<compile_context>
chip_gen: v6e
topology: v6e:2x2x1
jax: 0.10.0
libtpu: 0.0.40
codegen_flags: <defaults>
</compile_context>

<pallas_src>
import math

import jax
import jax.numpy as jnp
from jax import lax
from jax.experimental import pallas as pl
from jax.experimental.pallas import tpu as pltpu

# ----------------------------- config ---------------------------------------
BATCH = 2
SEQ = 8
NUM_HEADS = 4
HEAD_DIM = 8
HIDDEN = NUM_HEADS * HEAD_DIM          # 32
INTERMEDIATE = 64
NUM_LAYERS = 8
RMS_EPS = 1e-6
ROPE_THETA = 10000.0
TOKENS = BATCH * SEQ                   # 16 rows processed at once


# ----------------------------- kernel ---------------------------------------
def fused_decoder_stack_kernel(x_ref, cos_ref, sin_ref, mask_ref,
                               rms1_ref, wqkv_ref, wo_ref,
                               rms2_ref, wgu_ref, wd_ref,
                               out_ref):
    """One invocation runs all 8 decoder layers on the resident activations.

    Shapes (all resident in VMEM, ~200 KB total):
      x_ref    : [T, H]          f32   (T = B*S = 16, H = 32)
      cos/sin  : [T, H]          f32   (RoPE tables tiled over batch & heads)
      mask_ref : [T, T]          f32   additive block-diagonal causal mask
      rms1/2   : [L, 1, H]       f32
      wqkv_ref : [L, H, 5H]      bf16  = [Wq*scale | Wk | Wv | Wq*scale@R | Wk@R]
      wo_ref   : [L, NH, D, H]   bf16  (Wo split per head)
      wgu_ref  : [L, H, 2I]      bf16  = [Wgate | Wup]
      wd_ref   : [L, I, H]       bf16
    """
    H, D, NH, I = HIDDEN, HEAD_DIM, NUM_HEADS, INTERMEDIATE

    x = x_ref[...]                      # [T, H] f32, stays resident across layers
    cos = cos_ref[...]
    sin = sin_ref[...]
    neg = mask_ref[...]                 # 0 where attendable, -1e30 elsewhere

    for l in range(NUM_LAYERS):         # static unroll: all indices constant
        # ---- input RMSNorm (f32) ----
        var = jnp.mean(x * x, axis=-1, keepdims=True)
        xn = x * lax.rsqrt(var + RMS_EPS) * rms1_ref[l]

        # ---- fused QKV + RoPE-rotation projection (bf16 MXU, f32 acc) ----
        proj = jnp.dot(xn.astype(jnp.bfloat16), wqkv_ref[l],
                       preferred_element_type=jnp.float32)        # [T, 5H]
        # RoPE:  rot(q) = q*cos + (q @ R)*sin   (R folded into the weights;
        # 1/sqrt(D) already folded into the Q columns)
        q = proj[:, 0:H] * cos + proj[:, 3 * H:4 * H] * sin        # [T, H]
        k = proj[:, H:2 * H] * cos + proj[:, 4 * H:5 * H] * sin    # [T, H]
        v = proj[:, 2 * H:3 * H]                                   # [T, H]

        # ---- head-batched attention (block-diagonal causal over batch) ----
        qh = jnp.stack([q[:, h * D:(h + 1) * D] for h in range(NH)],
                       axis=0).astype(jnp.bfloat16)                # [NH, T, D]
        kh = jnp.stack([k[:, h * D:(h + 1) * D] for h in range(NH)],
                       axis=0).astype(jnp.bfloat16)
        vh = jnp.stack([v[:, h * D:(h + 1) * D] for h in range(NH)],
                       axis=0).astype(jnp.bfloat16)

        s = jnp.einsum('hsd,htd->hst', qh, kh,
                       preferred_element_type=jnp.float32) + neg   # [NH, T, T]
        m = jnp.max(s, axis=-1, keepdims=True)
        p = jnp.exp(s - m)
        p = p * pl.reciprocal(jnp.sum(p, axis=-1, keepdims=True), approx=True)

        ctx = jnp.einsum('hst,htd->hsd', p.astype(jnp.bfloat16), vh,
                         preferred_element_type=jnp.float32)       # [NH, T, D]
        # Fold Wo per head and accumulate -> no head concatenate.
        attn = jnp.einsum('hsd,hdk->hsk', ctx.astype(jnp.bfloat16), wo_ref[l],
                          preferred_element_type=jnp.float32)      # [NH, T, H]
        h1 = x + jnp.sum(attn, axis=0)                             # residual

        # ---- post-attention RMSNorm + SwiGLU MLP (f32 elementwise) ----
        var2 = jnp.mean(h1 * h1, axis=-1, keepdims=True)
        hn = h1 * lax.rsqrt(var2 + RMS_EPS) * rms2_ref[l]
        gu = jnp.dot(hn.astype(jnp.bfloat16), wgu_ref[l],
                     preferred_element_type=jnp.float32)           # [T, 2I]
        g = gu[:, :I]
        u = gu[:, I:]
        act = g * (1.0 / (1.0 + jnp.exp(-g)))                      # SiLU
        mlp = jnp.dot((act * u).astype(jnp.bfloat16), wd_ref[l],
                      preferred_element_type=jnp.float32)          # [T, H]
        x = h1 + mlp                                               # residual

    out_ref[...] = x


# ----------------------------- wrapper ---------------------------------------
def _full_spec(shape):
    shape = tuple(int(d) for d in shape)
    return pl.BlockSpec(shape, lambda i: (0,) * len(shape))


def _cost_estimate(packed):
    t = TOKENS
    flops_layer = (
        2 * t * HIDDEN * 5 * HIDDEN                    # fused qkv + rope proj
        + NUM_HEADS * 2 * t * t * HEAD_DIM * 2         # qk^T and p@v
        + NUM_HEADS * 2 * t * HEAD_DIM * HIDDEN        # per-head Wo fold
        + 2 * t * HIDDEN * 2 * INTERMEDIATE            # gate/up
        + 2 * t * INTERMEDIATE * HIDDEN)               # down
    transc_layer = NUM_HEADS * t * t + t * INTERMEDIATE + 4 * t
    bytes_acc = sum(int(v.size) * v.dtype.itemsize for v in packed.values())
    bytes_acc += (4 * t * HIDDEN + t * t + t * HIDDEN) * 4   # x, out, cos, sin, mask
    return pl.CostEstimate(flops=NUM_LAYERS * flops_layer,
                           transcendentals=NUM_LAYERS * transc_layer,
                           bytes_accessed=bytes_acc)


@jax.jit
def fused_forward(x, packed, cos_full, sin_full, negmask):
    B, S, H = x.shape
    x2 = x.reshape(B * S, H)
    out = pl.pallas_call(
        fused_decoder_stack_kernel,
        out_shape=jax.ShapeDtypeStruct((B * S, H), jnp.float32),
        grid=(1,),
        in_specs=[
            _full_spec(x2.shape), _full_spec(cos_full.shape),
            _full_spec(sin_full.shape), _full_spec(negmask.shape),
            _full_spec(packed["rms1"].shape), _full_spec(packed["wqkv"].shape),
            _full_spec(packed["wo"].shape), _full_spec(packed["rms2"].shape),
            _full_spec(packed["wgu"].shape), _full_spec(packed["wd"].shape),
        ],
        out_specs=_full_spec((B * S, H)),
        compiler_params=pltpu.CompilerParams(
            dimension_semantics=("arbitrary",)),
        cost_estimate=_cost_estimate(packed),
    )(x2, cos_full, sin_full, negmask,
      packed["rms1"], packed["wqkv"], packed["wo"],
      packed["rms2"], packed["wgu"], packed["wd"])
    return out.reshape(B, S, H)


# ----------------------------- param / rope / mask setup ----------------------
def make_rope_tables(seq, head_dim, theta=ROPE_THETA):
    inv_freq = 1.0 / (theta ** (jnp.arange(0, head_dim, 2, dtype=jnp.float32)
                                / head_dim))
    pos = jnp.arange(seq, dtype=jnp.float32)            # position_ids 0..seq-1
    freqs = pos[:, None] * inv_freq[None, :]             # [S, D/2]
    emb = jnp.concatenate([freqs, freqs], axis=-1)       # [S, D]
    return jnp.cos(emb), jnp.sin(emb)


def make_layer_params(key):
    ks = jax.random.split(key, 7)
    std = 0.02
    return {
        "rms1": jnp.ones((1, HIDDEN), jnp.float32),
        "wq": std * jax.random.normal(ks[0], (HIDDEN, HIDDEN), jnp.float32),
        "wk": std * jax.random.normal(ks[1], (HIDDEN, HIDDEN), jnp.float32),
        "wv": std * jax.random.normal(ks[2], (HIDDEN, HIDDEN), jnp.float32),
        "wo": std * jax.random.normal(ks[3], (HIDDEN, HIDDEN), jnp.float32),
        "rms2": jnp.ones((1, HIDDEN), jnp.float32),
        "wg": std * jax.random.normal(ks[4], (HIDDEN, INTERMEDIATE), jnp.float32),
        "wu": std * jax.random.normal(ks[5], (HIDDEN, INTERMEDIATE), jnp.float32),
        "wd": std * jax.random.normal(ks[6], (INTERMEDIATE, HIDDEN), jnp.float32),
    }


def rotate_half_matrix():
    # Per-head signed permutation R with rotate_half(x) == x @ R, block-diagonal
    # over heads:  R_head = [[0, I], [-I, 0]].
    half = HEAD_DIM // 2
    eye = jnp.eye(half, dtype=jnp.float32)
    zero = jnp.zeros((half, half), jnp.float32)
    r_head = jnp.concatenate(
        [jnp.concatenate([zero, eye], axis=1),
         jnp.concatenate([-eye, zero], axis=1)], axis=0)          # [D, D]
    return jnp.kron(jnp.eye(NUM_HEADS, dtype=jnp.float32), r_head)  # [H, H]


def pack_layer_params(layer_params):
    scale = 1.0 / math.sqrt(HEAD_DIM)
    r = rotate_half_matrix()
    wqkv, wo, wgu, wd, rms1, rms2 = [], [], [], [], [], []
    for p in layer_params:
        wq_s = p["wq"] * scale                                     # fold 1/sqrt(D)
        wqkv.append(jnp.concatenate(
            [wq_s, p["wk"], p["wv"], wq_s @ r, p["wk"] @ r], axis=1))  # [H, 5H]
        wo.append(p["wo"].reshape(NUM_HEADS, HEAD_DIM, HIDDEN))        # [NH, D, H]
        wgu.append(jnp.concatenate([p["wg"], p["wu"]], axis=1))        # [H, 2I]
        wd.append(p["wd"])
        rms1.append(p["rms1"].reshape(1, HIDDEN))
        rms2.append(p["rms2"].reshape(1, HIDDEN))
    return {
        "rms1": jnp.stack(rms1).astype(jnp.float32),      # [L, 1, H]
        "wqkv": jnp.stack(wqkv).astype(jnp.bfloat16),     # [L, H, 5H]
        "wo":   jnp.stack(wo).astype(jnp.bfloat16),       # [L, NH, D, H]
        "rms2": jnp.stack(rms2).astype(jnp.float32),      # [L, 1, H]
        "wgu":  jnp.stack(wgu).astype(jnp.bfloat16),      # [L, H, 2I]
        "wd":   jnp.stack(wd).astype(jnp.bfloat16),       # [L, I, H]
    }


def make_block_causal_mask(batch, seq):
    idx = jnp.arange(batch * seq)
    ri, ci = idx[:, None], idx[None, :]
    allowed = (ri // seq == ci // seq) & (ci <= ri)       # same batch & causal
    return jnp.where(allowed, 0.0, -1e30).astype(jnp.float32)


# ----------------------------- pure-JAX reference ----------------------------
def reference_forward(x, layer_params, cos, sin):
    def rot_half(t):
        return jnp.concatenate([-t[..., HEAD_DIM // 2:], t[..., :HEAD_DIM // 2]],
                               axis=-1)
    B, S, H = x.shape
    causal = jnp.tril(jnp.ones((S, S), bool))
    for p in layer_params:
        var = jnp.mean(x * x, axis=-1, keepdims=True)
        xn = x * lax.rsqrt(var + RMS_EPS) * p["rms1"][0]
        q = (xn @ p["wq"]).reshape(B, S, NUM_HEADS, HEAD_DIM).transpose(0, 2, 1, 3)
        k = (xn @ p["wk"]).reshape(B, S, NUM_HEADS, HEAD_DIM).transpose(0, 2, 1, 3)
        v = (xn @ p["wv"]).reshape(B, S, NUM_HEADS, HEAD_DIM).transpose(0, 2, 1, 3)
        cb, sb = cos[None, None], sin[None, None]
        q = q * cb + rot_half(q) * sb
        k = k * cb + rot_half(k) * sb
        s = jnp.einsum('bhsd,bhtd->bhst', q, k) / math.sqrt(HEAD_DIM)
        s = jnp.where(causal, s, -1e30)
        pr = jax.nn.softmax(s, axis=-1)
        ctx = jnp.einsum('bhst,bhtd->bhsd', pr, v)
        ctx = ctx.transpose(0, 2, 1, 3).reshape(B, S, H)
        h1 = x + ctx @ p["wo"]
        var2 = jnp.mean(h1 * h1, axis=-1, keepdims=True)
        hn = h1 * lax.rsqrt(var2 + RMS_EPS) * p["rms2"][0]
        g = hn @ p["wg"]
        u = hn @ p["wu"]
        x = h1 + (g * jax.nn.sigmoid(g) * u) @ p["wd"]
    return x


# ----------------------------- main -------------------------------------------
if __name__ == "__main__":
    root = jax.random.PRNGKey(0)
    k_x, k_p = jax.random.split(root)

    x = jax.random.normal(k_x, (BATCH, SEQ, HIDDEN), jnp.float32)
    layer_keys = jax.random.split(k_p, NUM_LAYERS)
    layer_params = [make_layer_params(k) for k in layer_keys]
    cos, sin = make_rope_tables(SEQ, HEAD_DIM)

    packed = pack_layer_params(layer_params)
    cos_full = jnp.tile(cos, (BATCH, NUM_HEADS))          # [B*S, H]
    sin_full = jnp.tile(sin, (BATCH, NUM_HEADS))          # [B*S, H]
    negmask = make_block_causal_mask(BATCH, SEQ)          # [B*S, B*S]

    out = fused_forward(x, packed, cos_full, sin_full, negmask)
    out = jax.block_until_ready(out)

    assert out.shape == (BATCH, SEQ, HIDDEN)
    assert bool(jnp.all(jnp.isfinite(out)))

    ref = reference_forward(x, layer_params, cos, sin)
    max_err = float(jnp.max(jnp.abs(out - ref)))
    assert max_err < 5e-2, f"max abs error vs reference: {max_err}"

    print("KERNEL_OK")
</pallas_src>

<mosaic_0001>
module attributes {stable_mosaic.version = 11 : i64} {
  func.func @fused_decoder_stack_kernel(%arg0: i32, %arg1: memref<16x32xf32, #tpu.memory_space<vmem>>, %arg2: memref<16x32xf32, #tpu.memory_space<vmem>>, %arg3: memref<16x32xf32, #tpu.memory_space<vmem>>, %arg4: memref<16x16xf32, #tpu.memory_space<vmem>>, %arg5: memref<8x1x32xf32, #tpu.memory_space<vmem>>, %arg6: memref<8x32x160xbf16, #tpu.memory_space<vmem>>, %arg7: memref<8x4x8x32xbf16, #tpu.memory_space<vmem>>, %arg8: memref<8x1x32xf32, #tpu.memory_space<vmem>>, %arg9: memref<8x32x128xbf16, #tpu.memory_space<vmem>>, %arg10: memref<8x64x32xbf16, #tpu.memory_space<vmem>>, %arg11: memref<16x32xf32, #tpu.memory_space<vmem>>) attributes {dimension_semantics = [#tpu.dimension_semantics<arbitrary>], iteration_bounds = array<i64: 1>, scalar_prefetch = 0 : i64, scratch_operands = 0 : i64, tpu.core_type = #tpu.core_type<tc>, window_params = [{pipeline_mode = #tpu.pipeline_mode<synchronous>, transform_indices = @transform_0, window_bounds = array<i64: 16, 32>}, {pipeline_mode = #tpu.pipeline_mode<synchronous>, transform_indices = @transform_1, window_bounds = array<i64: 16, 32>}, {pipeline_mode = #tpu.pipeline_mode<synchronous>, transform_indices = @transform_2, window_bounds = array<i64: 16, 32>}, {pipeline_mode = #tpu.pipeline_mode<synchronous>, transform_indices = @transform_3, window_bounds = array<i64: 16, 16>}, {pipeline_mode = #tpu.pipeline_mode<synchronous>, transform_indices = @transform_4, window_bounds = array<i64: 8, 1, 32>}, {pipeline_mode = #tpu.pipeline_mode<synchronous>, transform_indices = @transform_5, window_bounds = array<i64: 8, 32, 160>}, {pipeline_mode = #tpu.pipeline_mode<synchronous>, transform_indices = @transform_6, window_bounds = array<i64: 8, 4, 8, 32>}, {pipeline_mode = #tpu.pipeline_mode<synchronous>, transform_indices = @transform_7, window_bounds = array<i64: 8, 1, 32>}, {pipeline_mode = #tpu.pipeline_mode<synchronous>, transform_indices = @transform_8, window_bounds = array<i64: 8, 32, 128>}, {pipeline_mode = #tpu.pipeline_mode<synchronous>, transform_indices = @transform_9, window_bounds = array<i64: 8, 64, 32>}, {pipeline_mode = #tpu.pipeline_mode<synchronous>, transform_indices = @transform_10, window_bounds = array<i64: 16, 32>}]} {
    %c0 = arith.constant 0 : index
    %c0_0 = arith.constant 0 : index
    %0 = vector.load %arg1[%c0, %c0_0] : memref<16x32xf32, #tpu.memory_space<vmem>>, vector<16x32xf32>
    %c0_1 = arith.constant 0 : index
    %c0_2 = arith.constant 0 : index
    %1 = vector.load %arg2[%c0_1, %c0_2] : memref<16x32xf32, #tpu.memory_space<vmem>>, vector<16x32xf32>
    %c0_3 = arith.constant 0 : index
    %c0_4 = arith.constant 0 : index
    %2 = vector.load %arg3[%c0_3, %c0_4] : memref<16x32xf32, #tpu.memory_space<vmem>>, vector<16x32xf32>
    %c0_5 = arith.constant 0 : index
    %c0_6 = arith.constant 0 : index
    %3 = vector.load %arg4[%c0_5, %c0_6] : memref<16x16xf32, #tpu.memory_space<vmem>>, vector<16x16xf32>
    %4 = arith.mulf %0, %0 : vector<16x32xf32>
    %cst = arith.constant dense<0.000000e+00> : vector<16xf32>
    %5 = vector.multi_reduction <add>, %4, %cst [1] : vector<16x32xf32> to vector<16xf32>
    %6 = vector.shape_cast %5 : vector<16xf32> to vector<16x1xf32>
    %cst_7 = arith.constant 3.200000e+01 : f32
    %7 = vector.broadcast %cst_7 : f32 to vector<16x1xf32>
    %8 = arith.divf %6, %7 : vector<16x1xf32>
    %cst_8 = arith.constant 9.99999997E-7 : f32
    %9 = vector.broadcast %cst_8 : f32 to vector<16x1xf32>
    %10 = arith.addf %8, %9 : vector<16x1xf32>
    %11 = math.rsqrt %10 : vector<16x1xf32>
    %12 = vector.broadcast %11 : vector<16x1xf32> to vector<16x32xf32>
    %13 = arith.mulf %0, %12 : vector<16x32xf32>
    %c0_9 = arith.constant 0 : index
    %c0_10 = arith.constant 0 : index
    %c0_11 = arith.constant 0 : index
    %14 = vector.load %arg5[%c0_9, %c0_10, %c0_11] : memref<8x1x32xf32, #tpu.memory_space<vmem>>, vector<1x1x32xf32>
    %15 = vector.shape_cast %14 : vector<1x1x32xf32> to vector<1x32xf32>
    %16 = vector.broadcast %15 : vector<1x32xf32> to vector<16x32xf32>
    %17 = arith.mulf %13, %16 : vector<16x32xf32>
    %18 = arith.truncf %17 : vector<16x32xf32> to vector<16x32xbf16>
    %c0_12 = arith.constant 0 : index
    %c0_13 = arith.constant 0 : index
    %c0_14 = arith.constant 0 : index
    %19 = vector.load %arg6[%c0_12, %c0_13, %c0_14] : memref<8x32x160xbf16, #tpu.memory_space<vmem>>, vector<1x32x160xbf16>
    %20 = vector.shape_cast %19 : vector<1x32x160xbf16> to vector<32x160xbf16>
    %cst_15 = arith.constant dense<0.000000e+00> : vector<16x160xf32>
    %21 = tpu.matmul %18, %20, %cst_15 {dimension_numbers = #tpu.dot_dimension_numbers<[1], [0], [0], [1], [0, 0, 1, 1], [], []>} : vector<16x32xbf16>, vector<32x160xbf16>, vector<16x160xf32> -> vector<16x160xf32>
    %22 = vector.extract_strided_slice %21 {offsets = [0, 0], sizes = [16, 32], strides = [1, 1]} : vector<16x160xf32> to vector<16x32xf32>
    %23 = arith.mulf %22, %1 : vector<16x32xf32>
    %24 = vector.extract_strided_slice %21 {offsets = [0, 96], sizes = [16, 32], strides = [1, 1]} : vector<16x160xf32> to vector<16x32xf32>
    %25 = arith.mulf %24, %2 : vector<16x32xf32>
    %26 = arith.addf %23, %25 : vector<16x32xf32>
    %27 = vector.extract_strided_slice %21 {offsets = [0, 32], sizes = [16, 32], strides = [1, 1]} : vector<16x160xf32> to vector<16x32xf32>
    %28 = arith.mulf %27, %1 : vector<16x32xf32>
    %29 = vector.extract_strided_slice %21 {offsets = [0, 128], sizes = [16, 32], strides = [1, 1]} : vector<16x160xf32> to vector<16x32xf32>
    %30 = arith.mulf %29, %2 : vector<16x32xf32>
    %31 = arith.addf %28, %30 : vector<16x32xf32>
    %32 = vector.extract_strided_slice %21 {offsets = [0, 64], sizes = [16, 32], strides = [1, 1]} : vector<16x160xf32> to vector<16x32xf32>
    %33 = vector.extract_strided_slice %26 {offsets = [0, 0], sizes = [16, 8], strides = [1, 1]} : vector<16x32xf32> to vector<16x8xf32>
    %34 = vector.extract_strided_slice %26 {offsets = [0, 8], sizes = [16, 8], strides = [1, 1]} : vector<16x32xf32> to vector<16x8xf32>
    %35 = vector.extract_strided_slice %26 {offsets = [0, 16], sizes = [16, 8], strides = [1, 1]} : vector<16x32xf32> to vector<16x8xf32>
    %36 = vector.extract_strided_slice %26 {offsets = [0, 24], sizes = [16, 8], strides = [1, 1]} : vector<16x32xf32> to vector<16x8xf32>
    %37 = vector.shape_cast %33 : vector<16x8xf32> to vector<1x16x8xf32>
    %38 = vector.shape_cast %34 : vector<16x8xf32> to vector<1x16x8xf32>
    %39 = vector.shape_cast %35 : vector<16x8xf32> to vector<1x16x8xf32>
    %40 = vector.shape_cast %36 : vector<16x8xf32> to vector<1x16x8xf32>
    %41 = tpu.concatenate %37, %38, %39, %40 in 0 : vector<1x16x8xf32>, vector<1x16x8xf32>, vector<1x16x8xf32>, vector<1x16x8xf32> -> vector<4x16x8xf32>
    %42 = arith.truncf %41 : vector<4x16x8xf32> to vector<4x16x8xbf16>
    %43 = vector.extract_strided_slice %31 {offsets = [0, 0], sizes = [16, 8], strides = [1, 1]} : vector<16x32xf32> to vector<16x8xf32>
    %44 = vector.extract_strided_slice %31 {offsets = [0, 8], sizes = [16, 8], strides = [1, 1]} : vector<16x32xf32> to vector<16x8xf32>
    %45 = vector.extract_strided_slice %31 {offsets = [0, 16], sizes = [16, 8], strides = [1, 1]} : vector<16x32xf32> to vector<16x8xf32>
    %46 = vector.extract_strided_slice %31 {offsets = [0, 24], sizes = [16, 8], strides = [1, 1]} : vector<16x32xf32> to vector<16x8xf32>
    %47 = vector.shape_cast %43 : vector<16x8xf32> to vector<1x16x8xf32>
    %48 = vector.shape_cast %44 : vector<16x8xf32> to vector<1x16x8xf32>
    %49 = vector.shape_cast %45 : vector<16x8xf32> to vector<1x16x8xf32>
    %50 = vector.shape_cast %46 : vector<16x8xf32> to vector<1x16x8xf32>
    %51 = tpu.concatenate %47, %48, %49, %50 in 0 : vector<1x16x8xf32>, vector<1x16x8xf32>, vector<1x16x8xf32>, vector<1x16x8xf32> -> vector<4x16x8xf32>
    %52 = arith.truncf %51 : vector<4x16x8xf32> to vector<4x16x8xbf16>
    %53 = vector.extract_strided_slice %32 {offsets = [0, 0], sizes = [16, 8], strides = [1, 1]} : vector<16x32xf32> to vector<16x8xf32>
    %54 = vector.extract_strided_slice %32 {offsets = [0, 8], sizes = [16, 8], strides = [1, 1]} : vector<16x32xf32> to vector<16x8xf32>
    %55 = vector.extract_strided_slice %32 {offsets = [0, 16], sizes = [16, 8], strides = [1, 1]} : vector<16x32xf32> to vector<16x8xf32>
    %56 = vector.extract_strided_slice %32 {offsets = [0, 24], sizes = [16, 8], strides = [1, 1]} : vector<16x32xf32> to vector<16x8xf32>
    %57 = vector.shape_cast %53 : vector<16x8xf32> to vector<1x16x8xf32>
    %58 = vector.shape_cast %54 : vector<16x8xf32> to vector<1x16x8xf32>
    %59 = vector.shape_cast %55 : vector<16x8xf32> to vector<1x16x8xf32>
    %60 = vector.shape_cast %56 : vector<16x8xf32> to vector<1x16x8xf32>
    %61 = tpu.concatenate %57, %58, %59, %60 in 0 : vector<1x16x8xf32>, vector<1x16x8xf32>, vector<1x16x8xf32>, vector<1x16x8xf32> -> vector<4x16x8xf32>
    %62 = arith.truncf %61 : vector<4x16x8xf32> to vector<4x16x8xbf16>
    "tpu.trace_start"() <{level = 10 : i32, message = "hsd,htd->hst"}> : () -> ()
    %cst_16 = arith.constant dense<0.000000e+00> : vector<4x16x16xf32>
    %63 = tpu.matmul %42, %52, %cst_16 {dimension_numbers = #tpu.dot_dimension_numbers<[2], [2], [1], [1], [0, 0, 0, 1, 1, 1], [0], [0]>} : vector<4x16x8xbf16>, vector<4x16x8xbf16>, vector<4x16x16xf32> -> vector<4x16x16xf32>
    "tpu.trace_stop"() : () -> ()
    %64 = vector.shape_cast %3 : vector<16x16xf32> to vector<1x16x16xf32>
    %65 = vector.broadcast %64 : vector<1x16x16xf32> to vector<4x16x16xf32>
    %66 = arith.addf %63, %65 : vector<4x16x16xf32>
    %cst_17 = arith.constant dense<0xFF800000> : vector<4x16xf32>
    %67 = vector.multi_reduction <maximumf>, %66, %cst_17 [2] : vector<4x16x16xf32> to vector<4x16xf32>
    %68 = vector.shape_cast %67 : vector<4x16xf32> to vector<4x16x1xf32>
    %69 = vector.broadcast %68 : vector<4x16x1xf32> to vector<4x16x16xf32>
    %70 = arith.subf %66, %69 : vector<4x16x16xf32>
    %71 = math.exp %70 : vector<4x16x16xf32>
    %cst_18 = arith.constant dense<0.000000e+00> : vector<4x16xf32>
    %72 = vector.multi_reduction <add>, %71, %cst_18 [2] : vector<4x16x16xf32> to vector<4x16xf32>
    %73 = vector.shape_cast %72 : vector<4x16xf32> to vector<4x16x1xf32>
    %74 = tpu.reciprocal %73 {approx = true} : vector<4x16x1xf32> -> vector<4x16x1xf32>
    %75 = vector.broadcast %74 : vector<4x16x1xf32> to vector<4x16x16xf32>
    %76 = arith.mulf %71, %75 : vector<4x16x16xf32>
    %77 = arith.truncf %76 : vector<4x16x16xf32> to vector<4x16x16xbf16>
    "tpu.trace_start"() <{level = 10 : i32, message = "hst,htd->hsd"}> : () -> ()
    %cst_19 = arith.constant dense<0.000000e+00> : vector<4x16x8xf32>
    %78 = tpu.matmul %77, %62, %cst_19 {dimension_numbers = #tpu.dot_dimension_numbers<[2], [1], [1], [2], [0, 0, 0, 1, 1, 2], [0], [0]>} : vector<4x16x16xbf16>, vector<4x16x8xbf16>, vector<4x16x8xf32> -> vector<4x16x8xf32>
    "tpu.trace_stop"() : () -> ()
    %79 = arith.truncf %78 : vector<4x16x8xf32> to vector<4x16x8xbf16>
    %c0_20 = arith.constant 0 : index
    %c0_21 = arith.constant 0 : index
    %c0_22 = arith.constant 0 : index
    %c0_23 = arith.constant 0 : index
    %80 = vector.load %arg7[%c0_20, %c0_21, %c0_22, %c0_23] : memref<8x4x8x32xbf16, #tpu.memory_space<vmem>>, vector<1x4x8x32xbf16>
    %81 = vector.shape_cast %80 : vector<1x4x8x32xbf16> to vector<4x8x32xbf16>
    "tpu.trace_start"() <{level = 10 : i32, message = "hsd,hdk->hsk"}> : () -> ()
    %cst_24 = arith.constant dense<0.000000e+00> : vector<4x16x32xf32>
    %82 = tpu.matmul %79, %81, %cst_24 {dimension_numbers = #tpu.dot_dimension_numbers<[2], [1], [1], [2], [0, 0, 0, 1, 1, 2], [0], [0]>} : vector<4x16x8xbf16>, vector<4x8x32xbf16>, vector<4x16x32xf32> -> vector<4x16x32xf32>
    "tpu.trace_stop"() : () -> ()
    %cst_25 = arith.constant dense<0.000000e+00> : vector<16x32xf32>
    %83 = vector.multi_reduction <add>, %82, %cst_25 [0] : vector<4x16x32xf32> to vector<16x32xf32>
    %84 = arith.addf %0, %83 : vector<16x32xf32>
    %85 = arith.mulf %84, %84 : vector<16x32xf32>
    %cst_26 = arith.constant dense<0.000000e+00> : vector<16xf32>
    %86 = vector.multi_reduction <add>, %85, %cst_26 [1] : vector<16x32xf32> to vector<16xf32>
    %87 = vector.shape_cast %86 : vector<16xf32> to vector<16x1xf32>
    %cst_27 = arith.constant 3.200000e+01 : f32
    %88 = vector.broadcast %cst_27 : f32 to vector<16x1xf32>
    %89 = arith.divf %87, %88 : vector<16x1xf32>
    %cst_28 = arith.constant 9.99999997E-7 : f32
    %90 = vector.broadcast %cst_28 : f32 to vector<16x1xf32>
    %91 = arith.addf %89, %90 : vector<16x1xf32>
    %92 = math.rsqrt %91 : vector<16x1xf32>
    %93 = vector.broadcast %92 : vector<16x1xf32> to vector<16x32xf32>
    %94 = arith.mulf %84, %93 : vector<16x32xf32>
    %c0_29 = arith.constant 0 : index
    %c0_30 = arith.constant 0 : index
    %c0_31 = arith.constant 0 : index
    %95 = vector.load %arg8[%c0_29, %c0_30, %c0_31] : memref<8x1x32xf32, #tpu.memory_space<vmem>>, vector<1x1x32xf32>
    %96 = vector.shape_cast %95 : vector<1x1x32xf32> to vector<1x32xf32>
    %97 = vector.broadcast %96 : vector<1x32xf32> to vector<16x32xf32>
    %98 = arith.mulf %94, %97 : vector<16x32xf32>
    %99 = arith.truncf %98 : vector<16x32xf32> to vector<16x32xbf16>
    %c0_32 = arith.constant 0 : index
    %c0_33 = arith.constant 0 : index
    %c0_34 = arith.constant 0 : index
    %100 = vector.load %arg9[%c0_32, %c0_33, %c0_34] : memref<8x32x128xbf16, #tpu.memory_space<vmem>>, vector<1x32x128xbf16>
    %101 = vector.shape_cast %100 : vector<1x32x128xbf16> to vector<32x128xbf16>
    %cst_35 = arith.constant dense<0.000000e+00> : vector<16x128xf32>
    %102 = tpu.matmul %99, %101, %cst_35 {dimension_numbers = #tpu.dot_dimension_numbers<[1], [0], [0], [1], [0, 0, 1, 1], [], []>} : vector<16x32xbf16>, vector<32x128xbf16>, vector<16x128xf32> -> vector<16x128xf32>
    %103 = vector.extract_strided_slice %102 {offsets = [0, 0], sizes = [16, 64], strides = [1, 1]} : vector<16x128xf32> to vector<16x64xf32>
    %104 = vector.extract_strided_slice %102 {offsets = [0, 64], sizes = [16, 64], strides = [1, 1]} : vector<16x128xf32> to vector<16x64xf32>
    %cst_36 = arith.constant 0.000000e+00 : f32
    %105 = vector.broadcast %cst_36 : f32 to vector<16x64xf32>
    %106 = arith.subf %105, %103 : vector<16x64xf32>
    %107 = math.exp %106 : vector<16x64xf32>
    %cst_37 = arith.constant 1.000000e+00 : f32
    %108 = vector.broadcast %cst_37 : f32 to vector<16x64xf32>
    %109 = arith.addf %108, %107 : vector<16x64xf32>
    %cst_38 = arith.constant 1.000000e+00 : f32
    %110 = vector.broadcast %cst_38 : f32 to vector<16x64xf32>
    %111 = arith.divf %110, %109 : vector<16x64xf32>
    %112 = arith.mulf %103, %111 : vector<16x64xf32>
    %113 = arith.mulf %112, %104 : vector<16x64xf32>
    %114 = arith.truncf %113 : vector<16x64xf32> to vector<16x64xbf16>
    %c0_39 = arith.constant 0 : index
    %c0_40 = arith.constant 0 : index
    %c0_41 = arith.constant 0 : index
    %115 = vector.load %arg10[%c0_39, %c0_40, %c0_41] : memref<8x64x32xbf16, #tpu.memory_space<vmem>>, vector<1x64x32xbf16>
    %116 = vector.shape_cast %115 : vector<1x64x32xbf16> to vector<64x32xbf16>
    %cst_42 = arith.constant dense<0.000000e+00> : vector<16x32xf32>
    %117 = tpu.matmul %114, %116, %cst_42 {dimension_numbers = #tpu.dot_dimension_numbers<[1], [0], [0], [1], [0, 0, 1, 1], [], []>} : vector<16x64xbf16>, vector<64x32xbf16>, vector<16x32xf32> -> vector<16x32xf32>
    %118 = arith.addf %84, %117 : vector<16x32xf32>
    %119 = arith.mulf %118, %118 : vector<16x32xf32>
    %cst_43 = arith.constant dense<0.000000e+00> : vector<16xf32>
    %120 = vector.multi_reduction <add>, %119, %cst_43 [1] : vector<16x32xf32> to vector<16xf32>
    %121 = vector.shape_cast %120 : vector<16xf32> to vector<16x1xf32>
    %cst_44 = arith.constant 3.200000e+01 : f32
    %122 = vector.broadcast %cst_44 : f32 to vector<16x1xf32>
    %123 = arith.divf %121, %122 : vector<16x1xf32>
    %cst_45 = arith.constant 9.99999997E-7 : f32
    %124 = vector.broadcast %cst_45 : f32 to vector<16x1xf32>
    %125 = arith.addf %123, %124 : vector<16x1xf32>
    %126 = math.rsqrt %125 : vector<16x1xf32>
    %127 = vector.broadcast %126 : vector<16x1xf32> to vector<16x32xf32>
    %128 = arith.mulf %118, %127 : vector<16x32xf32>
    %c1 = arith.constant 1 : index
    %c0_46 = arith.constant 0 : index
    %c0_47 = arith.constant 0 : index
    %129 = vector.load %arg5[%c1, %c0_46, %c0_47] : memref<8x1x32xf32, #tpu.memory_space<vmem>>, vector<1x1x32xf32>
    %130 = vector.shape_cast %129 : vector<1x1x32xf32> to vector<1x32xf32>
    %131 = vector.broadcast %130 : vector<1x32xf32> to vector<16x32xf32>
    %132 = arith.mulf %128, %131 : vector<16x32xf32>
    %133 = arith.truncf %132 : vector<16x32xf32> to vector<16x32xbf16>
    %c1_48 = arith.constant 1 : index
    %c0_49 = arith.constant 0 : index
    %c0_50 = arith.constant 0 : index
    %134 = vector.load %arg6[%c1_48, %c0_49, %c0_50] : memref<8x32x160xbf16, #tpu.memory_space<vmem>>, vector<1x32x160xbf16>
    %135 = vector.shape_cast %134 : vector<1x32x160xbf16> to vector<32x160xbf16>
    %cst_51 = arith.constant dense<0.000000e+00> : vector<16x160xf32>
    %136 = tpu.matmul %133, %135, %cst_51 {dimension_numbers = #tpu.dot_dimension_numbers<[1], [0], [0], [1], [0, 0, 1, 1], [], []>} : vector<16x32xbf16>, vector<32x160xbf16>, vector<16x160xf32> -> vector<16x160xf32>
    %137 = vector.extract_strided_slice %136 {offsets = [0, 0], sizes = [16, 32], strides = [1, 1]} : vector<16x160xf32> to vector<16x32xf32>
    %138 = arith.mulf %137, %1 : vector<16x32xf32>
    %139 = vector.extract_strided_slice %136 {offsets = [0, 96], sizes = [16, 32], strides = [1, 1]} : vector<16x160xf32> to vector<16x32xf32>
    %140 = arith.mulf %139, %2 : vector<16x32xf32>
    %141 = arith.addf %138, %140 : vector<16x32xf32>
    %142 = vector.extract_strided_slice %136 {offsets = [0, 32], sizes = [16, 32], strides = [1, 1]} : vector<16x160xf32> to vector<16x32xf32>
    %143 = arith.mulf %142, %1 : vector<16x32xf32>
    %144 = vector.extract_strided_slice %136 {offsets = [0, 128], sizes = [16, 32], strides = [1, 1]} : vector<16x160xf32> to vector<16x32xf32>
    %145 = arith.mulf %144, %2 : vector<16x32xf32>
    %146 = arith.addf %143, %145 : vector<16x32xf32>
    %147 = vector.extract_strided_slice %136 {offsets = [0, 64], sizes = [16, 32], strides = [1, 1]} : vector<16x160xf32> to vector<16x32xf32>
    %148 = vector.extract_strided_slice %141 {offsets = [0, 0], sizes = [16, 8], strides = [1, 1]} : vector<16x32xf32> to vector<16x8xf32>
    %149 = vector.extract_strided_slice %141 {offsets = [0, 8], sizes = [16, 8], strides = [1, 1]} : vector<16x32xf32> to vector<16x8xf32>
    %150 = vector.extract_strided_slice %141 {offsets = [0, 16], sizes = [16, 8], strides = [1, 1]} : vector<16x32xf32> to vector<16x8xf32>
    %151 = vector.extract_strided_slice %141 {offsets = [0, 24], sizes = [16, 8], strides = [1, 1]} : vector<16x32xf32> to vector<16x8xf32>
    %152 = vector.shape_cast %148 : vector<16x8xf32> to vector<1x16x8xf32>
    %153 = vector.shape_cast %149 : vector<16x8xf32> to vector<1x16x8xf32>
    %154 = vector.shape_cast %150 : vector<16x8xf32> to vector<1x16x8xf32>
    %155 = vector.shape_cast %151 : vector<16x8xf32> to vector<1x16x8xf32>
    %156 = tpu.concatenate %152, %153, %154, %155 in 0 : vector<1x16x8xf32>, vector<1x16x8xf32>, vector<1x16x8xf32>, vector<1x16x8xf32> -> vector<4x16x8xf32>
    %157 = arith.truncf %156 : vector<4x16x8xf32> to vector<4x16x8xbf16>
    %158 = vector.extract_strided_slice %146 {offsets = [0, 0], sizes = [16, 8], strides = [1, 1]} : vector<16x32xf32> to vector<16x8xf32>
    %159 = vector.extract_strided_slice %146 {offsets = [0, 8], sizes = [16, 8], strides = [1, 1]} : vector<16x32xf32> to vector<16x8xf32>
    %160 = vector.extract_strided_slice %146 {offsets = [0, 16], sizes = [16, 8], strides = [1, 1]} : vector<16x32xf32> to vector<16x8xf32>
    %161 = vector.extract_strided_slice %146 {offsets = [0, 24], sizes = [16, 8], strides = [1, 1]} : vector<16x32xf32> to vector<16x8xf32>
    %162 = vector.shape_cast %158 : vector<16x8xf32> to vector<1x16x8xf32>
    %163 = vector.shape_cast %159 : vector<16x8xf32> to vector<1x16x8xf32>
    %164 = vector.shape_cast %160 : vector<16x8xf32> to vector<1x16x8xf32>
    %165 = vector.shape_cast %161 : vector<16x8xf32> to vector<1x16x8xf32>
    %166 = tpu.concatenate %162, %163, %164, %165 in 0 : vector<1x16x8xf32>, vector<1x16x8xf32>, vector<1x16x8xf32>, vector<1x16x8xf32> -> vector<4x16x8xf32>
    %167 = arith.truncf %166 : vector<4x16x8xf32> to vector<4x16x8xbf16>
    %168 = vector.extract_strided_slice %147 {offsets = [0, 0], sizes = [16, 8], strides = [1, 1]} : vector<16x32xf32> to vector<16x8xf32>
    %169 = vector.extract_strided_slice %147 {offsets = [0, 8], sizes = [16, 8], strides = [1, 1]} : vector<16x32xf32> to vector<16x8xf32>
    %170 = vector.extract_strided_slice %147 {offsets = [0, 16], sizes = [16, 8], strides = [1, 1]} : vector<16x32xf32> to vector<16x8xf32>
    %171 = vector.extract_strided_slice %147 {offsets = [0, 24], sizes = [16, 8], strides = [1, 1]} : vector<16x32xf32> to vector<16x8xf32>
    %172 = vector.shape_cast %168 : vector<16x8xf32> to vector<1x16x8xf32>
    %173 = vector.shape_cast %169 : vector<16x8xf32> to vector<1x16x8xf32>
    %174 = vector.shape_cast %170 : vector<16x8xf32> to vector<1x16x8xf32>
    %175 = vector.shape_cast %171 : vector<16x8xf32> to vector<1x16x8xf32>
    %176 = tpu.concatenate %172, %173, %174, %175 in 0 : vector<1x16x8xf32>, vector<1x16x8xf32>, vector<1x16x8xf32>, vector<1x16x8xf32> -> vector<4x16x8xf32>
    %177 = arith.truncf %176 : vector<4x16x8xf32> to vector<4x16x8xbf16>
    "tpu.trace_start"() <{level = 10 : i32, message = "hsd,htd->hst"}> : () -> ()
    %cst_52 = arith.constant dense<0.000000e+00> : vector<4x16x16xf32>
    %178 = tpu.matmul %157, %167, %cst_52 {dimension_numbers = #tpu.dot_dimension_numbers<[2], [2], [1], [1], [0, 0, 0, 1, 1, 1], [0], [0]>} : vector<4x16x8xbf16>, vector<4x16x8xbf16>, vector<4x16x16xf32> -> vector<4x16x16xf32>
    "tpu.trace_stop"() : () -> ()
    %179 = vector.shape_cast %3 : vector<16x16xf32> to vector<1x16x16xf32>
    %180 = vector.broadcast %179 : vector<1x16x16xf32> to vector<4x16x16xf32>
    %181 = arith.addf %178, %180 : vector<4x16x16xf32>
    %cst_53 = arith.constant dense<0xFF800000> : vector<4x16xf32>
    %182 = vector.multi_reduction <maximumf>, %181, %cst_53 [2] : vector<4x16x16xf32> to vector<4x16xf32>
    %183 = vector.shape_cast %182 : vector<4x16xf32> to vector<4x16x1xf32>
    %184 = vector.broadcast %183 : vector<4x16x1xf32> to vector<4x16x16xf32>
    %185 = arith.subf %181, %184 : vector<4x16x16xf32>
    %186 = math.exp %185 : vector<4x16x16xf32>
    %cst_54 = arith.constant dense<0.000000e+00> : vector<4x16xf32>
    %187 = vector.multi_reduction <add>, %186, %cst_54 [2] : vector<4x16x16xf32> to vector<4x16xf32>
    %188 = vector.shape_cast %187 : vector<4x16xf32> to vector<4x16x1xf32>
    %189 = tpu.reciprocal %188 {approx = true} : vector<4x16x1xf32> -> vector<4x16x1xf32>
    %190 = vector.broadcast %189 : vector<4x16x1xf32> to vector<4x16x16xf32>
    %191 = arith.mulf %186, %190 : vector<4x16x16xf32>
    %192 = arith.truncf %191 : vector<4x16x16xf32> to vector<4x16x16xbf16>
    "tpu.trace_start"() <{level = 10 : i32, message = "hst,htd->hsd"}> : () -> ()
    %cst_55 = arith.constant dense<0.000000e+00> : vector<4x16x8xf32>
    %193 = tpu.matmul %192, %177, %cst_55 {dimension_numbers = #tpu.dot_dimension_numbers<[2], [1], [1], [2], [0, 0, 0, 1, 1, 2], [0], [0]>} : vector<4x16x16xbf16>, vector<4x16x8xbf16>, vector<4x16x8xf32> -> vector<4x16x8xf32>
    "tpu.trace_stop"() : () -> ()
    %194 = arith.truncf %193 : vector<4x16x8xf32> to vector<4x16x8xbf16>
    %c1_56 = arith.constant 1 : index
    %c0_57 = arith.constant 0 : index
    %c0_58 = arith.constant 0 : index
    %c0_59 = arith.constant 0 : index
    %195 = vector.load %arg7[%c1_56, %c0_57, %c0_58, %c0_59] : memref<8x4x8x32xbf16, #tpu.memory_space<vmem>>, vector<1x4x8x32xbf16>
    %196 = vector.shape_cast %195 : vector<1x4x8x32xbf16> to vector<4x8x32xbf16>
    "tpu.trace_start"() <{level = 10 : i32, message = "hsd,hdk->hsk"}> : () -> ()
    %cst_60 = arith.constant dense<0.000000e+00> : vector<4x16x32xf32>
    %197 = tpu.matmul %194, %196, %cst_60 {dimension_numbers = #tpu.dot_dimension_numbers<[2], [1], [1], [2], [0, 0, 0, 1, 1, 2], [0], [0]>} : vector<4x16x8xbf16>, vector<4x8x32xbf16>, vector<4x16x32xf32> -> vector<4x16x32xf32>
    "tpu.trace_stop"() : () -> ()
    %cst_61 = arith.constant dense<0.000000e+00> : vector<16x32xf32>
    %198 = vector.multi_reduction <add>, %197, %cst_61 [0] : vector<4x16x32xf32> to vector<16x32xf32>
    %199 = arith.addf %118, %198 : vector<16x32xf32>
    %200 = arith.mulf %199, %199 : vector<16x32xf32>
    %cst_62 = arith.constant dense<0.000000e+00> : vector<16xf32>
    %201 = vector.multi_reduction <add>, %200, %cst_62 [1] : vector<16x32xf32> to vector<16xf32>
    %202 = vector.shape_cast %201 : vector<16xf32> to vector<16x1xf32>
    %cst_63 = arith.constant 3.200000e+01 : f32
    %203 = vector.broadcast %cst_63 : f32 to vector<16x1xf32>
    %204 = arith.divf %202, %203 : vector<16x1xf32>
    %cst_64 = arith.constant 9.99999997E-7 : f32
    %205 = vector.broadcast %cst_64 : f32 to vector<16x1xf32>
    %206 = arith.addf %204, %205 : vector<16x1xf32>
    %207 = math.rsqrt %206 : vector<16x1xf32>
    %208 = vector.broadcast %207 : vector<16x1xf32> to vector<16x32xf32>
    %209 = arith.mulf %199, %208 : vector<16x32xf32>
    %c1_65 = arith.constant 1 : index
    %c0_66 = arith.constant 0 : index
    %c0_67 = arith.constant 0 : index
    %210 = vector.load %arg8[%c1_65, %c0_66, %c0_67] : memref<8x1x32xf32, #tpu.memory_space<vmem>>, vector<1x1x32xf32>
    %211 = vector.shape_cast %210 : vector<1x1x32xf32> to vector<1x32xf32>
    %212 = vector.broadcast %211 : vector<1x32xf32> to vector<16x32xf32>
    %213 = arith.mulf %209, %212 : vector<16x32xf32>
    %214 = arith.truncf %213 : vector<16x32xf32> to vector<16x32xbf16>
    %c1_68 = arith.constant 1 : index
    %c0_69 = arith.constant 0 : index
    %c0_70 = arith.constant 0 : index
    %215 = vector.load %arg9[%c1_68, %c0_69, %c0_70] : memref<8x32x128xbf16, #tpu.memory_space<vmem>>, vector<1x32x128xbf16>
    %216 = vector.shape_cast %215 : vector<1x32x128xbf16> to vector<32x128xbf16>
    %cst_71 = arith.constant dense<0.000000e+00> : vector<16x128xf32>
    %217 = tpu.matmul %214, %216, %cst_71 {dimension_numbers = #tpu.dot_dimension_numbers<[1], [0], [0], [1], [0, 0, 1, 1], [], []>} : vector<16x32xbf16>, vector<32x128xbf16>, vector<16x128xf32> -> vector<16x128xf32>
    %218 = vector.extract_strided_slice %217 {offsets = [0, 0], sizes = [16, 64], strides = [1, 1]} : vector<16x128xf32> to vector<16x64xf32>
    %219 = vector.extract_strided_slice %217 {offsets = [0, 64], sizes = [16, 64], strides = [1, 1]} : vector<16x128xf32> to vector<16x64xf32>
    %cst_72 = arith.constant 0.000000e+00 : f32
    %220 = vector.broadcast %cst_72 : f32 to vector<16x64xf32>
    %221 = arith.subf %220, %218 : vector<16x64xf32>
    %222 = math.exp %221 : vector<16x64xf32>
    %cst_73 = arith.constant 1.000000e+00 : f32
    %223 = vector.broadcast %cst_73 : f32 to vector<16x64xf32>
    %224 = arith.addf %223, %222 : vector<16x64xf32>
    %cst_74 = arith.constant 1.000000e+00 : f32
    %225 = vector.broadcast %cst_74 : f32 to vector<16x64xf32>
    %226 = arith.divf %225, %224 : vector<16x64xf32>
    %227 = arith.mulf %218, %226 : vector<16x64xf32>
    %228 = arith.mulf %227, %219 : vector<16x64xf32>
    %229 = arith.truncf %228 : vector<16x64xf32> to vector<16x64xbf16>
    %c1_75 = arith.constant 1 : index
    %c0_76 = arith.constant 0 : index
    %c0_77 = arith.constant 0 : index
    %230 = vector.load %arg10[%c1_75, %c0_76, %c0_77] : memref<8x64x32xbf16, #tpu.memory_space<vmem>>, vector<1x64x32xbf16>
    %231 = vector.shape_cast %230 : vector<1x64x32xbf16> to vector<64x32xbf16>
    %cst_78 = arith.constant dense<0.000000e+00> : vector<16x32xf32>
    %232 = tpu.matmul %229, %231, %cst_78 {dimension_numbers = #tpu.dot_dimension_numbers<[1], [0], [0], [1], [0, 0, 1, 1], [], []>} : vector<16x64xbf16>, vector<64x32xbf16>, vector<16x32xf32> -> vector<16x32xf32>
    %233 = arith.addf %199, %232 : vector<16x32xf32>
    %234 = arith.mulf %233, %233 : vector<16x32xf32>
    %cst_79 = arith.constant dense<0.000000e+00> : vector<16xf32>
    %235 = vector.multi_reduction <add>, %234, %cst_79 [1] : vector<16x32xf32> to vector<16xf32>
    %236 = vector.shape_cast %235 : vector<16xf32> to vector<16x1xf32>
    %cst_80 = arith.constant 3.200000e+01 : f32
    %237 = vector.broadcast %cst_80 : f32 to vector<16x1xf32>
    %238 = arith.divf %236, %237 : vector<16x1xf32>
    %cst_81 = arith.constant 9.99999997E-7 : f32
    %239 = vector.broadcast %cst_81 : f32 to vector<16x1xf32>
    %240 = arith.addf %238, %239 : vector<16x1xf32>
    %241 = math.rsqrt %240 : vector<16x1xf32>
    %242 = vector.broadcast %241 : vector<16x1xf32> to vector<16x32xf32>
    %243 = arith.mulf %233, %242 : vector<16x32xf32>
    %c2 = arith.constant 2 : index
    %c0_82 = arith.constant 0 : index
    %c0_83 = arith.constant 0 : index
    %244 = vector.load %arg5[%c2, %c0_82, %c0_83] : memref<8x1x32xf32, #tpu.memory_space<vmem>>, vector<1x1x32xf32>
    %245 = vector.shape_cast %244 : vector<1x1x32xf32> to vector<1x32xf32>
    %246 = vector.broadcast %245 : vector<1x32xf32> to vector<16x32xf32>
    %247 = arith.mulf %243, %246 : vector<16x32xf32>
    %248 = arith.truncf %247 : vector<16x32xf32> to vector<16x32xbf16>
    %c2_84 = arith.constant 2 : index
    %c0_85 = arith.constant 0 : index
    %c0_86 = arith.constant 0 : index
    %249 = vector.load %arg6[%c2_84, %c0_85, %c0_86] : memref<8x32x160xbf16, #tpu.memory_space<vmem>>, vector<1x32x160xbf16>
    %250 = vector.shape_cast %249 : vector<1x32x160xbf16> to vector<32x160xbf16>
    %cst_87 = arith.constant dense<0.000000e+00> : vector<16x160xf32>
    %251 = tpu.matmul %248, %250, %cst_87 {dimension_numbers = #tpu.dot_dimension_numbers<[1], [0], [0], [1], [0, 0, 1, 1], [], []>} : vector<16x32xbf16>, vector<32x160xbf16>, vector<16x160xf32> -> vector<16x160xf32>
    %252 = vector.extract_strided_slice %251 {offsets = [0, 0], sizes = [16, 32], strides = [1, 1]} : vector<16x160xf32> to vector<16x32xf32>
    %253 = arith.mulf %252, %1 : vector<16x32xf32>
    %254 = vector.extract_strided_slice %251 {offsets = [0, 96], sizes = [16, 32], strides = [1, 1]} : vector<16x160xf32> to vector<16x32xf32>
    %255 = arith.mulf %254, %2 : vector<16x32xf32>
    %256 = arith.addf %253, %255 : vector<16x32xf32>
    %257 = vector.extract_strided_slice %251 {offsets = [0, 32], sizes = [16, 32], strides = [1, 1]} : vector<16x160xf32> to vector<16x32xf32>
    %258 = arith.mulf %257, %1 : vector<16x32xf32>
    %259 = vector.extract_strided_slice %251 {offsets = [0, 128], sizes = [16, 32], strides = [1, 1]} : vector<16x160xf32> to vector<16x32xf32>
    %260 = arith.mulf %259, %2 : vector<16x32xf32>
    %261 = arith.addf %258, %260 : vector<16x32xf32>
    %262 = vector.extract_strided_slice %251 {offsets = [0, 64], sizes = [16, 32], strides = [1, 1]} : vector<16x160xf32> to vector<16x32xf32>
    %263 = vector.extract_strided_slice %256 {offsets = [0, 0], sizes = [16, 8], strides = [1, 1]} : vector<16x32xf32> to vector<16x8xf32>
    %264 = vector.extract_strided_slice %256 {offsets = [0, 8], sizes = [16, 8], strides = [1, 1]} : vector<16x32xf32> to vector<16x8xf32>
    %265 = vector.extract_strided_slice %256 {offsets = [0, 16], sizes = [16, 8], strides = [1, 1]} : vector<16x32xf32> to vector<16x8xf32>
    %266 = vector.extract_strided_slice %256 {offsets = [0, 24], sizes = [16, 8], strides = [1, 1]} : vector<16x32xf32> to vector<16x8xf32>
    %267 = vector.shape_cast %263 : vector<16x8xf32> to vector<1x16x8xf32>
    %268 = vector.shape_cast %264 : vector<16x8xf32> to vector<1x16x8xf32>
    %269 = vector.shape_cast %265 : vector<16x8xf32> to vector<1x16x8xf32>
    %270 = vector.shape_cast %266 : vector<16x8xf32> to vector<1x16x8xf32>
    %271 = tpu.concatenate %267, %268, %269, %270 in 0 : vector<1x16x8xf32>, vector<1x16x8xf32>, vector<1x16x8xf32>, vector<1x16x8xf32> -> vector<4x16x8xf32>
    %272 = arith.truncf %271 : vector<4x16x8xf32> to vector<4x16x8xbf16>
    %273 = vector.extract_strided_slice %261 {offsets = [0, 0], sizes = [16, 8], strides = [1, 1]} : vector<16x32xf32> to vector<16x8xf32>
    %274 = vector.extract_strided_slice %261 {offsets = [0, 8], sizes = [16, 8], strides = [1, 1]} : vector<16x32xf32> to vector<16x8xf32>
    %275 = vector.extract_strided_slice %261 {offsets = [0, 16], sizes = [16, 8], strides = [1, 1]} : vector<16x32xf32> to vector<16x8xf32>
    %276 = vector.extract_strided_slice %261 {offsets = [0, 24], sizes = [16, 8], strides = [1, 1]} : vector<16x32xf32> to vector<16x8xf32>
    %277 = vector.shape_cast %273 : vector<16x8xf32> to vector<1x16x8xf32>
    %278 = vector.shape_cast %274 : vector<16x8xf32> to vector<1x16x8xf32>
    %279 = vector.shape_cast %275 : vector<16x8xf32> to vector<1x16x8xf32>
    %280 = vector.shape_cast %276 : vector<16x8xf32> to vector<1x16x8xf32>
    %281 = tpu.concatenate %277, %278, %279, %280 in 0 : vector<1x16x8xf32>, vector<1x16x8xf32>, vector<1x16x8xf32>, vector<1x16x8xf32> -> vector<4x16x8xf32>
    %282 = arith.truncf %281 : vector<4x16x8xf32> to vector<4x16x8xbf16>
    %283 = vector.extract_strided_slice %262 {offsets = [0, 0], sizes = [16, 8], strides = [1, 1]} : vector<16x32xf32> to vector<16x8xf32>
    %284 = vector.extract_strided_slice %262 {offsets = [0, 8], sizes = [16, 8], strides = [1, 1]} : vector<16x32xf32> to vector<16x8xf32>
    %285 = vector.extract_strided_slice %262 {offsets = [0, 16], sizes = [16, 8], strides = [1, 1]} : vector<16x32xf32> to vector<16x8xf32>
    %286 = vector.extract_strided_slice %262 {offsets = [0, 24], sizes = [16, 8], strides = [1, 1]} : vector<16x32xf32> to vector<16x8xf32>
    %287 = vector.shape_cast %283 : vector<16x8xf32> to vector<1x16x8xf32>
    %288 = vector.shape_cast %284 : vector<16x8xf32> to vector<1x16x8xf32>
    %289 = vector.shape_cast %285 : vector<16x8xf32> to vector<1x16x8xf32>
    %290 = vector.shape_cast %286 : vector<16x8xf32> to vector<1x16x8xf32>
    %291 = tpu.concatenate %287, %288, %289, %290 in 0 : vector<1x16x8xf32>, vector<1x16x8xf32>, vector<1x16x8xf32>, vector<1x16x8xf32> -> vector<4x16x8xf32>
    %292 = arith.truncf %291 : vector<4x16x8xf32> to vector<4x16x8xbf16>
    "tpu.trace_start"() <{level = 10 : i32, message = "hsd,htd->hst"}> : () -> ()
    %cst_88 = arith.constant dense<0.000000e+00> : vector<4x16x16xf32>
    %293 = tpu.matmul %272, %282, %cst_88 {dimension_numbers = #tpu.dot_dimension_numbers<[2], [2], [1], [1], [0, 0, 0, 1, 1, 1], [0], [0]>} : vector<4x16x8xbf16>, vector<4x16x8xbf16>, vector<4x16x16xf32> -> vector<4x16x16xf32>
    "tpu.trace_stop"() : () -> ()
    %294 = vector.shape_cast %3 : vector<16x16xf32> to vector<1x16x16xf32>
    %295 = vector.broadcast %294 : vector<1x16x16xf32> to vector<4x16x16xf32>
    %296 = arith.addf %293, %295 : vector<4x16x16xf32>
    %cst_89 = arith.constant dense<0xFF800000> : vector<4x16xf32>
    %297 = vector.multi_reduction <maximumf>, %296, %cst_89 [2] : vector<4x16x16xf32> to vector<4x16xf32>
    %298 = vector.shape_cast %297 : vector<4x16xf32> to vector<4x16x1xf32>
    %299 = vector.broadcast %298 : vector<4x16x1xf32> to vector<4x16x16xf32>
    %300 = arith.subf %296, %299 : vector<4x16x16xf32>
    %301 = math.exp %300 : vector<4x16x16xf32>
    %cst_90 = arith.constant dense<0.000000e+00> : vector<4x16xf32>
    %302 = vector.multi_reduction <add>, %301, %cst_90 [2] : vector<4x16x16xf32> to vector<4x16xf32>
    %303 = vector.shape_cast %302 : vector<4x16xf32> to vector<4x16x1xf32>
    %304 = tpu.reciprocal %303 {approx = true} : vector<4x16x1xf32> -> vector<4x16x1xf32>
    %305 = vector.broadcast %304 : vector<4x16x1xf32> to vector<4x16x16xf32>
    %306 = arith.mulf %301, %305 : vector<4x16x16xf32>
    %307 = arith.truncf %306 : vector<4x16x16xf32> to vector<4x16x16xbf16>
    "tpu.trace_start"() <{level = 10 : i32, message = "hst,htd->hsd"}> : () -> ()
    %cst_91 = arith.constant dense<0.000000e+00> : vector<4x16x8xf32>
    %308 = tpu.matmul %307, %292, %cst_91 {dimension_numbers = #tpu.dot_dimension_numbers<[2], [1], [1], [2], [0, 0, 0, 1, 1, 2], [0], [0]>} : vector<4x16x16xbf16>, vector<4x16x8xbf16>, vector<4x16x8xf32> -> vector<4x16x8xf32>
    "tpu.trace_stop"() : () -> ()
    %309 = arith.truncf %308 : vector<4x16x8xf32> to vector<4x16x8xbf16>
    %c2_92 = arith.constant 2 : index
    %c0_93 = arith.constant 0 : index
    %c0_94 = arith.constant 0 : index
    %c0_95 = arith.constant 0 : index
    %310 = vector.load %arg7[%c2_92, %c0_93, %c0_94, %c0_95] : memref<8x4x8x32xbf16, #tpu.memory_space<vmem>>, vector<1x4x8x32xbf16>
    %311 = vector.shape_cast %310 : vector<1x4x8x32xbf16> to vector<4x8x32xbf16>
    "tpu.trace_start"() <{level = 10 : i32, message = "hsd,hdk->hsk"}> : () -> ()
    %cst_96 = arith.constant dense<0.000000e+00> : vector<4x16x32xf32>
    %312 = tpu.matmul %309, %311, %cst_96 {dimension_numbers = #tpu.dot_dimension_numbers<[2], [1], [1], [2], [0, 0, 0, 1, 1, 2], [0], [0]>} : vector<4x16x8xbf16>, vector<4x8x32xbf16>, vector<4x16x32xf32> -> vector<4x16x32xf32>
    "tpu.trace_stop"() : () -> ()
    %cst_97 = arith.constant dense<0.000000e+00> : vector<16x32xf32>
    %313 = vector.multi_reduction <add>, %312, %cst_97 [0] : vector<4x16x32xf32> to vector<16x32xf32>
    %314 = arith.addf %233, %313 : vector<16x32xf32>
    %315 = arith.mulf %314, %314 : vector<16x32xf32>
    %cst_98 = arith.constant dense<0.000000e+00> : vector<16xf32>
    %316 = vector.multi_reduction <add>, %315, %cst_98 [1] : vector<16x32xf32> to vector<16xf32>
    %317 = vector.shape_cast %316 : vector<16xf32> to vector<16x1xf32>
    %cst_99 = arith.constant 3.200000e+01 : f32
    %318 = vector.broadcast %cst_99 : f32 to vector<16x1xf32>
    %319 = arith.divf %317, %318 : vector<16x1xf32>
    %cst_100 = arith.constant 9.99999997E-7 : f32
    %320 = vector.broadcast %cst_100 : f32 to vector<16x1xf32>
    %321 = arith.addf %319, %320 : vector<16x1xf32>
    %322 = math.rsqrt %321 : vector<16x1xf32>
    %323 = vector.broadcast %322 : vector<16x1xf32> to vector<16x32xf32>
    %324 = arith.mulf %314, %323 : vector<16x32xf32>
    %c2_101 = arith.constant 2 : index
    %c0_102 = arith.constant 0 : index
    %c0_103 = arith.constant 0 : index
    %325 = vector.load %arg8[%c2_101, %c0_102, %c0_103] : memref<8x1x32xf32, #tpu.memory_space<vmem>>, vector<1x1x32xf32>
    %326 = vector.shape_cast %325 : vector<1x1x32xf32> to vector<1x32xf32>
    %327 = vector.broadcast %326 : vector<1x32xf32> to vector<16x32xf32>
    %328 = arith.mulf %324, %327 : vector<16x32xf32>
    %329 = arith.truncf %328 : vector<16x32xf32> to vector<16x32xbf16>
    %c2_104 = arith.constant 2 : index
    %c0_105 = arith.constant 0 : index
    %c0_106 = arith.constant 0 : index
    %330 = vector.load %arg9[%c2_104, %c0_105, %c0_106] : memref<8x32x128xbf16, #tpu.memory_space<vmem>>, vector<1x32x128xbf16>
    %331 = vector.shape_cast %330 : vector<1x32x128xbf16> to vector<32x128xbf16>
    %cst_107 = arith.constant dense<0.000000e+00> : vector<16x128xf32>
    %332 = tpu.matmul %329, %331, %cst_107 {dimension_numbers = #tpu.dot_dimension_numbers<[1], [0], [0], [1], [0, 0, 1, 1], [], []>} : vector<16x32xbf16>, vector<32x128xbf16>, vector<16x128xf32> -> vector<16x128xf32>
    %333 = vector.extract_strided_slice %332 {offsets = [0, 0], sizes = [16, 64], strides = [1, 1]} : vector<16x128xf32> to vector<16x64xf32>
    %334 = vector.extract_strided_slice %332 {offsets = [0, 64], sizes = [16, 64], strides = [1, 1]} : vector<16x128xf32> to vector<16x64xf32>
    %cst_108 = arith.constant 0.000000e+00 : f32
    %335 = vector.broadcast %cst_108 : f32 to vector<16x64xf32>
    %336 = arith.subf %335, %333 : vector<16x64xf32>
    %337 = math.exp %336 : vector<16x64xf32>
    %cst_109 = arith.constant 1.000000e+00 : f32
    %338 = vector.broadcast %cst_109 : f32 to vector<16x64xf32>
    %339 = arith.addf %338, %337 : vector<16x64xf32>
    %cst_110 = arith.constant 1.000000e+00 : f32
    %340 = vector.broadcast %cst_110 : f32 to vector<16x64xf32>
    %341 = arith.divf %340, %339 : vector<16x64xf32>
    %342 = arith.mulf %333, %341 : vector<16x64xf32>
    %343 = arith.mulf %342, %334 : vector<16x64xf32>
    %344 = arith.truncf %343 : vector<16x64xf32> to vector<16x64xbf16>
    %c2_111 = arith.constant 2 : index
    %c0_112 = arith.constant 0 : index
    %c0_113 = arith.constant 0 : index
    %345 = vector.load %arg10[%c2_111, %c0_112, %c0_113] : memref<8x64x32xbf16, #tpu.memory_space<vmem>>, vector<1x64x32xbf16>
    %346 = vector.shape_cast %345 : vector<1x64x32xbf16> to vector<64x32xbf16>
    %cst_114 = arith.constant dense<0.000000e+00> : vector<16x32xf32>
    %347 = tpu.matmul %344, %346, %cst_114 {dimension_numbers = #tpu.dot_dimension_numbers<[1], [0], [0], [1], [0, 0, 1, 1], [], []>} : vector<16x64xbf16>, vector<64x32xbf16>, vector<16x32xf32> -> vector<16x32xf32>
    %348 = arith.addf %314, %347 : vector<16x32xf32>
    %349 = arith.mulf %348, %348 : vector<16x32xf32>
    %cst_115 = arith.constant dense<0.000000e+00> : vector<16xf32>
    %350 = vector.multi_reduction <add>, %349, %cst_115 [1] : vector<16x32xf32> to vector<16xf32>
    %351 = vector.shape_cast %350 : vector<16xf32> to vector<16x1xf32>
    %cst_116 = arith.constant 3.200000e+01 : f32
    %352 = vector.broadcast %cst_116 : f32 to vector<16x1xf32>
    %353 = arith.divf %351, %352 : vector<16x1xf32>
    %cst_117 = arith.constant 9.99999997E-7 : f32
    %354 = vector.broadcast %cst_117 : f32 to vector<16x1xf32>
    %355 = arith.addf %353, %354 : vector<16x1xf32>
    %356 = math.rsqrt %355 : vector<16x1xf32>
    %357 = vector.broadcast %356 : vector<16x1xf32> to vector<16x32xf32>
    %358 = arith.mulf %348, %357 : vector<16x32xf32>
    %c3 = arith.constant 3 : index
    %c0_118 = arith.constant 0 : index
    %c0_119 = arith.constant 0 : index
    %359 = vector.load %arg5[%c3, %c0_118, %c0_119] : memref<8x1x32xf32, #tpu.memory_space<vmem>>, vector<1x1x32xf32>
    %360 = vector.shape_cast %359 : vector<1x1x32xf32> to vector<1x32xf32>
    %361 = vector.broadcast %360 : vector<1x32xf32> to vector<16x32xf32>
    %362 = arith.mulf %358, %361 : vector<16x32xf32>
    %363 = arith.truncf %362 : vector<16x32xf32> to vector<16x32xbf16>
    %c3_120 = arith.constant 3 : index
    %c0_121 = arith.constant 0 : index
    %c0_122 = arith.constant 0 : index
    %364 = vector.load %arg6[%c3_120, %c0_121, %c0_122] : memref<8x32x160xbf16, #tpu.memory_space<vmem>>, vector<1x32x160xbf16>
    %365 = vector.shape_cast %364 : vector<1x32x160xbf16> to vector<32x160xbf16>
    %cst_123 = arith.constant dense<0.000000e+00> : vector<16x160xf32>
    %366 = tpu.matmul %363, %365, %cst_123 {dimension_numbers = #tpu.dot_dimension_numbers<[1], [0], [0], [1], [0, 0, 1, 1], [], []>} : vector<16x32xbf16>, vector<32x160xbf16>, vector<16x160xf32> -> vector<16x160xf32>
    %367 = vector.extract_strided_slice %366 {offsets = [0, 0], sizes = [16, 32], strides = [1, 1]} : vector<16x160xf32> to vector<16x32xf32>
    %368 = arith.mulf %367, %1 : vector<16x32xf32>
    %369 = vector.extract_strided_slice %366 {offsets = [0, 96], sizes = [16, 32], strides = [1, 1]} : vector<16x160xf32> to vector<16x32xf32>
    %370 = arith.mulf %369, %2 : vector<16x32xf32>
    %371 = arith.addf %368, %370 : vector<16x32xf32>
    %372 = vector.extract_strided_slice %366 {offsets = [0, 32], sizes = [16, 32], strides = [1, 1]} : vector<16x160xf32> to vector<16x32xf32>
    %373 = arith.mulf %372, %1 : vector<16x32xf32>
    %374 = vector.extract_strided_slice %366 {offsets = [0, 128], sizes = [16, 32], strides = [1, 1]} : vector<16x160xf32> to vector<16x32xf32>
    %375 = arith.mulf %374, %2 : vector<16x32xf32>
    %376 = arith.addf %373, %375 : vector<16x32xf32>
    %377 = vector.extract_strided_slice %366 {offsets = [0, 64], sizes = [16, 32], strides = [1, 1]} : vector<16x160xf32> to vector<16x32xf32>
    %378 = vector.extract_strided_slice %371 {offsets = [0, 0], sizes = [16, 8], strides = [1, 1]} : vector<16x32xf32> to vector<16x8xf32>
    %379 = vector.extract_strided_slice %371 {offsets = [0, 8], sizes = [16, 8], strides = [1, 1]} : vector<16x32xf32> to vector<16x8xf32>
    %380 = vector.extract_strided_slice %371 {offsets = [0, 16], sizes = [16, 8], strides = [1, 1]} : vector<16x32xf32> to vector<16x8xf32>
    %381 = vector.extract_strided_slice %371 {offsets = [0, 24], sizes = [16, 8], strides = [1, 1]} : vector<16x32xf32> to vector<16x8xf32>
    %382 = vector.shape_cast %378 : vector<16x8xf32> to vector<1x16x8xf32>
    %383 = vector.shape_cast %379 : vector<16x8xf32> to vector<1x16x8xf32>
    %384 = vector.shape_cast %380 : vector<16x8xf32> to vector<1x16x8xf32>
    %385 = vector.shape_cast %381 : vector<16x8xf32> to vector<1x16x8xf32>
    %386 = tpu.concatenate %382, %383, %384, %385 in 0 : vector<1x16x8xf32>, vector<1x16x8xf32>, vector<1x16x8xf32>, vector<1x16x8xf32> -> vector<4x16x8xf32>
    %387 = arith.truncf %386 : vector<4x16x8xf32> to vector<4x16x8xbf16>
    %388 = vector.extract_strided_slice %376 {offsets = [0, 0], sizes = [16, 8], strides = [1, 1]} : vector<16x32xf32> to vector<16x8xf32>
    %389 = vector.extract_strided_slice %376 {offsets = [0, 8], sizes = [16, 8], strides = [1, 1]} : vector<16x32xf32> to vector<16x8xf32>
    %390 = vector.extract_strided_slice %376 {offsets = [0, 16], sizes = [16, 8], strides = [1, 1]} : vector<16x32xf32> to vector<16x8xf32>
    %391 = vector.extract_strided_slice %376 {offsets = [0, 24], sizes = [16, 8], strides = [1, 1]} : vector<16x32xf32> to vector<16x8xf32>
    %392 = vector.shape_cast %388 : vector<16x8xf32> to vector<1x16x8xf32>
    %393 = vector.shape_cast %389 : vector<16x8xf32> to vector<1x16x8xf32>
    %394 = vector.shape_cast %390 : vector<16x8xf32> to vector<1x16x8xf32>
    %395 = vector.shape_cast %391 : vector<16x8xf32> to vector<1x16x8xf32>
    %396 = tpu.concatenate %392, %393, %394, %395 in 0 : vector<1x16x8xf32>, vector<1x16x8xf32>, vector<1x16x8xf32>, vector<1x16x8xf32> -> vector<4x16x8xf32>
    %397 = arith.truncf %396 : vector<4x16x8xf32> to vector<4x16x8xbf16>
    %398 = vector.extract_strided_slice %377 {offsets = [0, 0], sizes = [16, 8], strides = [1, 1]} : vector<16x32xf32> to vector<16x8xf32>
    %399 = vector.extract_strided_slice %377 {offsets = [0, 8], sizes = [16, 8], strides = [1, 1]} : vector<16x32xf32> to vector<16x8xf32>
    %400 = vector.extract_strided_slice %377 {offsets = [0, 16], sizes = [16, 8], strides = [1, 1]} : vector<16x32xf32> to vector<16x8xf32>
    %401 = vector.extract_strided_slice %377 {offsets = [0, 24], sizes = [16, 8], strides = [1, 1]} : vector<16x32xf32> to vector<16x8xf32>
    %402 = vector.shape_cast %398 : vector<16x8xf32> to vector<1x16x8xf32>
    %403 = vector.shape_cast %399 : vector<16x8xf32> to vector<1x16x8xf32>
    %404 = vector.shape_cast %400 : vector<16x8xf32> to vector<1x16x8xf32>
    %405 = vector.shape_cast %401 : vector<16x8xf32> to vector<1x16x8xf32>
    %406 = tpu.concatenate %402, %403, %404, %405 in 0 : vector<1x16x8xf32>, vector<1x16x8xf32>, vector<1x16x8xf32>, vector<1x16x8xf32> -> vector<4x16x8xf32>
    %407 = arith.truncf %406 : vector<4x16x8xf32> to vector<4x16x8xbf16>
    "tpu.trace_start"() <{level = 10 : i32, message = "hsd,htd->hst"}> : () -> ()
    %cst_124 = arith.constant dense<0.000000e+00> : vector<4x16x16xf32>
    %408 = tpu.matmul %387, %397, %cst_124 {dimension_numbers = #tpu.dot_dimension_numbers<[2], [2], [1], [1], [0, 0, 0, 1, 1, 1], [0], [0]>} : vector<4x16x8xbf16>, vector<4x16x8xbf16>, vector<4x16x16xf32> -> vector<4x16x16xf32>
    "tpu.trace_stop"() : () -> ()
    %409 = vector.shape_cast %3 : vector<16x16xf32> to vector<1x16x16xf32>
    %410 = vector.broadcast %409 : vector<1x16x16xf32> to vector<4x16x16xf32>
    %411 = arith.addf %408, %410 : vector<4x16x16xf32>
    %cst_125 = arith.constant dense<0xFF800000> : vector<4x16xf32>
    %412 = vector.multi_reduction <maximumf>, %411, %cst_125 [2] : vector<4x16x16xf32> to vector<4x16xf32>
    %413 = vector.shape_cast %412 : vector<4x16xf32> to vector<4x16x1xf32>
    %414 = vector.broadcast %413 : vector<4x16x1xf32> to vector<4x16x16xf32>
    %415 = arith.subf %411, %414 : vector<4x16x16xf32>
    %416 = math.exp %415 : vector<4x16x16xf32>
    %cst_126 = arith.constant dense<0.000000e+00> : vector<4x16xf32>
    %417 = vector.multi_reduction <add>, %416, %cst_126 [2] : vector<4x16x16xf32> to vector<4x16xf32>
    %418 = vector.shape_cast %417 : vector<4x16xf32> to vector<4x16x1xf32>
    %419 = tpu.reciprocal %418 {approx = true} : vector<4x16x1xf32> -> vector<4x16x1xf32>
    %420 = vector.broadcast %419 : vector<4x16x1xf32> to vector<4x16x16xf32>
    %421 = arith.mulf %416, %420 : vector<4x16x16xf32>
    %422 = arith.truncf %421 : vector<4x16x16xf32> to vector<4x16x16xbf16>
    "tpu.trace_start"() <{level = 10 : i32, message = "hst,htd->hsd"}> : () -> ()
    %cst_127 = arith.constant dense<0.000000e+00> : vector<4x16x8xf32>
    %423 = tpu.matmul %422, %407, %cst_127 {dimension_numbers = #tpu.dot_dimension_numbers<[2], [1], [1], [2], [0, 0, 0, 1, 1, 2], [0], [0]>} : vector<4x16x16xbf16>, vector<4x16x8xbf16>, vector<4x16x8xf32> -> vector<4x16x8xf32>
    "tpu.trace_stop"() : () -> ()
    %424 = arith.truncf %423 : vector<4x16x8xf32> to vector<4x16x8xbf16>
    %c3_128 = arith.constant 3 : index
    %c0_129 = arith.constant 0 : index
    %c0_130 = arith.constant 0 : index
    %c0_131 = arith.constant 0 : index
    %425 = vector.load %arg7[%c3_128, %c0_129, %c0_130, %c0_131] : memref<8x4x8x32xbf16, #tpu.memory_space<vmem>>, vector<1x4x8x32xbf16>
    %426 = vector.shape_cast %425 : vector<1x4x8x32xbf16> to vector<4x8x32xbf16>
    "tpu.trace_start"() <{level = 10 : i32, message = "hsd,hdk->hsk"}> : () -> ()
    %cst_132 = arith.constant dense<0.000000e+00> : vector<4x16x32xf32>
    %427 = tpu.matmul %424, %426, %cst_132 {dimension_numbers = #tpu.dot_dimension_numbers<[2], [1], [1], [2], [0, 0, 0, 1, 1, 2], [0], [0]>} : vector<4x16x8xbf16>, vector<4x8x32xbf16>, vector<4x16x32xf32> -> vector<4x16x32xf32>
    "tpu.trace_stop"() : () -> ()
    %cst_133 = arith.constant dense<0.000000e+00> : vector<16x32xf32>
    %428 = vector.multi_reduction <add>, %427, %cst_133 [0] : vector<4x16x32xf32> to vector<16x32xf32>
    %429 = arith.addf %348, %428 : vector<16x32xf32>
    %430 = arith.mulf %429, %429 : vector<16x32xf32>
    %cst_134 = arith.constant dense<0.000000e+00> : vector<16xf32>
    %431 = vector.multi_reduction <add>, %430, %cst_134 [1] : vector<16x32xf32> to vector<16xf32>
    %432 = vector.shape_cast %431 : vector<16xf32> to vector<16x1xf32>
    %cst_135 = arith.constant 3.200000e+01 : f32
    %433 = vector.broadcast %cst_135 : f32 to vector<16x1xf32>
    %434 = arith.divf %432, %433 : vector<16x1xf32>
    %cst_136 = arith.constant 9.99999997E-7 : f32
    %435 = vector.broadcast %cst_136 : f32 to vector<16x1xf32>
    %436 = arith.addf %434, %435 : vector<16x1xf32>
    %437 = math.rsqrt %436 : vector<16x1xf32>
    %438 = vector.broadcast %437 : vector<16x1xf32> to vector<16x32xf32>
    %439 = arith.mulf %429, %438 : vector<16x32xf32>
    %c3_137 = arith.constant 3 : index
    %c0_138 = arith.constant 0 : index
    %c0_139 = arith.constant 0 : index
    %440 = vector.load %arg8[%c3_137, %c0_138, %c0_139] : memref<8x1x32xf32, #tpu.memory_space<vmem>>, vector<1x1x32xf32>
    %441 = vector.shape_cast %440 : vector<1x1x32xf32> to vector<1x32xf32>
    %442 = vector.broadcast %441 : vector<1x32xf32> to vector<16x32xf32>
    %443 = arith.mulf %439, %442 : vector<16x32xf32>
    %444 = arith.truncf %443 : vector<16x32xf32> to vector<16x32xbf16>
    %c3_140 = arith.constant 3 : index
    %c0_141 = arith.constant 0 : index
    %c0_142 = arith.constant 0 : index
    %445 = vector.load %arg9[%c3_140, %c0_141, %c0_142] : memref<8x32x128xbf16, #tpu.memory_space<vmem>>, vector<1x32x128xbf16>
    %446 = vector.shape_cast %445 : vector<1x32x128xbf16> to vector<32x128xbf16>
    %cst_143 = arith.constant dense<0.000000e+00> : vector<16x128xf32>
    %447 = tpu.matmul %444, %446, %cst_143 {dimension_numbers = #tpu.dot_dimension_numbers<[1], [0], [0], [1], [0, 0, 1, 1], [], []>} : vector<16x32xbf16>, vector<32x128xbf16>, vector<16x128xf32> -> vector<16x128xf32>
    %448 = vector.extract_strided_slice %447 {offsets = [0, 0], sizes = [16, 64], strides = [1, 1]} : vector<16x128xf32> to vector<16x64xf32>
    %449 = vector.extract_strided_slice %447 {offsets = [0, 64], sizes = [16, 64], strides = [1, 1]} : vector<16x128xf32> to vector<16x64xf32>
    %cst_144 = arith.constant 0.000000e+00 : f32
    %450 = vector.broadcast %cst_144 : f32 to vector<16x64xf32>
    %451 = arith.subf %450, %448 : vector<16x64xf32>
    %452 = math.exp %451 : vector<16x64xf32>
    %cst_145 = arith.constant 1.000000e+00 : f32
    %453 = vector.broadcast %cst_145 : f32 to vector<16x64xf32>
    %454 = arith.addf %453, %452 : vector<16x64xf32>
    %cst_146 = arith.constant 1.000000e+00 : f32
    %455 = vector.broadcast %cst_146 : f32 to vector<16x64xf32>
    %456 = arith.divf %455, %454 : vector<16x64xf32>
    %457 = arith.mulf %448, %456 : vector<16x64xf32>
    %458 = arith.mulf %457, %449 : vector<16x64xf32>
    %459 = arith.truncf %458 : vector<16x64xf32> to vector<16x64xbf16>
    %c3_147 = arith.constant 3 : index
    %c0_148 = arith.constant 0 : index
    %c0_149 = arith.constant 0 : index
    %460 = vector.load %arg10[%c3_147, %c0_148, %c0_149] : memref<8x64x32xbf16, #tpu.memory_space<vmem>>, vector<1x64x32xbf16>
    %461 = vector.shape_cast %460 : vector<1x64x32xbf16> to vector<64x32xbf16>
    %cst_150 = arith.constant dense<0.000000e+00> : vector<16x32xf32>
    %462 = tpu.matmul %459, %461, %cst_150 {dimension_numbers = #tpu.dot_dimension_numbers<[1], [0], [0], [1], [0, 0, 1, 1], [], []>} : vector<16x64xbf16>, vector<64x32xbf16>, vector<16x32xf32> -> vector<16x32xf32>
    %463 = arith.addf %429, %462 : vector<16x32xf32>
    %464 = arith.mulf %463, %463 : vector<16x32xf32>
    %cst_151 = arith.constant dense<0.000000e+00> : vector<16xf32>
    %465 = vector.multi_reduction <add>, %464, %cst_151 [1] : vector<16x32xf32> to vector<16xf32>
    %466 = vector.shape_cast %465 : vector<16xf32> to vector<16x1xf32>
    %cst_152 = arith.constant 3.200000e+01 : f32
    %467 = vector.broadcast %cst_152 : f32 to vector<16x1xf32>
    %468 = arith.divf %466, %467 : vector<16x1xf32>
    %cst_153 = arith.constant 9.99999997E-7 : f32
    %469 = vector.broadcast %cst_153 : f32 to vector<16x1xf32>
    %470 = arith.addf %468, %469 : vector<16x1xf32>
    %471 = math.rsqrt %470 : vector<16x1xf32>
    %472 = vector.broadcast %471 : vector<16x1xf32> to vector<16x32xf32>
    %473 = arith.mulf %463, %472 : vector<16x32xf32>
    %c4 = arith.constant 4 : index
    %c0_154 = arith.constant 0 : index
    %c0_155 = arith.constant 0 : index
    %474 = vector.load %arg5[%c4, %c0_154, %c0_155] : memref<8x1x32xf32, #tpu.memory_space<vmem>>, vector<1x1x32xf32>
    %475 = vector.shape_cast %474 : vector<1x1x32xf32> to vector<1x32xf32>
    %476 = vector.broadcast %475 : vector<1x32xf32> to vector<16x32xf32>
    %477 = arith.mulf %473, %476 : vector<16x32xf32>
    %478 = arith.truncf %477 : vector<16x32xf32> to vector<16x32xbf16>
    %c4_156 = arith.constant 4 : index
    %c0_157 = arith.constant 0 : index
    %c0_158 = arith.constant 0 : index
    %479 = vector.load %arg6[%c4_156, %c0_157, %c0_158] : memref<8x32x160xbf16, #tpu.memory_space<vmem>>, vector<1x32x160xbf16>
    %480 = vector.shape_cast %479 : vector<1x32x160xbf16> to vector<32x160xbf16>
    %cst_159 = arith.constant dense<0.000000e+00> : vector<16x160xf32>
    %481 = tpu.matmul %478, %480, %cst_159 {dimension_numbers = #tpu.dot_dimension_numbers<[1], [0], [0], [1], [0, 0, 1, 1], [], []>} : vector<16x32xbf16>, vector<32x160xbf16>, vector<16x160xf32> -> vector<16x160xf32>
    %482 = vector.extract_strided_slice %481 {offsets = [0, 0], sizes = [16, 32], strides = [1, 1]} : vector<16x160xf32> to vector<16x32xf32>
    %483 = arith.mulf %482, %1 : vector<16x32xf32>
    %484 = vector.extract_strided_slice %481 {offsets = [0, 96], sizes = [16, 32], strides = [1, 1]} : vector<16x160xf32> to vector<16x32xf32>
    %485 = arith.mulf %484, %2 : vector<16x32xf32>
    %486 = arith.addf %483, %485 : vector<16x32xf32>
    %487 = vector.extract_strided_slice %481 {offsets = [0, 32], sizes = [16, 32], strides = [1, 1]} : vector<16x160xf32> to vector<16x32xf32>
    %488 = arith.mulf %487, %1 : vector<16x32xf32>
    %489 = vector.extract_strided_slice %481 {offsets = [0, 128], sizes = [16, 32], strides = [1, 1]} : vector<16x160xf32> to vector<16x32xf32>
    %490 = arith.mulf %489, %2 : vector<16x32xf32>
    %491 = arith.addf %488, %490 : vector<16x32xf32>
    %492 = vector.extract_strided_slice %481 {offsets = [0, 64], sizes = [16, 32], strides = [1, 1]} : vector<16x160xf32> to vector<16x32xf32>
    %493 = vector.extract_strided_slice %486 {offsets = [0, 0], sizes = [16, 8], strides = [1, 1]} : vector<16x32xf32> to vector<16x8xf32>
    %494 = vector.extract_strided_slice %486 {offsets = [0, 8], sizes = [16, 8], strides = [1, 1]} : vector<16x32xf32> to vector<16x8xf32>
    %495 = vector.extract_strided_slice %486 {offsets = [0, 16], sizes = [16, 8], strides = [1, 1]} : vector<16x32xf32> to vector<16x8xf32>
    %496 = vector.extract_strided_slice %486 {offsets = [0, 24], sizes = [16, 8], strides = [1, 1]} : vector<16x32xf32> to vector<16x8xf32>
    %497 = vector.shape_cast %493 : vector<16x8xf32> to vector<1x16x8xf32>
    %498 = vector.shape_cast %494 : vector<16x8xf32> to vector<1x16x8xf32>
    %499 = vector.shape_cast %495 : vector<16x8xf32> to vector<1x16x8xf32>
    %500 = vector.shape_cast %496 : vector<16x8xf32> to vector<1x16x8xf32>
    %501 = tpu.concatenate %497, %498, %499, %500 in 0 : vector<1x16x8xf32>, vector<1x16x8xf32>, vector<1x16x8xf32>, vector<1x16x8xf32> -> vector<4x16x8xf32>
    %502 = arith.truncf %501 : vector<4x16x8xf32> to vector<4x16x8xbf16>
    %503 = vector.extract_strided_slice %491 {offsets = [0, 0], sizes = [16, 8], strides = [1, 1]} : vector<16x32xf32> to vector<16x8xf32>
    %504 = vector.extract_strided_slice %491 {offsets = [0, 8], sizes = [16, 8], strides = [1, 1]} : vector<16x32xf32> to vector<16x8xf32>
    %505 = vector.extract_strided_slice %491 {offsets = [0, 16], sizes = [16, 8], strides = [1, 1]} : vector<16x32xf32> to vector<16x8xf32>
    %506 = vector.extract_strided_slice %491 {offsets = [0, 24], sizes = [16, 8], strides = [1, 1]} : vector<16x32xf32> to vector<16x8xf32>
    %507 = vector.shape_cast %503 : vector<16x8xf32> to vector<1x16x8xf32>
    %508 = vector.shape_cast %504 : vector<16x8xf32> to vector<1x16x8xf32>
    %509 = vector.shape_cast %505 : vector<16x8xf32> to vector<1x16x8xf32>
    %510 = vector.shape_cast %506 : vector<16x8xf32> to vector<1x16x8xf32>
    %511 = tpu.concatenate %507, %508, %509, %510 in 0 : vector<1x16x8xf32>, vector<1x16x8xf32>, vector<1x16x8xf32>, vector<1x16x8xf32> -> vector<4x16x8xf32>
    %512 = arith.truncf %511 : vector<4x16x8xf32> to vector<4x16x8xbf16>
    %513 = vector.extract_strided_slice %492 {offsets = [0, 0], sizes = [16, 8], strides = [1, 1]} : vector<16x32xf32> to vector<16x8xf32>
    %514 = vector.extract_strided_slice %492 {offsets = [0, 8], sizes = [16, 8], strides = [1, 1]} : vector<16x32xf32> to vector<16x8xf32>
    %515 = vector.extract_strided_slice %492 {offsets = [0, 16], sizes = [16, 8], strides = [1, 1]} : vector<16x32xf32> to vector<16x8xf32>
    %516 = vector.extract_strided_slice %492 {offsets = [0, 24], sizes = [16, 8], strides = [1, 1]} : vector<16x32xf32> to vector<16x8xf32>
    %517 = vector.shape_cast %513 : vector<16x8xf32> to vector<1x16x8xf32>
    %518 = vector.shape_cast %514 : vector<16x8xf32> to vector<1x16x8xf32>
    %519 = vector.shape_cast %515 : vector<16x8xf32> to vector<1x16x8xf32>
    %520 = vector.shape_cast %516 : vector<16x8xf32> to vector<1x16x8xf32>
    %521 = tpu.concatenate %517, %518, %519, %520 in 0 : vector<1x16x8xf32>, vector<1x16x8xf32>, vector<1x16x8xf32>, vector<1x16x8xf32> -> vector<4x16x8xf32>
    %522 = arith.truncf %521 : vector<4x16x8xf32> to vector<4x16x8xbf16>
    "tpu.trace_start"() <{level = 10 : i32, message = "hsd,htd->hst"}> : () -> ()
    %cst_160 = arith.constant dense<0.000000e+00> : vector<4x16x16xf32>
    %523 = tpu.matmul %502, %512, %cst_160 {dimension_numbers = #tpu.dot_dimension_numbers<[2], [2], [1], [1], [0, 0, 0, 1, 1, 1], [0], [0]>} : vector<4x16x8xbf16>, vector<4x16x8xbf16>, vector<4x16x16xf32> -> vector<4x16x16xf32>
    "tpu.trace_stop"() : () -> ()
    %524 = vector.shape_cast %3 : vector<16x16xf32> to vector<1x16x16xf32>
    %525 = vector.broadcast %524 : vector<1x16x16xf32> to vector<4x16x16xf32>
    %526 = arith.addf %523, %525 : vector<4x16x16xf32>
    %cst_161 = arith.constant dense<0xFF800000> : vector<4x16xf32>
    %527 = vector.multi_reduction <maximumf>, %526, %cst_161 [2] : vector<4x16x16xf32> to vector<4x16xf32>
    %528 = vector.shape_cast %527 : vector<4x16xf32> to vector<4x16x1xf32>
    %529 = vector.broadcast %528 : vector<4x16x1xf32> to vector<4x16x16xf32>
    %530 = arith.subf %526, %529 : vector<4x16x16xf32>
    %531 = math.exp %530 : vector<4x16x16xf32>
    %cst_162 = arith.constant dense<0.000000e+00> : vector<4x16xf32>
    %532 = vector.multi_reduction <add>, %531, %cst_162 [2] : vector<4x16x16xf32> to vector<4x16xf32>
    %533 = vector.shape_cast %532 : vector<4x16xf32> to vector<4x16x1xf32>
    %534 = tpu.reciprocal %533 {approx = true} : vector<4x16x1xf32> -> vector<4x16x1xf32>
    %535 = vector.broadcast %534 : vector<4x16x1xf32> to vector<4x16x16xf32>
    %536 = arith.mulf %531, %535 : vector<4x16x16xf32>
    %537 = arith.truncf %536 : vector<4x16x16xf32> to vector<4x16x16xbf16>
    "tpu.trace_start"() <{level = 10 : i32, message = "hst,htd->hsd"}> : () -> ()
    %cst_163 = arith.constant dense<0.000000e+00> : vector<4x16x8xf32>
    %538 = tpu.matmul %537, %522, %cst_163 {dimension_numbers = #tpu.dot_dimension_numbers<[2], [1], [1], [2], [0, 0, 0, 1, 1, 2], [0], [0]>} : vector<4x16x16xbf16>, vector<4x16x8xbf16>, vector<4x16x8xf32> -> vector<4x16x8xf32>
    "tpu.trace_stop"() : () -> ()
    %539 = arith.truncf %538 : vector<4x16x8xf32> to vector<4x16x8xbf16>
    %c4_164 = arith.constant 4 : index
    %c0_165 = arith.constant 0 : index
    %c0_166 = arith.constant 0 : index
    %c0_167 = arith.constant 0 : index
    %540 = vector.load %arg7[%c4_164, %c0_165, %c0_166, %c0_167] : memref<8x4x8x32xbf16, #tpu.memory_space<vmem>>, vector<1x4x8x32xbf16>
    %541 = vector.shape_cast %540 : vector<1x4x8x32xbf16> to vector<4x8x32xbf16>
    "tpu.trace_start"() <{level = 10 : i32, message = "hsd,hdk->hsk"}> : () -> ()
    %cst_168 = arith.constant dense<0.000000e+00> : vector<4x16x32xf32>
    %542 = tpu.matmul %539, %541, %cst_168 {dimension_numbers = #tpu.dot_dimension_numbers<[2], [1], [1], [2], [0, 0, 0, 1, 1, 2], [0], [0]>} : vector<4x16x8xbf16>, vector<4x8x32xbf16>, vector<4x16x32xf32> -> vector<4x16x32xf32>
    "tpu.trace_stop"() : () -> ()
    %cst_169 = arith.constant dense<0.000000e+00> : vector<16x32xf32>
    %543 = vector.multi_reduction <add>, %542, %cst_169 [0] : vector<4x16x32xf32> to vector<16x32xf32>
    %544 = arith.addf %463, %543 : vector<16x32xf32>
    %545 = arith.mulf %544, %544 : vector<16x32xf32>
    %cst_170 = arith.constant dense<0.000000e+00> : vector<16xf32>
    %546 = vector.multi_reduction <add>, %545, %cst_170 [1] : vector<16x32xf32> to vector<16xf32>
    %547 = vector.shape_cast %546 : vector<16xf32> to vector<16x1xf32>
    %cst_171 = arith.constant 3.200000e+01 : f32
    %548 = vector.broadcast %cst_171 : f32 to vector<16x1xf32>
    %549 = arith.divf %547, %548 : vector<16x1xf32>
    %cst_172 = arith.constant 9.99999997E-7 : f32
    %550 = vector.broadcast %cst_172 : f32 to vector<16x1xf32>
    %551 = arith.addf %549, %550 : vector<16x1xf32>
    %552 = math.rsqrt %551 : vector<16x1xf32>
    %553 = vector.broadcast %552 : vector<16x1xf32> to vector<16x32xf32>
    %554 = arith.mulf %544, %553 : vector<16x32xf32>
    %c4_173 = arith.constant 4 : index
    %c0_174 = arith.constant 0 : index
    %c0_175 = arith.constant 0 : index
    %555 = vector.load %arg8[%c4_173, %c0_174, %c0_175] : memref<8x1x32xf32, #tpu.memory_space<vmem>>, vector<1x1x32xf32>
    %556 = vector.shape_cast %555 : vector<1x1x32xf32> to vector<1x32xf32>
    %557 = vector.broadcast %556 : vector<1x32xf32> to vector<16x32xf32>
    %558 = arith.mulf %554, %557 : vector<16x32xf32>
    %559 = arith.truncf %558 : vector<16x32xf32> to vector<16x32xbf16>
    %c4_176 = arith.constant 4 : index
    %c0_177 = arith.constant 0 : index
    %c0_178 = arith.constant 0 : index
    %560 = vector.load %arg9[%c4_176, %c0_177, %c0_178] : memref<8x32x128xbf16, #tpu.memory_space<vmem>>, vector<1x32x128xbf16>
    %561 = vector.shape_cast %560 : vector<1x32x128xbf16> to vector<32x128xbf16>
    %cst_179 = arith.constant dense<0.000000e+00> : vector<16x128xf32>
    %562 = tpu.matmul %559, %561, %cst_179 {dimension_numbers = #tpu.dot_dimension_numbers<[1], [0], [0], [1], [0, 0, 1, 1], [], []>} : vector<16x32xbf16>, vector<32x128xbf16>, vector<16x128xf32> -> vector<16x128xf32>
    %563 = vector.extract_strided_slice %562 {offsets = [0, 0], sizes = [16, 64], strides = [1, 1]} : vector<16x128xf32> to vector<16x64xf32>
    %564 = vector.extract_strided_slice %562 {offsets = [0, 64], sizes = [16, 64], strides = [1, 1]} : vector<16x128xf32> to vector<16x64xf32>
    %cst_180 = arith.constant 0.000000e+00 : f32
    %565 = vector.broadcast %cst_180 : f32 to vector<16x64xf32>
    %566 = arith.subf %565, %563 : vector<16x64xf32>
    %567 = math.exp %566 : vector<16x64xf32>
    %cst_181 = arith.constant 1.000000e+00 : f32
    %568 = vector.broadcast %cst_181 : f32 to vector<16x64xf32>
    %569 = arith.addf %568, %567 : vector<16x64xf32>
    %cst_182 = arith.constant 1.000000e+00 : f32
    %570 = vector.broadcast %cst_182 : f32 to vector<16x64xf32>
    %571 = arith.divf %570, %569 : vector<16x64xf32>
    %572 = arith.mulf %563, %571 : vector<16x64xf32>
    %573 = arith.mulf %572, %564 : vector<16x64xf32>
    %574 = arith.truncf %573 : vector<16x64xf32> to vector<16x64xbf16>
    %c4_183 = arith.constant 4 : index
    %c0_184 = arith.constant 0 : index
    %c0_185 = arith.constant 0 : index
    %575 = vector.load %arg10[%c4_183, %c0_184, %c0_185] : memref<8x64x32xbf16, #tpu.memory_space<vmem>>, vector<1x64x32xbf16>
    %576 = vector.shape_cast %575 : vector<1x64x32xbf16> to vector<64x32xbf16>
    %cst_186 = arith.constant dense<0.000000e+00> : vector<16x32xf32>
    %577 = tpu.matmul %574, %576, %cst_186 {dimension_numbers = #tpu.dot_dimension_numbers<[1], [0], [0], [1], [0, 0, 1, 1], [], []>} : vector<16x64xbf16>, vector<64x32xbf16>, vector<16x32xf32> -> vector<16x32xf32>
    %578 = arith.addf %544, %577 : vector<16x32xf32>
    %579 = arith.mulf %578, %578 : vector<16x32xf32>
    %cst_187 = arith.constant dense<0.000000e+00> : vector<16xf32>
    %580 = vector.multi_reduction <add>, %579, %cst_187 [1] : vector<16x32xf32> to vector<16xf32>
    %581 = vector.shape_cast %580 : vector<16xf32> to vector<16x1xf32>
    %cst_188 = arith.constant 3.200000e+01 : f32
    %582 = vector.broadcast %cst_188 : f32 to vector<16x1xf32>
    %583 = arith.divf %581, %582 : vector<16x1xf32>
    %cst_189 = arith.constant 9.99999997E-7 : f32
    %584 = vector.broadcast %cst_189 : f32 to vector<16x1xf32>
    %585 = arith.addf %583, %584 : vector<16x1xf32>
    %586 = math.rsqrt %585 : vector<16x1xf32>
    %587 = vector.broadcast %586 : vector<16x1xf32> to vector<16x32xf32>
    %588 = arith.mulf %578, %587 : vector<16x32xf32>
    %c5 = arith.constant 5 : index
    %c0_190 = arith.constant 0 : index
    %c0_191 = arith.constant 0 : index
    %589 = vector.load %arg5[%c5, %c0_190, %c0_191] : memref<8x1x32xf32, #tpu.memory_space<vmem>>, vector<1x1x32xf32>
    %590 = vector.shape_cast %589 : vector<1x1x32xf32> to vector<1x32xf32>
    %591 = vector.broadcast %590 : vector<1x32xf32> to vector<16x32xf32>
    %592 = arith.mulf %588, %591 : vector<16x32xf32>
    %593 = arith.truncf %592 : vector<16x32xf32> to vector<16x32xbf16>
    %c5_192 = arith.constant 5 : index
    %c0_193 = arith.constant 0 : index
    %c0_194 = arith.constant 0 : index
    %594 = vector.load %arg6[%c5_192, %c0_193, %c0_194] : memref<8x32x160xbf16, #tpu.memory_space<vmem>>, vector<1x32x160xbf16>
    %595 = vector.shape_cast %594 : vector<1x32x160xbf16> to vector<32x160xbf16>
    %cst_195 = arith.constant dense<0.000000e+00> : vector<16x160xf32>
    %596 = tpu.matmul %593, %595, %cst_195 {dimension_numbers = #tpu.dot_dimension_numbers<[1], [0], [0], [1], [0, 0, 1, 1], [], []>} : vector<16x32xbf16>, vector<32x160xbf16>, vector<16x160xf32> -> vector<16x160xf32>
    %597 = vector.extract_strided_slice %596 {offsets = [0, 0], sizes = [16, 32], strides = [1, 1]} : vector<16x160xf32> to vector<16x32xf32>
    %598 = arith.mulf %597, %1 : vector<16x32xf32>
    %599 = vector.extract_strided_slice %596 {offsets = [0, 96], sizes = [16, 32], strides = [1, 1]} : vector<16x160xf32> to vector<16x32xf32>
    %600 = arith.mulf %599, %2 : vector<16x32xf32>
    %601 = arith.addf %598, %600 : vector<16x32xf32>
    %602 = vector.extract_strided_slice %596 {offsets = [0, 32], sizes = [16, 32], strides = [1, 1]} : vector<16x160xf32> to vector<16x32xf32>
    %603 = arith.mulf %602, %1 : vector<16x32xf32>
    %604 = vector.extract_strided_slice %596 {offsets = [0, 128], sizes = [16, 32], strides = [1, 1]} : vector<16x160xf32> to vector<16x32xf32>
    %605 = arith.mulf %604, %2 : vector<16x32xf32>
    %606 = arith.addf %603, %605 : vector<16x32xf32>
    %607 = vector.extract_strided_slice %596 {offsets = [0, 64], sizes = [16, 32], strides = [1, 1]} : vector<16x160xf32> to vector<16x32xf32>
    %608 = vector.extract_strided_slice %601 {offsets = [0, 0], sizes = [16, 8], strides = [1, 1]} : vector<16x32xf32> to vector<16x8xf32>
    %609 = vector.extract_strided_slice %601 {offsets = [0, 8], sizes = [16, 8], strides = [1, 1]} : vector<16x32xf32> to vector<16x8xf32>
    %610 = vector.extract_strided_slice %601 {offsets = [0, 16], sizes = [16, 8], strides = [1, 1]} : vector<16x32xf32> to vector<16x8xf32>
    %611 = vector.extract_strided_slice %601 {offsets = [0, 24], sizes = [16, 8], strides = [1, 1]} : vector<16x32xf32> to vector<16x8xf32>
    %612 = vector.shape_cast %608 : vector<16x8xf32> to vector<1x16x8xf32>
    %613 = vector.shape_cast %609 : vector<16x8xf32> to vector<1x16x8xf32>
    %614 = vector.shape_cast %610 : vector<16x8xf32> to vector<1x16x8xf32>
    %615 = vector.shape_cast %611 : vector<16x8xf32> to vector<1x16x8xf32>
    %616 = tpu.concatenate %612, %613, %614, %615 in 0 : vector<1x16x8xf32>, vector<1x16x8xf32>, vector<1x16x8xf32>, vector<1x16x8xf32> -> vector<4x16x8xf32>
    %617 = arith.truncf %616 : vector<4x16x8xf32> to vector<4x16x8xbf16>
    %618 = vector.extract_strided_slice %606 {offsets = [0, 0], sizes = [16, 8], strides = [1, 1]} : vector<16x32xf32> to vector<16x8xf32>
    %619 = vector.extract_strided_slice %606 {offsets = [0, 8], sizes = [16, 8], strides = [1, 1]} : vector<16x32xf32> to vector<16x8xf32>
    %620 = vector.extract_strided_slice %606 {offsets = [0, 16], sizes = [16, 8], strides = [1, 1]} : vector<16x32xf32> to vector<16x8xf32>
    %621 = vector.extract_strided_slice %606 {offsets = [0, 24], sizes = [16, 8], strides = [1, 1]} : vector<16x32xf32> to vector<16x8xf32>
    %622 = vector.shape_cast %618 : vector<16x8xf32> to vector<1x16x8xf32>
    %623 = vector.shape_cast %619 : vector<16x8xf32> to vector<1x16x8xf32>
    %624 = vector.shape_cast %620 : vector<16x8xf32> to vector<1x16x8xf32>
    %625 = vector.shape_cast %621 : vector<16x8xf32> to vector<1x16x8xf32>
    %626 = tpu.concatenate %622, %623, %624, %625 in 0 : vector<1x16x8xf32>, vector<1x16x8xf32>, vector<1x16x8xf32>, vector<1x16x8xf32> -> vector<4x16x8xf32>
    %627 = arith.truncf %626 : vector<4x16x8xf32> to vector<4x16x8xbf16>
    %628 = vector.extract_strided_slice %607 {offsets = [0, 0], sizes = [16, 8], strides = [1, 1]} : vector<16x32xf32> to vector<16x8xf32>
    %629 = vector.extract_strided_slice %607 {offsets = [0, 8], sizes = [16, 8], strides = [1, 1]} : vector<16x32xf32> to vector<16x8xf32>
    %630 = vector.extract_strided_slice %607 {offsets = [0, 16], sizes = [16, 8], strides = [1, 1]} : vector<16x32xf32> to vector<16x8xf32>
    %631 = vector.extract_strided_slice %607 {offsets = [0, 24], sizes = [16, 8], strides = [1, 1]} : vector<16x32xf32> to vector<16x8xf32>
    %632 = vector.shape_cast %628 : vector<16x8xf32> to vector<1x16x8xf32>
    %633 = vector.shape_cast %629 : vector<16x8xf32> to vector<1x16x8xf32>
    %634 = vector.shape_cast %630 : vector<16x8xf32> to vector<1x16x8xf32>
    %635 = vector.shape_cast %631 : vector<16x8xf32> to vector<1x16x8xf32>
    %636 = tpu.concatenate %632, %633, %634, %635 in 0 : vector<1x16x8xf32>, vector<1x16x8xf32>, vector<1x16x8xf32>, vector<1x16x8xf32> -> vector<4x16x8xf32>
    %637 = arith.truncf %636 : vector<4x16x8xf32> to vector<4x16x8xbf16>
    "tpu.trace_start"() <{level = 10 : i32, message = "hsd,htd->hst"}> : () -> ()
    %cst_196 = arith.constant dense<0.000000e+00> : vector<4x16x16xf32>
    %638 = tpu.matmul %617, %627, %cst_196 {dimension_numbers = #tpu.dot_dimension_numbers<[2], [2], [1], [1], [0, 0, 0, 1, 1, 1], [0], [0]>} : vector<4x16x8xbf16>, vector<4x16x8xbf16>, vector<4x16x16xf32> -> vector<4x16x16xf32>
    "tpu.trace_stop"() : () -> ()
    %639 = vector.shape_cast %3 : vector<16x16xf32> to vector<1x16x16xf32>
    %640 = vector.broadcast %639 : vector<1x16x16xf32> to vector<4x16x16xf32>
    %641 = arith.addf %638, %640 : vector<4x16x16xf32>
    %cst_197 = arith.constant dense<0xFF800000> : vector<4x16xf32>
    %642 = vector.multi_reduction <maximumf>, %641, %cst_197 [2] : vector<4x16x16xf32> to vector<4x16xf32>
    %643 = vector.shape_cast %642 : vector<4x16xf32> to vector<4x16x1xf32>
    %644 = vector.broadcast %643 : vector<4x16x1xf32> to vector<4x16x16xf32>
    %645 = arith.subf %641, %644 : vector<4x16x16xf32>
    %646 = math.exp %645 : vector<4x16x16xf32>
    %cst_198 = arith.constant dense<0.000000e+00> : vector<4x16xf32>
    %647 = vector.multi_reduction <add>, %646, %cst_198 [2] : vector<4x16x16xf32> to vector<4x16xf32>
    %648 = vector.shape_cast %647 : vector<4x16xf32> to vector<4x16x1xf32>
    %649 = tpu.reciprocal %648 {approx = true} : vector<4x16x1xf32> -> vector<4x16x1xf32>
    %650 = vector.broadcast %649 : vector<4x16x1xf32> to vector<4x16x16xf32>
    %651 = arith.mulf %646, %650 : vector<4x16x16xf32>
    %652 = arith.truncf %651 : vector<4x16x16xf32> to vector<4x16x16xbf16>
    "tpu.trace_start"() <{level = 10 : i32, message = "hst,htd->hsd"}> : () -> ()
    %cst_199 = arith.constant dense<0.000000e+00> : vector<4x16x8xf32>
    %653 = tpu.matmul %652, %637, %cst_199 {dimension_numbers = #tpu.dot_dimension_numbers<[2], [1], [1], [2], [0, 0, 0, 1, 1, 2], [0], [0]>} : vector<4x16x16xbf16>, vector<4x16x8xbf16>, vector<4x16x8xf32> -> vector<4x16x8xf32>
    "tpu.trace_stop"() : () -> ()
    %654 = arith.truncf %653 : vector<4x16x8xf32> to vector<4x16x8xbf16>
    %c5_200 = arith.constant 5 : index
    %c0_201 = arith.constant 0 : index
    %c0_202 = arith.constant 0 : index
    %c0_203 = arith.constant 0 : index
    %655 = vector.load %arg7[%c5_200, %c0_201, %c0_202, %c0_203] : memref<8x4x8x32xbf16, #tpu.memory_space<vmem>>, vector<1x4x8x32xbf16>
    %656 = vector.shape_cast %655 : vector<1x4x8x32xbf16> to vector<4x8x32xbf16>
    "tpu.trace_start"() <{level = 10 : i32, message = "hsd,hdk->hsk"}> : () -> ()
    %cst_204 = arith.constant dense<0.000000e+00> : vector<4x16x32xf32>
    %657 = tpu.matmul %654, %656, %cst_204 {dimension_numbers = #tpu.dot_dimension_numbers<[2], [1], [1], [2], [0, 0, 0, 1, 1, 2], [0], [0]>} : vector<4x16x8xbf16>, vector<4x8x32xbf16>, vector<4x16x32xf32> -> vector<4x16x32xf32>
    "tpu.trace_stop"() : () -> ()
    %cst_205 = arith.constant dense<0.000000e+00> : vector<16x32xf32>
    %658 = vector.multi_reduction <add>, %657, %cst_205 [0] : vector<4x16x32xf32> to vector<16x32xf32>
    %659 = arith.addf %578, %658 : vector<16x32xf32>
    %660 = arith.mulf %659, %659 : vector<16x32xf32>
    %cst_206 = arith.constant dense<0.000000e+00> : vector<16xf32>
    %661 = vector.multi_reduction <add>, %660, %cst_206 [1] : vector<16x32xf32> to vector<16xf32>
    %662 = vector.shape_cast %661 : vector<16xf32> to vector<16x1xf32>
    %cst_207 = arith.constant 3.200000e+01 : f32
    %663 = vector.broadcast %cst_207 : f32 to vector<16x1xf32>
    %664 = arith.divf %662, %663 : vector<16x1xf32>
    %cst_208 = arith.constant 9.99999997E-7 : f32
    %665 = vector.broadcast %cst_208 : f32 to vector<16x1xf32>
    %666 = arith.addf %664, %665 : vector<16x1xf32>
    %667 = math.rsqrt %666 : vector<16x1xf32>
    %668 = vector.broadcast %667 : vector<16x1xf32> to vector<16x32xf32>
    %669 = arith.mulf %659, %668 : vector<16x32xf32>
    %c5_209 = arith.constant 5 : index
    %c0_210 = arith.constant 0 : index
    %c0_211 = arith.constant 0 : index
    %670 = vector.load %arg8[%c5_209, %c0_210, %c0_211] : memref<8x1x32xf32, #tpu.memory_space<vmem>>, vector<1x1x32xf32>
    %671 = vector.shape_cast %670 : vector<1x1x32xf32> to vector<1x32xf32>
    %672 = vector.broadcast %671 : vector<1x32xf32> to vector<16x32xf32>
    %673 = arith.mulf %669, %672 : vector<16x32xf32>
    %674 = arith.truncf %673 : vector<16x32xf32> to vector<16x32xbf16>
    %c5_212 = arith.constant 5 : index
    %c0_213 = arith.constant 0 : index
    %c0_214 = arith.constant 0 : index
    %675 = vector.load %arg9[%c5_212, %c0_213, %c0_214] : memref<8x32x128xbf16, #tpu.memory_space<vmem>>, vector<1x32x128xbf16>
    %676 = vector.shape_cast %675 : vector<1x32x128xbf16> to vector<32x128xbf16>
    %cst_215 = arith.constant dense<0.000000e+00> : vector<16x128xf32>
    %677 = tpu.matmul %674, %676, %cst_215 {dimension_numbers = #tpu.dot_dimension_numbers<[1], [0], [0], [1], [0, 0, 1, 1], [], []>} : vector<16x32xbf16>, vector<32x128xbf16>, vector<16x128xf32> -> vector<16x128xf32>
    %678 = vector.extract_strided_slice %677 {offsets = [0, 0], sizes = [16, 64], strides = [1, 1]} : vector<16x128xf32> to vector<16x64xf32>
    %679 = vector.extract_strided_slice %677 {offsets = [0, 64], sizes = [16, 64], strides = [1, 1]} : vector<16x128xf32> to vector<16x64xf32>
    %cst_216 = arith.constant 0.000000e+00 : f32
    %680 = vector.broadcast %cst_216 : f32 to vector<16x64xf32>
    %681 = arith.subf %680, %678 : vector<16x64xf32>
    %682 = math.exp %681 : vector<16x64xf32>
    %cst_217 = arith.constant 1.000000e+00 : f32
    %683 = vector.broadcast %cst_217 : f32 to vector<16x64xf32>
    %684 = arith.addf %683, %682 : vector<16x64xf32>
    %cst_218 = arith.constant 1.000000e+00 : f32
    %685 = vector.broadcast %cst_218 : f32 to vector<16x64xf32>
    %686 = arith.divf %685, %684 : vector<16x64xf32>
    %687 = arith.mulf %678, %686 : vector<16x64xf32>
    %688 = arith.mulf %687, %679 : vector<16x64xf32>
    %689 = arith.truncf %688 : vector<16x64xf32> to vector<16x64xbf16>
    %c5_219 = arith.constant 5 : index
    %c0_220 = arith.constant 0 : index
    %c0_221 = arith.constant 0 : index
    %690 = vector.load %arg10[%c5_219, %c0_220, %c0_221] : memref<8x64x32xbf16, #tpu.memory_space<vmem>>, vector<1x64x32xbf16>
    %691 = vector.shape_cast %690 : vector<1x64x32xbf16> to vector<64x32xbf16>
    %cst_222 = arith.constant dense<0.000000e+00> : vector<16x32xf32>
    %692 = tpu.matmul %689, %691, %cst_222 {dimension_numbers = #tpu.dot_dimension_numbers<[1], [0], [0], [1], [0, 0, 1, 1], [], []>} : vector<16x64xbf16>, vector<64x32xbf16>, vector<16x32xf32> -> vector<16x32xf32>
    %693 = arith.addf %659, %692 : vector<16x32xf32>
    %694 = arith.mulf %693, %693 : vector<16x32xf32>
    %cst_223 = arith.constant dense<0.000000e+00> : vector<16xf32>
    %695 = vector.multi_reduction <add>, %694, %cst_223 [1] : vector<16x32xf32> to vector<16xf32>
    %696 = vector.shape_cast %695 : vector<16xf32> to vector<16x1xf32>
    %cst_224 = arith.constant 3.200000e+01 : f32
    %697 = vector.broadcast %cst_224 : f32 to vector<16x1xf32>
    %698 = arith.divf %696, %697 : vector<16x1xf32>
    %cst_225 = arith.constant 9.99999997E-7 : f32
    %699 = vector.broadcast %cst_225 : f32 to vector<16x1xf32>
    %700 = arith.addf %698, %699 : vector<16x1xf32>
    %701 = math.rsqrt %700 : vector<16x1xf32>
    %702 = vector.broadcast %701 : vector<16x1xf32> to vector<16x32xf32>
    %703 = arith.mulf %693, %702 : vector<16x32xf32>
    %c6 = arith.constant 6 : index
    %c0_226 = arith.constant 0 : index
    %c0_227 = arith.constant 0 : index
    %704 = vector.load %arg5[%c6, %c0_226, %c0_227] : memref<8x1x32xf32, #tpu.memory_space<vmem>>, vector<1x1x32xf32>
    %705 = vector.shape_cast %704 : vector<1x1x32xf32> to vector<1x32xf32>
    %706 = vector.broadcast %705 : vector<1x32xf32> to vector<16x32xf32>
    %707 = arith.mulf %703, %706 : vector<16x32xf32>
    %708 = arith.truncf %707 : vector<16x32xf32> to vector<16x32xbf16>
    %c6_228 = arith.constant 6 : index
    %c0_229 = arith.constant 0 : index
    %c0_230 = arith.constant 0 : index
    %709 = vector.load %arg6[%c6_228, %c0_229, %c0_230] : memref<8x32x160xbf16, #tpu.memory_space<vmem>>, vector<1x32x160xbf16>
    %710 = vector.shape_cast %709 : vector<1x32x160xbf16> to vector<32x160xbf16>
    %cst_231 = arith.constant dense<0.000000e+00> : vector<16x160xf32>
    %711 = tpu.matmul %708, %710, %cst_231 {dimension_numbers = #tpu.dot_dimension_numbers<[1], [0], [0], [1], [0, 0, 1, 1], [], []>} : vector<16x32xbf16>, vector<32x160xbf16>, vector<16x160xf32> -> vector<16x160xf32>
    %712 = vector.extract_strided_slice %711 {offsets = [0, 0], sizes = [16, 32], strides = [1, 1]} : vector<16x160xf32> to vector<16x32xf32>
    %713 = arith.mulf %712, %1 : vector<16x32xf32>
    %714 = vector.extract_strided_slice %711 {offsets = [0, 96], sizes = [16, 32], strides = [1, 1]} : vector<16x160xf32> to vector<16x32xf32>
    %715 = arith.mulf %714, %2 : vector<16x32xf32>
    %716 = arith.addf %713, %715 : vector<16x32xf32>
    %717 = vector.extract_strided_slice %711 {offsets = [0, 32], sizes = [16, 32], strides = [1, 1]} : vector<16x160xf32> to vector<16x32xf32>
    %718 = arith.mulf %717, %1 : vector<16x32xf32>
    %719 = vector.extract_strided_slice %711 {offsets = [0, 128], sizes = [16, 32], strides = [1, 1]} : vector<16x160xf32> to vector<16x32xf32>
    %720 = arith.mulf %719, %2 : vector<16x32xf32>
    %721 = arith.addf %718, %720 : vector<16x32xf32>
    %722 = vector.extract_strided_slice %711 {offsets = [0, 64], sizes = [16, 32], strides = [1, 1]} : vector<16x160xf32> to vector<16x32xf32>
    %723 = vector.extract_strided_slice %716 {offsets = [0, 0], sizes = [16, 8], strides = [1, 1]} : vector<16x32xf32> to vector<16x8xf32>
    %724 = vector.extract_strided_slice %716 {offsets = [0, 8], sizes = [16, 8], strides = [1, 1]} : vector<16x32xf32> to vector<16x8xf32>
    %725 = vector.extract_strided_slice %716 {offsets = [0, 16], sizes = [16, 8], strides = [1, 1]} : vector<16x32xf32> to vector<16x8xf32>
    %726 = vector.extract_strided_slice %716 {offsets = [0, 24], sizes = [16, 8], strides = [1, 1]} : vector<16x32xf32> to vector<16x8xf32>
    %727 = vector.shape_cast %723 : vector<16x8xf32> to vector<1x16x8xf32>
    %728 = vector.shape_cast %724 : vector<16x8xf32> to vector<1x16x8xf32>
    %729 = vector.shape_cast %725 : vector<16x8xf32> to vector<1x16x8xf32>
    %730 = vector.shape_cast %726 : vector<16x8xf32> to vector<1x16x8xf32>
    %731 = tpu.concatenate %727, %728, %729, %730 in 0 : vector<1x16x8xf32>, vector<1x16x8xf32>, vector<1x16x8xf32>, vector<1x16x8xf32> -> vector<4x16x8xf32>
    %732 = arith.truncf %731 : vector<4x16x8xf32> to vector<4x16x8xbf16>
    %733 = vector.extract_strided_slice %721 {offsets = [0, 0], sizes = [16, 8], strides = [1, 1]} : vector<16x32xf32> to vector<16x8xf32>
    %734 = vector.extract_strided_slice %721 {offsets = [0, 8], sizes = [16, 8], strides = [1, 1]} : vector<16x32xf32> to vector<16x8xf32>
    %735 = vector.extract_strided_slice %721 {offsets = [0, 16], sizes = [16, 8], strides = [1, 1]} : vector<16x32xf32> to vector<16x8xf32>
    %736 = vector.extract_strided_slice %721 {offsets = [0, 24], sizes = [16, 8], strides = [1, 1]} : vector<16x32xf32> to vector<16x8xf32>
    %737 = vector.shape_cast %733 : vector<16x8xf32> to vector<1x16x8xf32>
    %738 = vector.shape_cast %734 : vector<16x8xf32> to vector<1x16x8xf32>
    %739 = vector.shape_cast %735 : vector<16x8xf32> to vector<1x16x8xf32>
    %740 = vector.shape_cast %736 : vector<16x8xf32> to vector<1x16x8xf32>
    %741 = tpu.concatenate %737, %738, %739, %740 in 0 : vector<1x16x8xf32>, vector<1x16x8xf32>, vector<1x16x8xf32>, vector<1x16x8xf32> -> vector<4x16x8xf32>
    %742 = arith.truncf %741 : vector<4x16x8xf32> to vector<4x16x8xbf16>
    %743 = vector.extract_strided_slice %722 {offsets = [0, 0], sizes = [16, 8], strides = [1, 1]} : vector<16x32xf32> to vector<16x8xf32>
    %744 = vector.extract_strided_slice %722 {offsets = [0, 8], sizes = [16, 8], strides = [1, 1]} : vector<16x32xf32> to vector<16x8xf32>
    %745 = vector.extract_strided_slice %722 {offsets = [0, 16], sizes = [16, 8], strides = [1, 1]} : vector<16x32xf32> to vector<16x8xf32>
    %746 = vector.extract_strided_slice %722 {offsets = [0, 24], sizes = [16, 8], strides = [1, 1]} : vector<16x32xf32> to vector<16x8xf32>
    %747 = vector.shape_cast %743 : vector<16x8xf32> to vector<1x16x8xf32>
    %748 = vector.shape_cast %744 : vector<16x8xf32> to vector<1x16x8xf32>
    %749 = vector.shape_cast %745 : vector<16x8xf32> to vector<1x16x8xf32>
    %750 = vector.shape_cast %746 : vector<16x8xf32> to vector<1x16x8xf32>
    %751 = tpu.concatenate %747, %748, %749, %750 in 0 : vector<1x16x8xf32>, vector<1x16x8xf32>, vector<1x16x8xf32>, vector<1x16x8xf32> -> vector<4x16x8xf32>
    %752 = arith.truncf %751 : vector<4x16x8xf32> to vector<4x16x8xbf16>
    "tpu.trace_start"() <{level = 10 : i32, message = "hsd,htd->hst"}> : () -> ()
    %cst_232 = arith.constant dense<0.000000e+00> : vector<4x16x16xf32>
    %753 = tpu.matmul %732, %742, %cst_232 {dimension_numbers = #tpu.dot_dimension_numbers<[2], [2], [1], [1], [0, 0, 0, 1, 1, 1], [0], [0]>} : vector<4x16x8xbf16>, vector<4x16x8xbf16>, vector<4x16x16xf32> -> vector<4x16x16xf32>
    "tpu.trace_stop"() : () -> ()
    %754 = vector.shape_cast %3 : vector<16x16xf32> to vector<1x16x16xf32>
    %755 = vector.broadcast %754 : vector<1x16x16xf32> to vector<4x16x16xf32>
    %756 = arith.addf %753, %755 : vector<4x16x16xf32>
    %cst_233 = arith.constant dense<0xFF800000> : vector<4x16xf32>
    %757 = vector.multi_reduction <maximumf>, %756, %cst_233 [2] : vector<4x16x16xf32> to vector<4x16xf32>
    %758 = vector.shape_cast %757 : vector<4x16xf32> to vector<4x16x1xf32>
    %759 = vector.broadcast %758 : vector<4x16x1xf32> to vector<4x16x16xf32>
    %760 = arith.subf %756, %759 : vector<4x16x16xf32>
    %761 = math.exp %760 : vector<4x16x16xf32>
    %cst_234 = arith.constant dense<0.000000e+00> : vector<4x16xf32>
    %762 = vector.multi_reduction <add>, %761, %cst_234 [2] : vector<4x16x16xf32> to vector<4x16xf32>
    %763 = vector.shape_cast %762 : vector<4x16xf32> to vector<4x16x1xf32>
    %764 = tpu.reciprocal %763 {approx = true} : vector<4x16x1xf32> -> vector<4x16x1xf32>
    %765 = vector.broadcast %764 : vector<4x16x1xf32> to vector<4x16x16xf32>
    %766 = arith.mulf %761, %765 : vector<4x16x16xf32>
    %767 = arith.truncf %766 : vector<4x16x16xf32> to vector<4x16x16xbf16>
    "tpu.trace_start"() <{level = 10 : i32, message = "hst,htd->hsd"}> : () -> ()
    %cst_235 = arith.constant dense<0.000000e+00> : vector<4x16x8xf32>
    %768 = tpu.matmul %767, %752, %cst_235 {dimension_numbers = #tpu.dot_dimension_numbers<[2], [1], [1], [2], [0, 0, 0, 1, 1, 2], [0], [0]>} : vector<4x16x16xbf16>, vector<4x16x8xbf16>, vector<4x16x8xf32> -> vector<4x16x8xf32>
    "tpu.trace_stop"() : () -> ()
    %769 = arith.truncf %768 : vector<4x16x8xf32> to vector<4x16x8xbf16>
    %c6_236 = arith.constant 6 : index
    %c0_237 = arith.constant 0 : index
    %c0_238 = arith.constant 0 : index
    %c0_239 = arith.constant 0 : index
    %770 = vector.load %arg7[%c6_236, %c0_237, %c0_238, %c0_239] : memref<8x4x8x32xbf16, #tpu.memory_space<vmem>>, vector<1x4x8x32xbf16>
    %771 = vector.shape_cast %770 : vector<1x4x8x32xbf16> to vector<4x8x32xbf16>
    "tpu.trace_start"() <{level = 10 : i32, message = "hsd,hdk->hsk"}> : () -> ()
    %cst_240 = arith.constant dense<0.000000e+00> : vector<4x16x32xf32>
    %772 = tpu.matmul %769, %771, %cst_240 {dimension_numbers = #tpu.dot_dimension_numbers<[2], [1], [1], [2], [0, 0, 0, 1, 1, 2], [0], [0]>} : vector<4x16x8xbf16>, vector<4x8x32xbf16>, vector<4x16x32xf32> -> vector<4x16x32xf32>
    "tpu.trace_stop"() : () -> ()
    %cst_241 = arith.constant dense<0.000000e+00> : vector<16x32xf32>
    %773 = vector.multi_reduction <add>, %772, %cst_241 [0] : vector<4x16x32xf32> to vector<16x32xf32>
    %774 = arith.addf %693, %773 : vector<16x32xf32>
    %775 = arith.mulf %774, %774 : vector<16x32xf32>
    %cst_242 = arith.constant dense<0.000000e+00> : vector<16xf32>
    %776 = vector.multi_reduction <add>, %775, %cst_242 [1] : vector<16x32xf32> to vector<16xf32>
    %777 = vector.shape_cast %776 : vector<16xf32> to vector<16x1xf32>
    %cst_243 = arith.constant 3.200000e+01 : f32
    %778 = vector.broadcast %cst_243 : f32 to vector<16x1xf32>
    %779 = arith.divf %777, %778 : vector<16x1xf32>
    %cst_244 = arith.constant 9.99999997E-7 : f32
    %780 = vector.broadcast %cst_244 : f32 to vector<16x1xf32>
    %781 = arith.addf %779, %780 : vector<16x1xf32>
    %782 = math.rsqrt %781 : vector<16x1xf32>
    %783 = vector.broadcast %782 : vector<16x1xf32> to vector<16x32xf32>
    %784 = arith.mulf %774, %783 : vector<16x32xf32>
    %c6_245 = arith.constant 6 : index
    %c0_246 = arith.constant 0 : index
    %c0_247 = arith.constant 0 : index
    %785 = vector.load %arg8[%c6_245, %c0_246, %c0_247] : memref<8x1x32xf32, #tpu.memory_space<vmem>>, vector<1x1x32xf32>
    %786 = vector.shape_cast %785 : vector<1x1x32xf32> to vector<1x32xf32>
    %787 = vector.broadcast %786 : vector<1x32xf32> to vector<16x32xf32>
    %788 = arith.mulf %784, %787 : vector<16x32xf32>
    %789 = arith.truncf %788 : vector<16x32xf32> to vector<16x32xbf16>
    %c6_248 = arith.constant 6 : index
    %c0_249 = arith.constant 0 : index
    %c0_250 = arith.constant 0 : index
    %790 = vector.load %arg9[%c6_248, %c0_249, %c0_250] : memref<8x32x128xbf16, #tpu.memory_space<vmem>>, vector<1x32x128xbf16>
    %791 = vector.shape_cast %790 : vector<1x32x128xbf16> to vector<32x128xbf16>
    %cst_251 = arith.constant dense<0.000000e+00> : vector<16x128xf32>
    %792 = tpu.matmul %789, %791, %cst_251 {dimension_numbers = #tpu.dot_dimension_numbers<[1], [0], [0], [1], [0, 0, 1, 1], [], []>} : vector<16x32xbf16>, vector<32x128xbf16>, vector<16x128xf32> -> vector<16x128xf32>
    %793 = vector.extract_strided_slice %792 {offsets = [0, 0], sizes = [16, 64], strides = [1, 1]} : vector<16x128xf32> to vector<16x64xf32>
    %794 = vector.extract_strided_slice %792 {offsets = [0, 64], sizes = [16, 64], strides = [1, 1]} : vector<16x128xf32> to vector<16x64xf32>
    %cst_252 = arith.constant 0.000000e+00 : f32
    %795 = vector.broadcast %cst_252 : f32 to vector<16x64xf32>
    %796 = arith.subf %795, %793 : vector<16x64xf32>
    %797 = math.exp %796 : vector<16x64xf32>
    %cst_253 = arith.constant 1.000000e+00 : f32
    %798 = vector.broadcast %cst_253 : f32 to vector<16x64xf32>
    %799 = arith.addf %798, %797 : vector<16x64xf32>
    %cst_254 = arith.constant 1.000000e+00 : f32
    %800 = vector.broadcast %cst_254 : f32 to vector<16x64xf32>
    %801 = arith.divf %800, %799 : vector<16x64xf32>
    %802 = arith.mulf %793, %801 : vector<16x64xf32>
    %803 = arith.mulf %802, %794 : vector<16x64xf32>
    %804 = arith.truncf %803 : vector<16x64xf32> to vector<16x64xbf16>
    %c6_255 = arith.constant 6 : index
    %c0_256 = arith.constant 0 : index
    %c0_257 = arith.constant 0 : index
    %805 = vector.load %arg10[%c6_255, %c0_256, %c0_257] : memref<8x64x32xbf16, #tpu.memory_space<vmem>>, vector<1x64x32xbf16>
    %806 = vector.shape_cast %805 : vector<1x64x32xbf16> to vector<64x32xbf16>
    %cst_258 = arith.constant dense<0.000000e+00> : vector<16x32xf32>
    %807 = tpu.matmul %804, %806, %cst_258 {dimension_numbers = #tpu.dot_dimension_numbers<[1], [0], [0], [1], [0, 0, 1, 1], [], []>} : vector<16x64xbf16>, vector<64x32xbf16>, vector<16x32xf32> -> vector<16x32xf32>
    %808 = arith.addf %774, %807 : vector<16x32xf32>
    %809 = arith.mulf %808, %808 : vector<16x32xf32>
    %cst_259 = arith.constant dense<0.000000e+00> : vector<16xf32>
    %810 = vector.multi_reduction <add>, %809, %cst_259 [1] : vector<16x32xf32> to vector<16xf32>
    %811 = vector.shape_cast %810 : vector<16xf32> to vector<16x1xf32>
    %cst_260 = arith.constant 3.200000e+01 : f32
    %812 = vector.broadcast %cst_260 : f32 to vector<16x1xf32>
    %813 = arith.divf %811, %812 : vector<16x1xf32>
    %cst_261 = arith.constant 9.99999997E-7 : f32
    %814 = vector.broadcast %cst_261 : f32 to vector<16x1xf32>
    %815 = arith.addf %813, %814 : vector<16x1xf32>
    %816 = math.rsqrt %815 : vector<16x1xf32>
    %817 = vector.broadcast %816 : vector<16x1xf32> to vector<16x32xf32>
    %818 = arith.mulf %808, %817 : vector<16x32xf32>
    %c7 = arith.constant 7 : index
    %c0_262 = arith.constant 0 : index
    %c0_263 = arith.constant 0 : index
    %819 = vector.load %arg5[%c7, %c0_262, %c0_263] : memref<8x1x32xf32, #tpu.memory_space<vmem>>, vector<1x1x32xf32>
    %820 = vector.shape_cast %819 : vector<1x1x32xf32> to vector<1x32xf32>
    %821 = vector.broadcast %820 : vector<1x32xf32> to vector<16x32xf32>
    %822 = arith.mulf %818, %821 : vector<16x32xf32>
    %823 = arith.truncf %822 : vector<16x32xf32> to vector<16x32xbf16>
    %c7_264 = arith.constant 7 : index
    %c0_265 = arith.constant 0 : index
    %c0_266 = arith.constant 0 : index
    %824 = vector.load %arg6[%c7_264, %c0_265, %c0_266] : memref<8x32x160xbf16, #tpu.memory_space<vmem>>, vector<1x32x160xbf16>
    %825 = vector.shape_cast %824 : vector<1x32x160xbf16> to vector<32x160xbf16>
    %cst_267 = arith.constant dense<0.000000e+00> : vector<16x160xf32>
    %826 = tpu.matmul %823, %825, %cst_267 {dimension_numbers = #tpu.dot_dimension_numbers<[1], [0], [0], [1], [0, 0, 1, 1], [], []>} : vector<16x32xbf16>, vector<32x160xbf16>, vector<16x160xf32> -> vector<16x160xf32>
    %827 = vector.extract_strided_slice %826 {offsets = [0, 0], sizes = [16, 32], strides = [1, 1]} : vector<16x160xf32> to vector<16x32xf32>
    %828 = arith.mulf %827, %1 : vector<16x32xf32>
    %829 = vector.extract_strided_slice %826 {offsets = [0, 96], sizes = [16, 32], strides = [1, 1]} : vector<16x160xf32> to vector<16x32xf32>
    %830 = arith.mulf %829, %2 : vector<16x32xf32>
    %831 = arith.addf %828, %830 : vector<16x32xf32>
    %832 = vector.extract_strided_slice %826 {offsets = [0, 32], sizes = [16, 32], strides = [1, 1]} : vector<16x160xf32> to vector<16x32xf32>
    %833 = arith.mulf %832, %1 : vector<16x32xf32>
    %834 = vector.extract_strided_slice %826 {offsets = [0, 128], sizes = [16, 32], strides = [1, 1]} : vector<16x160xf32> to vector<16x32xf32>
    %835 = arith.mulf %834, %2 : vector<16x32xf32>
    %836 = arith.addf %833, %835 : vector<16x32xf32>
    %837 = vector.extract_strided_slice %826 {offsets = [0, 64], sizes = [16, 32], strides = [1, 1]} : vector<16x160xf32> to vector<16x32xf32>
    %838 = vector.extract_strided_slice %831 {offsets = [0, 0], sizes = [16, 8], strides = [1, 1]} : vector<16x32xf32> to vector<16x8xf32>
    %839 = vector.extract_strided_slice %831 {offsets = [0, 8], sizes = [16, 8], strides = [1, 1]} : vector<16x32xf32> to vector<16x8xf32>
    %840 = vector.extract_strided_slice %831 {offsets = [0, 16], sizes = [16, 8], strides = [1, 1]} : vector<16x32xf32> to vector<16x8xf32>
    %841 = vector.extract_strided_slice %831 {offsets = [0, 24], sizes = [16, 8], strides = [1, 1]} : vector<16x32xf32> to vector<16x8xf32>
    %842 = vector.shape_cast %838 : vector<16x8xf32> to vector<1x16x8xf32>
    %843 = vector.shape_cast %839 : vector<16x8xf32> to vector<1x16x8xf32>
    %844 = vector.shape_cast %840 : vector<16x8xf32> to vector<1x16x8xf32>
    %845 = vector.shape_cast %841 : vector<16x8xf32> to vector<1x16x8xf32>
    %846 = tpu.concatenate %842, %843, %844, %845 in 0 : vector<1x16x8xf32>, vector<1x16x8xf32>, vector<1x16x8xf32>, vector<1x16x8xf32> -> vector<4x16x8xf32>
    %847 = arith.truncf %846 : vector<4x16x8xf32> to vector<4x16x8xbf16>
    %848 = vector.extract_strided_slice %836 {offsets = [0, 0], sizes = [16, 8], strides = [1, 1]} : vector<16x32xf32> to vector<16x8xf32>
    %849 = vector.extract_strided_slice %836 {offsets = [0, 8], sizes = [16, 8], strides = [1, 1]} : vector<16x32xf32> to vector<16x8xf32>
    %850 = vector.extract_strided_slice %836 {offsets = [0, 16], sizes = [16, 8], strides = [1, 1]} : vector<16x32xf32> to vector<16x8xf32>
    %851 = vector.extract_strided_slice %836 {offsets = [0, 24], sizes = [16, 8], strides = [1, 1]} : vector<16x32xf32> to vector<16x8xf32>
    %852 = vector.shape_cast %848 : vector<16x8xf32> to vector<1x16x8xf32>
    %853 = vector.shape_cast %849 : vector<16x8xf32> to vector<1x16x8xf32>
    %854 = vector.shape_cast %850 : vector<16x8xf32> to vector<1x16x8xf32>
    %855 = vector.shape_cast %851 : vector<16x8xf32> to vector<1x16x8xf32>
    %856 = tpu.concatenate %852, %853, %854, %855 in 0 : vector<1x16x8xf32>, vector<1x16x8xf32>, vector<1x16x8xf32>, vector<1x16x8xf32> -> vector<4x16x8xf32>
    %857 = arith.truncf %856 : vector<4x16x8xf32> to vector<4x16x8xbf16>
    %858 = vector.extract_strided_slice %837 {offsets = [0, 0], sizes = [16, 8], strides = [1, 1]} : vector<16x32xf32> to vector<16x8xf32>
    %859 = vector.extract_strided_slice %837 {offsets = [0, 8], sizes = [16, 8], strides = [1, 1]} : vector<16x32xf32> to vector<16x8xf32>
    %860 = vector.extract_strided_slice %837 {offsets = [0, 16], sizes = [16, 8], strides = [1, 1]} : vector<16x32xf32> to vector<16x8xf32>
    %861 = vector.extract_strided_slice %837 {offsets = [0, 24], sizes = [16, 8], strides = [1, 1]} : vector<16x32xf32> to vector<16x8xf32>
    %862 = vector.shape_cast %858 : vector<16x8xf32> to vector<1x16x8xf32>
    %863 = vector.shape_cast %859 : vector<16x8xf32> to vector<1x16x8xf32>
    %864 = vector.shape_cast %860 : vector<16x8xf32> to vector<1x16x8xf32>
    %865 = vector.shape_cast %861 : vector<16x8xf32> to vector<1x16x8xf32>
    %866 = tpu.concatenate %862, %863, %864, %865 in 0 : vector<1x16x8xf32>, vector<1x16x8xf32>, vector<1x16x8xf32>, vector<1x16x8xf32> -> vector<4x16x8xf32>
    %867 = arith.truncf %866 : vector<4x16x8xf32> to vector<4x16x8xbf16>
    "tpu.trace_start"() <{level = 10 : i32, message = "hsd,htd->hst"}> : () -> ()
    %cst_268 = arith.constant dense<0.000000e+00> : vector<4x16x16xf32>
    %868 = tpu.matmul %847, %857, %cst_268 {dimension_numbers = #tpu.dot_dimension_numbers<[2], [2], [1], [1], [0, 0, 0, 1, 1, 1], [0], [0]>} : vector<4x16x8xbf16>, vector<4x16x8xbf16>, vector<4x16x16xf32> -> vector<4x16x16xf32>
    "tpu.trace_stop"() : () -> ()
    %869 = vector.shape_cast %3 : vector<16x16xf32> to vector<1x16x16xf32>
    %870 = vector.broadcast %869 : vector<1x16x16xf32> to vector<4x16x16xf32>
    %871 = arith.addf %868, %870 : vector<4x16x16xf32>
    %cst_269 = arith.constant dense<0xFF800000> : vector<4x16xf32>
    %872 = vector.multi_reduction <maximumf>, %871, %cst_269 [2] : vector<4x16x16xf32> to vector<4x16xf32>
    %873 = vector.shape_cast %872 : vector<4x16xf32> to vector<4x16x1xf32>
    %874 = vector.broadcast %873 : vector<4x16x1xf32> to vector<4x16x16xf32>
    %875 = arith.subf %871, %874 : vector<4x16x16xf32>
    %876 = math.exp %875 : vector<4x16x16xf32>
    %cst_270 = arith.constant dense<0.000000e+00> : vector<4x16xf32>
    %877 = vector.multi_reduction <add>, %876, %cst_270 [2] : vector<4x16x16xf32> to vector<4x16xf32>
    %878 = vector.shape_cast %877 : vector<4x16xf32> to vector<4x16x1xf32>
    %879 = tpu.reciprocal %878 {approx = true} : vector<4x16x1xf32> -> vector<4x16x1xf32>
    %880 = vector.broadcast %879 : vector<4x16x1xf32> to vector<4x16x16xf32>
    %881 = arith.mulf %876, %880 : vector<4x16x16xf32>
    %882 = arith.truncf %881 : vector<4x16x16xf32> to vector<4x16x16xbf16>
    "tpu.trace_start"() <{level = 10 : i32, message = "hst,htd->hsd"}> : () -> ()
    %cst_271 = arith.constant dense<0.000000e+00> : vector<4x16x8xf32>
    %883 = tpu.matmul %882, %867, %cst_271 {dimension_numbers = #tpu.dot_dimension_numbers<[2], [1], [1], [2], [0, 0, 0, 1, 1, 2], [0], [0]>} : vector<4x16x16xbf16>, vector<4x16x8xbf16>, vector<4x16x8xf32> -> vector<4x16x8xf32>
    "tpu.trace_stop"() : () -> ()
    %884 = arith.truncf %883 : vector<4x16x8xf32> to vector<4x16x8xbf16>
    %c7_272 = arith.constant 7 : index
    %c0_273 = arith.constant 0 : index
    %c0_274 = arith.constant 0 : index
    %c0_275 = arith.constant 0 : index
    %885 = vector.load %arg7[%c7_272, %c0_273, %c0_274, %c0_275] : memref<8x4x8x32xbf16, #tpu.memory_space<vmem>>, vector<1x4x8x32xbf16>
    %886 = vector.shape_cast %885 : vector<1x4x8x32xbf16> to vector<4x8x32xbf16>
    "tpu.trace_start"() <{level = 10 : i32, message = "hsd,hdk->hsk"}> : () -> ()
    %cst_276 = arith.constant dense<0.000000e+00> : vector<4x16x32xf32>
    %887 = tpu.matmul %884, %886, %cst_276 {dimension_numbers = #tpu.dot_dimension_numbers<[2], [1], [1], [2], [0, 0, 0, 1, 1, 2], [0], [0]>} : vector<4x16x8xbf16>, vector<4x8x32xbf16>, vector<4x16x32xf32> -> vector<4x16x32xf32>
    "tpu.trace_stop"() : () -> ()
    %cst_277 = arith.constant dense<0.000000e+00> : vector<16x32xf32>
    %888 = vector.multi_reduction <add>, %887, %cst_277 [0] : vector<4x16x32xf32> to vector<16x32xf32>
    %889 = arith.addf %808, %888 : vector<16x32xf32>
    %890 = arith.mulf %889, %889 : vector<16x32xf32>
    %cst_278 = arith.constant dense<0.000000e+00> : vector<16xf32>
    %891 = vector.multi_reduction <add>, %890, %cst_278 [1] : vector<16x32xf32> to vector<16xf32>
    %892 = vector.shape_cast %891 : vector<16xf32> to vector<16x1xf32>
    %cst_279 = arith.constant 3.200000e+01 : f32
    %893 = vector.broadcast %cst_279 : f32 to vector<16x1xf32>
    %894 = arith.divf %892, %893 : vector<16x1xf32>
    %cst_280 = arith.constant 9.99999997E-7 : f32
    %895 = vector.broadcast %cst_280 : f32 to vector<16x1xf32>
    %896 = arith.addf %894, %895 : vector<16x1xf32>
    %897 = math.rsqrt %896 : vector<16x1xf32>
    %898 = vector.broadcast %897 : vector<16x1xf32> to vector<16x32xf32>
    %899 = arith.mulf %889, %898 : vector<16x32xf32>
    %c7_281 = arith.constant 7 : index
    %c0_282 = arith.constant 0 : index
    %c0_283 = arith.constant 0 : index
    %900 = vector.load %arg8[%c7_281, %c0_282, %c0_283] : memref<8x1x32xf32, #tpu.memory_space<vmem>>, vector<1x1x32xf32>
    %901 = vector.shape_cast %900 : vector<1x1x32xf32> to vector<1x32xf32>
    %902 = vector.broadcast %901 : vector<1x32xf32> to vector<16x32xf32>
    %903 = arith.mulf %899, %902 : vector<16x32xf32>
    %904 = arith.truncf %903 : vector<16x32xf32> to vector<16x32xbf16>
    %c7_284 = arith.constant 7 : index
    %c0_285 = arith.constant 0 : index
    %c0_286 = arith.constant 0 : index
    %905 = vector.load %arg9[%c7_284, %c0_285, %c0_286] : memref<8x32x128xbf16, #tpu.memory_space<vmem>>, vector<1x32x128xbf16>
    %906 = vector.shape_cast %905 : vector<1x32x128xbf16> to vector<32x128xbf16>
    %cst_287 = arith.constant dense<0.000000e+00> : vector<16x128xf32>
    %907 = tpu.matmul %904, %906, %cst_287 {dimension_numbers = #tpu.dot_dimension_numbers<[1], [0], [0], [1], [0, 0, 1, 1], [], []>} : vector<16x32xbf16>, vector<32x128xbf16>, vector<16x128xf32> -> vector<16x128xf32>
    %908 = vector.extract_strided_slice %907 {offsets = [0, 0], sizes = [16, 64], strides = [1, 1]} : vector<16x128xf32> to vector<16x64xf32>
    %909 = vector.extract_strided_slice %907 {offsets = [0, 64], sizes = [16, 64], strides = [1, 1]} : vector<16x128xf32> to vector<16x64xf32>
    %cst_288 = arith.constant 0.000000e+00 : f32
    %910 = vector.broadcast %cst_288 : f32 to vector<16x64xf32>
    %911 = arith.subf %910, %908 : vector<16x64xf32>
    %912 = math.exp %911 : vector<16x64xf32>
    %cst_289 = arith.constant 1.000000e+00 : f32
    %913 = vector.broadcast %cst_289 : f32 to vector<16x64xf32>
    %914 = arith.addf %913, %912 : vector<16x64xf32>
    %cst_290 = arith.constant 1.000000e+00 : f32
    %915 = vector.broadcast %cst_290 : f32 to vector<16x64xf32>
    %916 = arith.divf %915, %914 : vector<16x64xf32>
    %917 = arith.mulf %908, %916 : vector<16x64xf32>
    %918 = arith.mulf %917, %909 : vector<16x64xf32>
    %919 = arith.truncf %918 : vector<16x64xf32> to vector<16x64xbf16>
    %c7_291 = arith.constant 7 : index
    %c0_292 = arith.constant 0 : index
    %c0_293 = arith.constant 0 : index
    %920 = vector.load %arg10[%c7_291, %c0_292, %c0_293] : memref<8x64x32xbf16, #tpu.memory_space<vmem>>, vector<1x64x32xbf16>
    %921 = vector.shape_cast %920 : vector<1x64x32xbf16> to vector<64x32xbf16>
    %cst_294 = arith.constant dense<0.000000e+00> : vector<16x32xf32>
    %922 = tpu.matmul %919, %921, %cst_294 {dimension_numbers = #tpu.dot_dimension_numbers<[1], [0], [0], [1], [0, 0, 1, 1], [], []>} : vector<16x64xbf16>, vector<64x32xbf16>, vector<16x32xf32> -> vector<16x32xf32>
    %923 = arith.addf %889, %922 : vector<16x32xf32>
    %c0_295 = arith.constant 0 : index
    %c0_296 = arith.constant 0 : index
    %924 = vector.load %arg11[%c0_295, %c0_296] : memref<16x32xf32, #tpu.memory_space<vmem>>, vector<16x32xf32>
    tpu.vector_store %arg11[%c0_295, %c0_296], %923 {strides = array<i32>} : memref<16x32xf32, #tpu.memory_space<vmem>>, vector<16x32xf32>,
    return
  }
  func.func @transform_0(%arg0: i32) -> (i32, i32) {
    %c0_i32 = arith.constant 0 : i32
    %c0_i32_0 = arith.constant 0 : i32
    %c0_i32_1 = arith.constant 0 : i32
    return %c0_i32, %c0_i32_0 : i32, i32
  }
  func.func @transform_1(%arg0: i32) -> (i32, i32) {
    %c0_i32 = arith.constant 0 : i32
    %c0_i32_0 = arith.constant 0 : i32
    %c0_i32_1 = arith.constant 0 : i32
    return %c0_i32, %c0_i32_0 : i32, i32
  }
  func.func @transform_2(%arg0: i32) -> (i32, i32) {
    %c0_i32 = arith.constant 0 : i32
    %c0_i32_0 = arith.constant 0 : i32
    %c0_i32_1 = arith.constant 0 : i32
    return %c0_i32, %c0_i32_0 : i32, i32
  }
  func.func @transform_3(%arg0: i32) -> (i32, i32) {
    %c0_i32 = arith.constant 0 : i32
    %c0_i32_0 = arith.constant 0 : i32
    %c0_i32_1 = arith.constant 0 : i32
    return %c0_i32, %c0_i32_0 : i32, i32
  }
  func.func @transform_4(%arg0: i32) -> (i32, i32, i32) {
    %c0_i32 = arith.constant 0 : i32
    %c0_i32_0 = arith.constant 0 : i32
    %c0_i32_1 = arith.constant 0 : i32
    %c0_i32_2 = arith.constant 0 : i32
    return %c0_i32, %c0_i32_0, %c0_i32_1 : i32, i32, i32
  }
  func.func @transform_5(%arg0: i32) -> (i32, i32, i32) {
    %c0_i32 = arith.constant 0 : i32
    %c0_i32_0 = arith.constant 0 : i32
    %c0_i32_1 = arith.constant 0 : i32
    %c0_i32_2 = arith.constant 0 : i32
    return %c0_i32, %c0_i32_0, %c0_i32_1 : i32, i32, i32
  }
  func.func @transform_6(%arg0: i32) -> (i32, i32, i32, i32) {
    %c0_i32 = arith.constant 0 : i32
    %c0_i32_0 = arith.constant 0 : i32
    %c0_i32_1 = arith.constant 0 : i32
    %c0_i32_2 = arith.constant 0 : i32
    %c0_i32_3 = arith.constant 0 : i32
    return %c0_i32, %c0_i32_0, %c0_i32_1, %c0_i32_2 : i32, i32, i32, i32
  }
  func.func @transform_7(%arg0: i32) -> (i32, i32, i32) {
    %c0_i32 = arith.constant 0 : i32
    %c0_i32_0 = arith.constant 0 : i32
    %c0_i32_1 = arith.constant 0 : i32
    %c0_i32_2 = arith.constant 0 : i32
    return %c0_i32, %c0_i32_0, %c0_i32_1 : i32, i32, i32
  }
  func.func @transform_8(%arg0: i32) -> (i32, i32, i32) {
    %c0_i32 = arith.constant 0 : i32
    %c0_i32_0 = arith.constant 0 : i32
    %c0_i32_1 = arith.constant 0 : i32
    %c0_i32_2 = arith.constant 0 : i32
    return %c0_i32, %c0_i32_0, %c0_i32_1 : i32, i32, i32
  }
  func.func @transform_9(%arg0: i32) -> (i32, i32, i32) {
    %c0_i32 = arith.constant 0 : i32
    %c0_i32_0 = arith.constant 0 : i32
    %c0_i32_1 = arith.constant 0 : i32
    %c0_i32_2 = arith.constant 0 : i32
    return %c0_i32, %c0_i32_0, %c0_i32_1 : i32, i32, i32
  }
  func.func @transform_10(%arg0: i32) -> (i32, i32) {
    %c0_i32 = arith.constant 0 : i32
    %c0_i32_0 = arith.constant 0 : i32
    %c0_i32_1 = arith.constant 0 : i32
    return %c0_i32, %c0_i32_0 : i32, i32
  }
}

</mosaic_0001>

<bundles_post_ra>
// kernel: fused_forward.1
= control target key start
LH: loop header
LB: loop body
LE: loop exit
PB: predicated region body
PF: predicated region fallthrough
CT: control target
= control target key end

     0   :  { %15 = vsyncpa [#allocation3], 0  ;;  %s13367_s0 = inlined_call_operand.hbm [shape: f32[16,32], index: 0, kind: input, shape index: {}]   ;;  %s13368_s1 = inlined_call_operand.hbm [shape: f32[16,32], index: 1, kind: input, shape index: {}]   ;;  %s13369_s2 = inlined_call_operand.vmem [shape: f32[16,32], index: 2, kind: input, shape index: {}]   ;;  %s13370_s3 = inlined_call_operand.hbm [shape: f32[16,16], index: 3, kind: input, shape index: {}]   ;;  %s13371_s4 = inlined_call_operand.hbm [shape: f32[8,1,32], index: 4, kind: input, shape index: {}]   ;;  %s13372_s5 = inlined_call_operand.vmem [shape: bf16[8,32,160], index: 5, kind: input, shape index: {}]   ;;  %s13373_s6 = inlined_call_operand.vmem [shape: bf16[8,4,8,32], index: 6, kind: input, shape index: {}]   ;;  %s13374_s7 = inlined_call_operand.hbm [shape: f32[8,1,32], index: 7, kind: input, shape index: {}]   ;;  %s13375_s8 = inlined_call_operand.hbm [shape: bf16[8,32,128], index: 8, kind: input, shape index: {}]   ;;  %s13376_s9 = inlined_call_operand.vmem [shape: bf16[8,64,32], index: 9, kind: input, shape index: {}]   ;;  %s13377_s10 = inlined_call_operand.hbm [shape: f32[16,32], index: 10, kind: output, shape index: {}]  }
   0x1   :  { %16 = vsyncpa [#allocation6], 0 }
   0x2   :  { %17 = vsyncpa [#allocation9], 0 }
   0x3   :  { %18 = vsyncpa [#allocation12], 0 }
   0x4   :  { %19 = vsyncpa [#allocation4], 0  ;;  %s11214_s13 = smov [#allocation5]   ;;  %s11215_s15 = smov [#allocation8]  }
   0x5   :  { %s37_s14 = sshll.u32 %s11214_s13, 4  ;;  %s63_s16 = sshll.u32 %s11215_s15, 4  ;;  %s38_s14 = int_to_ptr.vmem [resolvable:$true] %s37_s14  ;;  %s64_s16 = int_to_ptr.vmem [resolvable:$true] %s63_s16 }
   0x6   :  { %s11072_s17 = scalar_lea.vmem %s38_s14, 256  ;;  %p11077_p1 = scmp.lt.s32.totalorder %s38_s14, %s38_s14 }
   0x7   :  { %p11073_p0 = scmp.ne.s32.totalorder %s38_s14, %s11072_s17  ;;  %p11078_p2 = scmp.lt.s32.totalorder %s11072_s17, %s11072_s17 }
   0x9   :  { %p11079_p3 = por %p11078_p2, %p11077_p1 }
   0xb   :  { %p11080_p4 = pnand %p11079_p3, %p11073_p0 }
   0xd   :  { %11083 = shalt.err (!%p11080_p4)
}
   0xe   :  { %s11216_s18 = smov 128   ;;  %s11217_s19 = smov 8  }
   0xf   :  { %43 = dma.hbm_to_vmem [thread:$0]  %s13368_s1, 256, %s38_s14, [#allocation6], %s11216_s18, %s11216_s18, %s11217_s19  }
  0x10   :  { %s11092_s22 = scalar_lea.vmem %s64_s16, 128  ;;  %p11097_p6 = scmp.lt.s32.totalorder %s64_s16, %s64_s16 }
  0x11   :  { %p11093_p5 = scmp.ne.s32.totalorder %s64_s16, %s11092_s22  ;;  %p11098_p7 = scmp.lt.s32.totalorder %s11092_s22, %s11092_s22 }
  0x13   :  { %p11099_p8 = por %p11098_p7, %p11097_p6 }
  0x15   :  { %p11100_p9 = pnand %p11099_p8, %p11093_p5 }
  0x17   :  { %11103 = shalt.err (!%p11100_p9)
}
  0x18   :  { %s11218_s23 = smov 16   ;;  %s11219_s24 = smov 1  }
  0x19   :  { %69 = dma.hbm_to_vmem [thread:$0]  %s13371_s4, 128, %s64_s16, [#allocation9], %s11218_s23, %s11218_s23, %s11219_s24  }
  0x1a   :  { %s11220_s27 = smov [#allocation2]   ;;  %s11221_s29 = smov [#allocation7]  }
  0x1b   :  { %s25_s28 = sshll.u32 %s11220_s27, 4  ;;  %s51_s1 = sshll.u32 %s11221_s29, 4  ;;  %s26_s28 = int_to_ptr.vmem [resolvable:$true] %s25_s28  ;;  %s52_s1 = int_to_ptr.vmem [resolvable:$true] %s51_s1 }
  0x1c   :  { %s11112_s30 = scalar_lea.vmem %s26_s28, 256  ;;  %p11117_p11 = scmp.lt.s32.totalorder %s26_s28, %s26_s28 }
  0x1d   :  { %p11113_p10 = scmp.ne.s32.totalorder %s26_s28, %s11112_s30  ;;  %p11118_p12 = scmp.lt.s32.totalorder %s11112_s30, %s11112_s30 }
  0x1f   :  { %p11119_p13 = por %p11118_p12, %p11117_p11 }
  0x21   :  { %p11120_p0 = pnand %p11119_p13, %p11113_p10 }
  0x23   :  { %11123 = shalt.err (!%p11120_p0)
}
  0x24   :  { %31 = dma.hbm_to_vmem [thread:$0]  %s13367_s0, 256, %s26_s28, [#allocation3], %s11216_s18, %s11216_s18, %s11217_s19  }
  0x25   :  { %s11132_s4 = scalar_lea.vmem %s52_s1, 256  ;;  %p11137_p2 = scmp.lt.s32.totalorder %s52_s1, %s52_s1 }
  0x26   :  { %p11133_p1 = scmp.ne.s32.totalorder %s52_s1, %s11132_s4  ;;  %p11138_p3 = scmp.lt.s32.totalorder %s11132_s4, %s11132_s4 }
  0x28   :  { %p11139_p4 = por %p11138_p3, %p11137_p2 }
  0x2a   :  { %p11140_p5 = pnand %p11139_p4, %p11133_p1 }
  0x2c   :  { %11143 = shalt.err (!%p11140_p5)
}
  0x2d   :  { %57 = dma.hbm_to_vmem [thread:$0]  %s13370_s3, 256, %s52_s1, [#allocation6], %s11216_s18, %s11216_s18, %s11217_s19  }
  0x2e   :  { %s11222_s15 = smov [#allocation10]   ;;  %s11223_s17 = smov [#allocation11]  }
  0x2f   :  { %s79_s16 = sshll.u32 %s11222_s15, 4  ;;  %s91_s20 = sshll.u32 %s11223_s17, 4  ;;  %s80_s16 = int_to_ptr.vmem [resolvable:$true] %s79_s16  ;;  %s92_s20 = int_to_ptr.vmem [resolvable:$true] %s91_s20 }
  0x30   :  { %s11152_s0 = scalar_lea.vmem %s80_s16, 128  ;;  %p11157_p7 = scmp.lt.s32.totalorder %s80_s16, %s80_s16 }
  0x31   :  { %p11153_p6 = scmp.ne.s32.totalorder %s80_s16, %s11152_s0  ;;  %p11158_p8 = scmp.lt.s32.totalorder %s11152_s0, %s11152_s0 }
  0x33   :  { %p11159_p9 = por %p11158_p8, %p11157_p7 }
  0x35   :  { %p11160_p10 = pnand %p11159_p9, %p11153_p6 }
  0x37   :  { %11163 = shalt.err (!%p11160_p10)
}
  0x38   :  { %85 = dma.hbm_to_vmem [thread:$0]  %s13374_s7, 128, %s80_s16, [#allocation9], %s11218_s23, %s11218_s23, %s11219_s24  }
  0x39   :  { %s11172_s3 = scalar_lea.vmem %s92_s20, 2048  ;;  %p11177_p12 = scmp.lt.s32.totalorder %s92_s20, %s92_s20 }
  0x3a   :  { %p11173_p11 = scmp.ne.s32.totalorder %s92_s20, %s11172_s3  ;;  %p11178_p13 = scmp.lt.s32.totalorder %s11172_s3, %s11172_s3 }
  0x3c   :  { %p11179_p0 = por %p11178_p13, %p11177_p12 }
  0x3e   :  { %p11180_p1 = pnand %p11179_p0, %p11173_p11 }
  0x40   :  { %11183 = shalt.err (!%p11180_p1)
}
  0x41   :  { %s11224_s25 = smov 64   ;;  %s11225_s26 = smov 4  }
  0x42   :  { %97 = dma.hbm_to_vmem [thread:$0]  %s13375_s8, 2048, %s92_s20, [#allocation12], %s11224_s25, %s11224_s25, %s11225_s26  }
  0x43   :  { %11204 = dma.done.wait [#allocation3], 256  }
  0x44   :  { %11205 = vsyncadd [#allocation3], 4294967040 }
  0x45   :  { %11206 = dma.done.wait [#allocation6], 512  }
  0x46   :  { %11207 = vsyncadd [#allocation6], 4294966784 }
  0x47   :  { %11208 = dma.done.wait [#allocation9], 256  }
  0x48   :  { %11209 = vsyncadd [#allocation9], 4294967040 }
  0x49   :  { %11210 = dma.done.wait [#allocation12], 2048  }
  0x4a   :  { %11211 = vsyncadd [#allocation12], 4294965248  ;;  %v119_v0 = vld [vmem:[#allocation2] sm:$0xff]  ;;  %vm129_vm0 = vcmask 261120   ;;  %v120_v1 = vld [vmem:[#allocation2 + $0x8] sm:$0xff]  ;;  %v11226_v10 = vmov 0  }
  0x4b   :  { %v127_v2 = vmul.f32 %v119_v0, %v119_v0  ;;  %v128_v3 = vmul.f32 %v120_v1, %v120_v1  ;;  %v10562_v6 = vld [vmem:[%s13372_s5 + $0x14] ss:$8 sps:$4 sm:$0xff]   ;;  %v10564_v7 = vld [vmem:[%s13372_s5 + $0x10] ss:$8 sps:$4 sm:$0xff]   ;;  %v10565_v8 = vld [vmem:[%s13372_s5 + $0x4] ss:$8 sps:$4 sm:$0xff]   ;;  %214 = vmatprep.mubr.bf16.mxu1 %v11226_v10 }
  0x4c   :  { %v10567_v9 = vld [vmem:[%s13372_s5] ss:$8 sps:$4 sm:$0xff]   ;;  %194 = vmatprep.subr.bf16.mxu1 %v10562_v6  ;;  %v11340_v11 = vld [vmem:[#allocation5] sm:$0xff]  ;;  %v11342_v12 = vld [vmem:[#allocation5 + $0x8] sm:$0xff]  ;;  %s11227_s12 = smov 32   ;;  %s11228_s16 = smov 96  }
  0x4d   :  { %v130_v4 = vsel %vm129_vm0, %v127_v2, 0.0  ;;  %v133_v5 = vsel %vm129_vm0, %v128_v3, 0.0  ;;  %195 = vmatpush1.bf16.msra.mxu1 %v10564_v7  ;;  %249 = vrot.lane.b32.xlu1 %v11340_v11, %s11227_s12  ;;  %v8861_v22 = vld [vmem:[#allocation8] ss:$0 sm:$0xff]  ;;  %v11354_v28 = vld [vmem:[%s13369_s2] sm:$0xff]  ;;  %v11362_v32 = vld [vmem:[%s13369_s2 + $0x8] sm:$0xff] }
  0x4e   :  { %131 = vadd.xlane.f32.xlu0 %v130_v4  ;;  %196 = vmatprep.subr.bf16.mxu1 %v10565_v8  ;;  %v11229_v37 = vmov 0.0   ;;  %s11230_s17 = smov 112   ;;  %vm11231_vm1 = vmmov 0   ;;  %s11232_s20 = smov 120   ;;  %vm344_vm2 = vcmask 64512   ;;  %vm542_vm3 = vcmask 130048  }
  0x4f   :  { %9451 = vmatprep.subr.bf16.mxu0 %v11229_v37  ;;  %9453 = vmatprep.mubr.msk.bf16.mxu0 %vm11231_vm1, %v11229_v37  ;;  %s11233_s0 = smov 104   ;;  %vm838_vm4 = vcmask 1043456   ;;  %vm1183_vm5 = vcmask 523264  }
  0x51   :  { %197 = vmatpush1.bf16.msra.mxu1 %v10567_v9  ;;  %251 = vrot.lane.b32.xlu1 %v11342_v12, %s11227_s12 }
  0x52   :  { %134 = vadd.xlane.f32.xlu0 %v133_v5  ;;  %9445 = vmatprep.subr.bf16.mxu1 %v11229_v37 }
  0xbf   :  { %v11371_v35 = vpop.permute.xlu1 %249 }
  0xc3   :  { %v11373_v36 = vpop.permute.xlu1 %251 }
  0xd7   :  { %v132_v13 = vpop.xlane.xlu0 %131 }
  0xd8   :  { %v137_v14 = vmul.f32 0.03125, %v132_v13 }
  0xda   :  { %v139_v15 = vadd.f32 1e-06, %v137_v14 }
  0xdb   :  { %v135_v16 = vpop.xlane.xlu0 %134 }
  0xdc   :  { %10658 = vrsqrt.f32 %v139_v15  ;;  %v138_v17 = vmul.f32 0.03125, %v135_v16 }
  0xde   :  { %v140_v18 = vadd.f32 1e-06, %v138_v17 }
  0xe0   :  { %10660 = vrsqrt.f32 %v140_v18 }
  0xe9   :  { %v10659_v19 = vpop.eup %10658 }
  0xea   :  { %v143_v20 = vmul.f32 %v10659_v19, %v119_v0 }
  0xec   :  { %v152_v24 = vmul.f32 %v8861_v22, %v143_v20 }
  0xed   :  { %v10661_v21 = vpop.eup %10660 }
  0xee   :  { %v144_v23 = vmul.f32 %v10661_v21, %v120_v1 }
  0xf0   :  { %v153_v25 = vmul.f32 %v8861_v22, %v144_v23 }
  0xf2   :  { %v154_v26 = vpack.c.bf16 %v153_v25, %v152_v24 }
  0xf4   :  { %8866 = vmatmul.mubr.msk.bf16.vlgmr.msra.gmra.mxu1 %vm129_vm0, %v154_v26 }
  0xf5   :  { %9447 = vmatprep.mubr.msk.bf16.mxu1 %vm11231_vm1, %v11229_v37 }
 0x1b4   :  { %v11349_v27 = vpop.f32.mrf.mxu1 }
 0x1b5   :  { %v255_v39 = vmul.f32 %v11371_v35, %v11349_v27  ;;  %v225_v57 = vmul.f32 %v11349_v27, %v11340_v11 }
 0x1b6   :  { %v218_v29 = vpop.f32.mrf.mxu1 }
 0x1b7   :  { %v257_v30 = vmul.f32 %v218_v29, %v11354_v28  ;;  %v11429_v29 = vld [vmem:[#allocation7] sm:$0xff] }
 0x1b8   :  { %v11357_v31 = vpop.f32.mrf.mxu1 }
 0x1b9   :  { %261 = vrot.lane.b32.xlu0 %v257_v30, %s11227_s12  ;;  %v256_v40 = vmul.f32 %v11373_v36, %v11357_v31  ;;  %v226_v58 = vmul.f32 %v11357_v31, %v11342_v12 }
 0x1ba   :  { %v222_v33 = vpop.f32.mrf.mxu1 }
 0x1bb   :  { %v258_v34 = vmul.f32 %v222_v33, %v11362_v32 }
 0x1bd   :  { %263 = vrot.lane.b32.xlu1 %v258_v34, %s11227_s12 }
 0x1c1   :  { %229 = vrot.lane.b32.xlu1 %v11354_v28, %s11228_s16 }
 0x1c5   :  { %231 = vrot.lane.b32.xlu1 %v11362_v32, %s11228_s16 }
 0x22b   :  { %v262_v38 = vpop.permute.xlu0 %261 }
 0x22c   :  { %v267_v42 = vadd.f32 %v262_v38, %v255_v39  ;;  %v11432_v38 = vld [vmem:[#allocation7 + $0x8] sm:$0xff] }
 0x22f   :  { %v264_v41 = vpop.permute.xlu1 %263 }
 0x230   :  { %v268_v43 = vadd.f32 %v264_v41, %v256_v40 }
 0x232   :  { %v10207_v44 = vpack.i.bf16 %v268_v43, %v267_v42  ;;  %v313_v47 = vpack.c.bf16 %v268_v43, %v267_v42 }
 0x233   :  { %v11381_v45 = vpop.permute.xlu1 %229 }
 0x234   :  { %10208 = vrot.lane.b32.xlu0 %v10207_v44, %s11230_s17  ;;  %v235_v46 = vmul.f32 %v11381_v45, %v11349_v27 }
 0x236   :  { %239 = vrot.lane.b32.xlu1 %v235_v46, %s11227_s12 }
 0x237   :  { %v11392_v48 = vpop.permute.xlu1 %231 }
 0x238   :  { %342 = vrot.lane.b32.xlu0 %v313_v47, %s11228_s16  ;;  %v236_v49 = vmul.f32 %v11392_v48, %v11357_v31 }
 0x23a   :  { %10203 = vrot.lane.b32.xlu1 %v10207_v44, %s11232_s20 }
 0x23e   :  { %241 = vrot.lane.b32.xlu1 %v236_v49, %s11227_s12 }
 0x242   :  { %10213 = vrot.lane.b32.xlu1 %v10207_v44, %s11233_s0 }
 0x2a6   :  { %v10209_v50 = vpop.permute.xlu0 %10208 }
 0x2a7   :  { %v10211_v60 = vunpack.i.h.bf16 %v10209_v50  ;;  %v10210_v61 = vunpack.i.l.bf16 %v10209_v50 }
 0x2a8   :  { %v240_v51 = vpop.permute.xlu1 %239 }
 0x2a9   :  { %v245_v63 = vadd.f32 %v240_v51, %v225_v57  ;;  %v315_v4 = vpack.c.bf16 %v10211_v60, %v10210_v61 }
 0x2aa   :  { %v343_v52 = vpop.permute.xlu0 %342 }
 0x2ab   :  { %v349_v53 = vsel %vm344_vm2, %v343_v52, 0 }
 0x2ac   :  { %9446 = vmatpush3.bf16.xpose.msra.mxu1 %v349_v53  ;;  %v10204_v54 = vpop.permute.xlu1 %10203 }
 0x2ad   :  { %v10206_v55 = vunpack.i.h.bf16 %v10204_v54  ;;  %v10205_v56 = vunpack.i.l.bf16 %v10204_v54  ;;  %9457 = vmatprep.subr.bf16.mxu1 %v11229_v37 }
 0x2af   :  { %v314_v59 = vpack.c.bf16 %v10206_v55, %v10205_v56 }
 0x2b0   :  { %v242_v62 = vpop.permute.xlu1 %241 }
 0x2b1   :  { %v246_v0 = vadd.f32 %v242_v62, %v226_v58  ;;  %393 = vrot.lane.b32.xlu1 %v314_v59, %s11228_s16 }
 0x2b3   :  { %v289_v1 = vpack.c.bf16 %v246_v0, %v245_v63  ;;  %v10217_v2 = vpack.i.bf16 %v246_v0, %v245_v63 }
 0x2b4   :  { %v10214_v3 = vpop.permute.xlu1 %10213 }
 0x2b5   :  { %v10216_v5 = vunpack.i.h.bf16 %v10214_v3  ;;  %v10215_v6 = vunpack.i.l.bf16 %v10214_v3  ;;  %10218 = vrot.lane.b32.xlu0 %v10217_v2, %s11232_s20  ;;  %9448 = vmatmul.mubr.msk.bf16.vlgmr.msra.gmra.mxu1 %vm344_vm2, %v289_v1 }
 0x2b6   :  { %443 = vrot.lane.b32.xlu1 %v315_v4, %s11228_s16  ;;  %9459 = vmatprep.mubr.msk.bf16.mxu1 %vm11231_vm1, %v11229_v37 }
 0x2b7   :  { %v316_v7 = vpack.c.bf16 %v10216_v5, %v10215_v6  ;;  %v10237_v6 = vpack.i.bf16 %v11357_v31, %v11349_v27 }
 0x2b9   :  { %493 = vrot.lane.b32.xlu0 %v316_v7, %s11228_s16 }
 0x2ba   :  { %10223 = vrot.lane.b32.xlu1 %v10217_v2, %s11230_s17 }
 0x2bd   :  { %10228 = vrot.lane.b32.xlu0 %v10217_v2, %s11233_s0 }
 0x323   :  { %v394_v8 = vpop.permute.xlu1 %393 }
 0x324   :  { %v399_v9 = vsel %vm344_vm2, %v394_v8, 0  ;;  %v337_v8 = vpack.c.bf16 %v11357_v31, %v11349_v27 }
 0x325   :  { %9452 = vmatpush3.bf16.xpose.msra.mxu0 %v399_v9 }
 0x326   :  { %9463 = vmatprep.subr.bf16.mxu0 %v11229_v37 }
 0x327   :  { %v10219_v11 = vpop.permute.xlu0 %10218 }
 0x328   :  { %v10221_v12 = vunpack.i.h.bf16 %v10219_v11  ;;  %v10220_v13 = vunpack.i.l.bf16 %v10219_v11  ;;  %v444_v14 = vpop.permute.xlu1 %443 }
 0x329   :  { %v449_v15 = vsel %vm344_vm2, %v444_v14, 0 }
 0x32a   :  { %v290_v16 = vpack.c.bf16 %v10221_v12, %v10220_v13  ;;  %9458 = vmatpush3.bf16.xpose.msra.mxu1 %v449_v15 }
 0x32b   :  { %v494_v17 = vpop.permute.xlu0 %493  ;;  %9469 = vmatprep.subr.bf16.mxu1 %v11229_v37 }
 0x32c   :  { %v499_v18 = vsel %vm344_vm2, %v494_v17, 0  ;;  %v10224_v19 = vpop.permute.xlu1 %10223  ;;  %9454 = vmatmul.mubr.msk.bf16.vlgmr.msra.gmra.mxu0 %vm344_vm2, %v290_v16 }
 0x32d   :  { %v10226_v20 = vunpack.i.h.bf16 %v10224_v19  ;;  %v10225_v21 = vunpack.i.l.bf16 %v10224_v19  ;;  %9464 = vmatpush3.bf16.xpose.msra.mxu0 %v499_v18  ;;  %9465 = vmatprep.mubr.msk.bf16.mxu0 %vm11231_vm1, %v11229_v37 }
 0x32e   :  { %9475 = vmatprep.subr.bf16.mxu0 %v11229_v37 }
 0x32f   :  { %v291_v22 = vpack.c.bf16 %v10226_v20, %v10225_v21  ;;  %v10229_v23 = vpop.permute.xlu0 %10228 }
 0x330   :  { %v10231_v24 = vunpack.i.h.bf16 %v10229_v23  ;;  %v10230_v25 = vunpack.i.l.bf16 %v10229_v23 }
 0x331   :  { %9460 = vmatmul.mubr.msk.bf16.vlgmr.msra.gmra.mxu1 %vm344_vm2, %v291_v22 }
 0x332   :  { %v292_v26 = vpack.c.bf16 %v10231_v24, %v10230_v25  ;;  %9471 = vmatprep.mubr.msk.bf16.mxu1 %vm11231_vm1, %v11229_v37 }
 0x334   :  { %9466 = vmatmul.mubr.msk.bf16.vlgmr.msra.gmra.mxu0 %vm344_vm2, %v292_v26 }
 0x335   :  { %9477 = vmatprep.mubr.msk.bf16.mxu0 %vm11231_vm1, %v11229_v37 }
 0x375   :  { %v385_v30 = vpop.f32.mrf.mxu1 }
 0x376   :  { %v386_v33 = vadd.f32 %v385_v30, %v11429_v29 }
 0x377   :  { %v9449_v34 = vpop.f32.mrf.mxu1 }
 0x378   :  { %v543_v39 = vsel %vm542_vm3, %v386_v33, -inf }
 0x379   :  { %v388_v40 = vpop.f32.mrf.mxu1  ;;  %544 = vmax.xlane.f32.xlu1 %v543_v39 }
 0x37a   :  { %v389_v41 = vadd.f32 %v388_v40, %v11432_v38 }
 0x37b   :  { %v9450_v42 = vpop.f32.mrf.mxu1 }
 0x37c   :  { %v546_v43 = vsel %vm542_vm3, %v389_v41, -inf }
 0x37d   :  { %547 = vmax.xlane.f32.xlu0 %v546_v43 }
 0x3ec   :  { %v435_v44 = vpop.f32.mrf.mxu0 }
 0x3ed   :  { %v436_v46 = vadd.f32 %v435_v44, %v11429_v29 }
 0x3ee   :  { %v9455_v47 = vpop.f32.mrf.mxu0 }
 0x3ef   :  { %v549_v49 = vsel %vm542_vm3, %v436_v46, -inf }
 0x3f0   :  { %550 = vmax.xlane.f32.xlu0 %v549_v49  ;;  %v438_v50 = vpop.f32.mrf.mxu0 }
 0x3f1   :  { %v439_v51 = vadd.f32 %v438_v50, %v11432_v38  ;;  %v485_v52 = vpop.f32.mrf.mxu1 }
 0x3f2   :  { %v486_v53 = vadd.f32 %v485_v52, %v11429_v29  ;;  %v9456_v54 = vpop.f32.mrf.mxu0 }
 0x3f3   :  { %v9461_v55 = vpop.f32.mrf.mxu1  ;;  %v552_v56 = vsel %vm542_vm3, %v439_v51, -inf }
 0x3f4   :  { %553 = vmax.xlane.f32.xlu1 %v552_v56  ;;  %v535_v57 = vpop.f32.mrf.mxu0  ;;  %v555_v58 = vsel %vm542_vm3, %v486_v53, -inf }
 0x3f5   :  { %v536_v59 = vadd.f32 %v535_v57, %v11429_v29  ;;  %556 = vmax.xlane.f32.xlu0 %v555_v58  ;;  %v488_v60 = vpop.f32.mrf.mxu1 }
 0x3f6   :  { %v489_v61 = vadd.f32 %v488_v60, %v11432_v38  ;;  %v9467_v62 = vpop.f32.mrf.mxu0 }
 0x3f7   :  { %v9462_v63 = vpop.f32.mrf.mxu1  ;;  %v561_v0 = vsel %vm542_vm3, %v536_v59, -inf }
 0x3f8   :  { %v538_v1 = vpop.f32.mrf.mxu0  ;;  %v558_v2 = vsel %vm542_vm3, %v489_v61, -inf }
 0x3f9   :  { %v539_v3 = vadd.f32 %v538_v1, %v11432_v38  ;;  %562 = vmax.xlane.f32.xlu0 %v561_v0  ;;  %559 = vmax.xlane.f32.xlu1 %v558_v2 }
 0x3fa   :  { %v9468_v4 = vpop.f32.mrf.mxu0 }
 0x3fb   :  { %v564_v5 = vsel %vm542_vm3, %v539_v3, -inf }
 0x3fd   :  { %565 = vmax.xlane.f32.xlu1 %v564_v5 }
 0x402   :  { %v545_v7 = vpop.xlane.xlu1 %544 }
 0x403   :  { %v567_v9 = vsub.f32 %v386_v33, %v545_v7 }
 0x405   :  { %v575_v11 = vmul.f32 1.442695, %v567_v9 }
 0x406   :  { %v548_v12 = vpop.xlane.xlu0 %547 }
 0x407   :  { %10662 = vpow2.f32 %v575_v11  ;;  %v568_v13 = vsub.f32 %v389_v41, %v548_v12 }
 0x409   :  { %v577_v14 = vmul.f32 1.442695, %v568_v13 }
 0x40b   :  { %10664 = vpow2.f32 %v577_v14 }
 0x40e   :  { %10238 = vrot.lane.b32.xlu1 %v10237_v6, %s11230_s17 }
 0x40f   :  { %10233 = vrot.lane.b32.xlu0 %v10237_v6, %s11232_s20 }
 0x412   :  { %10243 = vrot.lane.b32.xlu1 %v10237_v6, %s11233_s0 }
 0x414   :  { %v11457_v15 = vpop.eup %10662 }
 0x415   :  { %v591_v16 = vsel %vm542_vm3, %v11457_v15, 0.0 }
 0x416   :  { %636 = vrot.lane.b32.xlu1 %v337_v8, %s11224_s25 }
 0x418   :  { %v11461_v17 = vpop.eup %10664 }
 0x419   :  { %v594_v27 = vsel %vm542_vm3, %v11461_v17, 0.0 }
 0x42e   :  { %592 = vadd.xlane.f32.xlu0 %v591_v16 }
 0x43a   :  { %595 = vadd.xlane.f32.xlu1 %v594_v27 }
 0x479   :  { %v551_v31 = vpop.xlane.xlu0 %550 }
 0x47a   :  { %v569_v18 = vsub.f32 %v436_v46, %v551_v31 }
 0x47c   :  { %v579_v19 = vmul.f32 1.442695, %v569_v18 }
 0x47d   :  { %v554_v20 = vpop.xlane.xlu1 %553 }
 0x47e   :  { %10666 = vpow2.f32 %v579_v19  ;;  %v570_v21 = vsub.f32 %v439_v51, %v554_v20  ;;  %v557_v22 = vpop.xlane.xlu0 %556 }
 0x47f   :  { %v571_v23 = vsub.f32 %v486_v53, %v557_v22 }
 0x480   :  { %v581_v24 = vmul.f32 1.442695, %v570_v21 }
 0x481   :  { %v583_v25 = vmul.f32 1.442695, %v571_v23 }
 0x482   :  { %10668 = vpow2.f32 %v581_v24  ;;  %v563_v26 = vpop.xlane.xlu0 %562  ;;  %v560_v30 = vpop.xlane.xlu1 %559 }
 0x483   :  { %10670 = vpow2.f32 %v583_v25  ;;  %v573_v33 = vsub.f32 %v536_v59, %v563_v26  ;;  %v572_v34 = vsub.f32 %v489_v61, %v560_v30 }
 0x485   :  { %v587_v39 = vmul.f32 1.442695, %v573_v33  ;;  %v585_v40 = vmul.f32 1.442695, %v572_v34  ;;  %v831_v34 = vld [vmem:[%s13373_s6] sm:$0xf] }
 0x486   :  { %v566_v41 = vpop.xlane.xlu1 %565  ;;  %v10234_v2 = vpop.permute.xlu0 %10233 }
 0x487   :  { %10672 = vpow2.f32 %v587_v39  ;;  %v574_v42 = vsub.f32 %v539_v3, %v566_v41  ;;  %v10236_v4 = vunpack.i.h.bf16 %v10234_v2  ;;  %v10235_v5 = vunpack.i.l.bf16 %v10234_v2 }
 0x488   :  { %10674 = vpow2.f32 %v585_v40 }
 0x489   :  { %v589_v43 = vmul.f32 1.442695, %v574_v42  ;;  %v338_v6 = vpack.c.bf16 %v10236_v4, %v10235_v5 }
 0x48a   :  { %v10239_v44 = vpop.permute.xlu1 %10238 }
 0x48b   :  { %v11465_v46 = vpop.eup %10666  ;;  %10676 = vpow2.f32 %v589_v43  ;;  %v10241_v61 = vunpack.i.h.bf16 %v10239_v44  ;;  %v10240_v62 = vunpack.i.l.bf16 %v10239_v44  ;;  %v840_v43 = vsel %vm838_vm4, %v831_v34, 0 }
 0x48c   :  { %v597_v47 = vsel %vm542_vm3, %v11465_v46, 0.0 }
 0x48d   :  { %598 = vadd.xlane.f32.xlu0 %v597_v47  ;;  %v339_v63 = vpack.c.bf16 %v10241_v61, %v10240_v62  ;;  %v834_v61 = vld [vmem:[%s13373_s6 + $0xc] sm:$0xf] }
 0x48e   :  { %v10244_v49 = vpop.permute.xlu1 %10243 }
 0x48f   :  { %v10669_v50 = vpop.eup %10668  ;;  %v10246_v0 = vunpack.i.h.bf16 %v10244_v49  ;;  %v10245_v1 = vunpack.i.l.bf16 %v10244_v49 }
 0x490   :  { %v11469_v51 = vpop.eup %10670  ;;  %v600_v52 = vsel %vm542_vm3, %v10669_v50, 0.0 }
 0x491   :  { %601 = vadd.xlane.f32.xlu0 %v600_v52  ;;  %v603_v53 = vsel %vm542_vm3, %v11469_v51, 0.0  ;;  %v340_v3 = vpack.c.bf16 %v10246_v0, %v10245_v1  ;;  %v981_v0 = vsel %vm838_vm4, %v834_v61, 0  ;;  %v10569_v61 = vld [vmem:[#allocation11] sm:$0xff]  }
 0x492   :  { %604 = vadd.xlane.f32.xlu1 %v603_v53  ;;  %v637_v54 = vpop.permute.xlu1 %636 }
 0x493   :  { %9470 = vmatpush3.bf16.msra.mxu1 %v637_v54  ;;  %v833_v54 = vld [vmem:[%s13373_s6 + $0x8] sm:$0xf] }
 0x494   :  { %v11474_v55 = vpop.eup %10672  ;;  %9481 = vmatprep.subr.bf16.mxu1 %v11229_v37 }
 0x495   :  { %v11477_v56 = vpop.eup %10674  ;;  %v609_v57 = vsel %vm542_vm3, %v11474_v55, 0.0 }
 0x496   :  { %610 = vadd.xlane.f32.xlu1 %v609_v57  ;;  %v606_v58 = vsel %vm542_vm3, %v11477_v56, 0.0  ;;  %v934_v57 = vsel %vm838_vm4, %v833_v54, 0 }
 0x497   :  { %607 = vadd.xlane.f32.xlu0 %v606_v58 }
 0x498   :  { %v11483_v59 = vpop.eup %10676 }
 0x499   :  { %v612_v60 = vsel %vm542_vm3, %v11483_v59, 0.0 }
 0x49b   :  { %613 = vadd.xlane.f32.xlu0 %v612_v60 }
 0x4a7   :  { %732 = vrot.lane.b32.xlu1 %v339_v63, %s11224_s25 }
 0x4ab   :  { %780 = vrot.lane.b32.xlu1 %v340_v3, %s11224_s25 }
 0x4b1   :  { %684 = vrot.lane.b32.xlu0 %v338_v6, %s11224_s25 }
 0x4b7   :  { %v593_v7 = vpop.xlane.xlu0 %592 }
 0x4b8   :  { %10678 = vrcp.f32 %v593_v7 }
 0x4c3   :  { %v596_v8 = vpop.xlane.xlu1 %595 }
 0x4c4   :  { %10680 = vrcp.f32 %v596_v8 }
 0x4c5   :  { %v10679_v9 = vpop.eup %10678 }
 0x4c6   :  { %v623_v12 = vmul.f32 %v10679_v9, %v11457_v15 }
 0x4d1   :  { %v10681_v11 = vpop.eup %10680 }
 0x4d2   :  { %v624_v13 = vmul.f32 %v10681_v11, %v11461_v17 }
 0x4d4   :  { %v631_v14 = vpack.c.bf16 %v624_v13, %v623_v12 }
 0x4d6   :  { %9472 = vmatmul.mubr.msk.bf16.vlgmr.msra.gmra.mxu1 %vm542_vm3, %v631_v14 }
 0x4d7   :  { %9483 = vmatprep.mubr.msk.bf16.mxu1 %vm11231_vm1, %v11229_v37 }
 0x516   :  { %v599_v16 = vpop.xlane.xlu0 %598 }
 0x517   :  { %10682 = vrcp.f32 %v599_v16 }
 0x51a   :  { %v602_v27 = vpop.xlane.xlu0 %601 }
 0x51b   :  { %10684 = vrcp.f32 %v602_v27  ;;  %v605_v31 = vpop.xlane.xlu1 %604 }
 0x51c   :  { %10686 = vrcp.f32 %v605_v31 }
 0x51f   :  { %v611_v18 = vpop.xlane.xlu1 %610 }
 0x520   :  { %v608_v19 = vpop.xlane.xlu0 %607 }
 0x521   :  { %10688 = vrcp.f32 %v608_v19 }
 0x522   :  { %10690 = vrcp.f32 %v611_v18 }
 0x523   :  { %v733_v20 = vpop.permute.xlu1 %732 }
 0x524   :  { %v614_v15 = vpop.xlane.xlu0 %613  ;;  %9482 = vmatpush3.bf16.msra.mxu1 %v733_v20  ;;  %v10683_v17 = vpop.eup %10682 }
 0x525   :  { %10692 = vrcp.f32 %v614_v15  ;;  %9493 = vmatprep.subr.bf16.mxu1 %v11229_v37  ;;  %v625_v23 = vmul.f32 %v10683_v17, %v11465_v46 }
 0x527   :  { %v781_v30 = vpop.permute.xlu1 %780 }
 0x528   :  { %v10685_v21 = vpop.eup %10684  ;;  %v685_v22 = vpop.permute.xlu0 %684 }
 0x529   :  { %9476 = vmatpush3.bf16.msra.mxu0 %v685_v22  ;;  %v626_v24 = vmul.f32 %v10685_v21, %v10669_v50  ;;  %v10687_v26 = vpop.eup %10686  ;;  %v832_v50 = vld [vmem:[%s13373_s6 + $0x4] sm:$0xf] }
 0x52a   :  { %9487 = vmatprep.subr.bf16.mxu0 %v11229_v37  ;;  %v627_v39 = vmul.f32 %v10687_v26, %v11469_v51  ;;  %v887_v51 = vsel %vm838_vm4, %v832_v50, 0 }
 0x52b   :  { %v632_v25 = vpack.c.bf16 %v626_v24, %v625_v23 }
 0x52d   :  { %9478 = vmatmul.mubr.msk.bf16.vlgmr.msra.gmra.mxu0 %vm542_vm3, %v632_v25 }
 0x52e   :  { %v10689_v33 = vpop.eup %10688  ;;  %9488 = vmatpush3.bf16.msra.mxu0 %v781_v30  ;;  %9489 = vmatprep.mubr.msk.bf16.mxu0 %vm11231_vm1, %v11229_v37 }
 0x52f   :  { %v628_v40 = vmul.f32 %v10689_v33, %v11477_v56  ;;  %9499 = vmatprep.subr.bf16.mxu0 %v11229_v37  ;;  %v10691_v41 = vpop.eup %10690 }
 0x530   :  { %v629_v46 = vmul.f32 %v10691_v41, %v11474_v55 }
 0x531   :  { %v633_v42 = vpack.c.bf16 %v628_v40, %v627_v39 }
 0x532   :  { %v10693_v44 = vpop.eup %10692 }
 0x533   :  { %9484 = vmatmul.mubr.msk.bf16.vlgmr.msra.gmra.mxu1 %vm542_vm3, %v633_v42  ;;  %v630_v47 = vmul.f32 %v10693_v44, %v11483_v59 }
 0x534   :  { %9494 = vmatpush3.bf16.msra.mxu1 %v840_v43  ;;  %9495 = vmatprep.mubr.msk.bf16.mxu1 %vm11231_vm1, %v11229_v37 }
 0x535   :  { %v634_v49 = vpack.c.bf16 %v630_v47, %v629_v46  ;;  %9505 = vmatprep.subr.bf16.mxu1 %v11229_v37  ;;  %v11042_v47 = vld [vmem:[#allocation2] sm:$0xff] }
 0x537   :  { %9490 = vmatmul.mubr.msk.bf16.vlgmr.msra.gmra.mxu0 %vm542_vm3, %v634_v49 }
 0x538   :  { %9501 = vmatprep.mubr.msk.bf16.mxu0 %vm11231_vm1, %v11229_v37  ;;  %9500 = vmatpush3.bf16.msra.mxu0 %v887_v51 }
 0x539   :  { %9511 = vmatprep.subr.bf16.mxu0 %v11229_v37 }
 0x596   :  { %v676_v52 = vpop.f32.mrf.mxu1 }
 0x598   :  { %v9473_v53 = vpop.f32.mrf.mxu1 }
 0x59a   :  { %v679_v55 = vpop.f32.mrf.mxu1 }
 0x59b   :  { %v827_v56 = vpack.c.bf16 %v679_v55, %v676_v52  ;;  %v11043_v55 = vld [vmem:[#allocation2 + $0x8] sm:$0xff] }
 0x59c   :  { %v9474_v58 = vpop.f32.mrf.mxu1 }
 0x59d   :  { %9496 = vmatmul.mubr.msk.bf16.vlgmr.msra.gmra.mxu1 %vm344_vm2, %v827_v56 }
 0x59e   :  { %9506 = vmatpush3.bf16.msra.mxu1 %v934_v57  ;;  %9507 = vmatprep.mubr.msk.bf16.mxu1 %vm11231_vm1, %v11229_v37 }
 0x59f   :  { %9517 = vmatprep.subr.bf16.mxu1 %v11229_v37 }
 0x5ed   :  { %v724_v59 = vpop.f32.mrf.mxu0 }
 0x5ef   :  { %v9479_v60 = vpop.f32.mrf.mxu0 }
 0x5f0   :  { %v10568_v60 = vld [vmem:[#allocation11 + $0x8] sm:$0xff]  }
 0x5f1   :  { %v727_v62 = vpop.f32.mrf.mxu0 }
 0x5f2   :  { %v828_v63 = vpack.c.bf16 %v727_v62, %v724_v59 }
 0x5f3   :  { %v772_v1 = vpop.f32.mrf.mxu1  ;;  %v9480_v2 = vpop.f32.mrf.mxu0 }
 0x5f4   :  { %9502 = vmatmul.mubr.msk.bf16.vlgmr.msra.gmra.mxu0 %vm344_vm2, %v828_v63 }
 0x5f5   :  { %v9485_v3 = vpop.f32.mrf.mxu1  ;;  %9512 = vmatpush3.bf16.msra.mxu0 %v981_v0  ;;  %9513 = vmatprep.mubr.msk.bf16.mxu0 %vm11231_vm1, %v11229_v37 }
 0x5f6   :  { %9525 = vmatprep.subr.bf16.mxu0 %v11229_v37 }
 0x5f7   :  { %v775_v4 = vpop.f32.mrf.mxu1  ;;  %v820_v5 = vpop.f32.mrf.mxu0 }
 0x5f8   :  { %v829_v6 = vpack.c.bf16 %v775_v4, %v772_v1 }
 0x5f9   :  { %v9486_v7 = vpop.f32.mrf.mxu1  ;;  %v9491_v8 = vpop.f32.mrf.mxu0 }
 0x5fa   :  { %9508 = vmatmul.mubr.msk.bf16.vlgmr.msra.gmra.mxu1 %vm344_vm2, %v829_v6  ;;  %v8879_v7 = vld [vmem:[#allocation10] ss:$0 sm:$0xff] }
 0x5fb   :  { %v823_v9 = vpop.f32.mrf.mxu0  ;;  %9521 = vmatprep.mubr.msk.bf16.mxu1 %vm11231_vm1, %v11229_v37  ;;  %9518 = vmatpush3.bf16.msra.mxu1 %v10568_v60  ;;  %v10577_v60 = vld [vmem:[%s13372_s5 + $0x20] ss:$8 sps:$4 sm:$0xff]  }
 0x5fc   :  { %v830_v11 = vpack.c.bf16 %v823_v9, %v820_v5  ;;  %9519 = vmatprep.subr.bf16.mxu1 %v11229_v37 }
 0x5fd   :  { %v9492_v12 = vpop.f32.mrf.mxu0 }
 0x5fe   :  { %9514 = vmatmul.mubr.msk.bf16.vlgmr.msra.gmra.mxu0 %vm344_vm2, %v830_v11 }
 0x5ff   :  { %9533 = vmatprep.mubr.msk.bf16.mxu0 %vm11231_vm1, %v11229_v37  ;;  %9520 = vmatpush3.bf16.msra.mxu1 %v10569_v61 }
 0x65d   :  { %v876_v13 = vpop.f32.mrf.mxu1 }
 0x65e   :  { %v1024_v21 = vsel %vm129_vm0, %v876_v13, 0.0  ;;  %v10570_v13 = vld [vmem:[%s13376_s9 + $0x18] sm:$0xff]  }
 0x65f   :  { %v9497_v14 = vpop.f32.mrf.mxu1  ;;  %9526 = vmatpush3.bf16.msra.mxu0 %v10570_v13 }
 0x660   :  { %v10571_v14 = vld [vmem:[%s13376_s9 + $0x10] sm:$0xff]   ;;  %9527 = vmatprep.subr.bf16.mxu0 %v11229_v37 }
 0x661   :  { %v879_v16 = vpop.f32.mrf.mxu1 }
 0x662   :  { %v1031_v34 = vsel %vm129_vm0, %v879_v16, 0.0  ;;  %v10572_v16 = vld [vmem:[%s13376_s9 + $0x8] sm:$0xff]  }
 0x663   :  { %v9498_v27 = vpop.f32.mrf.mxu1  ;;  %9528 = vmatpush3.bf16.msra.mxu0 %v10571_v14 }
 0x664   :  { %9529 = vmatprep.subr.bf16.mxu0 %v11229_v37  ;;  %v10573_v27 = vld [vmem:[%s13376_s9] sm:$0xff]  }
 0x667   :  { %9530 = vmatpush3.bf16.msra.mxu0 %v10572_v16 }
 0x668   :  { %9531 = vmatprep.subr.bf16.mxu0 %v11229_v37 }
 0x66b   :  { %9532 = vmatpush3.bf16.msra.mxu0 %v10573_v27 }
 0x66c   :  { %9543 = vmatprep.subr.bf16.mxu0 %v11229_v37 }
 0x6b4   :  { %v923_v31 = vpop.f32.mrf.mxu0 }
 0x6b5   :  { %v1025_v20 = vsel %vm129_vm0, %v923_v31, 0.0 }
 0x6b6   :  { %v9503_v18 = vpop.f32.mrf.mxu0  ;;  %v1026_v23 = vadd.f32 %v1025_v20, %v1024_v21 }
 0x6b8   :  { %v926_v19 = vpop.f32.mrf.mxu0 }
 0x6b9   :  { %v1032_v25 = vsel %vm129_vm0, %v926_v19, 0.0 }
 0x6ba   :  { %v970_v15 = vpop.f32.mrf.mxu1  ;;  %v9504_v17 = vpop.f32.mrf.mxu0  ;;  %v1033_v41 = vadd.f32 %v1032_v25, %v1031_v34 }
 0x6bb   :  { %v1027_v22 = vsel %vm129_vm0, %v970_v15, 0.0 }
 0x6bc   :  { %v9509_v24 = vpop.f32.mrf.mxu1  ;;  %v1028_v26 = vadd.f32 %v1027_v22, %v1026_v23 }
 0x6be   :  { %v973_v30 = vpop.f32.mrf.mxu1  ;;  %v1017_v33 = vpop.f32.mrf.mxu0 }
 0x6bf   :  { %v1034_v39 = vsel %vm129_vm0, %v973_v30, 0.0  ;;  %v1029_v40 = vsel %vm129_vm0, %v1017_v33, 0.0 }
 0x6c0   :  { %v1030_v42 = vadd.f32 %v1029_v40, %v1028_v26  ;;  %v9510_v43 = vpop.f32.mrf.mxu1  ;;  %v9515_v44 = vpop.f32.mrf.mxu0  ;;  %v1035_v46 = vadd.f32 %v1034_v39, %v1033_v41 }
 0x6c2   :  { %v11551_v49 = vadd.f32 %v11042_v47, %v1030_v42  ;;  %v1020_v50 = vpop.f32.mrf.mxu0 }
 0x6c3   :  { %v1036_v51 = vsel %vm129_vm0, %v1020_v50, 0.0 }
 0x6c4   :  { %v1037_v52 = vadd.f32 %v1036_v51, %v1035_v46  ;;  %v9516_v53 = vpop.f32.mrf.mxu0  ;;  %v1040_v54 = vmul.f32 %v11551_v49, %v11551_v49 }
 0x6c6   :  { %v11556_v56 = vadd.f32 %v11043_v55, %v1037_v52  ;;  %v1042_v57 = vsel %vm129_vm0, %v1040_v54, 0.0 }
 0x6c7   :  { %1043 = vadd.xlane.f32.xlu0 %v1042_v57 }
 0x6c8   :  { %v1041_v58 = vmul.f32 %v11556_v56, %v11556_v56 }
 0x6ca   :  { %v1045_v59 = vsel %vm129_vm0, %v1041_v58, 0.0 }
 0x6cb   :  { %1046 = vadd.xlane.f32.xlu1 %v1045_v59  ;;  %v10576_v59 = vld [vmem:[%s13372_s5 + $0x34] ss:$8 sps:$4 sm:$0xff]  }
 0x6cc   :  { %1297 = vmatprep.subr.bf16.mxu1 %v10576_v59 }
 0x750   :  { %v1044_v62 = vpop.xlane.xlu0 %1043 }
 0x751   :  { %v1048_v63 = vmul.f32 0.03125, %v1044_v62 }
 0x753   :  { %v1050_v0 = vadd.f32 1e-06, %v1048_v63 }
 0x754   :  { %v1047_v1 = vpop.xlane.xlu1 %1046 }
 0x755   :  { %10694 = vrsqrt.f32 %v1050_v0  ;;  %v1049_v2 = vmul.f32 0.03125, %v1047_v1 }
 0x757   :  { %v1051_v3 = vadd.f32 1e-06, %v1049_v2 }
 0x759   :  { %10696 = vrsqrt.f32 %v1051_v3 }
 0x762   :  { %v10695_v4 = vpop.eup %10694 }
 0x763   :  { %v1054_v5 = vmul.f32 %v10695_v4, %v11551_v49 }
 0x765   :  { %v1063_v9 = vmul.f32 %v8879_v7, %v1054_v5 }
 0x766   :  { %v10697_v6 = vpop.eup %10696 }
 0x767   :  { %v1055_v8 = vmul.f32 %v10697_v6, %v11556_v56  ;;  %v8888_v6 = vld [vmem:[#allocation8 + $0x1] ss:$0 sm:$0xff] }
 0x769   :  { %v1064_v11 = vmul.f32 %v8879_v7, %v1055_v8 }
 0x76b   :  { %v1065_v12 = vpack.c.bf16 %v1064_v11, %v1063_v9 }
 0x76d   :  { %9522 = vmatmul.mubr.msk.bf16.vlgmr.msra.gmra.mxu1 %vm129_vm0, %v1065_v12 }
 0x76e   :  { %1317 = vmatprep.mubr.bf16.mxu1 %v11226_v10 }
 0x82d   :  { %v1119_v31 = vpop.f32.mrf.mxu1 }
 0x82e   :  { %1142 = vrot.lane.b32.xlu0 %v1119_v31, %s11224_s25  ;;  %v1126_v15 = vsub.f32 0.0, %v1119_v31 }
 0x82f   :  { %v9523_v18 = vpop.f32.mrf.mxu1 }
 0x830   :  { %v1128_v21 = vmul.f32 1.442695, %v1126_v15 }
 0x831   :  { %v1122_v19 = vpop.f32.mrf.mxu1 }
 0x832   :  { %1144 = vrot.lane.b32.xlu1 %v1122_v19, %s11224_s25  ;;  %v1127_v17 = vsub.f32 0.0, %v1122_v19  ;;  %10698 = vpow2.f32 %v1128_v21 }
 0x833   :  { %v9524_v20 = vpop.f32.mrf.mxu1 }
 0x834   :  { %v1130_v22 = vmul.f32 1.442695, %v1127_v17 }
 0x836   :  { %10700 = vpow2.f32 %v1130_v22 }
 0x83f   :  { %v10699_v23 = vpop.eup %10698 }
 0x840   :  { %v1132_v25 = vadd.f32 1.0, %v10699_v23 }
 0x842   :  { %10702 = vrcp.f32 %v1132_v25 }
 0x843   :  { %v10701_v24 = vpop.eup %10700 }
 0x844   :  { %v1133_v26 = vadd.f32 1.0, %v10701_v24 }
 0x846   :  { %10704 = vrcp.f32 %v1133_v26 }
 0x84f   :  { %v10703_v30 = vpop.eup %10702 }
 0x850   :  { %v1138_v39 = vmul.f32 %v10703_v30, %v1119_v31 }
 0x853   :  { %v10705_v33 = vpop.eup %10704 }
 0x854   :  { %v1139_v40 = vmul.f32 %v10705_v33, %v1122_v19 }
 0x8a0   :  { %v1143_v34 = vpop.permute.xlu0 %1142 }
 0x8a1   :  { %v1148_v42 = vmul.f32 %v1143_v34, %v1138_v39 }
 0x8a4   :  { %v1145_v41 = vpop.permute.xlu1 %1144 }
 0x8a5   :  { %v1149_v43 = vmul.f32 %v1145_v41, %v1139_v40 }
 0x8a7   :  { %v1150_v44 = vpack.c.bf16 %v1149_v43, %v1148_v42  ;;  %v11646_v42 = vld [vmem:[#allocation5] sm:$0xff] }
 0x8a9   :  { %9534 = vmatmul.mubr.msk.bf16.vlgmr.msra.gmra.mxu0 %vm1183_vm5, %v1150_v44  ;;  %v11650_v44 = vld [vmem:[#allocation5 + $0x8] sm:$0xff] }
 0x8aa   :  { %9545 = vmatprep.mubr.msk.bf16.mxu0 %vm11231_vm1, %v11229_v37 }
 0x969   :  { %v1221_v46 = vpop.f32.mrf.mxu0 }
 0x96a   :  { %v11589_v47 = vadd.f32 %v1221_v46, %v11551_v49  ;;  %v10574_v49 = vld [vmem:[%s13372_s5 + $0x30] ss:$8 sps:$4 sm:$0xff]  }
 0x96b   :  { %v9535_v50 = vpop.f32.mrf.mxu0  ;;  %1298 = vmatpush1.bf16.msra.mxu1 %v10574_v49 }
 0x96c   :  { %v1230_v51 = vmul.f32 %v11589_v47, %v11589_v47 }
 0x96d   :  { %v1224_v52 = vpop.f32.mrf.mxu0 }
 0x96e   :  { %v11594_v53 = vadd.f32 %v1224_v52, %v11556_v56  ;;  %v1232_v54 = vsel %vm129_vm0, %v1230_v51, 0.0  ;;  %v10579_v56 = vld [vmem:[%s13372_s5 + $0x24] ss:$8 sps:$4 sm:$0xff]  }
 0x96f   :  { %1233 = vadd.xlane.f32.xlu0 %v1232_v54  ;;  %v9536_v55 = vpop.f32.mrf.mxu0  ;;  %1299 = vmatprep.subr.bf16.mxu1 %v10579_v56 }
 0x970   :  { %v1231_v57 = vmul.f32 %v11594_v53, %v11594_v53  ;;  %1300 = vmatpush1.bf16.msra.mxu1 %v10577_v60 }
 0x971   :  { %9537 = vmatprep.subr.bf16.mxu1 %v11229_v37 }
 0x972   :  { %v1235_v58 = vsel %vm129_vm0, %v1231_v57, 0.0 }
 0x973   :  { %1236 = vadd.xlane.f32.xlu1 %v1235_v58 }
 0x9f8   :  { %v1234_v61 = vpop.xlane.xlu0 %1233 }
 0x9f9   :  { %v1238_v62 = vmul.f32 0.03125, %v1234_v61 }
 0x9fb   :  { %v1240_v63 = vadd.f32 1e-06, %v1238_v62 }
 0x9fc   :  { %v1237_v0 = vpop.xlane.xlu1 %1236 }
 0x9fd   :  { %10706 = vrsqrt.f32 %v1240_v63  ;;  %v1239_v1 = vmul.f32 0.03125, %v1237_v0 }
 0x9ff   :  { %v1241_v2 = vadd.f32 1e-06, %v1239_v1 }
 0xa01   :  { %10708 = vrsqrt.f32 %v1241_v2 }
 0xa0a   :  { %v10707_v3 = vpop.eup %10706 }
 0xa0b   :  { %v1244_v4 = vmul.f32 %v10707_v3, %v11589_v47 }
 0xa0d   :  { %v1254_v8 = vmul.f32 %v8888_v6, %v1244_v4 }
 0xa0e   :  { %v10709_v5 = vpop.eup %10708 }
 0xa0f   :  { %v1245_v7 = vmul.f32 %v10709_v5, %v11594_v53 }
 0xa11   :  { %v1255_v9 = vmul.f32 %v8888_v6, %v1245_v7 }
 0xa13   :  { %v1256_v11 = vpack.c.bf16 %v1255_v9, %v1254_v8 }
 0xa15   :  { %8897 = vmatmul.mubr.msk.bf16.vlgmr.msra.gmra.mxu1 %vm129_vm0, %v1256_v11 }
 0xa16   :  { %9539 = vmatprep.mubr.msk.bf16.mxu1 %vm11231_vm1, %v11229_v37 }
 0xad5   :  { %v11618_v12 = vpop.f32.mrf.mxu1 }
 0xad6   :  { %v1330_v20 = vmul.f32 %v11618_v12, %v11381_v45  ;;  %v1342_v15 = vmul.f32 %v11618_v12, %v11371_v35  ;;  %v1328_v43 = vmul.f32 %v11646_v42, %v11618_v12 }
 0xad7   :  { %v1321_v13 = vpop.f32.mrf.mxu1 }
 0xad8   :  { %v1344_v14 = vmul.f32 %v1321_v13, %v11354_v28 }
 0xad9   :  { %v11621_v16 = vpop.f32.mrf.mxu1 }
 0xada   :  { %1348 = vrot.lane.b32.xlu0 %v1344_v14, %s11227_s12  ;;  %v11626_v27 = vpack.i.bf16 %v11621_v16, %v11618_v12  ;;  %v1424_v18 = vpack.c.bf16 %v11621_v16, %v11618_v12  ;;  %v1343_v17 = vmul.f32 %v11621_v16, %v11373_v36  ;;  %v1329_v46 = vmul.f32 %v11650_v44, %v11621_v16 }
 0xadb   :  { %v1325_v31 = vpop.f32.mrf.mxu1 }
 0xadc   :  { %v1345_v19 = vmul.f32 %v1325_v31, %v11362_v32  ;;  %v1331_v32 = vmul.f32 %v11621_v16, %v11392_v48 }
 0xade   :  { %1350 = vrot.lane.b32.xlu1 %v1345_v19, %s11227_s12 }
 0xae2   :  { %1334 = vrot.lane.b32.xlu1 %v1330_v20, %s11227_s12 }
 0xb4c   :  { %v1349_v28 = vpop.permute.xlu0 %1348 }
 0xb4d   :  { %v1354_v22 = vadd.f32 %v1349_v28, %v1342_v15 }
 0xb50   :  { %v1351_v21 = vpop.permute.xlu1 %1350 }
 0xb51   :  { %v1355_v23 = vadd.f32 %v1351_v21, %v1343_v17 }
 0xb53   :  { %v10252_v24 = vpack.i.bf16 %v1355_v23, %v1354_v22  ;;  %v1400_v25 = vpack.c.bf16 %v1355_v23, %v1354_v22 }
 0xb54   :  { %v1335_v26 = vpop.permute.xlu1 %1334 }
 0xb55   :  { %10253 = vrot.lane.b32.xlu1 %v10252_v24, %s11230_s17  ;;  %10248 = vrot.lane.b32.xlu0 %v10252_v24, %s11232_s20  ;;  %v1340_v54 = vadd.f32 %v1335_v26, %v1328_v43 }
 0xb59   :  { %1336 = vrot.lane.b32.xlu0 %v1331_v32, %s11227_s12  ;;  %1429 = vrot.lane.b32.xlu1 %v1400_v25, %s11228_s16 }
 0xb5d   :  { %10258 = vrot.lane.b32.xlu0 %v10252_v24, %s11233_s0 }
 0xbc7   :  { %v10249_v30 = vpop.permute.xlu0 %10248  ;;  %v10254_v33 = vpop.permute.xlu1 %10253 }
 0xbc8   :  { %v10251_v34 = vunpack.i.h.bf16 %v10249_v30  ;;  %v10250_v39 = vunpack.i.l.bf16 %v10249_v30  ;;  %v10256_v40 = vunpack.i.h.bf16 %v10254_v33  ;;  %v10255_v41 = vunpack.i.l.bf16 %v10254_v33 }
 0xbca   :  { %v1401_v50 = vpack.c.bf16 %v10251_v34, %v10250_v39  ;;  %v1402_v58 = vpack.c.bf16 %v10256_v40, %v10255_v41 }
 0xbcb   :  { %v1337_v51 = vpop.permute.xlu0 %1336  ;;  %v1430_v52 = vpop.permute.xlu1 %1429 }
 0xbcc   :  { %v1341_v55 = vadd.f32 %v1337_v51, %v1329_v46  ;;  %v1435_v57 = vsel %vm344_vm2, %v1430_v52, 0  ;;  %1479 = vrot.lane.b32.xlu0 %v1401_v50, %s11228_s16 }
 0xbcd   :  { %9538 = vmatpush3.bf16.xpose.msra.mxu1 %v1435_v57 }
 0xbce   :  { %v1376_v49 = vpack.c.bf16 %v1341_v55, %v1340_v54  ;;  %v10262_v59 = vpack.i.bf16 %v1341_v55, %v1340_v54  ;;  %9549 = vmatprep.subr.bf16.mxu1 %v11229_v37 }
 0xbcf   :  { %v10259_v56 = vpop.permute.xlu0 %10258 }
 0xbd0   :  { %v10261_v60 = vunpack.i.h.bf16 %v10259_v56  ;;  %v10260_v61 = vunpack.i.l.bf16 %v10259_v56  ;;  %10263 = vrot.lane.b32.xlu1 %v10262_v59, %s11232_s20  ;;  %1529 = vrot.lane.b32.xlu0 %v1402_v58, %s11228_s16 }
 0xbd2   :  { %v1403_v62 = vpack.c.bf16 %v10261_v60, %v10260_v61 }
 0xbd4   :  { %1579 = vrot.lane.b32.xlu1 %v1403_v62, %s11228_s16  ;;  %9540 = vmatmul.mubr.msk.bf16.vlgmr.msra.gmra.mxu1 %vm344_vm2, %v1376_v49 }
 0xbd5   :  { %10268 = vrot.lane.b32.xlu0 %v10262_v59, %s11230_s17  ;;  %9551 = vmatprep.mubr.msk.bf16.mxu1 %vm11231_vm1, %v11229_v37 }
 0xbd8   :  { %10273 = vrot.lane.b32.xlu1 %v10262_v59, %s11233_s0 }
 0xc3e   :  { %v1480_v63 = vpop.permute.xlu0 %1479 }
 0xc3f   :  { %v1485_v0 = vsel %vm344_vm2, %v1480_v63, 0 }
 0xc40   :  { %9544 = vmatpush3.bf16.xpose.msra.mxu0 %v1485_v0 }
 0xc41   :  { %9555 = vmatprep.subr.bf16.mxu0 %v11229_v37 }
 0xc42   :  { %v10264_v1 = vpop.permute.xlu1 %10263  ;;  %v1530_v2 = vpop.permute.xlu0 %1529 }
 0xc43   :  { %v10266_v3 = vunpack.i.h.bf16 %v10264_v1  ;;  %v10265_v4 = vunpack.i.l.bf16 %v10264_v1  ;;  %v1535_v5 = vsel %vm344_vm2, %v1530_v2, 0 }
 0xc44   :  { %9550 = vmatpush3.bf16.xpose.msra.mxu1 %v1535_v5 }
 0xc45   :  { %v1377_v6 = vpack.c.bf16 %v10266_v3, %v10265_v4  ;;  %9561 = vmatprep.subr.bf16.mxu1 %v11229_v37 }
 0xc46   :  { %v1580_v7 = vpop.permute.xlu1 %1579 }
 0xc47   :  { %v1585_v8 = vsel %vm344_vm2, %v1580_v7, 0  ;;  %v10269_v9 = vpop.permute.xlu0 %10268  ;;  %9546 = vmatmul.mubr.msk.bf16.vlgmr.msra.gmra.mxu0 %vm344_vm2, %v1377_v6 }
 0xc48   :  { %v10271_v11 = vunpack.i.h.bf16 %v10269_v9  ;;  %v10270_v13 = vunpack.i.l.bf16 %v10269_v9  ;;  %9556 = vmatpush3.bf16.xpose.msra.mxu0 %v1585_v8  ;;  %9557 = vmatprep.mubr.msk.bf16.mxu0 %vm11231_vm1, %v11229_v37 }
 0xc49   :  { %9567 = vmatprep.subr.bf16.mxu0 %v11229_v37 }
 0xc4a   :  { %v1378_v14 = vpack.c.bf16 %v10271_v11, %v10270_v13  ;;  %v10274_v31 = vpop.permute.xlu1 %10273 }
 0xc4b   :  { %v10276_v19 = vunpack.i.h.bf16 %v10274_v31  ;;  %v10275_v20 = vunpack.i.l.bf16 %v10274_v31 }
 0xc4c   :  { %9552 = vmatmul.mubr.msk.bf16.vlgmr.msra.gmra.mxu1 %vm344_vm2, %v1378_v14 }
 0xc4d   :  { %v1379_v28 = vpack.c.bf16 %v10276_v19, %v10275_v20  ;;  %9563 = vmatprep.mubr.msk.bf16.mxu1 %vm11231_vm1, %v11229_v37 }
 0xc4f   :  { %9558 = vmatmul.mubr.msk.bf16.vlgmr.msra.gmra.mxu0 %vm344_vm2, %v1379_v28 }
 0xc50   :  { %9569 = vmatprep.mubr.msk.bf16.mxu0 %vm11231_vm1, %v11229_v37 }
 0xc94   :  { %v1471_v15 = vpop.f32.mrf.mxu1 }
 0xc95   :  { %v11681_v17 = vadd.f32 %v1471_v15, %v11429_v29 }
 0xc96   :  { %v9541_v21 = vpop.f32.mrf.mxu1 }
 0xc97   :  { %v1628_v22 = vsel %vm542_vm3, %v11681_v17, -inf }
 0xc98   :  { %v1474_v23 = vpop.f32.mrf.mxu1  ;;  %1629 = vmax.xlane.f32.xlu0 %v1628_v22 }
 0xc99   :  { %v1475_v24 = vadd.f32 %v1474_v23, %v11432_v38 }
 0xc9a   :  { %v9542_v25 = vpop.f32.mrf.mxu1 }
 0xc9b   :  { %v1631_v32 = vsel %vm542_vm3, %v1475_v24, -inf }
 0xc9c   :  { %1632 = vmax.xlane.f32.xlu1 %v1631_v32 }
 0xd07   :  { %v1521_v26 = vpop.f32.mrf.mxu0 }
 0xd08   :  { %v1522_v30 = vadd.f32 %v1521_v26, %v11429_v29 }
 0xd09   :  { %v9547_v33 = vpop.f32.mrf.mxu0 }
 0xd0a   :  { %v1634_v34 = vsel %vm542_vm3, %v1522_v30, -inf }
 0xd0b   :  { %v1524_v39 = vpop.f32.mrf.mxu0  ;;  %1635 = vmax.xlane.f32.xlu0 %v1634_v34 }
 0xd0c   :  { %v11690_v40 = vadd.f32 %v1524_v39, %v11432_v38  ;;  %v1571_v41 = vpop.f32.mrf.mxu1 }
 0xd0d   :  { %v1572_v43 = vadd.f32 %v1571_v41, %v11429_v29  ;;  %v9548_v46 = vpop.f32.mrf.mxu0 }
 0xd0e   :  { %v9553_v50 = vpop.f32.mrf.mxu1  ;;  %v1637_v51 = vsel %vm542_vm3, %v11690_v40, -inf }
 0xd0f   :  { %v1621_v52 = vpop.f32.mrf.mxu0  ;;  %1638 = vmax.xlane.f32.xlu0 %v1637_v51  ;;  %v1640_v54 = vsel %vm542_vm3, %v1572_v43, -inf }
 0xd10   :  { %v1622_v55 = vadd.f32 %v1621_v52, %v11429_v29  ;;  %1641 = vmax.xlane.f32.xlu1 %v1640_v54  ;;  %v1574_v57 = vpop.f32.mrf.mxu1 }
 0xd11   :  { %v11698_v58 = vadd.f32 %v1574_v57, %v11432_v38  ;;  %v9559_v49 = vpop.f32.mrf.mxu0 }
 0xd12   :  { %v9554_v59 = vpop.f32.mrf.mxu1  ;;  %v1646_v56 = vsel %vm542_vm3, %v1622_v55, -inf }
 0xd13   :  { %v1624_v60 = vpop.f32.mrf.mxu0  ;;  %v1643_v61 = vsel %vm542_vm3, %v11698_v58, -inf }
 0xd14   :  { %v1625_v62 = vadd.f32 %v1624_v60, %v11432_v38  ;;  %1647 = vmax.xlane.f32.xlu1 %v1646_v56  ;;  %1644 = vmax.xlane.f32.xlu0 %v1643_v61 }
 0xd15   :  { %v9560_v63 = vpop.f32.mrf.mxu0 }
 0xd16   :  { %v1649_v29 = vsel %vm542_vm3, %v1625_v62, -inf }
 0xd18   :  { %1650 = vmax.xlane.f32.xlu0 %v1649_v29 }
 0xd21   :  { %v1630_v4 = vpop.xlane.xlu0 %1629 }
 0xd25   :  { %10278 = vrot.lane.b32.xlu1 %v11626_v27, %s11232_s20  ;;  %v1633_v38 = vpop.xlane.xlu1 %1632 }
 0xd26   :  { %v1653_v0 = vsub.f32 %v1475_v24, %v1633_v38 }
 0xd28   :  { %v1662_v1 = vmul.f32 1.442695, %v1653_v0 }
 0xd29   :  { %10288 = vrot.lane.b32.xlu1 %v11626_v27, %s11233_s0 }
 0xd2a   :  { %10710 = vpow2.f32 %v1662_v1 }
 0xd2e   :  { %10283 = vrot.lane.b32.xlu0 %v11626_v27, %s11230_s17 }
 0xd32   :  { %1721 = vrot.lane.b32.xlu0 %v1424_v18, %s11224_s25 }
 0xd37   :  { %v11715_v2 = vpop.eup %10710 }
 0xd38   :  { %v1679_v3 = vsel %vm542_vm3, %v11715_v2, 0.0 }
 0xd51   :  { %1680 = vadd.xlane.f32.xlu0 %v1679_v3 }
 0xd94   :  { %v1636_v5 = vpop.xlane.xlu0 %1635 }
 0xd95   :  { %v1654_v6 = vsub.f32 %v1522_v30, %v1636_v5  ;;  %v1652_v30 = vsub.f32 %v11681_v17, %v1630_v4 }
 0xd97   :  { %v1664_v7 = vmul.f32 1.442695, %v1654_v6  ;;  %v1660_v33 = vmul.f32 1.442695, %v1652_v30 }
 0xd98   :  { %v1639_v27 = vpop.xlane.xlu0 %1638 }
 0xd99   :  { %10712 = vpow2.f32 %v1664_v7  ;;  %v1642_v8 = vpop.xlane.xlu1 %1641  ;;  %v1655_v34 = vsub.f32 %v11690_v40, %v1639_v27 }
 0xd9a   :  { %v1656_v9 = vsub.f32 %v1572_v43, %v1642_v8 }
 0xd9b   :  { %v1666_v39 = vmul.f32 1.442695, %v1655_v34 }
 0xd9c   :  { %v1668_v12 = vmul.f32 1.442695, %v1656_v9 }
 0xd9d   :  { %v1648_v16 = vpop.xlane.xlu1 %1647  ;;  %v1645_v18 = vpop.xlane.xlu0 %1644 }
 0xd9e   :  { %10714 = vpow2.f32 %v1668_v12  ;;  %v1658_v11 = vsub.f32 %v1622_v55, %v1648_v16  ;;  %v1657_v41 = vsub.f32 %v11698_v58, %v1645_v18 }
 0xda0   :  { %v1672_v13 = vmul.f32 1.442695, %v1658_v11  ;;  %v1670_v43 = vmul.f32 1.442695, %v1657_v41 }
 0xda1   :  { %v10279_v14 = vpop.permute.xlu1 %10278  ;;  %v1651_v31 = vpop.xlane.xlu0 %1650 }
 0xda2   :  { %10716 = vpow2.f32 %v1672_v13  ;;  %v10281_v19 = vunpack.i.h.bf16 %v10279_v14  ;;  %v10280_v20 = vunpack.i.l.bf16 %v10279_v14  ;;  %v1659_v46 = vsub.f32 %v1625_v62, %v1651_v31 }
 0xda3   :  { %10718 = vpow2.f32 %v1660_v33 }
 0xda4   :  { %v1425_v28 = vpack.c.bf16 %v10281_v19, %v10280_v20  ;;  %10720 = vpow2.f32 %v1666_v39  ;;  %v1674_v51 = vmul.f32 1.442695, %v1659_v46  ;;  %v8908_v46 = vld [vmem:[%s13373_s6 + $0x18] sm:$0xf] }
 0xda5   :  { %v10284_v15 = vpop.permute.xlu0 %10283  ;;  %v10289_v50 = vpop.permute.xlu1 %10288  ;;  %10722 = vpow2.f32 %v1670_v43 }
 0xda6   :  { %v11719_v21 = vpop.eup %10712  ;;  %1769 = vrot.lane.b32.xlu1 %v1425_v28, %s11224_s25  ;;  %v10291_v52 = vunpack.i.h.bf16 %v10289_v50  ;;  %v10290_v54 = vunpack.i.l.bf16 %v10289_v50  ;;  %10724 = vpow2.f32 %v1674_v51  ;;  %v10286_v61 = vunpack.i.h.bf16 %v10284_v15 }
 0xda7   :  { %v1682_v22 = vsel %vm542_vm3, %v11719_v21, 0.0  ;;  %v10285_v62 = vunpack.i.l.bf16 %v10284_v15 }
 0xda8   :  { %1683 = vadd.xlane.f32.xlu0 %v1682_v22  ;;  %v1427_v55 = vpack.c.bf16 %v10291_v52, %v10290_v54  ;;  %v2019_v54 = vsel %vm838_vm4, %v8908_v46, 0 }
 0xda9   :  { %v1722_v23 = vpop.permute.xlu0 %1721  ;;  %v1426_v63 = vpack.c.bf16 %v10286_v61, %v10285_v62 }
 0xdaa   :  { %9562 = vmatpush3.bf16.msra.mxu1 %v1722_v23 }
 0xdab   :  { %v11724_v24 = vpop.eup %10714  ;;  %9573 = vmatprep.subr.bf16.mxu1 %v11229_v37 }
 0xdac   :  { %v1688_v25 = vsel %vm542_vm3, %v11724_v24, 0.0 }
 0xdad   :  { %1689 = vadd.xlane.f32.xlu0 %v1688_v25 }
 0xdaf   :  { %v11729_v32 = vpop.eup %10716 }
 0xdb0   :  { %v1694_v26 = vsel %vm542_vm3, %v11729_v32, 0.0  ;;  %v10719_v57 = vpop.eup %10718 }
 0xdb1   :  { %1695 = vadd.xlane.f32.xlu0 %v1694_v26  ;;  %v1676_v17 = vsel %vm542_vm3, %v10719_v57, 0.0  ;;  %v10721_v40 = vpop.eup %10720 }
 0xdb2   :  { %v1685_v49 = vsel %vm542_vm3, %v10721_v40, 0.0  ;;  %v10723_v58 = vpop.eup %10722 }
 0xdb3   :  { %v1691_v59 = vsel %vm542_vm3, %v10723_v58, 0.0  ;;  %v10725_v56 = vpop.eup %10724 }
 0xdb4   :  { %v1697_v60 = vsel %vm542_vm3, %v10725_v56, 0.0 }
 0xdc7   :  { %1865 = vrot.lane.b32.xlu0 %v1427_v55, %s11224_s25 }
 0xdca   :  { %1677 = vadd.xlane.f32.xlu1 %v1676_v17  ;;  %v8909_v17 = vld [vmem:[%s13373_s6 + $0x1c] sm:$0xf] }
 0xdce   :  { %1686 = vadd.xlane.f32.xlu1 %v1685_v49 }
 0xdd2   :  { %1692 = vadd.xlane.f32.xlu1 %v1691_v59  ;;  %v2066_v59 = vsel %vm838_vm4, %v8909_v17, 0 }
 0xdd6   :  { %1698 = vadd.xlane.f32.xlu1 %v1697_v60 }
 0xdda   :  { %v1681_v38 = vpop.xlane.xlu0 %1680 }
 0xddb   :  { %10726 = vrcp.f32 %v1681_v38 }
 0xde7   :  { %1817 = vrot.lane.b32.xlu1 %v1426_v63, %s11224_s25 }
 0xde8   :  { %v10727_v7 = vpop.eup %10726 }
 0xde9   :  { %v1709_v12 = vmul.f32 %v10727_v7, %v11715_v2 }
 0xe18   :  { %v1770_v29 = vpop.permute.xlu1 %1769 }
 0xe19   :  { %9568 = vmatpush3.bf16.msra.mxu0 %v1770_v29 }
 0xe1a   :  { %9579 = vmatprep.subr.bf16.mxu0 %v11229_v37 }
 0xe31   :  { %v1684_v0 = vpop.xlane.xlu0 %1683 }
 0xe36   :  { %v1690_v3 = vpop.xlane.xlu0 %1689 }
 0xe3a   :  { %v1696_v5 = vpop.xlane.xlu0 %1695 }
 0xe3e   :  { %v1866_v15 = vpop.permute.xlu0 %1865 }
 0xe53   :  { %v1678_v1 = vpop.xlane.xlu1 %1677 }
 0xe54   :  { %10728 = vrcp.f32 %v1678_v1 }
 0xe55   :  { %10730 = vrcp.f32 %v1684_v0 }
 0xe57   :  { %v1687_v4 = vpop.xlane.xlu1 %1686 }
 0xe58   :  { %10732 = vrcp.f32 %v1687_v4 }
 0xe59   :  { %10734 = vrcp.f32 %v1690_v3 }
 0xe5b   :  { %v1693_v6 = vpop.xlane.xlu1 %1692 }
 0xe5c   :  { %10736 = vrcp.f32 %v1693_v6 }
 0xe5d   :  { %10738 = vrcp.f32 %v1696_v5 }
 0xe5f   :  { %v1699_v27 = vpop.xlane.xlu1 %1698 }
 0xe60   :  { %10740 = vrcp.f32 %v1699_v27 }
 0xe61   :  { %v10729_v8 = vpop.eup %10728 }
 0xe62   :  { %v1708_v9 = vmul.f32 %v10729_v8, %v10719_v57  ;;  %v10731_v16 = vpop.eup %10730 }
 0xe63   :  { %v1818_v13 = vpop.permute.xlu1 %1817  ;;  %v1710_v14 = vmul.f32 %v10731_v16, %v11719_v21 }
 0xe64   :  { %v1716_v18 = vpack.c.bf16 %v1709_v12, %v1708_v9 }
 0xe65   :  { %v10733_v11 = vpop.eup %10732 }
 0xe66   :  { %9564 = vmatmul.mubr.msk.bf16.vlgmr.msra.gmra.mxu1 %vm542_vm3, %v1716_v18  ;;  %v1711_v31 = vmul.f32 %v10733_v11, %v10721_v40  ;;  %v10735_v19 = vpop.eup %10734 }
 0xe67   :  { %9574 = vmatpush3.bf16.msra.mxu1 %v1818_v13  ;;  %9575 = vmatprep.mubr.msk.bf16.mxu1 %vm11231_vm1, %v11229_v37  ;;  %v1712_v2 = vmul.f32 %v10735_v19, %v11724_v24  ;;  %v8906_v24 = vld [vmem:[%s13373_s6 + $0x10] sm:$0xf] }
 0xe68   :  { %v1717_v20 = vpack.c.bf16 %v1711_v31, %v1710_v14  ;;  %9585 = vmatprep.subr.bf16.mxu1 %v11229_v37  ;;  %v1925_v34 = vsel %vm838_vm4, %v8906_v24, 0 }
 0xe69   :  { %v10737_v28 = vpop.eup %10736 }
 0xe6a   :  { %9570 = vmatmul.mubr.msk.bf16.vlgmr.msra.gmra.mxu0 %vm542_vm3, %v1717_v20  ;;  %v1713_v22 = vmul.f32 %v10737_v28, %v10723_v58  ;;  %v10739_v23 = vpop.eup %10738 }
 0xe6b   :  { %9580 = vmatpush3.bf16.msra.mxu0 %v1866_v15  ;;  %9581 = vmatprep.mubr.msk.bf16.mxu0 %vm11231_vm1, %v11229_v37  ;;  %v1714_v26 = vmul.f32 %v10739_v23, %v11729_v32  ;;  %v8907_v32 = vld [vmem:[%s13373_s6 + $0x14] sm:$0xf] }
 0xe6c   :  { %v1718_v21 = vpack.c.bf16 %v1713_v22, %v1712_v2  ;;  %9591 = vmatprep.subr.bf16.mxu0 %v11229_v37  ;;  %v1972_v39 = vsel %vm838_vm4, %v8907_v32, 0 }
 0xe6d   :  { %v10741_v25 = vpop.eup %10740 }
 0xe6e   :  { %9576 = vmatmul.mubr.msk.bf16.vlgmr.msra.gmra.mxu1 %vm542_vm3, %v1718_v21  ;;  %v1715_v30 = vmul.f32 %v10741_v25, %v10725_v56 }
 0xe6f   :  { %9587 = vmatprep.mubr.msk.bf16.mxu1 %vm11231_vm1, %v11229_v37  ;;  %9586 = vmatpush3.bf16.msra.mxu1 %v1925_v34 }
 0xe70   :  { %v1719_v33 = vpack.c.bf16 %v1715_v30, %v1714_v26  ;;  %9597 = vmatprep.subr.bf16.mxu1 %v11229_v37 }
 0xe72   :  { %9582 = vmatmul.mubr.msk.bf16.vlgmr.msra.gmra.mxu0 %vm542_vm3, %v1719_v33 }
 0xe73   :  { %9593 = vmatprep.mubr.msk.bf16.mxu0 %vm11231_vm1, %v11229_v37  ;;  %9592 = vmatpush3.bf16.msra.mxu0 %v1972_v39 }
 0xe74   :  { %9603 = vmatprep.subr.bf16.mxu0 %v11229_v37 }
 0xf26   :  { %v1761_v41 = vpop.f32.mrf.mxu1 }
 0xf28   :  { %v9565_v43 = vpop.f32.mrf.mxu1 }
 0xf2a   :  { %v1764_v50 = vpop.f32.mrf.mxu1  ;;  %v1809_v51 = vpop.f32.mrf.mxu0 }
 0xf2b   :  { %v1912_v52 = vpack.c.bf16 %v1764_v50, %v1761_v41 }
 0xf2c   :  { %v9566_v55 = vpop.f32.mrf.mxu1  ;;  %v9571_v57 = vpop.f32.mrf.mxu0 }
 0xf2d   :  { %9588 = vmatmul.mubr.msk.bf16.vlgmr.msra.gmra.mxu1 %vm344_vm2, %v1912_v52  ;;  %v10580_v52 = vld [vmem:[#allocation11 + $0x18] sm:$0xff]  }
 0xf2e   :  { %v1812_v40 = vpop.f32.mrf.mxu0  ;;  %v1857_v49 = vpop.f32.mrf.mxu1  ;;  %9598 = vmatpush3.bf16.msra.mxu1 %v2019_v54  ;;  %9599 = vmatprep.mubr.msk.bf16.mxu1 %vm11231_vm1, %v11229_v37  ;;  %v10581_v54 = vld [vmem:[#allocation11 + $0x10] sm:$0xff]  }
 0xf2f   :  { %v1913_v58 = vpack.c.bf16 %v1812_v40, %v1809_v51  ;;  %9609 = vmatprep.subr.bf16.mxu1 %v11229_v37 }
 0xf30   :  { %v9572_v56 = vpop.f32.mrf.mxu0  ;;  %v9577_v60 = vpop.f32.mrf.mxu1 }
 0xf31   :  { %9594 = vmatmul.mubr.msk.bf16.vlgmr.msra.gmra.mxu0 %vm344_vm2, %v1913_v58  ;;  %v8914_v60 = vld [vmem:[#allocation10 + $0x1] ss:$0 sm:$0xff] }
 0xf32   :  { %v1860_v61 = vpop.f32.mrf.mxu1  ;;  %v1905_v62 = vpop.f32.mrf.mxu0  ;;  %9604 = vmatpush3.bf16.msra.mxu0 %v2066_v59  ;;  %9605 = vmatprep.mubr.msk.bf16.mxu0 %vm11231_vm1, %v11229_v37 }
 0xf33   :  { %v1914_v63 = vpack.c.bf16 %v1860_v61, %v1857_v49  ;;  %9617 = vmatprep.subr.bf16.mxu0 %v11229_v37 }
 0xf34   :  { %v9578_v29 = vpop.f32.mrf.mxu1  ;;  %v9583_v38 = vpop.f32.mrf.mxu0 }
 0xf35   :  { %9600 = vmatmul.mubr.msk.bf16.vlgmr.msra.gmra.mxu1 %vm344_vm2, %v1914_v63  ;;  %v10582_v38 = vld [vmem:[%s13376_s9 + $0x38] sm:$0xff]  }
 0xf36   :  { %v1908_v0 = vpop.f32.mrf.mxu0  ;;  %9613 = vmatprep.mubr.msk.bf16.mxu1 %vm11231_vm1, %v11229_v37  ;;  %9610 = vmatpush3.bf16.msra.mxu1 %v10580_v52 }
 0xf37   :  { %v1915_v1 = vpack.c.bf16 %v1908_v0, %v1905_v62  ;;  %9611 = vmatprep.subr.bf16.mxu1 %v11229_v37  ;;  %v10583_v0 = vld [vmem:[%s13376_s9 + $0x30] sm:$0xff]  }
 0xf38   :  { %v9584_v3 = vpop.f32.mrf.mxu0 }
 0xf39   :  { %9606 = vmatmul.mubr.msk.bf16.vlgmr.msra.gmra.mxu0 %vm344_vm2, %v1915_v1  ;;  %v10584_v1 = vld [vmem:[%s13376_s9 + $0x28] sm:$0xff]   ;;  %v10585_v3 = vld [vmem:[%s13376_s9 + $0x20] sm:$0xff]  }
 0xf3a   :  { %9625 = vmatprep.mubr.msk.bf16.mxu0 %vm11231_vm1, %v11229_v37  ;;  %9612 = vmatpush3.bf16.msra.mxu1 %v10581_v54 }
 0xf3b   :  { %9618 = vmatpush3.bf16.msra.mxu0 %v10582_v38 }
 0xf3c   :  { %9619 = vmatprep.subr.bf16.mxu0 %v11229_v37 }
 0xf3f   :  { %9620 = vmatpush3.bf16.msra.mxu0 %v10583_v0 }
 0xf40   :  { %9621 = vmatprep.subr.bf16.mxu0 %v11229_v37 }
 0xf43   :  { %9622 = vmatpush3.bf16.msra.mxu0 %v10584_v1 }
 0xf44   :  { %9623 = vmatprep.subr.bf16.mxu0 %v11229_v37 }
 0xf47   :  { %9624 = vmatpush3.bf16.msra.mxu0 %v10585_v3 }
 0xf48   :  { %9635 = vmatprep.subr.bf16.mxu0 %v11229_v37 }
 0xfed   :  { %v1961_v4 = vpop.f32.mrf.mxu1 }
 0xfee   :  { %v2109_v18 = vsel %vm129_vm0, %v1961_v4, 0.0 }
 0xfef   :  { %v9589_v5 = vpop.f32.mrf.mxu1 }
 0xff1   :  { %v1964_v6 = vpop.f32.mrf.mxu1  ;;  %v2008_v7 = vpop.f32.mrf.mxu0 }
 0xff2   :  { %v2110_v9 = vsel %vm129_vm0, %v2008_v7, 0.0  ;;  %v2116_v2 = vsel %vm129_vm0, %v1964_v6, 0.0 }
 0xff3   :  { %v9590_v27 = vpop.f32.mrf.mxu1  ;;  %v9595_v8 = vpop.f32.mrf.mxu0  ;;  %v2111_v13 = vadd.f32 %v2110_v9, %v2109_v18 }
 0xff5   :  { %v2011_v12 = vpop.f32.mrf.mxu0  ;;  %v2055_v16 = vpop.f32.mrf.mxu1 }
 0xff6   :  { %v2112_v11 = vsel %vm129_vm0, %v2055_v16, 0.0  ;;  %v2117_v19 = vsel %vm129_vm0, %v2011_v12, 0.0 }
 0xff7   :  { %v9596_v14 = vpop.f32.mrf.mxu0  ;;  %v9601_v31 = vpop.f32.mrf.mxu1  ;;  %v2113_v20 = vadd.f32 %v2112_v11, %v2111_v13  ;;  %v2118_v21 = vadd.f32 %v2117_v19, %v2116_v2 }
 0xff9   :  { %v2058_v28 = vpop.f32.mrf.mxu1  ;;  %v2102_v15 = vpop.f32.mrf.mxu0 }
 0xffa   :  { %v2119_v22 = vsel %vm129_vm0, %v2058_v28, 0.0  ;;  %v2114_v23 = vsel %vm129_vm0, %v2102_v15, 0.0 }
 0xffb   :  { %v2115_v25 = vadd.f32 %v2114_v23, %v2113_v20  ;;  %v9602_v26 = vpop.f32.mrf.mxu1  ;;  %v9607_v30 = vpop.f32.mrf.mxu0  ;;  %v2120_v33 = vadd.f32 %v2119_v22, %v2118_v21 }
 0xffd   :  { %v11801_v24 = vadd.f32 %v2115_v25, %v11589_v47  ;;  %v2105_v34 = vpop.f32.mrf.mxu0 }
 0xffe   :  { %v2121_v32 = vsel %vm129_vm0, %v2105_v34, 0.0 }
 0xfff   :  { %v2122_v39 = vadd.f32 %v2121_v32, %v2120_v33  ;;  %v9608_v41 = vpop.f32.mrf.mxu0  ;;  %v2125_v43 = vmul.f32 %v11801_v24, %v11801_v24 }
0x1001   :  { %v11807_v46 = vadd.f32 %v2122_v39, %v11594_v53  ;;  %v2127_v50 = vsel %vm129_vm0, %v2125_v43, 0.0 }
0x1002   :  { %2128 = vadd.xlane.f32.xlu1 %v2127_v50  ;;  %v10588_v50 = vld [vmem:[%s13372_s5 + $0x54] ss:$8 sps:$4 sm:$0xff]  }
0x1003   :  { %v2126_v51 = vmul.f32 %v11807_v46, %v11807_v46  ;;  %2384 = vmatprep.subr.bf16.mxu1 %v10588_v50 }
0x1005   :  { %v2130_v47 = vsel %vm129_vm0, %v2126_v51, 0.0  ;;  %v10589_v51 = vld [vmem:[%s13372_s5 + $0x40] ss:$8 sps:$4 sm:$0xff]  }
0x1006   :  { %2131 = vadd.xlane.f32.xlu0 %v2130_v47 }
0x108b   :  { %v2129_v55 = vpop.xlane.xlu1 %2128 }
0x108c   :  { %v2133_v57 = vmul.f32 0.03125, %v2129_v55 }
0x108e   :  { %v2135_v17 = vadd.f32 1e-06, %v2133_v57 }
0x108f   :  { %v2132_v53 = vpop.xlane.xlu0 %2131 }
0x1090   :  { %10742 = vrsqrt.f32 %v2135_v17  ;;  %v2134_v40 = vmul.f32 0.03125, %v2132_v53 }
0x1092   :  { %v2136_v49 = vadd.f32 1e-06, %v2134_v40 }
0x1094   :  { %10744 = vrsqrt.f32 %v2136_v49 }
0x109d   :  { %v10743_v58 = vpop.eup %10742 }
0x109e   :  { %v2139_v59 = vmul.f32 %v10743_v58, %v11801_v24  ;;  %v8931_v58 = vld [vmem:[#allocation8 + $0x2] ss:$0 sm:$0xff] }
0x10a0   :  { %v2149_v62 = vmul.f32 %v8914_v60, %v2139_v59 }
0x10a1   :  { %v10745_v56 = vpop.eup %10744 }
0x10a2   :  { %v2140_v61 = vmul.f32 %v10745_v56, %v11807_v46 }
0x10a4   :  { %v2150_v63 = vmul.f32 %v8914_v60, %v2140_v61 }
0x10a6   :  { %v2151_v29 = vpack.c.bf16 %v2150_v63, %v2149_v62 }
0x10a8   :  { %9614 = vmatmul.mubr.msk.bf16.vlgmr.msra.gmra.mxu1 %vm129_vm0, %v2151_v29  ;;  %v11874_v29 = vld [vmem:[%s13369_s2] sm:$0xff] }
0x10a9   :  { %2404 = vmatprep.mubr.bf16.mxu1 %v11226_v10 }
0x1168   :  { %v2206_v4 = vpop.f32.mrf.mxu1 }
0x1169   :  { %2229 = vrot.lane.b32.xlu0 %v2206_v4, %s11224_s25  ;;  %v2213_v27 = vsub.f32 0.0, %v2206_v4 }
0x116a   :  { %v9615_v5 = vpop.f32.mrf.mxu1 }
0x116b   :  { %v2215_v9 = vmul.f32 1.442695, %v2213_v27  ;;  %v11889_v5 = vld [vmem:[%s13369_s2 + $0x8] sm:$0xff] }
0x116c   :  { %v2209_v6 = vpop.f32.mrf.mxu1 }
0x116d   :  { %2231 = vrot.lane.b32.xlu1 %v2209_v6, %s11224_s25  ;;  %v2214_v8 = vsub.f32 0.0, %v2209_v6  ;;  %10746 = vpow2.f32 %v2215_v9 }
0x116e   :  { %v9616_v7 = vpop.f32.mrf.mxu1 }
0x116f   :  { %v2217_v12 = vmul.f32 1.442695, %v2214_v8 }
0x1171   :  { %10748 = vpow2.f32 %v2217_v12 }
0x117a   :  { %v10747_v16 = vpop.eup %10746 }
0x117b   :  { %v2219_v11 = vadd.f32 1.0, %v10747_v16 }
0x117d   :  { %10750 = vrcp.f32 %v2219_v11 }
0x117e   :  { %v10749_v18 = vpop.eup %10748 }
0x117f   :  { %v2220_v13 = vadd.f32 1.0, %v10749_v18 }
0x1181   :  { %10752 = vrcp.f32 %v2220_v13 }
0x118a   :  { %v10751_v14 = vpop.eup %10750 }
0x118b   :  { %v2225_v20 = vmul.f32 %v10751_v14, %v2206_v4 }
0x118e   :  { %v10753_v31 = vpop.eup %10752 }
0x118f   :  { %v2226_v28 = vmul.f32 %v10753_v31, %v2209_v6 }
0x11db   :  { %v2230_v19 = vpop.permute.xlu0 %2229 }
0x11dc   :  { %v2235_v2 = vmul.f32 %v2230_v19, %v2225_v20 }
0x11df   :  { %v2232_v15 = vpop.permute.xlu1 %2231 }
0x11e0   :  { %v2236_v22 = vmul.f32 %v2232_v15, %v2226_v28 }
0x11e2   :  { %v2237_v23 = vpack.c.bf16 %v2236_v22, %v2235_v2 }
0x11e4   :  { %9626 = vmatmul.mubr.msk.bf16.vlgmr.msra.gmra.mxu0 %vm1183_vm5, %v2237_v23 }
0x11e5   :  { %9637 = vmatprep.mubr.msk.bf16.mxu0 %vm11231_vm1, %v11229_v37 }
0x12a4   :  { %v2308_v21 = vpop.f32.mrf.mxu0 }
0x12a5   :  { %v11840_v25 = vadd.f32 %v2308_v21, %v11801_v24  ;;  %v10586_v24 = vld [vmem:[%s13372_s5 + $0x50] ss:$8 sps:$4 sm:$0xff]  }
0x12a6   :  { %v9627_v26 = vpop.f32.mrf.mxu0  ;;  %2385 = vmatpush1.bf16.msra.mxu1 %v10586_v24 }
0x12a7   :  { %v2317_v30 = vmul.f32 %v11840_v25, %v11840_v25 }
0x12a8   :  { %v2311_v33 = vpop.f32.mrf.mxu0 }
0x12a9   :  { %v11845_v34 = vadd.f32 %v2311_v33, %v11807_v46  ;;  %v2319_v32 = vsel %vm129_vm0, %v2317_v30, 0.0  ;;  %v10591_v46 = vld [vmem:[%s13372_s5 + $0x44] ss:$8 sps:$4 sm:$0xff]  }
0x12aa   :  { %2320 = vadd.xlane.f32.xlu1 %v2319_v32  ;;  %v9628_v39 = vpop.f32.mrf.mxu0  ;;  %2386 = vmatprep.subr.bf16.mxu1 %v10591_v46 }
0x12ab   :  { %v2318_v41 = vmul.f32 %v11845_v34, %v11845_v34  ;;  %2387 = vmatpush1.bf16.msra.mxu1 %v10589_v51 }
0x12ac   :  { %9629 = vmatprep.subr.bf16.mxu1 %v11229_v37 }
0x12ad   :  { %v2322_v43 = vsel %vm129_vm0, %v2318_v41, 0.0 }
0x12ae   :  { %2323 = vadd.xlane.f32.xlu0 %v2322_v43 }
0x1333   :  { %v2321_v47 = vpop.xlane.xlu1 %2320 }
0x1334   :  { %v2325_v52 = vmul.f32 0.03125, %v2321_v47 }
0x1336   :  { %v2327_v54 = vadd.f32 1e-06, %v2325_v52 }
0x1337   :  { %v2324_v55 = vpop.xlane.xlu0 %2323 }
0x1338   :  { %10754 = vrsqrt.f32 %v2327_v54  ;;  %v2326_v57 = vmul.f32 0.03125, %v2324_v55 }
0x133a   :  { %v2328_v17 = vadd.f32 1e-06, %v2326_v57 }
0x133c   :  { %10756 = vrsqrt.f32 %v2328_v17 }
0x1345   :  { %v10755_v53 = vpop.eup %10754 }
0x1346   :  { %v2331_v40 = vmul.f32 %v10755_v53, %v11840_v25 }
0x1348   :  { %v2341_v56 = vmul.f32 %v8931_v58, %v2331_v40 }
0x1349   :  { %v10757_v49 = vpop.eup %10756 }
0x134a   :  { %v2332_v59 = vmul.f32 %v10757_v49, %v11845_v34 }
0x134c   :  { %v2342_v60 = vmul.f32 %v8931_v58, %v2332_v59 }
0x134e   :  { %v2343_v61 = vpack.c.bf16 %v2342_v60, %v2341_v56 }
0x1350   :  { %8940 = vmatmul.mubr.msk.bf16.vlgmr.msra.gmra.mxu1 %vm129_vm0, %v2343_v61 }
0x1351   :  { %9631 = vmatprep.mubr.msk.bf16.mxu1 %vm11231_vm1, %v11229_v37 }
0x1410   :  { %v11869_v62 = vpop.f32.mrf.mxu1 }
0x1411   :  { %v2417_v7 = vmul.f32 %v11869_v62, %v11381_v45  ;;  %v2429_v8 = vmul.f32 %v11869_v62, %v11371_v35  ;;  %v2415_v23 = vmul.f32 %v11646_v42, %v11869_v62 }
0x1412   :  { %v2408_v63 = vpop.f32.mrf.mxu1 }
0x1413   :  { %v2431_v38 = vmul.f32 %v11874_v29, %v2408_v63 }
0x1414   :  { %v11877_v0 = vpop.f32.mrf.mxu1 }
0x1415   :  { %2435 = vrot.lane.b32.xlu0 %v2431_v38, %s11227_s12  ;;  %v11882_v1 = vpack.i.bf16 %v11877_v0, %v11869_v62  ;;  %v2511_v4 = vpack.c.bf16 %v11877_v0, %v11869_v62  ;;  %v2430_v9 = vmul.f32 %v11877_v0, %v11373_v36  ;;  %v2418_v14 = vmul.f32 %v11877_v0, %v11392_v48 }
0x1416   :  { %v2412_v3 = vpop.f32.mrf.mxu1  ;;  %v2416_v26 = vmul.f32 %v11650_v44, %v11877_v0 }
0x1417   :  { %v2432_v6 = vmul.f32 %v11889_v5, %v2412_v3 }
0x1419   :  { %2421 = vrot.lane.b32.xlu0 %v2417_v7, %s11227_s12  ;;  %2437 = vrot.lane.b32.xlu1 %v2432_v6, %s11227_s12 }
0x1487   :  { %v2436_v27 = vpop.permute.xlu0 %2435 }
0x1488   :  { %v2441_v16 = vadd.f32 %v2436_v27, %v2429_v8  ;;  %v11937_v27 = vld [vmem:[#allocation7] sm:$0xff] }
0x148b   :  { %v2438_v12 = vpop.permute.xlu1 %2437  ;;  %v2422_v31 = vpop.permute.xlu0 %2421 }
0x148c   :  { %v2442_v18 = vadd.f32 %v2438_v12, %v2430_v9  ;;  %v2427_v32 = vadd.f32 %v2422_v31, %v2415_v23 }
0x148e   :  { %v10297_v11 = vpack.i.bf16 %v2442_v18, %v2441_v16  ;;  %v2487_v13 = vpack.c.bf16 %v2442_v18, %v2441_v16  ;;  %v11941_v18 = vld [vmem:[#allocation7 + $0x8] sm:$0xff] }
0x1490   :  { %10298 = vrot.lane.b32.xlu0 %v10297_v11, %s11230_s17  ;;  %10293 = vrot.lane.b32.xlu1 %v10297_v11, %s11232_s20 }
0x1494   :  { %2423 = vrot.lane.b32.xlu1 %v2418_v14, %s11227_s12  ;;  %2516 = vrot.lane.b32.xlu0 %v2487_v13, %s11228_s16 }
0x1498   :  { %10303 = vrot.lane.b32.xlu1 %v10297_v11, %s11233_s0 }
0x1502   :  { %v10299_v19 = vpop.permute.xlu0 %10298  ;;  %v10294_v20 = vpop.permute.xlu1 %10293 }
0x1503   :  { %v10296_v28 = vunpack.i.h.bf16 %v10294_v20  ;;  %v10295_v15 = vunpack.i.l.bf16 %v10294_v20  ;;  %v10301_v2 = vunpack.i.h.bf16 %v10299_v19  ;;  %v10300_v22 = vunpack.i.l.bf16 %v10299_v19 }
0x1505   :  { %v2488_v21 = vpack.c.bf16 %v10296_v28, %v10295_v15  ;;  %v2489_v43 = vpack.c.bf16 %v10301_v2, %v10300_v22 }
0x1506   :  { %v2424_v30 = vpop.permute.xlu1 %2423  ;;  %v2517_v33 = vpop.permute.xlu0 %2516 }
0x1507   :  { %v2428_v39 = vadd.f32 %v2424_v30, %v2416_v26  ;;  %v2522_v41 = vsel %vm344_vm2, %v2517_v33, 0  ;;  %2566 = vrot.lane.b32.xlu1 %v2488_v21, %s11228_s16 }
0x1508   :  { %9630 = vmatpush3.bf16.xpose.msra.mxu1 %v2522_v41 }
0x1509   :  { %v2463_v24 = vpack.c.bf16 %v2428_v39, %v2427_v32  ;;  %v10307_v50 = vpack.i.bf16 %v2428_v39, %v2427_v32  ;;  %9641 = vmatprep.subr.bf16.mxu1 %v11229_v37 }
0x150a   :  { %v10304_v46 = vpop.permute.xlu1 %10303 }
0x150b   :  { %v10306_v42 = vunpack.i.h.bf16 %v10304_v46  ;;  %v10305_v51 = vunpack.i.l.bf16 %v10304_v46  ;;  %2616 = vrot.lane.b32.xlu1 %v2489_v43, %s11228_s16  ;;  %10308 = vrot.lane.b32.xlu0 %v10307_v50, %s11232_s20 }
0x150d   :  { %v2490_v44 = vpack.c.bf16 %v10306_v42, %v10305_v51 }
0x150f   :  { %10313 = vrot.lane.b32.xlu1 %v10307_v50, %s11230_s17  ;;  %2666 = vrot.lane.b32.xlu0 %v2490_v44, %s11228_s16 }
0x1510   :  { %9632 = vmatmul.mubr.msk.bf16.vlgmr.msra.gmra.mxu1 %vm344_vm2, %v2463_v24 }
0x1511   :  { %9643 = vmatprep.mubr.msk.bf16.mxu1 %vm11231_vm1, %v11229_v37 }
0x1513   :  { %10318 = vrot.lane.b32.xlu0 %v10307_v50, %s11233_s0 }
0x1579   :  { %v2567_v47 = vpop.permute.xlu1 %2566 }
0x157a   :  { %v2572_v52 = vsel %vm344_vm2, %v2567_v47, 0 }
0x157b   :  { %9636 = vmatpush3.bf16.xpose.msra.mxu0 %v2572_v52 }
0x157c   :  { %9647 = vmatprep.subr.bf16.mxu0 %v11229_v37 }
0x157d   :  { %v2617_v54 = vpop.permute.xlu1 %2616  ;;  %v10309_v55 = vpop.permute.xlu0 %10308 }
0x157e   :  { %v2622_v57 = vsel %vm344_vm2, %v2617_v54, 0  ;;  %v10311_v17 = vunpack.i.h.bf16 %v10309_v55  ;;  %v10310_v53 = vunpack.i.l.bf16 %v10309_v55 }
0x157f   :  { %9642 = vmatpush3.bf16.xpose.msra.mxu1 %v2622_v57 }
0x1580   :  { %v2464_v40 = vpack.c.bf16 %v10311_v17, %v10310_v53  ;;  %9653 = vmatprep.subr.bf16.mxu1 %v11229_v37 }
0x1581   :  { %v10314_v49 = vpop.permute.xlu1 %10313  ;;  %v2667_v58 = vpop.permute.xlu0 %2666 }
0x1582   :  { %v10316_v59 = vunpack.i.h.bf16 %v10314_v49  ;;  %v10315_v56 = vunpack.i.l.bf16 %v10314_v49  ;;  %v2672_v60 = vsel %vm344_vm2, %v2667_v58, 0  ;;  %9638 = vmatmul.mubr.msk.bf16.vlgmr.msra.gmra.mxu0 %vm344_vm2, %v2464_v40 }
0x1583   :  { %9648 = vmatpush3.bf16.xpose.msra.mxu0 %v2672_v60  ;;  %9649 = vmatprep.mubr.msk.bf16.mxu0 %vm11231_vm1, %v11229_v37 }
0x1584   :  { %v2465_v61 = vpack.c.bf16 %v10316_v59, %v10315_v56  ;;  %9659 = vmatprep.subr.bf16.mxu0 %v11229_v37 }
0x1585   :  { %v10319_v63 = vpop.permute.xlu0 %10318 }
0x1586   :  { %v10321_v38 = vunpack.i.h.bf16 %v10319_v63  ;;  %v10320_v3 = vunpack.i.l.bf16 %v10319_v63  ;;  %9644 = vmatmul.mubr.msk.bf16.vlgmr.msra.gmra.mxu1 %vm344_vm2, %v2465_v61 }
0x1587   :  { %9655 = vmatprep.mubr.msk.bf16.mxu1 %vm11231_vm1, %v11229_v37 }
0x1588   :  { %v2466_v6 = vpack.c.bf16 %v10321_v38, %v10320_v3 }
0x158a   :  { %9650 = vmatmul.mubr.msk.bf16.vlgmr.msra.gmra.mxu0 %vm344_vm2, %v2466_v6 }
0x158b   :  { %9661 = vmatprep.mubr.msk.bf16.mxu0 %vm11231_vm1, %v11229_v37 }
0x15d0   :  { %v2558_v7 = vpop.f32.mrf.mxu1 }
0x15d1   :  { %v2559_v8 = vadd.f32 %v11937_v27, %v2558_v7 }
0x15d2   :  { %v9633_v9 = vpop.f32.mrf.mxu1 }
0x15d3   :  { %v2715_v12 = vsel %vm542_vm3, %v2559_v8, -inf }
0x15d4   :  { %2716 = vmax.xlane.f32.xlu1 %v2715_v12  ;;  %v2561_v16 = vpop.f32.mrf.mxu1 }
0x15d5   :  { %v2562_v11 = vadd.f32 %v11941_v18, %v2561_v16 }
0x15d6   :  { %v9634_v13 = vpop.f32.mrf.mxu1 }
0x15d7   :  { %v2718_v14 = vsel %vm542_vm3, %v2562_v11, -inf }
0x15d8   :  { %2719 = vmax.xlane.f32.xlu0 %v2718_v14 }
0x1642   :  { %v2608_v31 = vpop.f32.mrf.mxu0 }
0x1643   :  { %v2609_v19 = vadd.f32 %v11937_v27, %v2608_v31 }
0x1644   :  { %v9639_v20 = vpop.f32.mrf.mxu0 }
0x1645   :  { %v2721_v28 = vsel %vm542_vm3, %v2609_v19, -inf }
0x1646   :  { %v2658_v15 = vpop.f32.mrf.mxu1  ;;  %2722 = vmax.xlane.f32.xlu0 %v2721_v28  ;;  %v2611_v2 = vpop.f32.mrf.mxu0 }
0x1647   :  { %v2659_v22 = vadd.f32 %v11937_v27, %v2658_v15  ;;  %v2612_v23 = vadd.f32 %v11941_v18, %v2611_v2 }
0x1648   :  { %v9640_v21 = vpop.f32.mrf.mxu0  ;;  %v9645_v26 = vpop.f32.mrf.mxu1 }
0x1649   :  { %v2727_v30 = vsel %vm542_vm3, %v2659_v22, -inf  ;;  %v2724_v33 = vsel %vm542_vm3, %v2612_v23, -inf }
0x164a   :  { %v2661_v32 = vpop.f32.mrf.mxu1  ;;  %2728 = vmax.xlane.f32.xlu0 %v2727_v30  ;;  %2725 = vmax.xlane.f32.xlu1 %v2724_v33  ;;  %v2708_v39 = vpop.f32.mrf.mxu0 }
0x164b   :  { %v2662_v41 = vadd.f32 %v11941_v18, %v2661_v32  ;;  %v2709_v43 = vadd.f32 %v11937_v27, %v2708_v39 }
0x164c   :  { %v9646_v24 = vpop.f32.mrf.mxu1  ;;  %v9651_v50 = vpop.f32.mrf.mxu0 }
0x164d   :  { %v2730_v46 = vsel %vm542_vm3, %v2662_v41, -inf  ;;  %v2733_v42 = vsel %vm542_vm3, %v2709_v43, -inf }
0x164e   :  { %2731 = vmax.xlane.f32.xlu1 %v2730_v46  ;;  %2734 = vmax.xlane.f32.xlu0 %v2733_v42  ;;  %v2711_v51 = vpop.f32.mrf.mxu0 }
0x164f   :  { %v2712_v44 = vadd.f32 %v11941_v18, %v2711_v51 }
0x1650   :  { %v9652_v47 = vpop.f32.mrf.mxu0 }
0x1651   :  { %v2736_v52 = vsel %vm542_vm3, %v2712_v44, -inf }
0x1652   :  { %2737 = vmax.xlane.f32.xlu1 %v2736_v52 }
0x165d   :  { %v2717_v54 = vpop.xlane.xlu1 %2716 }
0x165e   :  { %v2739_v55 = vsub.f32 %v2559_v8, %v2717_v54 }
0x1660   :  { %v2747_v57 = vmul.f32 1.442695, %v2739_v55 }
0x1661   :  { %v2720_v17 = vpop.xlane.xlu0 %2719 }
0x1662   :  { %10758 = vpow2.f32 %v2747_v57  ;;  %v2740_v53 = vsub.f32 %v2562_v11, %v2720_v17 }
0x1663   :  { %10328 = vrot.lane.b32.xlu1 %v11882_v1, %s11230_s17 }
0x1664   :  { %10323 = vrot.lane.b32.xlu0 %v11882_v1, %s11232_s20  ;;  %v2749_v40 = vmul.f32 1.442695, %v2740_v53 }
0x1666   :  { %10760 = vpow2.f32 %v2749_v40 }
0x1667   :  { %10333 = vrot.lane.b32.xlu1 %v11882_v1, %s11233_s0 }
0x166b   :  { %2808 = vrot.lane.b32.xlu1 %v2511_v4, %s11224_s25 }
0x166f   :  { %v11967_v49 = vpop.eup %10758 }
0x1670   :  { %v2763_v58 = vsel %vm542_vm3, %v11967_v49, 0.0 }
0x1673   :  { %v11971_v59 = vpop.eup %10760 }
0x1674   :  { %v2766_v1 = vsel %vm542_vm3, %v11971_v59, 0.0 }
0x1683   :  { %2764 = vadd.xlane.f32.xlu0 %v2763_v58 }
0x168f   :  { %2767 = vadd.xlane.f32.xlu1 %v2766_v1 }
0x16cf   :  { %v2723_v62 = vpop.xlane.xlu0 %2722 }
0x16d0   :  { %v2741_v0 = vsub.f32 %v2609_v19, %v2723_v62 }
0x16d2   :  { %v2751_v4 = vmul.f32 1.442695, %v2741_v0 }
0x16d3   :  { %v2729_v56 = vpop.xlane.xlu0 %2728  ;;  %v2726_v60 = vpop.xlane.xlu1 %2725 }
0x16d4   :  { %10762 = vpow2.f32 %v2751_v4  ;;  %v2743_v61 = vsub.f32 %v2659_v22, %v2729_v56  ;;  %v2742_v63 = vsub.f32 %v2612_v23, %v2726_v60 }
0x16d6   :  { %v2755_v38 = vmul.f32 1.442695, %v2743_v61  ;;  %v2753_v3 = vmul.f32 1.442695, %v2742_v63 }
0x16d7   :  { %v2732_v6 = vpop.xlane.xlu1 %2731  ;;  %v2735_v7 = vpop.xlane.xlu0 %2734 }
0x16d8   :  { %10764 = vpow2.f32 %v2755_v38  ;;  %v2744_v8 = vsub.f32 %v2662_v41, %v2732_v6  ;;  %v2745_v9 = vsub.f32 %v2709_v43, %v2735_v7 }
0x16d9   :  { %10766 = vpow2.f32 %v2753_v3 }
0x16da   :  { %v2757_v12 = vmul.f32 1.442695, %v2744_v8  ;;  %v2759_v16 = vmul.f32 1.442695, %v2745_v9 }
0x16db   :  { %v2738_v11 = vpop.xlane.xlu1 %2737  ;;  %v10324_v51 = vpop.permute.xlu0 %10323 }
0x16dc   :  { %10768 = vpow2.f32 %v2757_v12  ;;  %v2746_v13 = vsub.f32 %v2712_v44, %v2738_v11  ;;  %v10326_v47 = vunpack.i.h.bf16 %v10324_v51  ;;  %v10325_v52 = vunpack.i.l.bf16 %v10324_v51  ;;  %v8949_v12 = vld [vmem:[%s13373_s6 + $0x20] sm:$0xf] }
0x16dd   :  { %10770 = vpow2.f32 %v2759_v16 }
0x16de   :  { %v2761_v14 = vmul.f32 1.442695, %v2746_v13  ;;  %v2512_v54 = vpack.c.bf16 %v10326_v47, %v10325_v52 }
0x16df   :  { %v10329_v31 = vpop.permute.xlu1 %10328 }
0x16e0   :  { %10772 = vpow2.f32 %v2761_v14  ;;  %v10331_v43 = vunpack.i.h.bf16 %v10329_v31  ;;  %v10330_v24 = vunpack.i.l.bf16 %v10329_v31 }
0x16e1   :  { %v11975_v19 = vpop.eup %10762 }
0x16e2   :  { %v2769_v20 = vsel %vm542_vm3, %v11975_v19, 0.0  ;;  %v2513_v42 = vpack.c.bf16 %v10331_v43, %v10330_v24 }
0x16e3   :  { %2770 = vadd.xlane.f32.xlu0 %v2769_v20  ;;  %v10334_v28 = vpop.permute.xlu1 %10333 }
0x16e4   :  { %v10336_v50 = vunpack.i.h.bf16 %v10334_v28  ;;  %v10335_v46 = vunpack.i.l.bf16 %v10334_v28 }
0x16e5   :  { %v11979_v15 = vpop.eup %10764 }
0x16e6   :  { %v10767_v2 = vpop.eup %10766  ;;  %v2775_v22 = vsel %vm542_vm3, %v11979_v15, 0.0  ;;  %v2514_v44 = vpack.c.bf16 %v10336_v50, %v10335_v46  ;;  %v8952_v50 = vld [vmem:[%s13373_s6 + $0x2c] sm:$0xf] }
0x16e7   :  { %v2772_v23 = vsel %vm542_vm3, %v10767_v2, 0.0  ;;  %2776 = vadd.xlane.f32.xlu1 %v2775_v22  ;;  %v2809_v21 = vpop.permute.xlu1 %2808  ;;  %v8950_v22 = vld [vmem:[%s13373_s6 + $0x24] sm:$0xf] }
0x16e8   :  { %2773 = vadd.xlane.f32.xlu0 %v2772_v23  ;;  %9654 = vmatpush3.bf16.msra.mxu1 %v2809_v21  ;;  %v3059_v23 = vsel %vm838_vm4, %v8950_v22, 0 }
0x16e9   :  { %v11984_v26 = vpop.eup %10768  ;;  %9665 = vmatprep.subr.bf16.mxu1 %v11229_v37 }
0x16ea   :  { %v11987_v30 = vpop.eup %10770  ;;  %v2778_v33 = vsel %vm542_vm3, %v11984_v26, 0.0 }
0x16eb   :  { %v2781_v32 = vsel %vm542_vm3, %v11987_v30, 0.0 }
0x16ec   :  { %2779 = vadd.xlane.f32.xlu0 %v2778_v33  ;;  %2782 = vadd.xlane.f32.xlu1 %v2781_v32 }
0x16ed   :  { %v11993_v39 = vpop.eup %10772 }
0x16ee   :  { %v2784_v41 = vsel %vm542_vm3, %v11993_v39, 0.0 }
0x16f0   :  { %2785 = vadd.xlane.f32.xlu0 %v2784_v41 }
0x16fd   :  { %2904 = vrot.lane.b32.xlu1 %v2513_v42, %s11224_s25 }
0x1701   :  { %2952 = vrot.lane.b32.xlu1 %v2514_v44, %s11224_s25  ;;  %v3153_v44 = vsel %vm838_vm4, %v8952_v50, 0 }
0x1706   :  { %2856 = vrot.lane.b32.xlu0 %v2512_v54, %s11224_s25 }
0x170c   :  { %v2765_v55 = vpop.xlane.xlu0 %2764 }
0x170d   :  { %10774 = vrcp.f32 %v2765_v55 }
0x1718   :  { %v2768_v57 = vpop.xlane.xlu1 %2767 }
0x1719   :  { %10776 = vrcp.f32 %v2768_v57 }
0x171a   :  { %v10775_v17 = vpop.eup %10774 }
0x171b   :  { %v2795_v40 = vmul.f32 %v10775_v17, %v11967_v49 }
0x1726   :  { %v10777_v53 = vpop.eup %10776 }
0x1727   :  { %v2796_v58 = vmul.f32 %v10777_v53, %v11971_v59 }
0x1729   :  { %v2803_v1 = vpack.c.bf16 %v2796_v58, %v2795_v40 }
0x172b   :  { %9656 = vmatmul.mubr.msk.bf16.vlgmr.msra.gmra.mxu1 %vm542_vm3, %v2803_v1 }
0x172c   :  { %9667 = vmatprep.mubr.msk.bf16.mxu1 %vm11231_vm1, %v11229_v37 }
0x176c   :  { %v2771_v62 = vpop.xlane.xlu0 %2770 }
0x176d   :  { %10778 = vrcp.f32 %v2771_v62 }
0x1770   :  { %v2777_v0 = vpop.xlane.xlu1 %2776 }
0x1771   :  { %v2774_v4 = vpop.xlane.xlu0 %2773 }
0x1772   :  { %10780 = vrcp.f32 %v2774_v4 }
0x1773   :  { %10782 = vrcp.f32 %v2777_v0 }
0x1775   :  { %v2780_v56 = vpop.xlane.xlu0 %2779  ;;  %v2783_v60 = vpop.xlane.xlu1 %2782 }
0x1776   :  { %10784 = vrcp.f32 %v2780_v56 }
0x1777   :  { %10786 = vrcp.f32 %v2783_v60 }
0x1779   :  { %v2786_v61 = vpop.xlane.xlu0 %2785  ;;  %v2905_v49 = vpop.permute.xlu1 %2904 }
0x177a   :  { %10788 = vrcp.f32 %v2786_v61  ;;  %9666 = vmatpush3.bf16.msra.mxu1 %v2905_v49  ;;  %v10779_v59 = vpop.eup %10778 }
0x177b   :  { %9677 = vmatprep.subr.bf16.mxu1 %v11229_v37  ;;  %v2797_v3 = vmul.f32 %v10779_v59, %v11975_v19  ;;  %v3012_v19 = vsel %vm838_vm4, %v8949_v12, 0 }
0x177d   :  { %v2857_v63 = vpop.permute.xlu0 %2856  ;;  %v2953_v16 = vpop.permute.xlu1 %2952 }
0x177e   :  { %9660 = vmatpush3.bf16.msra.mxu0 %v2857_v63 }
0x177f   :  { %v10781_v38 = vpop.eup %10780  ;;  %9671 = vmatprep.subr.bf16.mxu0 %v11229_v37 }
0x1780   :  { %v2798_v6 = vmul.f32 %v10781_v38, %v10767_v2  ;;  %v10783_v7 = vpop.eup %10782 }
0x1781   :  { %v2799_v11 = vmul.f32 %v10783_v7, %v11979_v15 }
0x1782   :  { %v2804_v8 = vpack.c.bf16 %v2798_v6, %v2797_v3 }
0x1783   :  { %v10785_v9 = vpop.eup %10784 }
0x1784   :  { %9662 = vmatmul.mubr.msk.bf16.vlgmr.msra.gmra.mxu0 %vm542_vm3, %v2804_v8  ;;  %v2800_v13 = vmul.f32 %v10785_v9, %v11984_v26  ;;  %v10787_v14 = vpop.eup %10786 }
0x1785   :  { %9672 = vmatpush3.bf16.msra.mxu0 %v2953_v16  ;;  %9673 = vmatprep.mubr.msk.bf16.mxu0 %vm11231_vm1, %v11229_v37  ;;  %v2801_v28 = vmul.f32 %v10787_v14, %v11987_v30  ;;  %v8951_v30 = vld [vmem:[%s13373_s6 + $0x28] sm:$0xf] }
0x1786   :  { %v2805_v31 = vpack.c.bf16 %v2800_v13, %v2799_v11  ;;  %9683 = vmatprep.subr.bf16.mxu0 %v11229_v37 }
0x1787   :  { %v10789_v20 = vpop.eup %10788 }
0x1788   :  { %9668 = vmatmul.mubr.msk.bf16.vlgmr.msra.gmra.mxu1 %vm542_vm3, %v2805_v31  ;;  %v2802_v2 = vmul.f32 %v10789_v20, %v11993_v39  ;;  %v3106_v39 = vsel %vm838_vm4, %v8951_v30, 0 }
0x1789   :  { %9678 = vmatpush3.bf16.msra.mxu1 %v3012_v19  ;;  %9679 = vmatprep.mubr.msk.bf16.mxu1 %vm11231_vm1, %v11229_v37 }
0x178a   :  { %v2806_v15 = vpack.c.bf16 %v2802_v2, %v2801_v28  ;;  %9689 = vmatprep.subr.bf16.mxu1 %v11229_v37 }
0x178c   :  { %9674 = vmatmul.mubr.msk.bf16.vlgmr.msra.gmra.mxu0 %vm542_vm3, %v2806_v15 }
0x178d   :  { %9685 = vmatprep.mubr.msk.bf16.mxu0 %vm11231_vm1, %v11229_v37  ;;  %9684 = vmatpush3.bf16.msra.mxu0 %v3059_v23 }
0x178e   :  { %9695 = vmatprep.subr.bf16.mxu0 %v11229_v37 }
0x17eb   :  { %v2848_v21 = vpop.f32.mrf.mxu1 }
0x17ed   :  { %v9657_v26 = vpop.f32.mrf.mxu1 }
0x17ef   :  { %v2851_v33 = vpop.f32.mrf.mxu1 }
0x17f0   :  { %v2999_v32 = vpack.c.bf16 %v2851_v33, %v2848_v21 }
0x17f1   :  { %v9658_v41 = vpop.f32.mrf.mxu1 }
0x17f2   :  { %9680 = vmatmul.mubr.msk.bf16.vlgmr.msra.gmra.mxu1 %vm344_vm2, %v2999_v32 }
0x17f3   :  { %9690 = vmatpush3.bf16.msra.mxu1 %v3106_v39  ;;  %9691 = vmatprep.mubr.msk.bf16.mxu1 %vm11231_vm1, %v11229_v37 }
0x17f4   :  { %9701 = vmatprep.subr.bf16.mxu1 %v11229_v37 }
0x1844   :  { %v2896_v43 = vpop.f32.mrf.mxu0 }
0x1846   :  { %v9663_v24 = vpop.f32.mrf.mxu0 }
0x1847   :  { %v10593_v24 = vld [vmem:[#allocation11 + $0x20] sm:$0xff]  }
0x1848   :  { %v2899_v46 = vpop.f32.mrf.mxu0  ;;  %v2944_v42 = vpop.f32.mrf.mxu1 }
0x1849   :  { %v3000_v51 = vpack.c.bf16 %v2899_v46, %v2896_v43  ;;  %v10592_v43 = vld [vmem:[#allocation11 + $0x28] sm:$0xff]  }
0x184a   :  { %v9664_v47 = vpop.f32.mrf.mxu0  ;;  %v9669_v52 = vpop.f32.mrf.mxu1 }
0x184b   :  { %9686 = vmatmul.mubr.msk.bf16.vlgmr.msra.gmra.mxu0 %vm344_vm2, %v3000_v51 }
0x184c   :  { %v2947_v54 = vpop.f32.mrf.mxu1  ;;  %v2992_v55 = vpop.f32.mrf.mxu0  ;;  %9696 = vmatpush3.bf16.msra.mxu0 %v3153_v44  ;;  %9697 = vmatprep.mubr.msk.bf16.mxu0 %vm11231_vm1, %v11229_v37 }
0x184d   :  { %v3001_v57 = vpack.c.bf16 %v2947_v54, %v2944_v42  ;;  %9709 = vmatprep.subr.bf16.mxu0 %v11229_v37 }
0x184e   :  { %v9670_v17 = vpop.f32.mrf.mxu1  ;;  %v9675_v53 = vpop.f32.mrf.mxu0 }
0x184f   :  { %9692 = vmatmul.mubr.msk.bf16.vlgmr.msra.gmra.mxu1 %vm344_vm2, %v3001_v57 }
0x1850   :  { %v2995_v40 = vpop.f32.mrf.mxu0  ;;  %9705 = vmatprep.mubr.msk.bf16.mxu1 %vm11231_vm1, %v11229_v37  ;;  %9702 = vmatpush3.bf16.msra.mxu1 %v10592_v43  ;;  %v10601_v43 = vld [vmem:[%s13372_s5 + $0x60] ss:$8 sps:$4 sm:$0xff]  }
0x1851   :  { %v3002_v58 = vpack.c.bf16 %v2995_v40, %v2992_v55  ;;  %9703 = vmatprep.subr.bf16.mxu1 %v11229_v37  ;;  %v8957_v55 = vld [vmem:[#allocation10 + $0x2] ss:$0 sm:$0xff] }
0x1852   :  { %v9676_v1 = vpop.f32.mrf.mxu0 }
0x1853   :  { %9698 = vmatmul.mubr.msk.bf16.vlgmr.msra.gmra.mxu0 %vm344_vm2, %v3002_v58  ;;  %v10594_v58 = vld [vmem:[%s13376_s9 + $0x58] sm:$0xff]   ;;  %v10595_v1 = vld [vmem:[%s13376_s9 + $0x50] sm:$0xff]  }
0x1854   :  { %9717 = vmatprep.mubr.msk.bf16.mxu0 %vm11231_vm1, %v11229_v37  ;;  %9704 = vmatpush3.bf16.msra.mxu1 %v10593_v24 }
0x1855   :  { %9710 = vmatpush3.bf16.msra.mxu0 %v10594_v58 }
0x1856   :  { %9711 = vmatprep.subr.bf16.mxu0 %v11229_v37 }
0x1859   :  { %9712 = vmatpush3.bf16.msra.mxu0 %v10595_v1 }
0x185a   :  { %9713 = vmatprep.subr.bf16.mxu0 %v11229_v37 }
0x18b2   :  { %v3048_v62 = vpop.f32.mrf.mxu1 }
0x18b3   :  { %v3196_v38 = vsel %vm129_vm0, %v3048_v62, 0.0  ;;  %v10596_v62 = vld [vmem:[%s13376_s9 + $0x48] sm:$0xff]  }
0x18b4   :  { %v9681_v0 = vpop.f32.mrf.mxu1  ;;  %9714 = vmatpush3.bf16.msra.mxu0 %v10596_v62 }
0x18b5   :  { %9715 = vmatprep.subr.bf16.mxu0 %v11229_v37  ;;  %v10597_v0 = vld [vmem:[%s13376_s9 + $0x40] sm:$0xff]  }
0x18b6   :  { %v3051_v4 = vpop.f32.mrf.mxu1 }
0x18b7   :  { %v3203_v13 = vsel %vm129_vm0, %v3051_v4, 0.0 }
0x18b8   :  { %v9682_v56 = vpop.f32.mrf.mxu1  ;;  %9716 = vmatpush3.bf16.msra.mxu0 %v10597_v0 }
0x18b9   :  { %9727 = vmatprep.subr.bf16.mxu0 %v11229_v37 }
0x190b   :  { %v3095_v60 = vpop.f32.mrf.mxu0 }
0x190c   :  { %v3197_v49 = vsel %vm129_vm0, %v3095_v60, 0.0 }
0x190d   :  { %v9687_v61 = vpop.f32.mrf.mxu0  ;;  %v3198_v6 = vadd.f32 %v3197_v49, %v3196_v38 }
0x190f   :  { %v3098_v59 = vpop.f32.mrf.mxu0  ;;  %v3142_v63 = vpop.f32.mrf.mxu1 }
0x1910   :  { %v3199_v3 = vsel %vm129_vm0, %v3142_v63, 0.0  ;;  %v3204_v9 = vsel %vm129_vm0, %v3098_v59, 0.0 }
0x1911   :  { %v9688_v7 = vpop.f32.mrf.mxu0  ;;  %v9693_v8 = vpop.f32.mrf.mxu1  ;;  %v3200_v12 = vadd.f32 %v3199_v3, %v3198_v6  ;;  %v3205_v19 = vadd.f32 %v3204_v9, %v3203_v13 }
0x1913   :  { %v3145_v16 = vpop.f32.mrf.mxu1  ;;  %v3189_v11 = vpop.f32.mrf.mxu0 }
0x1914   :  { %v3206_v14 = vsel %vm129_vm0, %v3145_v16, 0.0  ;;  %v3201_v31 = vsel %vm129_vm0, %v3189_v11, 0.0 }
0x1915   :  { %v3202_v20 = vadd.f32 %v3201_v31, %v3200_v12  ;;  %v9694_v28 = vpop.f32.mrf.mxu1  ;;  %v9699_v2 = vpop.f32.mrf.mxu0  ;;  %v3207_v15 = vadd.f32 %v3206_v14, %v3205_v19 }
0x1917   :  { %v12062_v22 = vadd.f32 %v3202_v20, %v11840_v25  ;;  %v3192_v23 = vpop.f32.mrf.mxu0 }
0x1918   :  { %v3208_v21 = vsel %vm129_vm0, %v3192_v23, 0.0 }
0x1919   :  { %v3209_v26 = vadd.f32 %v3208_v21, %v3207_v15  ;;  %v9700_v30 = vpop.f32.mrf.mxu0  ;;  %v3212_v33 = vmul.f32 %v12062_v22, %v12062_v22 }
0x191b   :  { %v12068_v32 = vadd.f32 %v3209_v26, %v11845_v34  ;;  %v3214_v39 = vsel %vm129_vm0, %v3212_v33, 0.0 }
0x191c   :  { %3215 = vadd.xlane.f32.xlu0 %v3214_v39 }
0x191d   :  { %v3213_v41 = vmul.f32 %v12068_v32, %v12068_v32 }
0x191f   :  { %v3217_v25 = vsel %vm129_vm0, %v3213_v41, 0.0 }
0x1920   :  { %3218 = vadd.xlane.f32.xlu1 %v3217_v25  ;;  %v10600_v25 = vld [vmem:[%s13372_s5 + $0x74] ss:$8 sps:$4 sm:$0xff]  }
0x1921   :  { %3471 = vmatprep.subr.bf16.mxu1 %v10600_v25 }
0x19a5   :  { %v3216_v50 = vpop.xlane.xlu0 %3215 }
0x19a6   :  { %v3220_v46 = vmul.f32 0.03125, %v3216_v50 }
0x19a8   :  { %v3222_v42 = vadd.f32 1e-06, %v3220_v46 }
0x19a9   :  { %v3219_v34 = vpop.xlane.xlu1 %3218 }
0x19aa   :  { %10790 = vrsqrt.f32 %v3222_v42  ;;  %v3221_v51 = vmul.f32 0.03125, %v3219_v34 }
0x19ac   :  { %v3223_v44 = vadd.f32 1e-06, %v3221_v51 }
0x19ae   :  { %10792 = vrsqrt.f32 %v3223_v44 }
0x19b7   :  { %v10791_v47 = vpop.eup %10790 }
0x19b8   :  { %v3226_v52 = vmul.f32 %v10791_v47, %v12062_v22 }
0x19ba   :  { %v3236_v17 = vmul.f32 %v8957_v55, %v3226_v52 }
0x19bb   :  { %v10793_v54 = vpop.eup %10792 }
0x19bc   :  { %v3227_v57 = vmul.f32 %v10793_v54, %v12068_v32  ;;  %v8974_v54 = vld [vmem:[#allocation8 + $0x3] ss:$0 sm:$0xff] }
0x19be   :  { %v3237_v53 = vmul.f32 %v8957_v55, %v3227_v57 }
0x19c0   :  { %v3238_v40 = vpack.c.bf16 %v3237_v53, %v3236_v17 }
0x19c2   :  { %9706 = vmatmul.mubr.msk.bf16.vlgmr.msra.gmra.mxu1 %vm129_vm0, %v3238_v40 }
0x19c3   :  { %3491 = vmatprep.mubr.bf16.mxu1 %v11226_v10 }
0x1a82   :  { %v3293_v4 = vpop.f32.mrf.mxu1 }
0x1a83   :  { %3316 = vrot.lane.b32.xlu0 %v3293_v4, %s11224_s25  ;;  %v3300_v49 = vsub.f32 0.0, %v3293_v4 }
0x1a84   :  { %v9707_v56 = vpop.f32.mrf.mxu1 }
0x1a85   :  { %v3302_v63 = vmul.f32 1.442695, %v3300_v49 }
0x1a86   :  { %v3296_v60 = vpop.f32.mrf.mxu1 }
0x1a87   :  { %3318 = vrot.lane.b32.xlu1 %v3296_v60, %s11224_s25  ;;  %v3301_v59 = vsub.f32 0.0, %v3296_v60  ;;  %10794 = vpow2.f32 %v3302_v63 }
0x1a88   :  { %v9708_v61 = vpop.f32.mrf.mxu1 }
0x1a89   :  { %v3304_v38 = vmul.f32 1.442695, %v3301_v59 }
0x1a8b   :  { %10796 = vpow2.f32 %v3304_v38 }
0x1a94   :  { %v10795_v3 = vpop.eup %10794 }
0x1a95   :  { %v3306_v7 = vadd.f32 1.0, %v10795_v3 }
0x1a97   :  { %10798 = vrcp.f32 %v3306_v7 }
0x1a98   :  { %v10797_v6 = vpop.eup %10796 }
0x1a99   :  { %v3307_v8 = vadd.f32 1.0, %v10797_v6 }
0x1a9b   :  { %10800 = vrcp.f32 %v3307_v8 }
0x1aa4   :  { %v10799_v9 = vpop.eup %10798 }
0x1aa5   :  { %v3312_v11 = vmul.f32 %v10799_v9, %v3293_v4 }
0x1aa8   :  { %v10801_v12 = vpop.eup %10800 }
0x1aa9   :  { %v3313_v13 = vmul.f32 %v10801_v12, %v3296_v60 }
0x1af5   :  { %v3317_v16 = vpop.permute.xlu0 %3316 }
0x1af6   :  { %v3322_v31 = vmul.f32 %v3317_v16, %v3312_v11 }
0x1af9   :  { %v3319_v14 = vpop.permute.xlu1 %3318 }
0x1afa   :  { %v3323_v19 = vmul.f32 %v3319_v14, %v3313_v13 }
0x1afc   :  { %v3324_v20 = vpack.c.bf16 %v3323_v19, %v3322_v31  ;;  %v12158_v31 = vld [vmem:[#allocation5] sm:$0xff] }
0x1afe   :  { %9718 = vmatmul.mubr.msk.bf16.vlgmr.msra.gmra.mxu0 %vm1183_vm5, %v3324_v20 }
0x1aff   :  { %9729 = vmatprep.mubr.msk.bf16.mxu0 %vm11231_vm1, %v11229_v37 }
0x1bbe   :  { %v3395_v28 = vpop.f32.mrf.mxu0 }
0x1bbf   :  { %v12101_v2 = vadd.f32 %v3395_v28, %v12062_v22  ;;  %v10598_v22 = vld [vmem:[%s13372_s5 + $0x70] ss:$8 sps:$4 sm:$0xff]  }
0x1bc0   :  { %v9719_v15 = vpop.f32.mrf.mxu0  ;;  %3472 = vmatpush1.bf16.msra.mxu1 %v10598_v22  ;;  %v12162_v28 = vld [vmem:[#allocation5 + $0x8] sm:$0xff] }
0x1bc1   :  { %v3404_v23 = vmul.f32 %v12101_v2, %v12101_v2 }
0x1bc2   :  { %v3398_v21 = vpop.f32.mrf.mxu0 }
0x1bc3   :  { %v12106_v26 = vadd.f32 %v3398_v21, %v12068_v32  ;;  %v3406_v30 = vsel %vm129_vm0, %v3404_v23, 0.0  ;;  %v10603_v32 = vld [vmem:[%s13372_s5 + $0x64] ss:$8 sps:$4 sm:$0xff]  }
0x1bc4   :  { %3407 = vadd.xlane.f32.xlu0 %v3406_v30  ;;  %v9720_v33 = vpop.f32.mrf.mxu0  ;;  %3473 = vmatprep.subr.bf16.mxu1 %v10603_v32 }
0x1bc5   :  { %v3405_v39 = vmul.f32 %v12106_v26, %v12106_v26  ;;  %3474 = vmatpush1.bf16.msra.mxu1 %v10601_v43 }
0x1bc6   :  { %9721 = vmatprep.subr.bf16.mxu1 %v11229_v37 }
0x1bc7   :  { %v3409_v41 = vsel %vm129_vm0, %v3405_v39, 0.0 }
0x1bc8   :  { %3410 = vadd.xlane.f32.xlu1 %v3409_v41 }
0x1c4d   :  { %v3408_v24 = vpop.xlane.xlu0 %3407 }
0x1c4e   :  { %v3412_v50 = vmul.f32 0.03125, %v3408_v24 }
0x1c50   :  { %v3414_v46 = vadd.f32 1e-06, %v3412_v50 }
0x1c51   :  { %v3411_v42 = vpop.xlane.xlu1 %3410 }
0x1c52   :  { %10802 = vrsqrt.f32 %v3414_v46  ;;  %v3413_v34 = vmul.f32 0.03125, %v3411_v42 }
0x1c54   :  { %v3415_v51 = vadd.f32 1e-06, %v3413_v34 }
0x1c56   :  { %10804 = vrsqrt.f32 %v3415_v51 }
0x1c5f   :  { %v10803_v44 = vpop.eup %10802 }
0x1c60   :  { %v3418_v47 = vmul.f32 %v10803_v44, %v12101_v2 }
0x1c62   :  { %v3428_v57 = vmul.f32 %v8974_v54, %v3418_v47 }
0x1c63   :  { %v10805_v52 = vpop.eup %10804 }
0x1c64   :  { %v3419_v55 = vmul.f32 %v10805_v52, %v12106_v26 }
0x1c66   :  { %v3429_v17 = vmul.f32 %v8974_v54, %v3419_v55 }
0x1c68   :  { %v3430_v53 = vpack.c.bf16 %v3429_v17, %v3428_v57 }
0x1c6a   :  { %8983 = vmatmul.mubr.msk.bf16.vlgmr.msra.gmra.mxu1 %vm129_vm0, %v3430_v53 }
0x1c6b   :  { %9723 = vmatprep.mubr.msk.bf16.mxu1 %vm11231_vm1, %v11229_v37 }
0x1d2a   :  { %v12130_v40 = vpop.f32.mrf.mxu1 }
0x1d2b   :  { %v3504_v61 = vmul.f32 %v12130_v40, %v11381_v45  ;;  %v3516_v49 = vmul.f32 %v12130_v40, %v11371_v35  ;;  %v3502_v19 = vmul.f32 %v12158_v31, %v12130_v40 }
0x1d2c   :  { %v3495_v58 = vpop.f32.mrf.mxu1 }
0x1d2d   :  { %v3518_v1 = vmul.f32 %v11874_v29, %v3495_v58 }
0x1d2e   :  { %v12133_v62 = vpop.f32.mrf.mxu1 }
0x1d2f   :  { %3522 = vrot.lane.b32.xlu0 %v3518_v1, %s11227_s12  ;;  %v12138_v0 = vpack.i.bf16 %v12133_v62, %v12130_v40  ;;  %v3598_v56 = vpack.c.bf16 %v12133_v62, %v12130_v40  ;;  %v3517_v59 = vmul.f32 %v12133_v62, %v11373_v36  ;;  %v3503_v15 = vmul.f32 %v12162_v28, %v12133_v62 }
0x1d30   :  { %v3499_v4 = vpop.f32.mrf.mxu1 }
0x1d31   :  { %v3519_v60 = vmul.f32 %v11889_v5, %v3499_v4  ;;  %v3505_v5 = vmul.f32 %v12133_v62, %v11392_v48 }
0x1d33   :  { %3524 = vrot.lane.b32.xlu1 %v3519_v60, %s11227_s12 }
0x1d37   :  { %3508 = vrot.lane.b32.xlu1 %v3504_v61, %s11227_s12 }
0x1da1   :  { %v3523_v29 = vpop.permute.xlu0 %3522 }
0x1da2   :  { %v3528_v38 = vadd.f32 %v3523_v29, %v3516_v49 }
0x1da5   :  { %v3525_v63 = vpop.permute.xlu1 %3524 }
0x1da6   :  { %v3529_v3 = vadd.f32 %v3525_v63, %v3517_v59 }
0x1da8   :  { %v10342_v6 = vpack.i.bf16 %v3529_v3, %v3528_v38  ;;  %v3574_v7 = vpack.c.bf16 %v3529_v3, %v3528_v38 }
0x1da9   :  { %v3509_v8 = vpop.permute.xlu1 %3508 }
0x1daa   :  { %10343 = vrot.lane.b32.xlu1 %v10342_v6, %s11230_s17  ;;  %10338 = vrot.lane.b32.xlu0 %v10342_v6, %s11232_s20  ;;  %v3514_v30 = vadd.f32 %v3509_v8, %v3502_v19 }
0x1dae   :  { %3510 = vrot.lane.b32.xlu0 %v3505_v5, %s11227_s12  ;;  %3603 = vrot.lane.b32.xlu1 %v3574_v7, %s11228_s16 }
0x1db2   :  { %10348 = vrot.lane.b32.xlu0 %v10342_v6, %s11233_s0 }
0x1e1c   :  { %v10339_v9 = vpop.permute.xlu0 %10338  ;;  %v10344_v12 = vpop.permute.xlu1 %10343 }
0x1e1d   :  { %v10341_v16 = vunpack.i.h.bf16 %v10339_v9  ;;  %v10340_v11 = vunpack.i.l.bf16 %v10339_v9  ;;  %v10346_v13 = vunpack.i.h.bf16 %v10344_v12  ;;  %v10345_v14 = vunpack.i.l.bf16 %v10344_v12 }
0x1e1f   :  { %v3575_v20 = vpack.c.bf16 %v10341_v16, %v10340_v11  ;;  %v3576_v41 = vpack.c.bf16 %v10346_v13, %v10345_v14 }
0x1e20   :  { %v3511_v23 = vpop.permute.xlu0 %3510  ;;  %v3604_v21 = vpop.permute.xlu1 %3603 }
0x1e21   :  { %v3515_v33 = vadd.f32 %v3511_v23, %v3503_v15  ;;  %v3609_v39 = vsel %vm344_vm2, %v3604_v21, 0  ;;  %3653 = vrot.lane.b32.xlu0 %v3575_v20, %s11228_s16 }
0x1e22   :  { %9722 = vmatpush3.bf16.xpose.msra.mxu1 %v3609_v39 }
0x1e23   :  { %v3550_v22 = vpack.c.bf16 %v3515_v33, %v3514_v30  ;;  %v10352_v25 = vpack.i.bf16 %v3515_v33, %v3514_v30  ;;  %9733 = vmatprep.subr.bf16.mxu1 %v11229_v37 }
0x1e24   :  { %v10349_v32 = vpop.permute.xlu0 %10348 }
0x1e25   :  { %v10351_v43 = vunpack.i.h.bf16 %v10349_v32  ;;  %v10350_v24 = vunpack.i.l.bf16 %v10349_v32  ;;  %10353 = vrot.lane.b32.xlu1 %v10352_v25, %s11232_s20  ;;  %3703 = vrot.lane.b32.xlu0 %v3576_v41, %s11228_s16 }
0x1e27   :  { %v3577_v50 = vpack.c.bf16 %v10351_v43, %v10350_v24 }
0x1e29   :  { %3753 = vrot.lane.b32.xlu1 %v3577_v50, %s11228_s16  ;;  %9724 = vmatmul.mubr.msk.bf16.vlgmr.msra.gmra.mxu1 %vm344_vm2, %v3550_v22 }
0x1e2a   :  { %10358 = vrot.lane.b32.xlu0 %v10352_v25, %s11230_s17  ;;  %9735 = vmatprep.mubr.msk.bf16.mxu1 %vm11231_vm1, %v11229_v37 }
0x1e2d   :  { %10363 = vrot.lane.b32.xlu1 %v10352_v25, %s11233_s0 }
0x1e93   :  { %v3654_v46 = vpop.permute.xlu0 %3653 }
0x1e94   :  { %v3659_v42 = vsel %vm344_vm2, %v3654_v46, 0 }
0x1e95   :  { %9728 = vmatpush3.bf16.xpose.msra.mxu0 %v3659_v42 }
0x1e96   :  { %9739 = vmatprep.subr.bf16.mxu0 %v11229_v37 }
0x1e97   :  { %v10354_v34 = vpop.permute.xlu1 %10353  ;;  %v3704_v51 = vpop.permute.xlu0 %3703 }
0x1e98   :  { %v10356_v44 = vunpack.i.h.bf16 %v10354_v34  ;;  %v10355_v47 = vunpack.i.l.bf16 %v10354_v34  ;;  %v3709_v52 = vsel %vm344_vm2, %v3704_v51, 0 }
0x1e99   :  { %9734 = vmatpush3.bf16.xpose.msra.mxu1 %v3709_v52 }
0x1e9a   :  { %v3551_v54 = vpack.c.bf16 %v10356_v44, %v10355_v47  ;;  %9745 = vmatprep.subr.bf16.mxu1 %v11229_v37 }
0x1e9b   :  { %v3754_v55 = vpop.permute.xlu1 %3753 }
0x1e9c   :  { %v3759_v57 = vsel %vm344_vm2, %v3754_v55, 0  ;;  %v10359_v17 = vpop.permute.xlu0 %10358  ;;  %9730 = vmatmul.mubr.msk.bf16.vlgmr.msra.gmra.mxu0 %vm344_vm2, %v3551_v54 }
0x1e9d   :  { %v10361_v53 = vunpack.i.h.bf16 %v10359_v17  ;;  %v10360_v58 = vunpack.i.l.bf16 %v10359_v17  ;;  %9740 = vmatpush3.bf16.xpose.msra.mxu0 %v3759_v57  ;;  %9741 = vmatprep.mubr.msk.bf16.mxu0 %vm11231_vm1, %v11229_v37 }
0x1e9e   :  { %9751 = vmatprep.subr.bf16.mxu0 %v11229_v37 }
0x1e9f   :  { %v3552_v1 = vpack.c.bf16 %v10361_v53, %v10360_v58  ;;  %v10364_v4 = vpop.permute.xlu1 %10363 }
0x1ea0   :  { %v10366_v60 = vunpack.i.h.bf16 %v10364_v4  ;;  %v10365_v61 = vunpack.i.l.bf16 %v10364_v4 }
0x1ea1   :  { %9736 = vmatmul.mubr.msk.bf16.vlgmr.msra.gmra.mxu1 %vm344_vm2, %v3552_v1 }
0x1ea2   :  { %v3553_v29 = vpack.c.bf16 %v10366_v60, %v10365_v61  ;;  %9747 = vmatprep.mubr.msk.bf16.mxu1 %vm11231_vm1, %v11229_v37 }
0x1ea4   :  { %9742 = vmatmul.mubr.msk.bf16.vlgmr.msra.gmra.mxu0 %vm344_vm2, %v3553_v29 }
0x1ea5   :  { %9753 = vmatprep.mubr.msk.bf16.mxu0 %vm11231_vm1, %v11229_v37 }
0x1ee9   :  { %v3645_v49 = vpop.f32.mrf.mxu1 }
0x1eea   :  { %v12193_v59 = vadd.f32 %v11937_v27, %v3645_v49 }
0x1eeb   :  { %v9725_v63 = vpop.f32.mrf.mxu1 }
0x1eec   :  { %v3802_v38 = vsel %vm542_vm3, %v12193_v59, -inf }
0x1eed   :  { %v3648_v3 = vpop.f32.mrf.mxu1  ;;  %3803 = vmax.xlane.f32.xlu0 %v3802_v38 }
0x1eee   :  { %v3649_v6 = vadd.f32 %v11941_v18, %v3648_v3 }
0x1eef   :  { %v9726_v7 = vpop.f32.mrf.mxu1 }
0x1ef0   :  { %v3805_v5 = vsel %vm542_vm3, %v3649_v6, -inf }
0x1ef1   :  { %3806 = vmax.xlane.f32.xlu1 %v3805_v5 }
0x1f5c   :  { %v3695_v8 = vpop.f32.mrf.mxu0 }
0x1f5d   :  { %v3696_v9 = vadd.f32 %v11937_v27, %v3695_v8 }
0x1f5e   :  { %v9731_v12 = vpop.f32.mrf.mxu0 }
0x1f5f   :  { %v3808_v16 = vsel %vm542_vm3, %v3696_v9, -inf }
0x1f60   :  { %3809 = vmax.xlane.f32.xlu0 %v3808_v16  ;;  %v3698_v11 = vpop.f32.mrf.mxu0 }
0x1f61   :  { %v3745_v13 = vpop.f32.mrf.mxu1  ;;  %v12202_v14 = vadd.f32 %v11941_v18, %v3698_v11 }
0x1f62   :  { %v3746_v19 = vadd.f32 %v11937_v27, %v3745_v13  ;;  %v9732_v20 = vpop.f32.mrf.mxu0 }
0x1f63   :  { %v9737_v15 = vpop.f32.mrf.mxu1  ;;  %v3811_v23 = vsel %vm542_vm3, %v12202_v14, -inf }
0x1f64   :  { %v3814_v21 = vsel %vm542_vm3, %v3746_v19, -inf  ;;  %3812 = vmax.xlane.f32.xlu0 %v3811_v23  ;;  %v3795_v30 = vpop.f32.mrf.mxu0 }
0x1f65   :  { %3815 = vmax.xlane.f32.xlu1 %v3814_v21  ;;  %v3748_v33 = vpop.f32.mrf.mxu1  ;;  %v3796_v39 = vadd.f32 %v11937_v27, %v3795_v30 }
0x1f66   :  { %v12210_v41 = vadd.f32 %v11941_v18, %v3748_v33  ;;  %v9743_v22 = vpop.f32.mrf.mxu0 }
0x1f67   :  { %v9738_v25 = vpop.f32.mrf.mxu1  ;;  %v3820_v32 = vsel %vm542_vm3, %v3796_v39, -inf }
0x1f68   :  { %v3817_v43 = vsel %vm542_vm3, %v12210_v41, -inf  ;;  %v3798_v24 = vpop.f32.mrf.mxu0 }
0x1f69   :  { %3818 = vmax.xlane.f32.xlu0 %v3817_v43  ;;  %3821 = vmax.xlane.f32.xlu1 %v3820_v32  ;;  %v3799_v50 = vadd.f32 %v11941_v18, %v3798_v24 }
0x1f6a   :  { %v9744_v46 = vpop.f32.mrf.mxu0 }
0x1f6b   :  { %v3823_v42 = vsel %vm542_vm3, %v3799_v50, -inf }
0x1f6d   :  { %3824 = vmax.xlane.f32.xlu0 %v3823_v42 }
0x1f76   :  { %v3804_v47 = vpop.xlane.xlu0 %3803 }
0x1f77   :  { %v3826_v8 = vsub.f32 %v12193_v59, %v3804_v47 }
0x1f79   :  { %v3834_v12 = vmul.f32 1.442695, %v3826_v8 }
0x1f7a   :  { %10368 = vrot.lane.b32.xlu1 %v12138_v0, %s11232_s20  ;;  %v3807_v27 = vpop.xlane.xlu1 %3806 }
0x1f7b   :  { %v3827_v18 = vsub.f32 %v3649_v6, %v3807_v27 }
0x1f7d   :  { %v3836_v34 = vmul.f32 1.442695, %v3827_v18 }
0x1f7e   :  { %10378 = vrot.lane.b32.xlu1 %v12138_v0, %s11233_s0 }
0x1f7f   :  { %10806 = vpow2.f32 %v3836_v34 }
0x1f83   :  { %10373 = vrot.lane.b32.xlu0 %v12138_v0, %s11230_s17 }
0x1f87   :  { %3895 = vrot.lane.b32.xlu0 %v3598_v56, %s11224_s25 }
0x1f8c   :  { %v12227_v51 = vpop.eup %10806 }
0x1f8d   :  { %v3853_v44 = vsel %vm542_vm3, %v12227_v51, 0.0 }
0x1fa6   :  { %3854 = vadd.xlane.f32.xlu0 %v3853_v44 }
0x1fe9   :  { %v3810_v52 = vpop.xlane.xlu0 %3809 }
0x1fea   :  { %v3828_v54 = vsub.f32 %v3696_v9, %v3810_v52 }
0x1fec   :  { %v3838_v55 = vmul.f32 1.442695, %v3828_v54 }
0x1fed   :  { %v3813_v0 = vpop.xlane.xlu0 %3812 }
0x1fee   :  { %10808 = vpow2.f32 %v3838_v55  ;;  %v3816_v57 = vpop.xlane.xlu1 %3815  ;;  %v3829_v16 = vsub.f32 %v12202_v14, %v3813_v0 }
0x1fef   :  { %v3830_v17 = vsub.f32 %v3746_v19, %v3816_v57 }
0x1ff0   :  { %v3840_v11 = vmul.f32 1.442695, %v3829_v16 }
0x1ff1   :  { %v3842_v40 = vmul.f32 1.442695, %v3830_v17 }
0x1ff2   :  { %v3819_v62 = vpop.xlane.xlu0 %3818  ;;  %v3822_v56 = vpop.xlane.xlu1 %3821 }
0x1ff3   :  { %10810 = vpow2.f32 %v3842_v40  ;;  %v3832_v53 = vsub.f32 %v3796_v39, %v3822_v56  ;;  %v3831_v13 = vsub.f32 %v12210_v41, %v3819_v62 }
0x1ff5   :  { %v3846_v58 = vmul.f32 1.442695, %v3832_v53  ;;  %v3844_v19 = vmul.f32 1.442695, %v3831_v13 }
0x1ff6   :  { %v10369_v1 = vpop.permute.xlu1 %10368  ;;  %v3825_v4 = vpop.xlane.xlu0 %3824 }
0x1ff7   :  { %v10371_v60 = vunpack.i.h.bf16 %v10369_v1  ;;  %v10370_v61 = vunpack.i.l.bf16 %v10369_v1  ;;  %10812 = vpow2.f32 %v3846_v58  ;;  %v3833_v20 = vsub.f32 %v3799_v50, %v3825_v4 }
0x1ff8   :  { %10814 = vpow2.f32 %v3834_v12  ;;  %v8992_v12 = vld [vmem:[%s13373_s6 + $0x30] sm:$0xf] }
0x1ff9   :  { %v3599_v29 = vpack.c.bf16 %v10371_v60, %v10370_v61  ;;  %10816 = vpow2.f32 %v3840_v11  ;;  %v3848_v23 = vmul.f32 1.442695, %v3833_v20  ;;  %v4099_v16 = vsel %vm838_vm4, %v8992_v12, 0  ;;  %v8994_v20 = vld [vmem:[%s13373_s6 + $0x38] sm:$0xf] }
0x1ffa   :  { %v10374_v49 = vpop.permute.xlu0 %10373  ;;  %v10379_v15 = vpop.permute.xlu1 %10378  ;;  %10818 = vpow2.f32 %v3844_v19 }
0x1ffb   :  { %v12231_v63 = vpop.eup %10808  ;;  %3943 = vrot.lane.b32.xlu1 %v3599_v29, %s11224_s25  ;;  %v10381_v21 = vunpack.i.h.bf16 %v10379_v15  ;;  %v10380_v30 = vunpack.i.l.bf16 %v10379_v15  ;;  %10820 = vpow2.f32 %v3848_v23  ;;  %v10376_v24 = vunpack.i.h.bf16 %v10374_v49 }
0x1ffc   :  { %v3856_v38 = vsel %vm542_vm3, %v12231_v63, 0.0  ;;  %v10375_v50 = vunpack.i.l.bf16 %v10374_v49 }
0x1ffd   :  { %3857 = vadd.xlane.f32.xlu0 %v3856_v38  ;;  %v3601_v33 = vpack.c.bf16 %v10381_v21, %v10380_v30  ;;  %v4193_v30 = vsel %vm838_vm4, %v8994_v20, 0 }
0x1ffe   :  { %v3896_v3 = vpop.permute.xlu0 %3895  ;;  %v3600_v46 = vpack.c.bf16 %v10376_v24, %v10375_v50 }
0x1fff   :  { %9746 = vmatpush3.bf16.msra.mxu1 %v3896_v3 }
0x2000   :  { %v12236_v6 = vpop.eup %10810  ;;  %9757 = vmatprep.subr.bf16.mxu1 %v11229_v37 }
0x2001   :  { %v3862_v7 = vsel %vm542_vm3, %v12236_v6, 0.0 }
0x2002   :  { %3863 = vadd.xlane.f32.xlu0 %v3862_v7 }
0x2004   :  { %v12241_v5 = vpop.eup %10812 }
0x2005   :  { %v3868_v9 = vsel %vm542_vm3, %v12241_v5, 0.0  ;;  %v10815_v59 = vpop.eup %10814 }
0x2006   :  { %3869 = vadd.xlane.f32.xlu0 %v3868_v9  ;;  %v3850_v39 = vsel %vm542_vm3, %v10815_v59, 0.0  ;;  %v10817_v14 = vpop.eup %10816 }
0x2007   :  { %v3859_v22 = vsel %vm542_vm3, %v10817_v14, 0.0  ;;  %v10819_v41 = vpop.eup %10818 }
0x2008   :  { %v3865_v25 = vsel %vm542_vm3, %v10819_v41, 0.0  ;;  %v10821_v32 = vpop.eup %10820 }
0x2009   :  { %v3871_v43 = vsel %vm542_vm3, %v10821_v32, 0.0 }
0x201c   :  { %4039 = vrot.lane.b32.xlu0 %v3601_v33, %s11224_s25 }
0x201f   :  { %3851 = vadd.xlane.f32.xlu1 %v3850_v39  ;;  %v8995_v39 = vld [vmem:[%s13373_s6 + $0x3c] sm:$0xf] }
0x2023   :  { %3860 = vadd.xlane.f32.xlu1 %v3859_v22 }
0x2027   :  { %3866 = vadd.xlane.f32.xlu1 %v3865_v25  ;;  %v4240_v25 = vsel %vm838_vm4, %v8995_v39, 0 }
0x202b   :  { %3872 = vadd.xlane.f32.xlu1 %v3871_v43 }
0x202f   :  { %v3855_v27 = vpop.xlane.xlu0 %3854 }
0x2030   :  { %10822 = vrcp.f32 %v3855_v27 }
0x203c   :  { %3991 = vrot.lane.b32.xlu1 %v3600_v46, %s11224_s25 }
0x203d   :  { %v10823_v55 = vpop.eup %10822 }
0x203e   :  { %v3883_v40 = vmul.f32 %v10823_v55, %v12227_v51 }
0x206d   :  { %v3944_v42 = vpop.permute.xlu1 %3943 }
0x206e   :  { %9752 = vmatpush3.bf16.msra.mxu0 %v3944_v42 }
0x206f   :  { %9763 = vmatprep.subr.bf16.mxu0 %v11229_v37 }
0x2086   :  { %v3858_v18 = vpop.xlane.xlu0 %3857 }
0x208b   :  { %v3864_v44 = vpop.xlane.xlu0 %3863 }
0x208f   :  { %v3870_v52 = vpop.xlane.xlu0 %3869 }
0x2093   :  { %v4040_v49 = vpop.permute.xlu0 %4039 }
0x20a8   :  { %v3852_v34 = vpop.xlane.xlu1 %3851 }
0x20a9   :  { %10824 = vrcp.f32 %v3852_v34 }
0x20aa   :  { %10826 = vrcp.f32 %v3858_v18 }
0x20ac   :  { %v3861_v47 = vpop.xlane.xlu1 %3860 }
0x20ad   :  { %10828 = vrcp.f32 %v3861_v47 }
0x20ae   :  { %10830 = vrcp.f32 %v3864_v44 }
0x20b0   :  { %v3867_v54 = vpop.xlane.xlu1 %3866 }
0x20b1   :  { %10832 = vrcp.f32 %v3867_v54 }
0x20b2   :  { %10834 = vrcp.f32 %v3870_v52 }
0x20b4   :  { %v3873_v0 = vpop.xlane.xlu1 %3872 }
0x20b5   :  { %10836 = vrcp.f32 %v3873_v0 }
0x20b6   :  { %v10825_v57 = vpop.eup %10824 }
0x20b7   :  { %v3882_v17 = vmul.f32 %v10825_v57, %v10815_v59  ;;  %v10827_v62 = vpop.eup %10826 }
0x20b8   :  { %v3992_v58 = vpop.permute.xlu1 %3991  ;;  %v3884_v1 = vmul.f32 %v10827_v62, %v12231_v63 }
0x20b9   :  { %v3890_v56 = vpack.c.bf16 %v3883_v40, %v3882_v17 }
0x20ba   :  { %v10829_v53 = vpop.eup %10828 }
0x20bb   :  { %9748 = vmatmul.mubr.msk.bf16.vlgmr.msra.gmra.mxu1 %vm542_vm3, %v3890_v56  ;;  %v3885_v4 = vmul.f32 %v10829_v53, %v10817_v14  ;;  %v10831_v60 = vpop.eup %10830 }
0x20bc   :  { %9758 = vmatpush3.bf16.msra.mxu1 %v3992_v58  ;;  %9759 = vmatprep.mubr.msk.bf16.mxu1 %vm11231_vm1, %v11229_v37  ;;  %v3886_v51 = vmul.f32 %v10831_v60, %v12236_v6 }
0x20bd   :  { %v3891_v61 = vpack.c.bf16 %v3885_v4, %v3884_v1  ;;  %9769 = vmatprep.subr.bf16.mxu1 %v11229_v37 }
0x20be   :  { %v10833_v29 = vpop.eup %10832 }
0x20bf   :  { %v3887_v38 = vmul.f32 %v10833_v29, %v10819_v41  ;;  %9754 = vmatmul.mubr.msk.bf16.vlgmr.msra.gmra.mxu0 %vm542_vm3, %v3891_v61  ;;  %v10835_v3 = vpop.eup %10834 }
0x20c0   :  { %9764 = vmatpush3.bf16.msra.mxu0 %v4040_v49  ;;  %9765 = vmatprep.mubr.msk.bf16.mxu0 %vm11231_vm1, %v11229_v37  ;;  %v3888_v8 = vmul.f32 %v10835_v3, %v12241_v5  ;;  %v8993_v5 = vld [vmem:[%s13373_s6 + $0x34] sm:$0xf] }
0x20c1   :  { %v3892_v63 = vpack.c.bf16 %v3887_v38, %v3886_v51  ;;  %9775 = vmatprep.subr.bf16.mxu0 %v11229_v37  ;;  %v4146_v11 = vsel %vm838_vm4, %v8993_v5, 0 }
0x20c2   :  { %v10837_v7 = vpop.eup %10836 }
0x20c3   :  { %9760 = vmatmul.mubr.msk.bf16.vlgmr.msra.gmra.mxu1 %vm542_vm3, %v3892_v63  ;;  %v3889_v9 = vmul.f32 %v10837_v7, %v10821_v32 }
0x20c4   :  { %9771 = vmatprep.mubr.msk.bf16.mxu1 %vm11231_vm1, %v11229_v37  ;;  %9770 = vmatpush3.bf16.msra.mxu1 %v4099_v16 }
0x20c5   :  { %v3893_v6 = vpack.c.bf16 %v3889_v9, %v3888_v8  ;;  %9781 = vmatprep.subr.bf16.mxu1 %v11229_v37 }
0x20c7   :  { %9766 = vmatmul.mubr.msk.bf16.vlgmr.msra.gmra.mxu0 %vm542_vm3, %v3893_v6 }
0x20c8   :  { %9777 = vmatprep.mubr.msk.bf16.mxu0 %vm11231_vm1, %v11229_v37  ;;  %9776 = vmatpush3.bf16.msra.mxu0 %v4146_v11 }
0x20c9   :  { %9787 = vmatprep.subr.bf16.mxu0 %v11229_v37 }
0x217b   :  { %v3935_v13 = vpop.f32.mrf.mxu1 }
0x217d   :  { %v9749_v19 = vpop.f32.mrf.mxu1 }
0x217f   :  { %v3938_v15 = vpop.f32.mrf.mxu1  ;;  %v3983_v23 = vpop.f32.mrf.mxu0 }
0x2180   :  { %v4086_v21 = vpack.c.bf16 %v3938_v15, %v3935_v13 }
0x2181   :  { %v9750_v59 = vpop.f32.mrf.mxu1  ;;  %v9755_v33 = vpop.f32.mrf.mxu0 }
0x2182   :  { %9772 = vmatmul.mubr.msk.bf16.vlgmr.msra.gmra.mxu1 %vm344_vm2, %v4086_v21  ;;  %v10604_v21 = vld [vmem:[#allocation11 + $0x38] sm:$0xff]  }
0x2183   :  { %v3986_v14 = vpop.f32.mrf.mxu0  ;;  %v4031_v22 = vpop.f32.mrf.mxu1  ;;  %9782 = vmatpush3.bf16.msra.mxu1 %v4193_v30  ;;  %9783 = vmatprep.mubr.msk.bf16.mxu1 %vm11231_vm1, %v11229_v37  ;;  %v10605_v30 = vld [vmem:[#allocation11 + $0x30] sm:$0xff]  }
0x2184   :  { %v4087_v41 = vpack.c.bf16 %v3986_v14, %v3983_v23  ;;  %9793 = vmatprep.subr.bf16.mxu1 %v11229_v37 }
0x2185   :  { %v9756_v32 = vpop.f32.mrf.mxu0  ;;  %v9761_v43 = vpop.f32.mrf.mxu1 }
0x2186   :  { %9778 = vmatmul.mubr.msk.bf16.vlgmr.msra.gmra.mxu0 %vm344_vm2, %v4087_v41  ;;  %v9000_v43 = vld [vmem:[#allocation10 + $0x3] ss:$0 sm:$0xff] }
0x2187   :  { %v4034_v24 = vpop.f32.mrf.mxu1  ;;  %v4079_v50 = vpop.f32.mrf.mxu0  ;;  %9788 = vmatpush3.bf16.msra.mxu0 %v4240_v25  ;;  %9789 = vmatprep.mubr.msk.bf16.mxu0 %vm11231_vm1, %v11229_v37 }
0x2188   :  { %v4088_v46 = vpack.c.bf16 %v4034_v24, %v4031_v22  ;;  %9801 = vmatprep.subr.bf16.mxu0 %v11229_v37 }
0x2189   :  { %v9762_v42 = vpop.f32.mrf.mxu1  ;;  %v9767_v27 = vpop.f32.mrf.mxu0 }
0x218a   :  { %9784 = vmatmul.mubr.msk.bf16.vlgmr.msra.gmra.mxu1 %vm344_vm2, %v4088_v46  ;;  %v10606_v27 = vld [vmem:[%s13376_s9 + $0x78] sm:$0xff]  }
0x218b   :  { %v4082_v18 = vpop.f32.mrf.mxu0  ;;  %9797 = vmatprep.mubr.msk.bf16.mxu1 %vm11231_vm1, %v11229_v37  ;;  %9794 = vmatpush3.bf16.msra.mxu1 %v10604_v21 }
0x218c   :  { %v4089_v34 = vpack.c.bf16 %v4082_v18, %v4079_v50  ;;  %9795 = vmatprep.subr.bf16.mxu1 %v11229_v37  ;;  %v10607_v18 = vld [vmem:[%s13376_s9 + $0x70] sm:$0xff]  }
0x218d   :  { %v9768_v44 = vpop.f32.mrf.mxu0 }
0x218e   :  { %9790 = vmatmul.mubr.msk.bf16.vlgmr.msra.gmra.mxu0 %vm344_vm2, %v4089_v34  ;;  %v10608_v34 = vld [vmem:[%s13376_s9 + $0x68] sm:$0xff]   ;;  %v10609_v44 = vld [vmem:[%s13376_s9 + $0x60] sm:$0xff]  }
0x218f   :  { %9809 = vmatprep.mubr.msk.bf16.mxu0 %vm11231_vm1, %v11229_v37  ;;  %9796 = vmatpush3.bf16.msra.mxu1 %v10605_v30 }
0x2190   :  { %9802 = vmatpush3.bf16.msra.mxu0 %v10606_v27 }
0x2191   :  { %9803 = vmatprep.subr.bf16.mxu0 %v11229_v37 }
0x2194   :  { %9804 = vmatpush3.bf16.msra.mxu0 %v10607_v18 }
0x2195   :  { %9805 = vmatprep.subr.bf16.mxu0 %v11229_v37 }
0x2198   :  { %9806 = vmatpush3.bf16.msra.mxu0 %v10608_v34 }
0x2199   :  { %9807 = vmatprep.subr.bf16.mxu0 %v11229_v37 }
0x219c   :  { %9808 = vmatpush3.bf16.msra.mxu0 %v10609_v44 }
0x219d   :  { %9819 = vmatprep.subr.bf16.mxu0 %v11229_v37 }
0x2242   :  { %v4135_v47 = vpop.f32.mrf.mxu1 }
0x2243   :  { %v4283_v56 = vsel %vm129_vm0, %v4135_v47, 0.0 }
0x2244   :  { %v9773_v52 = vpop.f32.mrf.mxu1 }
0x2246   :  { %v4138_v54 = vpop.f32.mrf.mxu1  ;;  %v4182_v55 = vpop.f32.mrf.mxu0 }
0x2247   :  { %v4284_v17 = vsel %vm129_vm0, %v4182_v55, 0.0  ;;  %v4290_v49 = vsel %vm129_vm0, %v4138_v54, 0.0 }
0x2248   :  { %v9774_v0 = vpop.f32.mrf.mxu1  ;;  %v9779_v57 = vpop.f32.mrf.mxu0  ;;  %v4285_v58 = vadd.f32 %v4284_v17, %v4283_v56 }
0x224a   :  { %v4185_v40 = vpop.f32.mrf.mxu0  ;;  %v4229_v62 = vpop.f32.mrf.mxu1 }
0x224b   :  { %v4286_v53 = vsel %vm129_vm0, %v4229_v62, 0.0  ;;  %v4291_v60 = vsel %vm129_vm0, %v4185_v40, 0.0 }
0x224c   :  { %v9780_v1 = vpop.f32.mrf.mxu0  ;;  %v9785_v4 = vpop.f32.mrf.mxu1  ;;  %v4287_v61 = vadd.f32 %v4286_v53, %v4285_v58  ;;  %v4292_v63 = vadd.f32 %v4291_v60, %v4290_v49 }
0x224e   :  { %v4232_v29 = vpop.f32.mrf.mxu1  ;;  %v4276_v51 = vpop.f32.mrf.mxu0 }
0x224f   :  { %v4293_v38 = vsel %vm129_vm0, %v4232_v29, 0.0  ;;  %v4288_v3 = vsel %vm129_vm0, %v4276_v51, 0.0 }
0x2250   :  { %v4289_v7 = vadd.f32 %v4288_v3, %v4287_v61  ;;  %v9786_v8 = vpop.f32.mrf.mxu1  ;;  %v9791_v9 = vpop.f32.mrf.mxu0  ;;  %v4294_v6 = vadd.f32 %v4293_v38, %v4292_v63 }
0x2252   :  { %v12313_v12 = vadd.f32 %v4289_v7, %v12101_v2  ;;  %v4279_v16 = vpop.f32.mrf.mxu0 }
0x2253   :  { %v4295_v5 = vsel %vm129_vm0, %v4279_v16, 0.0 }
0x2254   :  { %v4296_v11 = vadd.f32 %v4295_v5, %v4294_v6  ;;  %v9792_v13 = vpop.f32.mrf.mxu0  ;;  %v4299_v19 = vmul.f32 %v12313_v12, %v12313_v12 }
0x2256   :  { %v12319_v20 = vadd.f32 %v4296_v11, %v12106_v26  ;;  %v4301_v15 = vsel %vm129_vm0, %v4299_v19, 0.0 }
0x2257   :  { %4302 = vadd.xlane.f32.xlu1 %v4301_v15  ;;  %v10610_v15 = vld [vmem:[%s13372_s5 + $0x90] ss:$8 sps:$4 sm:$0xff]  }
0x2258   :  { %v4300_v23 = vmul.f32 %v12319_v20, %v12319_v20 }
0x225a   :  { %v4304_v2 = vsel %vm129_vm0, %v4300_v23, 0.0  ;;  %v10613_v23 = vld [vmem:[%s13372_s5 + $0x80] ss:$8 sps:$4 sm:$0xff]  }
0x225b   :  { %4305 = vadd.xlane.f32.xlu0 %v4304_v2 }
0x22e0   :  { %v4303_v59 = vpop.xlane.xlu1 %4302 }
0x22e1   :  { %v4307_v33 = vmul.f32 0.03125, %v4303_v59 }
0x22e3   :  { %v4309_v39 = vadd.f32 1e-06, %v4307_v33 }
0x22e4   :  { %v4306_v26 = vpop.xlane.xlu0 %4305 }
0x22e5   :  { %10838 = vrsqrt.f32 %v4309_v39  ;;  %v4308_v14 = vmul.f32 0.03125, %v4306_v26 }
0x22e7   :  { %v4310_v22 = vadd.f32 1e-06, %v4308_v14 }
0x22e9   :  { %10840 = vrsqrt.f32 %v4310_v22 }
0x22f2   :  { %v10839_v41 = vpop.eup %10838 }
0x22f3   :  { %v4313_v25 = vmul.f32 %v10839_v41, %v12313_v12  ;;  %v9017_v41 = vld [vmem:[#allocation8 + $0x4] ss:$0 sm:$0xff] }
0x22f5   :  { %v4323_v50 = vmul.f32 %v9000_v43, %v4313_v25 }
0x22f6   :  { %v10841_v32 = vpop.eup %10840 }
0x22f7   :  { %v4314_v24 = vmul.f32 %v10841_v32, %v12319_v20 }
0x22f9   :  { %v4324_v46 = vmul.f32 %v9000_v43, %v4314_v24 }
0x22fb   :  { %v4325_v42 = vpack.c.bf16 %v4324_v46, %v4323_v50 }
0x22fd   :  { %9798 = vmatmul.mubr.msk.bf16.vlgmr.msra.gmra.mxu1 %vm129_vm0, %v4325_v42  ;;  %v12386_v42 = vld [vmem:[%s13369_s2] sm:$0xff] }
0x22fe   :  { %4578 = vmatprep.mubr.bf16.mxu1 %v11226_v10 }
0x23bd   :  { %v4380_v47 = vpop.f32.mrf.mxu1 }
0x23be   :  { %4403 = vrot.lane.b32.xlu0 %v4380_v47, %s11224_s25  ;;  %v4387_v0 = vsub.f32 0.0, %v4380_v47 }
0x23bf   :  { %v9799_v52 = vpop.f32.mrf.mxu1 }
0x23c0   :  { %v4389_v17 = vmul.f32 1.442695, %v4387_v0  ;;  %v12401_v52 = vld [vmem:[%s13369_s2 + $0x8] sm:$0xff] }
0x23c1   :  { %v4383_v54 = vpop.f32.mrf.mxu1 }
0x23c2   :  { %4405 = vrot.lane.b32.xlu1 %v4383_v54, %s11224_s25  ;;  %v4388_v57 = vsub.f32 0.0, %v4383_v54  ;;  %10842 = vpow2.f32 %v4389_v17 }
0x23c3   :  { %v9800_v55 = vpop.f32.mrf.mxu1 }
0x23c4   :  { %v4391_v40 = vmul.f32 1.442695, %v4388_v57 }
0x23c6   :  { %10844 = vpow2.f32 %v4391_v40 }
0x23cf   :  { %v10843_v62 = vpop.eup %10842 }
0x23d0   :  { %v4393_v53 = vadd.f32 1.0, %v10843_v62 }
0x23d2   :  { %10846 = vrcp.f32 %v4393_v53 }
0x23d3   :  { %v10845_v56 = vpop.eup %10844 }
0x23d4   :  { %v4394_v58 = vadd.f32 1.0, %v10845_v56 }
0x23d6   :  { %10848 = vrcp.f32 %v4394_v58 }
0x23df   :  { %v10847_v1 = vpop.eup %10846 }
0x23e0   :  { %v4399_v61 = vmul.f32 %v10847_v1, %v4380_v47 }
0x23e3   :  { %v10849_v4 = vpop.eup %10848 }
0x23e4   :  { %v4400_v29 = vmul.f32 %v10849_v4, %v4383_v54 }
0x2430   :  { %v4404_v60 = vpop.permute.xlu0 %4403 }
0x2431   :  { %v4409_v49 = vmul.f32 %v4404_v60, %v4399_v61 }
0x2434   :  { %v4406_v51 = vpop.permute.xlu1 %4405 }
0x2435   :  { %v4410_v38 = vmul.f32 %v4406_v51, %v4400_v29 }
0x2437   :  { %v4411_v3 = vpack.c.bf16 %v4410_v38, %v4409_v49 }
0x2439   :  { %9810 = vmatmul.mubr.msk.bf16.vlgmr.msra.gmra.mxu0 %vm1183_vm5, %v4411_v3 }
0x243a   :  { %9821 = vmatprep.mubr.msk.bf16.mxu0 %vm11231_vm1, %v11229_v37 }
0x24f9   :  { %v4482_v63 = vpop.f32.mrf.mxu0 }
0x24fa   :  { %v12352_v7 = vadd.f32 %v4482_v63, %v12313_v12  ;;  %v10612_v12 = vld [vmem:[%s13372_s5 + $0x94] ss:$8 sps:$4 sm:$0xff]  }
0x24fb   :  { %v9811_v8 = vpop.f32.mrf.mxu0  ;;  %4558 = vmatprep.subr.bf16.mxu1 %v10612_v12 }
0x24fc   :  { %v4491_v9 = vmul.f32 %v12352_v7, %v12352_v7  ;;  %4559 = vmatpush1.bf16.msra.mxu1 %v10610_v15 }
0x24fd   :  { %v4485_v6 = vpop.f32.mrf.mxu0 }
0x24fe   :  { %v12357_v16 = vadd.f32 %v4485_v6, %v12319_v20  ;;  %v4493_v5 = vsel %vm129_vm0, %v4491_v9, 0.0  ;;  %v10615_v20 = vld [vmem:[%s13372_s5 + $0x84] ss:$8 sps:$4 sm:$0xff]  }
0x24ff   :  { %4494 = vadd.xlane.f32.xlu1 %v4493_v5  ;;  %v9812_v11 = vpop.f32.mrf.mxu0  ;;  %4560 = vmatprep.subr.bf16.mxu1 %v10615_v20 }
0x2500   :  { %v4492_v13 = vmul.f32 %v12357_v16, %v12357_v16  ;;  %4561 = vmatpush1.bf16.msra.mxu1 %v10613_v23 }
0x2501   :  { %9813 = vmatprep.subr.bf16.mxu1 %v11229_v37 }
0x2502   :  { %v4496_v19 = vsel %vm129_vm0, %v4492_v13, 0.0 }
0x2503   :  { %4497 = vadd.xlane.f32.xlu0 %v4496_v19 }
0x2588   :  { %v4495_v2 = vpop.xlane.xlu1 %4494 }
0x2589   :  { %v4499_v21 = vmul.f32 0.03125, %v4495_v2 }
0x258b   :  { %v4501_v30 = vadd.f32 1e-06, %v4499_v21 }
0x258c   :  { %v4498_v59 = vpop.xlane.xlu0 %4497 }
0x258d   :  { %10850 = vrsqrt.f32 %v4501_v30  ;;  %v4500_v33 = vmul.f32 0.03125, %v4498_v59 }
0x258f   :  { %v4502_v39 = vadd.f32 1e-06, %v4500_v33 }
0x2591   :  { %10852 = vrsqrt.f32 %v4502_v39 }
0x259a   :  { %v10851_v26 = vpop.eup %10850 }
0x259b   :  { %v4505_v14 = vmul.f32 %v10851_v26, %v12352_v7 }
0x259d   :  { %v4515_v32 = vmul.f32 %v9017_v41, %v4505_v14 }
0x259e   :  { %v10853_v22 = vpop.eup %10852 }
0x259f   :  { %v4506_v25 = vmul.f32 %v10853_v22, %v12357_v16 }
0x25a1   :  { %v4516_v43 = vmul.f32 %v9017_v41, %v4506_v25 }
0x25a3   :  { %v4517_v24 = vpack.c.bf16 %v4516_v43, %v4515_v32 }
0x25a5   :  { %9026 = vmatmul.mubr.msk.bf16.vlgmr.msra.gmra.mxu1 %vm129_vm0, %v4517_v24 }
0x25a6   :  { %9815 = vmatprep.mubr.msk.bf16.mxu1 %vm11231_vm1, %v11229_v37 }
0x2665   :  { %v12381_v50 = vpop.f32.mrf.mxu1 }
0x2666   :  { %v4591_v55 = vmul.f32 %v12381_v50, %v11381_v45  ;;  %v4603_v57 = vmul.f32 %v12381_v50, %v11371_v35  ;;  %v4589_v3 = vmul.f32 %v12158_v31, %v12381_v50 }
0x2667   :  { %v4582_v46 = vpop.f32.mrf.mxu1 }
0x2668   :  { %v4605_v27 = vmul.f32 %v12386_v42, %v4582_v46 }
0x2669   :  { %v12389_v18 = vpop.f32.mrf.mxu1 }
0x266a   :  { %4609 = vrot.lane.b32.xlu0 %v4605_v27, %s11227_s12  ;;  %v12394_v34 = vpack.i.bf16 %v12389_v18, %v12381_v50  ;;  %v4685_v47 = vpack.c.bf16 %v12389_v18, %v12381_v50  ;;  %v4604_v17 = vmul.f32 %v12389_v18, %v11373_v36  ;;  %v4592_v1 = vmul.f32 %v12389_v18, %v11392_v48 }
0x266b   :  { %v4586_v44 = vpop.f32.mrf.mxu1  ;;  %v4590_v8 = vmul.f32 %v12162_v28, %v12389_v18 }
0x266c   :  { %v4606_v54 = vmul.f32 %v12401_v52, %v4586_v44 }
0x266e   :  { %4595 = vrot.lane.b32.xlu0 %v4591_v55, %s11227_s12  ;;  %4611 = vrot.lane.b32.xlu1 %v4606_v54, %s11227_s12 }
0x26dc   :  { %v4610_v0 = vpop.permute.xlu0 %4609 }
0x26dd   :  { %v4615_v62 = vadd.f32 %v4610_v0, %v4603_v57  ;;  %v12449_v0 = vld [vmem:[#allocation7] sm:$0xff] }
0x26e0   :  { %v4612_v40 = vpop.permute.xlu1 %4611  ;;  %v4596_v4 = vpop.permute.xlu0 %4595 }
0x26e1   :  { %v4616_v56 = vadd.f32 %v4612_v40, %v4604_v17  ;;  %v4601_v5 = vadd.f32 %v4596_v4, %v4589_v3 }
0x26e3   :  { %v10387_v53 = vpack.i.bf16 %v4616_v56, %v4615_v62  ;;  %v4661_v58 = vpack.c.bf16 %v4616_v56, %v4615_v62  ;;  %v12453_v56 = vld [vmem:[#allocation7 + $0x8] sm:$0xff] }
0x26e5   :  { %10388 = vrot.lane.b32.xlu0 %v10387_v53, %s11230_s17  ;;  %10383 = vrot.lane.b32.xlu1 %v10387_v53, %s11232_s20 }
0x26e9   :  { %4597 = vrot.lane.b32.xlu1 %v4592_v1, %s11227_s12  ;;  %4690 = vrot.lane.b32.xlu0 %v4661_v58, %s11228_s16 }
0x26ed   :  { %10393 = vrot.lane.b32.xlu1 %v10387_v53, %s11233_s0 }
0x2757   :  { %v10389_v60 = vpop.permute.xlu0 %10388  ;;  %v10384_v61 = vpop.permute.xlu1 %10383 }
0x2758   :  { %v10386_v29 = vunpack.i.h.bf16 %v10384_v61  ;;  %v10385_v51 = vunpack.i.l.bf16 %v10384_v61  ;;  %v10391_v49 = vunpack.i.h.bf16 %v10389_v60  ;;  %v10390_v38 = vunpack.i.l.bf16 %v10389_v60 }
0x275a   :  { %v4662_v63 = vpack.c.bf16 %v10386_v29, %v10385_v51  ;;  %v4663_v19 = vpack.c.bf16 %v10391_v49, %v10390_v38 }
0x275b   :  { %v4598_v9 = vpop.permute.xlu1 %4597  ;;  %v4691_v6 = vpop.permute.xlu0 %4690 }
0x275c   :  { %v4602_v11 = vadd.f32 %v4598_v9, %v4590_v8  ;;  %v4696_v13 = vsel %vm344_vm2, %v4691_v6, 0  ;;  %4740 = vrot.lane.b32.xlu1 %v4662_v63, %s11228_s16 }
0x275d   :  { %9814 = vmatpush3.bf16.xpose.msra.mxu1 %v4696_v13 }
0x275e   :  { %v4637_v12 = vpack.c.bf16 %v4602_v11, %v4601_v5  ;;  %v10397_v15 = vpack.i.bf16 %v4602_v11, %v4601_v5  ;;  %9825 = vmatprep.subr.bf16.mxu1 %v11229_v37 }
0x275f   :  { %v10394_v20 = vpop.permute.xlu1 %10393 }
0x2760   :  { %v10396_v31 = vunpack.i.h.bf16 %v10394_v20  ;;  %v10395_v23 = vunpack.i.l.bf16 %v10394_v20  ;;  %4790 = vrot.lane.b32.xlu1 %v4663_v19, %s11228_s16  ;;  %10398 = vrot.lane.b32.xlu0 %v10397_v15, %s11232_s20 }
0x2762   :  { %v4664_v28 = vpack.c.bf16 %v10396_v31, %v10395_v23 }
0x2764   :  { %10403 = vrot.lane.b32.xlu1 %v10397_v15, %s11230_s17  ;;  %4840 = vrot.lane.b32.xlu0 %v4664_v28, %s11228_s16 }
0x2765   :  { %9816 = vmatmul.mubr.msk.bf16.vlgmr.msra.gmra.mxu1 %vm344_vm2, %v4637_v12 }
0x2766   :  { %9827 = vmatprep.mubr.msk.bf16.mxu1 %vm11231_vm1, %v11229_v37 }
0x2768   :  { %10408 = vrot.lane.b32.xlu0 %v10397_v15, %s11233_s0 }
0x27ce   :  { %v4741_v2 = vpop.permute.xlu1 %4740 }
0x27cf   :  { %v4746_v21 = vsel %vm344_vm2, %v4741_v2, 0 }
0x27d0   :  { %9820 = vmatpush3.bf16.xpose.msra.mxu0 %v4746_v21 }
0x27d1   :  { %9831 = vmatprep.subr.bf16.mxu0 %v11229_v37 }
0x27d2   :  { %v4791_v30 = vpop.permute.xlu1 %4790  ;;  %v10399_v59 = vpop.permute.xlu0 %10398 }
0x27d3   :  { %v4796_v33 = vsel %vm344_vm2, %v4791_v30, 0  ;;  %v10401_v39 = vunpack.i.h.bf16 %v10399_v59  ;;  %v10400_v26 = vunpack.i.l.bf16 %v10399_v59 }
0x27d4   :  { %9826 = vmatpush3.bf16.xpose.msra.mxu1 %v4796_v33 }
0x27d5   :  { %v4638_v14 = vpack.c.bf16 %v10401_v39, %v10400_v26  ;;  %9837 = vmatprep.subr.bf16.mxu1 %v11229_v37 }
0x27d6   :  { %v10404_v22 = vpop.permute.xlu1 %10403  ;;  %v4841_v41 = vpop.permute.xlu0 %4840 }
0x27d7   :  { %v10406_v25 = vunpack.i.h.bf16 %v10404_v22  ;;  %v10405_v32 = vunpack.i.l.bf16 %v10404_v22  ;;  %v4846_v43 = vsel %vm344_vm2, %v4841_v41, 0  ;;  %9822 = vmatmul.mubr.msk.bf16.vlgmr.msra.gmra.mxu0 %vm344_vm2, %v4638_v14 }
0x27d8   :  { %9832 = vmatpush3.bf16.xpose.msra.mxu0 %v4846_v43  ;;  %9833 = vmatprep.mubr.msk.bf16.mxu0 %vm11231_vm1, %v11229_v37 }
0x27d9   :  { %v4639_v24 = vpack.c.bf16 %v10406_v25, %v10405_v32  ;;  %9843 = vmatprep.subr.bf16.mxu0 %v11229_v37 }
0x27da   :  { %v10409_v46 = vpop.permute.xlu0 %10408 }
0x27db   :  { %v10411_v27 = vunpack.i.h.bf16 %v10409_v46  ;;  %v10410_v44 = vunpack.i.l.bf16 %v10409_v46  ;;  %9828 = vmatmul.mubr.msk.bf16.vlgmr.msra.gmra.mxu1 %vm344_vm2, %v4639_v24 }
0x27dc   :  { %9839 = vmatprep.mubr.msk.bf16.mxu1 %vm11231_vm1, %v11229_v37 }
0x27dd   :  { %v4640_v54 = vpack.c.bf16 %v10411_v27, %v10410_v44 }
0x27df   :  { %9834 = vmatmul.mubr.msk.bf16.vlgmr.msra.gmra.mxu0 %vm344_vm2, %v4640_v54 }
0x27e0   :  { %9845 = vmatprep.mubr.msk.bf16.mxu0 %vm11231_vm1, %v11229_v37 }
0x2825   :  { %v4732_v55 = vpop.f32.mrf.mxu1 }
0x2826   :  { %v4733_v57 = vadd.f32 %v12449_v0, %v4732_v55 }
0x2827   :  { %v9817_v17 = vpop.f32.mrf.mxu1 }
0x2828   :  { %v4889_v40 = vsel %vm542_vm3, %v4733_v57, -inf }
0x2829   :  { %4890 = vmax.xlane.f32.xlu1 %v4889_v40  ;;  %v4735_v62 = vpop.f32.mrf.mxu1 }
0x282a   :  { %v4736_v53 = vadd.f32 %v12453_v56, %v4735_v62 }
0x282b   :  { %v9818_v58 = vpop.f32.mrf.mxu1 }
0x282c   :  { %v4892_v1 = vsel %vm542_vm3, %v4736_v53, -inf }
0x282d   :  { %4893 = vmax.xlane.f32.xlu0 %v4892_v1 }
0x2897   :  { %v4782_v4 = vpop.f32.mrf.mxu0 }
0x2898   :  { %v4783_v60 = vadd.f32 %v12449_v0, %v4782_v4 }
0x2899   :  { %v9823_v61 = vpop.f32.mrf.mxu0 }
0x289a   :  { %v4895_v29 = vsel %vm542_vm3, %v4783_v60, -inf }
0x289b   :  { %v4832_v51 = vpop.f32.mrf.mxu1  ;;  %4896 = vmax.xlane.f32.xlu0 %v4895_v29  ;;  %v4785_v49 = vpop.f32.mrf.mxu0 }
0x289c   :  { %v4833_v38 = vadd.f32 %v12449_v0, %v4832_v51  ;;  %v4786_v3 = vadd.f32 %v12453_v56, %v4785_v49 }
0x289d   :  { %v9824_v63 = vpop.f32.mrf.mxu0  ;;  %v9829_v8 = vpop.f32.mrf.mxu1 }
0x289e   :  { %v4901_v9 = vsel %vm542_vm3, %v4833_v38, -inf  ;;  %v4898_v6 = vsel %vm542_vm3, %v4786_v3, -inf }
0x289f   :  { %v4835_v5 = vpop.f32.mrf.mxu1  ;;  %4902 = vmax.xlane.f32.xlu0 %v4901_v9  ;;  %4899 = vmax.xlane.f32.xlu1 %v4898_v6  ;;  %v4882_v11 = vpop.f32.mrf.mxu0 }
0x28a0   :  { %v4836_v13 = vadd.f32 %v12453_v56, %v4835_v5  ;;  %v4883_v19 = vadd.f32 %v12449_v0, %v4882_v11 }
0x28a1   :  { %v9830_v12 = vpop.f32.mrf.mxu1  ;;  %v9835_v15 = vpop.f32.mrf.mxu0 }
0x28a2   :  { %v4904_v20 = vsel %vm542_vm3, %v4836_v13, -inf  ;;  %v4907_v31 = vsel %vm542_vm3, %v4883_v19, -inf }
0x28a3   :  { %4905 = vmax.xlane.f32.xlu1 %v4904_v20  ;;  %4908 = vmax.xlane.f32.xlu0 %v4907_v31  ;;  %v4885_v23 = vpop.f32.mrf.mxu0 }
0x28a4   :  { %v4886_v28 = vadd.f32 %v12453_v56, %v4885_v23 }
0x28a5   :  { %v9836_v2 = vpop.f32.mrf.mxu0 }
0x28a6   :  { %v4910_v21 = vsel %vm542_vm3, %v4886_v28, -inf }
0x28a7   :  { %4911 = vmax.xlane.f32.xlu1 %v4910_v21 }
0x28b2   :  { %v4891_v30 = vpop.xlane.xlu1 %4890 }
0x28b3   :  { %v4913_v59 = vsub.f32 %v4733_v57, %v4891_v30 }
0x28b5   :  { %v4921_v33 = vmul.f32 1.442695, %v4913_v59 }
0x28b6   :  { %v4894_v39 = vpop.xlane.xlu0 %4893 }
0x28b7   :  { %10854 = vpow2.f32 %v4921_v33  ;;  %v4914_v26 = vsub.f32 %v4736_v53, %v4894_v39 }
0x28b8   :  { %10418 = vrot.lane.b32.xlu1 %v12394_v34, %s11230_s17 }
0x28b9   :  { %10413 = vrot.lane.b32.xlu0 %v12394_v34, %s11232_s20  ;;  %v4923_v14 = vmul.f32 1.442695, %v4914_v26 }
0x28bb   :  { %10856 = vpow2.f32 %v4923_v14 }
0x28bc   :  { %10423 = vrot.lane.b32.xlu1 %v12394_v34, %s11233_s0 }
0x28c0   :  { %4982 = vrot.lane.b32.xlu1 %v4685_v47, %s11224_s25 }
0x28c4   :  { %v12479_v22 = vpop.eup %10854 }
0x28c5   :  { %v4937_v41 = vsel %vm542_vm3, %v12479_v22, 0.0 }
0x28c8   :  { %v12483_v25 = vpop.eup %10856 }
0x28c9   :  { %v4940_v34 = vsel %vm542_vm3, %v12483_v25, 0.0 }
0x28d8   :  { %4938 = vadd.xlane.f32.xlu0 %v4937_v41 }
0x28e4   :  { %4941 = vadd.xlane.f32.xlu1 %v4940_v34 }
0x2924   :  { %v4897_v50 = vpop.xlane.xlu0 %4896 }
0x2925   :  { %v4915_v18 = vsub.f32 %v4783_v60, %v4897_v50 }
0x2927   :  { %v4925_v47 = vmul.f32 1.442695, %v4915_v18 }
0x2928   :  { %v4903_v32 = vpop.xlane.xlu0 %4902  ;;  %v4900_v43 = vpop.xlane.xlu1 %4899 }
0x2929   :  { %10858 = vpow2.f32 %v4925_v47  ;;  %v4917_v24 = vsub.f32 %v4833_v38, %v4903_v32  ;;  %v4916_v46 = vsub.f32 %v4786_v3, %v4900_v43 }
0x292b   :  { %v4929_v27 = vmul.f32 1.442695, %v4917_v24  ;;  %v4927_v44 = vmul.f32 1.442695, %v4916_v46 }
0x292c   :  { %v4906_v54 = vpop.xlane.xlu1 %4905  ;;  %v4909_v55 = vpop.xlane.xlu0 %4908 }
0x292d   :  { %10860 = vpow2.f32 %v4929_v27  ;;  %v4918_v57 = vsub.f32 %v4836_v13, %v4906_v54  ;;  %v4919_v17 = vsub.f32 %v4883_v19, %v4909_v55 }
0x292e   :  { %10862 = vpow2.f32 %v4927_v44 }
0x292f   :  { %v4931_v40 = vmul.f32 1.442695, %v4918_v57  ;;  %v4933_v62 = vmul.f32 1.442695, %v4919_v17 }
0x2930   :  { %v4912_v53 = vpop.xlane.xlu1 %4911  ;;  %v10414_v23 = vpop.permute.xlu0 %10413 }
0x2931   :  { %10864 = vpow2.f32 %v4931_v40  ;;  %v4920_v58 = vsub.f32 %v4886_v28, %v4912_v53  ;;  %v10416_v2 = vunpack.i.h.bf16 %v10414_v23  ;;  %v10415_v21 = vunpack.i.l.bf16 %v10414_v23  ;;  %v9035_v40 = vld [vmem:[%s13373_s6 + $0x40] sm:$0xf] }
0x2932   :  { %10866 = vpow2.f32 %v4933_v62 }
0x2933   :  { %v4935_v1 = vmul.f32 1.442695, %v4920_v58  ;;  %v4686_v30 = vpack.c.bf16 %v10416_v2, %v10415_v21 }
0x2934   :  { %v10419_v4 = vpop.permute.xlu1 %10418 }
0x2935   :  { %10868 = vpow2.f32 %v4935_v1  ;;  %v10421_v19 = vunpack.i.h.bf16 %v10419_v4  ;;  %v10420_v12 = vunpack.i.l.bf16 %v10419_v4 }
0x2936   :  { %v12487_v60 = vpop.eup %10858 }
0x2937   :  { %v4943_v61 = vsel %vm542_vm3, %v12487_v60, 0.0  ;;  %v4687_v31 = vpack.c.bf16 %v10421_v19, %v10420_v12 }
0x2938   :  { %4944 = vadd.xlane.f32.xlu0 %v4943_v61  ;;  %v10424_v29 = vpop.permute.xlu1 %10423 }
0x2939   :  { %v10426_v15 = vunpack.i.h.bf16 %v10424_v29  ;;  %v10425_v20 = vunpack.i.l.bf16 %v10424_v29 }
0x293a   :  { %v12491_v51 = vpop.eup %10860 }
0x293b   :  { %v10863_v49 = vpop.eup %10862  ;;  %v4949_v38 = vsel %vm542_vm3, %v12491_v51, 0.0  ;;  %v4688_v28 = vpack.c.bf16 %v10426_v15, %v10425_v20  ;;  %v9038_v15 = vld [vmem:[%s13373_s6 + $0x4c] sm:$0xf] }
0x293c   :  { %v4946_v3 = vsel %vm542_vm3, %v10863_v49, 0.0  ;;  %4950 = vadd.xlane.f32.xlu1 %v4949_v38  ;;  %v4983_v63 = vpop.permute.xlu1 %4982  ;;  %v9036_v38 = vld [vmem:[%s13373_s6 + $0x44] sm:$0xf] }
0x293d   :  { %4947 = vadd.xlane.f32.xlu0 %v4946_v3  ;;  %9838 = vmatpush3.bf16.msra.mxu1 %v4983_v63  ;;  %v5233_v3 = vsel %vm838_vm4, %v9036_v38, 0 }
0x293e   :  { %v10865_v8 = vpop.eup %10864  ;;  %9849 = vmatprep.subr.bf16.mxu1 %v11229_v37 }
0x293f   :  { %v12497_v9 = vpop.eup %10866  ;;  %v4952_v6 = vsel %vm542_vm3, %v10865_v8, 0.0 }
0x2940   :  { %v4955_v5 = vsel %vm542_vm3, %v12497_v9, 0.0 }
0x2941   :  { %4953 = vadd.xlane.f32.xlu0 %v4952_v6  ;;  %4956 = vadd.xlane.f32.xlu1 %v4955_v5 }
0x2942   :  { %v12502_v11 = vpop.eup %10868 }
0x2943   :  { %v4958_v13 = vsel %vm542_vm3, %v12502_v11, 0.0 }
0x2945   :  { %4959 = vadd.xlane.f32.xlu0 %v4958_v13 }
0x2952   :  { %5078 = vrot.lane.b32.xlu1 %v4687_v31, %s11224_s25 }
0x2956   :  { %5126 = vrot.lane.b32.xlu1 %v4688_v28, %s11224_s25  ;;  %v5327_v28 = vsel %vm838_vm4, %v9038_v15, 0 }
0x295b   :  { %5030 = vrot.lane.b32.xlu0 %v4686_v30, %s11224_s25 }
0x2961   :  { %v4939_v59 = vpop.xlane.xlu0 %4938 }
0x2962   :  { %10870 = vrcp.f32 %v4939_v59 }
0x296d   :  { %v4942_v33 = vpop.xlane.xlu1 %4941 }
0x296e   :  { %10872 = vrcp.f32 %v4942_v33 }
0x296f   :  { %v10871_v39 = vpop.eup %10870 }
0x2970   :  { %v4969_v14 = vmul.f32 %v10871_v39, %v12479_v22 }
0x297b   :  { %v10873_v26 = vpop.eup %10872 }
0x297c   :  { %v4970_v41 = vmul.f32 %v10873_v26, %v12483_v25 }
0x297e   :  { %v4977_v34 = vpack.c.bf16 %v4970_v41, %v4969_v14 }
0x2980   :  { %9840 = vmatmul.mubr.msk.bf16.vlgmr.msra.gmra.mxu1 %vm542_vm3, %v4977_v34 }
0x2981   :  { %9851 = vmatprep.mubr.msk.bf16.mxu1 %vm11231_vm1, %v11229_v37 }
0x29c1   :  { %v4945_v50 = vpop.xlane.xlu0 %4944 }
0x29c2   :  { %10874 = vrcp.f32 %v4945_v50 }
0x29c5   :  { %v4951_v18 = vpop.xlane.xlu1 %4950 }
0x29c6   :  { %v4948_v47 = vpop.xlane.xlu0 %4947 }
0x29c7   :  { %10876 = vrcp.f32 %v4948_v47 }
0x29c8   :  { %10878 = vrcp.f32 %v4951_v18 }
0x29ca   :  { %v4954_v32 = vpop.xlane.xlu0 %4953  ;;  %v4957_v43 = vpop.xlane.xlu1 %4956 }
0x29cb   :  { %10880 = vrcp.f32 %v4954_v32 }
0x29cc   :  { %10882 = vrcp.f32 %v4957_v43 }
0x29ce   :  { %v4960_v24 = vpop.xlane.xlu0 %4959  ;;  %v5079_v22 = vpop.permute.xlu1 %5078 }
0x29cf   :  { %10884 = vrcp.f32 %v4960_v24  ;;  %9850 = vmatpush3.bf16.msra.mxu1 %v5079_v22  ;;  %v10875_v25 = vpop.eup %10874 }
0x29d0   :  { %9861 = vmatprep.subr.bf16.mxu1 %v11229_v37  ;;  %v4971_v44 = vmul.f32 %v10875_v25, %v12487_v60  ;;  %v5186_v60 = vsel %vm838_vm4, %v9035_v40, 0 }
0x29d2   :  { %v5031_v46 = vpop.permute.xlu0 %5030  ;;  %v5127_v58 = vpop.permute.xlu1 %5126 }
0x29d3   :  { %9844 = vmatpush3.bf16.msra.mxu0 %v5031_v46 }
0x29d4   :  { %v10877_v27 = vpop.eup %10876  ;;  %9855 = vmatprep.subr.bf16.mxu0 %v11229_v37 }
0x29d5   :  { %v4972_v54 = vmul.f32 %v10877_v27, %v10863_v49  ;;  %v10879_v55 = vpop.eup %10878 }
0x29d6   :  { %v4973_v62 = vmul.f32 %v10879_v55, %v12491_v51 }
0x29d7   :  { %v4978_v57 = vpack.c.bf16 %v4972_v54, %v4971_v44 }
0x29d8   :  { %v10881_v17 = vpop.eup %10880 }
0x29d9   :  { %v4974_v53 = vmul.f32 %v10881_v17, %v10865_v8  ;;  %9846 = vmatmul.mubr.msk.bf16.vlgmr.msra.gmra.mxu0 %vm542_vm3, %v4978_v57  ;;  %v10883_v1 = vpop.eup %10882 }
0x29da   :  { %9856 = vmatpush3.bf16.msra.mxu0 %v5127_v58  ;;  %9857 = vmatprep.mubr.msk.bf16.mxu0 %vm11231_vm1, %v11229_v37  ;;  %v4975_v29 = vmul.f32 %v10883_v1, %v12497_v9  ;;  %v9037_v9 = vld [vmem:[%s13373_s6 + $0x48] sm:$0xf] }
0x29db   :  { %v4979_v4 = vpack.c.bf16 %v4974_v53, %v4973_v62  ;;  %9867 = vmatprep.subr.bf16.mxu0 %v11229_v37 }
0x29dc   :  { %v10885_v61 = vpop.eup %10884 }
0x29dd   :  { %v4976_v49 = vmul.f32 %v10885_v61, %v12502_v11  ;;  %9852 = vmatmul.mubr.msk.bf16.vlgmr.msra.gmra.mxu1 %vm542_vm3, %v4979_v4  ;;  %v5280_v11 = vsel %vm838_vm4, %v9037_v9, 0 }
0x29de   :  { %9862 = vmatpush3.bf16.msra.mxu1 %v5186_v60  ;;  %9863 = vmatprep.mubr.msk.bf16.mxu1 %vm11231_vm1, %v11229_v37 }
0x29df   :  { %v4980_v51 = vpack.c.bf16 %v4976_v49, %v4975_v29  ;;  %9873 = vmatprep.subr.bf16.mxu1 %v11229_v37 }
0x29e1   :  { %9858 = vmatmul.mubr.msk.bf16.vlgmr.msra.gmra.mxu0 %vm542_vm3, %v4980_v51 }
0x29e2   :  { %9869 = vmatprep.mubr.msk.bf16.mxu0 %vm11231_vm1, %v11229_v37  ;;  %9868 = vmatpush3.bf16.msra.mxu0 %v5233_v3 }
0x29e3   :  { %9879 = vmatprep.subr.bf16.mxu0 %v11229_v37 }
0x2a40   :  { %v5022_v63 = vpop.f32.mrf.mxu1 }
0x2a42   :  { %v9841_v8 = vpop.f32.mrf.mxu1 }
0x2a44   :  { %v5025_v6 = vpop.f32.mrf.mxu1 }
0x2a45   :  { %v5173_v5 = vpack.c.bf16 %v5025_v6, %v5022_v63 }
0x2a46   :  { %v9842_v13 = vpop.f32.mrf.mxu1 }
0x2a47   :  { %9864 = vmatmul.mubr.msk.bf16.vlgmr.msra.gmra.mxu1 %vm344_vm2, %v5173_v5 }
0x2a48   :  { %9874 = vmatpush3.bf16.msra.mxu1 %v5280_v11  ;;  %9875 = vmatprep.mubr.msk.bf16.mxu1 %vm11231_vm1, %v11229_v37 }
0x2a49   :  { %9885 = vmatprep.subr.bf16.mxu1 %v11229_v37 }
0x2a99   :  { %v5070_v19 = vpop.f32.mrf.mxu0 }
0x2a9b   :  { %v9847_v12 = vpop.f32.mrf.mxu0 }
0x2a9c   :  { %v10617_v12 = vld [vmem:[#allocation11 + $0x40] sm:$0xff]  }
0x2a9d   :  { %v5073_v20 = vpop.f32.mrf.mxu0  ;;  %v5118_v31 = vpop.f32.mrf.mxu1 }
0x2a9e   :  { %v5174_v23 = vpack.c.bf16 %v5073_v20, %v5070_v19  ;;  %v10616_v19 = vld [vmem:[#allocation11 + $0x48] sm:$0xff]  }
0x2a9f   :  { %v9848_v2 = vpop.f32.mrf.mxu0  ;;  %v9853_v21 = vpop.f32.mrf.mxu1 }
0x2aa0   :  { %9870 = vmatmul.mubr.msk.bf16.vlgmr.msra.gmra.mxu0 %vm344_vm2, %v5174_v23 }
0x2aa1   :  { %v5121_v30 = vpop.f32.mrf.mxu1  ;;  %v5166_v59 = vpop.f32.mrf.mxu0  ;;  %9880 = vmatpush3.bf16.msra.mxu0 %v5327_v28  ;;  %9881 = vmatprep.mubr.msk.bf16.mxu0 %vm11231_vm1, %v11229_v37 }
0x2aa2   :  { %v5175_v33 = vpack.c.bf16 %v5121_v30, %v5118_v31  ;;  %9893 = vmatprep.subr.bf16.mxu0 %v11229_v37 }
0x2aa3   :  { %v9854_v39 = vpop.f32.mrf.mxu1  ;;  %v9859_v26 = vpop.f32.mrf.mxu0 }
0x2aa4   :  { %9876 = vmatmul.mubr.msk.bf16.vlgmr.msra.gmra.mxu1 %vm344_vm2, %v5175_v33 }
0x2aa5   :  { %v5169_v14 = vpop.f32.mrf.mxu0  ;;  %9889 = vmatprep.mubr.msk.bf16.mxu1 %vm11231_vm1, %v11229_v37  ;;  %9886 = vmatpush3.bf16.msra.mxu1 %v10616_v19  ;;  %v10625_v19 = vld [vmem:[%s13372_s5 + $0xa0] ss:$8 sps:$4 sm:$0xff]  }
0x2aa6   :  { %v5176_v41 = vpack.c.bf16 %v5169_v14, %v5166_v59  ;;  %9887 = vmatprep.subr.bf16.mxu1 %v11229_v37  ;;  %v9043_v59 = vld [vmem:[#allocation10 + $0x4] ss:$0 sm:$0xff] }
0x2aa7   :  { %v9860_v34 = vpop.f32.mrf.mxu0 }
0x2aa8   :  { %9882 = vmatmul.mubr.msk.bf16.vlgmr.msra.gmra.mxu0 %vm344_vm2, %v5176_v41  ;;  %v10618_v41 = vld [vmem:[%s13376_s9 + $0x98] sm:$0xff]   ;;  %v10619_v34 = vld [vmem:[%s13376_s9 + $0x90] sm:$0xff]  }
0x2aa9   :  { %9901 = vmatprep.mubr.msk.bf16.mxu0 %vm11231_vm1, %v11229_v37  ;;  %9888 = vmatpush3.bf16.msra.mxu1 %v10617_v12 }
0x2aaa   :  { %9894 = vmatpush3.bf16.msra.mxu0 %v10618_v41 }
0x2aab   :  { %9895 = vmatprep.subr.bf16.mxu0 %v11229_v37 }
0x2aae   :  { %9896 = vmatpush3.bf16.msra.mxu0 %v10619_v34 }
0x2aaf   :  { %9897 = vmatprep.subr.bf16.mxu0 %v11229_v37 }
0x2b07   :  { %v5222_v50 = vpop.f32.mrf.mxu1 }
0x2b08   :  { %v5370_v27 = vsel %vm129_vm0, %v5222_v50, 0.0  ;;  %v10620_v50 = vld [vmem:[%s13376_s9 + $0x88] sm:$0xff]  }
0x2b09   :  { %v9865_v18 = vpop.f32.mrf.mxu1  ;;  %9898 = vmatpush3.bf16.msra.mxu0 %v10620_v50 }
0x2b0a   :  { %9899 = vmatprep.subr.bf16.mxu0 %v11229_v37  ;;  %v10621_v18 = vld [vmem:[%s13376_s9 + $0x80] sm:$0xff]  }
0x2b0b   :  { %v5225_v47 = vpop.f32.mrf.mxu1 }
0x2b0c   :  { %v5377_v58 = vsel %vm129_vm0, %v5225_v47, 0.0 }
0x2b0d   :  { %v9866_v32 = vpop.f32.mrf.mxu1  ;;  %9900 = vmatpush3.bf16.msra.mxu0 %v10621_v18 }
0x2b0e   :  { %9911 = vmatprep.subr.bf16.mxu0 %v11229_v37 }
0x2b60   :  { %v5269_v43 = vpop.f32.mrf.mxu0 }
0x2b61   :  { %v5371_v22 = vsel %vm129_vm0, %v5269_v43, 0.0 }
0x2b62   :  { %v9871_v24 = vpop.f32.mrf.mxu0  ;;  %v5372_v54 = vadd.f32 %v5371_v22, %v5370_v27 }
0x2b64   :  { %v5272_v25 = vpop.f32.mrf.mxu0  ;;  %v5316_v46 = vpop.f32.mrf.mxu1 }
0x2b65   :  { %v5373_v44 = vsel %vm129_vm0, %v5316_v46, 0.0  ;;  %v5378_v17 = vsel %vm129_vm0, %v5272_v25, 0.0 }
0x2b66   :  { %v9872_v55 = vpop.f32.mrf.mxu0  ;;  %v9877_v57 = vpop.f32.mrf.mxu1  ;;  %v5374_v40 = vadd.f32 %v5373_v44, %v5372_v54  ;;  %v5379_v60 = vadd.f32 %v5378_v17, %v5377_v58 }
0x2b68   :  { %v5319_v62 = vpop.f32.mrf.mxu1  ;;  %v5363_v53 = vpop.f32.mrf.mxu0 }
0x2b69   :  { %v5380_v1 = vsel %vm129_vm0, %v5319_v62, 0.0  ;;  %v5375_v4 = vsel %vm129_vm0, %v5363_v53, 0.0 }
0x2b6a   :  { %v5376_v61 = vadd.f32 %v5375_v4, %v5374_v40  ;;  %v9878_v29 = vpop.f32.mrf.mxu1  ;;  %v9883_v49 = vpop.f32.mrf.mxu0  ;;  %v5381_v51 = vadd.f32 %v5380_v1, %v5379_v60 }
0x2b6c   :  { %v12570_v38 = vadd.f32 %v5376_v61, %v12352_v7  ;;  %v5366_v3 = vpop.f32.mrf.mxu0 }
0x2b6d   :  { %v5382_v63 = vsel %vm129_vm0, %v5366_v3, 0.0 }
0x2b6e   :  { %v5383_v8 = vadd.f32 %v5382_v63, %v5381_v51  ;;  %v9884_v9 = vpop.f32.mrf.mxu0  ;;  %v5386_v6 = vmul.f32 %v12570_v38, %v12570_v38 }
0x2b70   :  { %v12576_v5 = vadd.f32 %v5383_v8, %v12357_v16  ;;  %v5388_v11 = vsel %vm129_vm0, %v5386_v6, 0.0 }
0x2b71   :  { %5389 = vadd.xlane.f32.xlu0 %v5388_v11 }
0x2b72   :  { %v5387_v13 = vmul.f32 %v12576_v5, %v12576_v5 }
0x2b74   :  { %v5391_v7 = vsel %vm129_vm0, %v5387_v13, 0.0 }
0x2b75   :  { %5392 = vadd.xlane.f32.xlu1 %v5391_v7  ;;  %v10622_v7 = vld [vmem:[%s13372_s5 + $0xb0] ss:$8 sps:$4 sm:$0xff]  }
0x2bfa   :  { %v5390_v15 = vpop.xlane.xlu0 %5389 }
0x2bfb   :  { %v5394_v20 = vmul.f32 0.03125, %v5390_v15 }
0x2bfd   :  { %v5396_v31 = vadd.f32 1e-06, %v5394_v20 }
0x2bfe   :  { %v5393_v16 = vpop.xlane.xlu1 %5392 }
0x2bff   :  { %10886 = vrsqrt.f32 %v5396_v31  ;;  %v5395_v23 = vmul.f32 0.03125, %v5393_v16 }
0x2c01   :  { %v5397_v28 = vadd.f32 1e-06, %v5395_v23 }
0x2c03   :  { %10888 = vrsqrt.f32 %v5397_v28 }
0x2c0c   :  { %v10887_v2 = vpop.eup %10886 }
0x2c0d   :  { %v5400_v21 = vmul.f32 %v10887_v2, %v12570_v38 }
0x2c0f   :  { %v5410_v39 = vmul.f32 %v9043_v59, %v5400_v21 }
0x2c10   :  { %v10889_v30 = vpop.eup %10888 }
0x2c11   :  { %v5401_v33 = vmul.f32 %v10889_v30, %v12576_v5  ;;  %v9060_v30 = vld [vmem:[#allocation8 + $0x5] ss:$0 sm:$0xff] }
0x2c13   :  { %v5411_v26 = vmul.f32 %v9043_v59, %v5401_v33 }
0x2c15   :  { %v5412_v14 = vpack.c.bf16 %v5411_v26, %v5410_v39 }
0x2c17   :  { %9890 = vmatmul.mubr.msk.bf16.vlgmr.msra.gmra.mxu1 %vm129_vm0, %v5412_v14 }
0x2c18   :  { %5665 = vmatprep.mubr.bf16.mxu1 %v11226_v10 }
0x2cd7   :  { %v5467_v47 = vpop.f32.mrf.mxu1 }
0x2cd8   :  { %5490 = vrot.lane.b32.xlu0 %v5467_v47, %s11224_s25  ;;  %v5474_v22 = vsub.f32 0.0, %v5467_v47 }
0x2cd9   :  { %v9891_v32 = vpop.f32.mrf.mxu1 }
0x2cda   :  { %v5476_v46 = vmul.f32 1.442695, %v5474_v22 }
0x2cdb   :  { %v5470_v43 = vpop.f32.mrf.mxu1 }
0x2cdc   :  { %5492 = vrot.lane.b32.xlu1 %v5470_v43, %s11224_s25  ;;  %v5475_v25 = vsub.f32 0.0, %v5470_v43  ;;  %10890 = vpow2.f32 %v5476_v46 }
0x2cdd   :  { %v9892_v24 = vpop.f32.mrf.mxu1 }
0x2cde   :  { %v5478_v27 = vmul.f32 1.442695, %v5475_v25 }
0x2ce0   :  { %10892 = vpow2.f32 %v5478_v27 }
0x2ce9   :  { %v10891_v44 = vpop.eup %10890 }
0x2cea   :  { %v5480_v55 = vadd.f32 1.0, %v10891_v44 }
0x2cec   :  { %10894 = vrcp.f32 %v5480_v55 }
0x2ced   :  { %v10893_v54 = vpop.eup %10892 }
0x2cee   :  { %v5481_v57 = vadd.f32 1.0, %v10893_v54 }
0x2cf0   :  { %10896 = vrcp.f32 %v5481_v57 }
0x2cf9   :  { %v10895_v17 = vpop.eup %10894 }
0x2cfa   :  { %v5486_v53 = vmul.f32 %v10895_v17, %v5467_v47 }
0x2cfd   :  { %v10897_v40 = vpop.eup %10896 }
0x2cfe   :  { %v5487_v58 = vmul.f32 %v10897_v40, %v5470_v43 }
0x2d4a   :  { %v5491_v62 = vpop.permute.xlu0 %5490 }
0x2d4b   :  { %v5496_v4 = vmul.f32 %v5491_v62, %v5486_v53 }
0x2d4e   :  { %v5493_v1 = vpop.permute.xlu1 %5492 }
0x2d4f   :  { %v5497_v60 = vmul.f32 %v5493_v1, %v5487_v58 }
0x2d51   :  { %v5498_v61 = vpack.c.bf16 %v5497_v60, %v5496_v4  ;;  %v12666_v4 = vld [vmem:[#allocation5] sm:$0xff] }
0x2d53   :  { %9902 = vmatmul.mubr.msk.bf16.vlgmr.msra.gmra.mxu0 %vm1183_vm5, %v5498_v61 }
0x2d54   :  { %9913 = vmatprep.mubr.msk.bf16.mxu0 %vm11231_vm1, %v11229_v37 }
0x2e13   :  { %v5569_v29 = vpop.f32.mrf.mxu0 }
0x2e14   :  { %v12609_v49 = vadd.f32 %v5569_v29, %v12570_v38  ;;  %v10624_v38 = vld [vmem:[%s13372_s5 + $0xb4] ss:$8 sps:$4 sm:$0xff]  }
0x2e15   :  { %v9903_v51 = vpop.f32.mrf.mxu0  ;;  %5645 = vmatprep.subr.bf16.mxu1 %v10624_v38  ;;  %v12670_v29 = vld [vmem:[#allocation5 + $0x8] sm:$0xff] }
0x2e16   :  { %v5578_v3 = vmul.f32 %v12609_v49, %v12609_v49  ;;  %5646 = vmatpush1.bf16.msra.mxu1 %v10622_v7 }
0x2e17   :  { %v5572_v63 = vpop.f32.mrf.mxu0 }
0x2e18   :  { %v12614_v8 = vadd.f32 %v5572_v63, %v12576_v5  ;;  %v5580_v9 = vsel %vm129_vm0, %v5578_v3, 0.0  ;;  %v10627_v5 = vld [vmem:[%s13372_s5 + $0xa4] ss:$8 sps:$4 sm:$0xff]  }
0x2e19   :  { %5581 = vadd.xlane.f32.xlu0 %v5580_v9  ;;  %v9904_v6 = vpop.f32.mrf.mxu0  ;;  %5647 = vmatprep.subr.bf16.mxu1 %v10627_v5 }
0x2e1a   :  { %v5579_v11 = vmul.f32 %v12614_v8, %v12614_v8  ;;  %5648 = vmatpush1.bf16.msra.mxu1 %v10625_v19 }
0x2e1b   :  { %9905 = vmatprep.subr.bf16.mxu1 %v11229_v37 }
0x2e1c   :  { %v5583_v13 = vsel %vm129_vm0, %v5579_v11, 0.0 }
0x2e1d   :  { %5584 = vadd.xlane.f32.xlu1 %v5583_v13 }
0x2ea2   :  { %v5582_v12 = vpop.xlane.xlu0 %5581 }
0x2ea3   :  { %v5586_v15 = vmul.f32 0.03125, %v5582_v12 }
0x2ea5   :  { %v5588_v20 = vadd.f32 1e-06, %v5586_v15 }
0x2ea6   :  { %v5585_v31 = vpop.xlane.xlu1 %5584 }
0x2ea7   :  { %10898 = vrsqrt.f32 %v5588_v20  ;;  %v5587_v16 = vmul.f32 0.03125, %v5585_v31 }
0x2ea9   :  { %v5589_v23 = vadd.f32 1e-06, %v5587_v16 }
0x2eab   :  { %10900 = vrsqrt.f32 %v5589_v23 }
0x2eb4   :  { %v10899_v28 = vpop.eup %10898 }
0x2eb5   :  { %v5592_v2 = vmul.f32 %v10899_v28, %v12609_v49 }
0x2eb7   :  { %v5602_v33 = vmul.f32 %v9060_v30, %v5592_v2 }
0x2eb8   :  { %v10901_v21 = vpop.eup %10900 }
0x2eb9   :  { %v5593_v59 = vmul.f32 %v10901_v21, %v12614_v8 }
0x2ebb   :  { %v5603_v39 = vmul.f32 %v9060_v30, %v5593_v59 }
0x2ebd   :  { %v5604_v26 = vpack.c.bf16 %v5603_v39, %v5602_v33 }
0x2ebf   :  { %9069 = vmatmul.mubr.msk.bf16.vlgmr.msra.gmra.mxu1 %vm129_vm0, %v5604_v26 }
0x2ec0   :  { %9907 = vmatprep.mubr.msk.bf16.mxu1 %vm11231_vm1, %v11229_v37 }
0x2f7f   :  { %v12638_v14 = vpop.f32.mrf.mxu1 }
0x2f80   :  { %v5678_v24 = vmul.f32 %v12638_v14, %v11381_v45  ;;  %v5690_v22 = vmul.f32 %v12638_v14, %v11371_v35  ;;  %v5676_v60 = vmul.f32 %v12666_v4, %v12638_v14 }
0x2f81   :  { %v5669_v41 = vpop.f32.mrf.mxu1 }
0x2f82   :  { %v5692_v34 = vmul.f32 %v12386_v42, %v5669_v41 }
0x2f83   :  { %v12641_v50 = vpop.f32.mrf.mxu1 }
0x2f84   :  { %5696 = vrot.lane.b32.xlu0 %v5692_v34, %s11227_s12  ;;  %v12646_v18 = vpack.i.bf16 %v12641_v50, %v12638_v14  ;;  %v5772_v32 = vpack.c.bf16 %v12641_v50, %v12638_v14  ;;  %v5691_v25 = vmul.f32 %v12641_v50, %v11373_v36  ;;  %v5677_v51 = vmul.f32 %v12670_v29, %v12641_v50 }
0x2f85   :  { %v5673_v47 = vpop.f32.mrf.mxu1 }
0x2f86   :  { %v5693_v43 = vmul.f32 %v12401_v52, %v5673_v47  ;;  %v5679_v52 = vmul.f32 %v12641_v50, %v11392_v48 }
0x2f88   :  { %5698 = vrot.lane.b32.xlu1 %v5693_v43, %s11227_s12 }
0x2f8c   :  { %5682 = vrot.lane.b32.xlu1 %v5678_v24, %s11227_s12 }
0x2ff6   :  { %v5697_v42 = vpop.permute.xlu0 %5696 }
0x2ff7   :  { %v5702_v27 = vadd.f32 %v5697_v42, %v5690_v22 }
0x2ffa   :  { %v5699_v46 = vpop.permute.xlu1 %5698 }
0x2ffb   :  { %v5703_v44 = vadd.f32 %v5699_v46, %v5691_v25 }
0x2ffd   :  { %v10432_v54 = vpack.i.bf16 %v5703_v44, %v5702_v27  ;;  %v5748_v55 = vpack.c.bf16 %v5703_v44, %v5702_v27 }
0x2ffe   :  { %v5683_v57 = vpop.permute.xlu1 %5682 }
0x2fff   :  { %10433 = vrot.lane.b32.xlu1 %v10432_v54, %s11230_s17  ;;  %10428 = vrot.lane.b32.xlu0 %v10432_v54, %s11232_s20  ;;  %v5688_v9 = vadd.f32 %v5683_v57, %v5676_v60 }
0x3003   :  { %5684 = vrot.lane.b32.xlu0 %v5679_v52, %s11227_s12  ;;  %5777 = vrot.lane.b32.xlu1 %v5748_v55, %s11228_s16 }
0x3007   :  { %10438 = vrot.lane.b32.xlu0 %v10432_v54, %s11233_s0 }
0x3071   :  { %v10429_v17 = vpop.permute.xlu0 %10428  ;;  %v10434_v40 = vpop.permute.xlu1 %10433 }
0x3072   :  { %v10431_v62 = vunpack.i.h.bf16 %v10429_v17  ;;  %v10430_v53 = vunpack.i.l.bf16 %v10429_v17  ;;  %v10436_v58 = vunpack.i.h.bf16 %v10434_v40  ;;  %v10435_v1 = vunpack.i.l.bf16 %v10434_v40 }
0x3074   :  { %v5749_v61 = vpack.c.bf16 %v10431_v62, %v10430_v53  ;;  %v5750_v13 = vpack.c.bf16 %v10436_v58, %v10435_v1 }
0x3075   :  { %v5685_v3 = vpop.permute.xlu0 %5684  ;;  %v5778_v63 = vpop.permute.xlu1 %5777 }
0x3076   :  { %v5689_v6 = vadd.f32 %v5685_v3, %v5677_v51  ;;  %v5783_v11 = vsel %vm344_vm2, %v5778_v63, 0  ;;  %5827 = vrot.lane.b32.xlu0 %v5749_v61, %s11228_s16 }
0x3077   :  { %9906 = vmatpush3.bf16.xpose.msra.mxu1 %v5783_v11 }
0x3078   :  { %v5724_v38 = vpack.c.bf16 %v5689_v6, %v5688_v9  ;;  %v10442_v7 = vpack.i.bf16 %v5689_v6, %v5688_v9  ;;  %9917 = vmatprep.subr.bf16.mxu1 %v11229_v37 }
0x3079   :  { %v10439_v5 = vpop.permute.xlu0 %10438 }
0x307a   :  { %v10441_v19 = vunpack.i.h.bf16 %v10439_v5  ;;  %v10440_v12 = vunpack.i.l.bf16 %v10439_v5  ;;  %10443 = vrot.lane.b32.xlu1 %v10442_v7, %s11232_s20  ;;  %5877 = vrot.lane.b32.xlu0 %v5750_v13, %s11228_s16 }
0x307c   :  { %v5751_v15 = vpack.c.bf16 %v10441_v19, %v10440_v12 }
0x307e   :  { %5927 = vrot.lane.b32.xlu1 %v5751_v15, %s11228_s16  ;;  %9908 = vmatmul.mubr.msk.bf16.vlgmr.msra.gmra.mxu1 %vm344_vm2, %v5724_v38 }
0x307f   :  { %10448 = vrot.lane.b32.xlu0 %v10442_v7, %s11230_s17  ;;  %9919 = vmatprep.mubr.msk.bf16.mxu1 %vm11231_vm1, %v11229_v37 }
0x3082   :  { %10453 = vrot.lane.b32.xlu1 %v10442_v7, %s11233_s0 }
0x30e8   :  { %v5828_v20 = vpop.permute.xlu0 %5827 }
0x30e9   :  { %v5833_v31 = vsel %vm344_vm2, %v5828_v20, 0 }
0x30ea   :  { %9912 = vmatpush3.bf16.xpose.msra.mxu0 %v5833_v31 }
0x30eb   :  { %9923 = vmatprep.subr.bf16.mxu0 %v11229_v37 }
0x30ec   :  { %v10444_v16 = vpop.permute.xlu1 %10443  ;;  %v5878_v23 = vpop.permute.xlu0 %5877 }
0x30ed   :  { %v10446_v28 = vunpack.i.h.bf16 %v10444_v16  ;;  %v10445_v2 = vunpack.i.l.bf16 %v10444_v16  ;;  %v5883_v21 = vsel %vm344_vm2, %v5878_v23, 0 }
0x30ee   :  { %9918 = vmatpush3.bf16.xpose.msra.mxu1 %v5883_v21 }
0x30ef   :  { %v5725_v30 = vpack.c.bf16 %v10446_v28, %v10445_v2  ;;  %9929 = vmatprep.subr.bf16.mxu1 %v11229_v37 }
0x30f0   :  { %v5928_v59 = vpop.permute.xlu1 %5927 }
0x30f1   :  { %v5933_v33 = vsel %vm344_vm2, %v5928_v59, 0  ;;  %v10449_v39 = vpop.permute.xlu0 %10448  ;;  %9914 = vmatmul.mubr.msk.bf16.vlgmr.msra.gmra.mxu0 %vm344_vm2, %v5725_v30 }
0x30f2   :  { %v10451_v26 = vunpack.i.h.bf16 %v10449_v39  ;;  %v10450_v41 = vunpack.i.l.bf16 %v10449_v39  ;;  %9924 = vmatpush3.bf16.xpose.msra.mxu0 %v5933_v33  ;;  %9925 = vmatprep.mubr.msk.bf16.mxu0 %vm11231_vm1, %v11229_v37 }
0x30f3   :  { %9935 = vmatprep.subr.bf16.mxu0 %v11229_v37 }
0x30f4   :  { %v5726_v34 = vpack.c.bf16 %v10451_v26, %v10450_v41  ;;  %v10454_v47 = vpop.permute.xlu1 %10453 }
0x30f5   :  { %v10456_v43 = vunpack.i.h.bf16 %v10454_v47  ;;  %v10455_v24 = vunpack.i.l.bf16 %v10454_v47 }
0x30f6   :  { %9920 = vmatmul.mubr.msk.bf16.vlgmr.msra.gmra.mxu1 %vm344_vm2, %v5726_v34 }
0x30f7   :  { %v5727_v42 = vpack.c.bf16 %v10456_v43, %v10455_v24  ;;  %9931 = vmatprep.mubr.msk.bf16.mxu1 %vm11231_vm1, %v11229_v37 }
0x30f9   :  { %9926 = vmatmul.mubr.msk.bf16.vlgmr.msra.gmra.mxu0 %vm344_vm2, %v5727_v42 }
0x30fa   :  { %9937 = vmatprep.mubr.msk.bf16.mxu0 %vm11231_vm1, %v11229_v37 }
0x313e   :  { %v5819_v22 = vpop.f32.mrf.mxu1 }
0x313f   :  { %v12701_v25 = vadd.f32 %v12449_v0, %v5819_v22 }
0x3140   :  { %v9909_v46 = vpop.f32.mrf.mxu1 }
0x3141   :  { %v5976_v27 = vsel %vm542_vm3, %v12701_v25, -inf }
0x3142   :  { %v5822_v44 = vpop.f32.mrf.mxu1  ;;  %5977 = vmax.xlane.f32.xlu0 %v5976_v27 }
0x3143   :  { %v5823_v54 = vadd.f32 %v12453_v56, %v5822_v44 }
0x3144   :  { %v9910_v55 = vpop.f32.mrf.mxu1 }
0x3145   :  { %v5979_v52 = vsel %vm542_vm3, %v5823_v54, -inf }
0x3146   :  { %5980 = vmax.xlane.f32.xlu1 %v5979_v52 }
0x31b1   :  { %v5869_v57 = vpop.f32.mrf.mxu0 }
0x31b2   :  { %v5870_v17 = vadd.f32 %v12449_v0, %v5869_v57 }
0x31b3   :  { %v9915_v40 = vpop.f32.mrf.mxu0 }
0x31b4   :  { %v5982_v62 = vsel %vm542_vm3, %v5870_v17, -inf }
0x31b5   :  { %5983 = vmax.xlane.f32.xlu0 %v5982_v62  ;;  %v5872_v53 = vpop.f32.mrf.mxu0 }
0x31b6   :  { %v5919_v58 = vpop.f32.mrf.mxu1  ;;  %v12710_v1 = vadd.f32 %v12453_v56, %v5872_v53 }
0x31b7   :  { %v5920_v60 = vadd.f32 %v12449_v0, %v5919_v58  ;;  %v9916_v61 = vpop.f32.mrf.mxu0 }
0x31b8   :  { %v9921_v51 = vpop.f32.mrf.mxu1  ;;  %v5985_v3 = vsel %vm542_vm3, %v12710_v1, -inf }
0x31b9   :  { %v5988_v63 = vsel %vm542_vm3, %v5920_v60, -inf  ;;  %5986 = vmax.xlane.f32.xlu0 %v5985_v3  ;;  %v5969_v9 = vpop.f32.mrf.mxu0 }
0x31ba   :  { %5989 = vmax.xlane.f32.xlu1 %v5988_v63  ;;  %v5922_v6 = vpop.f32.mrf.mxu1  ;;  %v5970_v11 = vadd.f32 %v12449_v0, %v5969_v9 }
0x31bb   :  { %v12718_v13 = vadd.f32 %v12453_v56, %v5922_v6  ;;  %v9927_v38 = vpop.f32.mrf.mxu0 }
0x31bc   :  { %v9922_v7 = vpop.f32.mrf.mxu1  ;;  %v5994_v5 = vsel %vm542_vm3, %v5970_v11, -inf }
0x31bd   :  { %v5991_v19 = vsel %vm542_vm3, %v12718_v13, -inf  ;;  %v5972_v12 = vpop.f32.mrf.mxu0 }
0x31be   :  { %5992 = vmax.xlane.f32.xlu0 %v5991_v19  ;;  %5995 = vmax.xlane.f32.xlu1 %v5994_v5  ;;  %v5973_v15 = vadd.f32 %v12453_v56, %v5972_v12 }
0x31bf   :  { %v9928_v20 = vpop.f32.mrf.mxu0 }
0x31c0   :  { %v5997_v31 = vsel %vm542_vm3, %v5973_v15, -inf }
0x31c2   :  { %5998 = vmax.xlane.f32.xlu0 %v5997_v31 }
0x31cb   :  { %v5978_v2 = vpop.xlane.xlu0 %5977 }
0x31cc   :  { %v6000_v57 = vsub.f32 %v12701_v25, %v5978_v2 }
0x31ce   :  { %v6008_v40 = vmul.f32 1.442695, %v6000_v57 }
0x31cf   :  { %10458 = vrot.lane.b32.xlu1 %v12646_v18, %s11232_s20  ;;  %v5981_v0 = vpop.xlane.xlu1 %5980 }
0x31d0   :  { %v6001_v56 = vsub.f32 %v5823_v54, %v5981_v0 }
0x31d2   :  { %v6010_v16 = vmul.f32 1.442695, %v6001_v56 }
0x31d3   :  { %10468 = vrot.lane.b32.xlu1 %v12646_v18, %s11233_s0 }
0x31d4   :  { %10902 = vpow2.f32 %v6010_v16 }
0x31d8   :  { %10463 = vrot.lane.b32.xlu0 %v12646_v18, %s11230_s17 }
0x31dc   :  { %6069 = vrot.lane.b32.xlu0 %v5772_v32, %s11224_s25 }
0x31e1   :  { %v12735_v23 = vpop.eup %10902 }
0x31e2   :  { %v6027_v28 = vsel %vm542_vm3, %v12735_v23, 0.0 }
0x31fb   :  { %6028 = vadd.xlane.f32.xlu0 %v6027_v28 }
0x323e   :  { %v5984_v21 = vpop.xlane.xlu0 %5983 }
0x323f   :  { %v6002_v30 = vsub.f32 %v5870_v17, %v5984_v21 }
0x3241   :  { %v6012_v59 = vmul.f32 1.442695, %v6002_v30 }
0x3242   :  { %v5987_v18 = vpop.xlane.xlu0 %5986 }
0x3243   :  { %10904 = vpow2.f32 %v6012_v59  ;;  %v5990_v33 = vpop.xlane.xlu1 %5989  ;;  %v6003_v62 = vsub.f32 %v12710_v1, %v5987_v18 }
0x3244   :  { %v6004_v39 = vsub.f32 %v5920_v60, %v5990_v33 }
0x3245   :  { %v6014_v53 = vmul.f32 1.442695, %v6003_v62 }
0x3246   :  { %v6016_v14 = vmul.f32 1.442695, %v6004_v39 }
0x3247   :  { %v5993_v50 = vpop.xlane.xlu0 %5992  ;;  %v5996_v32 = vpop.xlane.xlu1 %5995 }
0x3248   :  { %10906 = vpow2.f32 %v6016_v14  ;;  %v6006_v26 = vsub.f32 %v5970_v11, %v5996_v32  ;;  %v6005_v58 = vsub.f32 %v12718_v13, %v5993_v50 }
0x324a   :  { %v6020_v41 = vmul.f32 1.442695, %v6006_v26  ;;  %v6018_v60 = vmul.f32 1.442695, %v6005_v58 }
0x324b   :  { %v10459_v34 = vpop.permute.xlu1 %10458  ;;  %v5999_v47 = vpop.xlane.xlu0 %5998 }
0x324c   :  { %v10461_v43 = vunpack.i.h.bf16 %v10459_v34  ;;  %v10460_v24 = vunpack.i.l.bf16 %v10459_v34  ;;  %10908 = vpow2.f32 %v6020_v41  ;;  %v6007_v61 = vsub.f32 %v5973_v15, %v5999_v47 }
0x324d   :  { %10910 = vpow2.f32 %v6008_v40  ;;  %v9078_v40 = vld [vmem:[%s13373_s6 + $0x50] sm:$0xf] }
0x324e   :  { %v5773_v42 = vpack.c.bf16 %v10461_v43, %v10460_v24  ;;  %10912 = vpow2.f32 %v6014_v53  ;;  %v6022_v3 = vmul.f32 1.442695, %v6007_v61  ;;  %v6273_v62 = vsel %vm838_vm4, %v9078_v40, 0  ;;  %v9080_v61 = vld [vmem:[%s13373_s6 + $0x58] sm:$0xf] }
0x324f   :  { %v10464_v22 = vpop.permute.xlu0 %10463  ;;  %v10469_v51 = vpop.permute.xlu1 %10468  ;;  %10914 = vpow2.f32 %v6018_v60 }
0x3250   :  { %v12739_v46 = vpop.eup %10904  ;;  %6117 = vrot.lane.b32.xlu1 %v5773_v42, %s11224_s25  ;;  %v10471_v63 = vunpack.i.h.bf16 %v10469_v51  ;;  %v10470_v9 = vunpack.i.l.bf16 %v10469_v51  ;;  %10916 = vpow2.f32 %v6022_v3  ;;  %v10466_v12 = vunpack.i.h.bf16 %v10464_v22 }
0x3251   :  { %v6030_v27 = vsel %vm542_vm3, %v12739_v46, 0.0  ;;  %v10465_v15 = vunpack.i.l.bf16 %v10464_v22 }
0x3252   :  { %6031 = vadd.xlane.f32.xlu0 %v6030_v27  ;;  %v5775_v6 = vpack.c.bf16 %v10471_v63, %v10470_v9  ;;  %v6367_v9 = vsel %vm838_vm4, %v9080_v61, 0 }
0x3253   :  { %v6070_v44 = vpop.permute.xlu0 %6069  ;;  %v5774_v20 = vpack.c.bf16 %v10466_v12, %v10465_v15 }
0x3254   :  { %9930 = vmatpush3.bf16.msra.mxu1 %v6070_v44 }
0x3255   :  { %v12744_v54 = vpop.eup %10906  ;;  %9941 = vmatprep.subr.bf16.mxu1 %v11229_v37 }
0x3256   :  { %v6036_v55 = vsel %vm542_vm3, %v12744_v54, 0.0 }
0x3257   :  { %6037 = vadd.xlane.f32.xlu0 %v6036_v55 }
0x3259   :  { %v12749_v52 = vpop.eup %10908 }
0x325a   :  { %v6042_v17 = vsel %vm542_vm3, %v12749_v52, 0.0  ;;  %v10911_v25 = vpop.eup %10910 }
0x325b   :  { %6043 = vadd.xlane.f32.xlu0 %v6042_v17  ;;  %v6024_v11 = vsel %vm542_vm3, %v10911_v25, 0.0  ;;  %v10913_v1 = vpop.eup %10912 }
0x325c   :  { %v6033_v38 = vsel %vm542_vm3, %v10913_v1, 0.0  ;;  %v10915_v13 = vpop.eup %10914 }
0x325d   :  { %v6039_v7 = vsel %vm542_vm3, %v10915_v13, 0.0  ;;  %v10917_v5 = vpop.eup %10916 }
0x325e   :  { %v6045_v19 = vsel %vm542_vm3, %v10917_v5, 0.0 }
0x3271   :  { %6213 = vrot.lane.b32.xlu0 %v5775_v6, %s11224_s25 }
0x3274   :  { %6025 = vadd.xlane.f32.xlu1 %v6024_v11  ;;  %v9081_v11 = vld [vmem:[%s13373_s6 + $0x5c] sm:$0xf] }
0x3278   :  { %6034 = vadd.xlane.f32.xlu1 %v6033_v38 }
0x327c   :  { %6040 = vadd.xlane.f32.xlu1 %v6039_v7  ;;  %v6414_v7 = vsel %vm838_vm4, %v9081_v11, 0 }
0x3280   :  { %6046 = vadd.xlane.f32.xlu1 %v6045_v19 }
0x3284   :  { %v6029_v0 = vpop.xlane.xlu0 %6028 }
0x3285   :  { %10918 = vrcp.f32 %v6029_v0 }
0x3291   :  { %6165 = vrot.lane.b32.xlu1 %v5774_v20, %s11224_s25 }
0x3292   :  { %v10919_v59 = vpop.eup %10918 }
0x3293   :  { %v6057_v39 = vmul.f32 %v10919_v59, %v12735_v23 }
0x32c2   :  { %v6118_v31 = vpop.permute.xlu1 %6117 }
0x32c3   :  { %9936 = vmatpush3.bf16.msra.mxu0 %v6118_v31 }
0x32c4   :  { %9947 = vmatprep.subr.bf16.mxu0 %v11229_v37 }
0x32db   :  { %v6032_v56 = vpop.xlane.xlu0 %6031 }
0x32e0   :  { %v6038_v28 = vpop.xlane.xlu0 %6037 }
0x32e4   :  { %v6044_v21 = vpop.xlane.xlu0 %6043 }
0x32e8   :  { %v6214_v22 = vpop.permute.xlu0 %6213 }
0x32fd   :  { %v6026_v16 = vpop.xlane.xlu1 %6025 }
0x32fe   :  { %10920 = vrcp.f32 %v6026_v16 }
0x32ff   :  { %10922 = vrcp.f32 %v6032_v56 }
0x3301   :  { %v6035_v2 = vpop.xlane.xlu1 %6034 }
0x3302   :  { %10924 = vrcp.f32 %v6035_v2 }
0x3303   :  { %10926 = vrcp.f32 %v6038_v28 }
0x3305   :  { %v6041_v30 = vpop.xlane.xlu1 %6040 }
0x3306   :  { %10928 = vrcp.f32 %v6041_v30 }
0x3307   :  { %10930 = vrcp.f32 %v6044_v21 }
0x3309   :  { %v6047_v18 = vpop.xlane.xlu1 %6046 }
0x330a   :  { %10932 = vrcp.f32 %v6047_v18 }
0x330b   :  { %v10921_v33 = vpop.eup %10920 }
0x330c   :  { %v6056_v14 = vmul.f32 %v10921_v33, %v10911_v25  ;;  %v10923_v50 = vpop.eup %10922 }
0x330d   :  { %v6058_v41 = vmul.f32 %v10923_v50, %v12739_v46  ;;  %v6166_v47 = vpop.permute.xlu1 %6165 }
0x330e   :  { %v6064_v32 = vpack.c.bf16 %v6057_v39, %v6056_v14 }
0x330f   :  { %v10925_v26 = vpop.eup %10924 }
0x3310   :  { %v6059_v34 = vmul.f32 %v10925_v26, %v10913_v1  ;;  %9932 = vmatmul.mubr.msk.bf16.vlgmr.msra.gmra.mxu1 %vm542_vm3, %v6064_v32  ;;  %v10927_v43 = vpop.eup %10926 }
0x3311   :  { %9942 = vmatpush3.bf16.msra.mxu1 %v6166_v47  ;;  %9943 = vmatprep.mubr.msk.bf16.mxu1 %vm11231_vm1, %v11229_v37  ;;  %v6060_v23 = vmul.f32 %v10927_v43, %v12744_v54 }
0x3312   :  { %v6065_v24 = vpack.c.bf16 %v6059_v34, %v6058_v41  ;;  %9953 = vmatprep.subr.bf16.mxu1 %v11229_v37 }
0x3313   :  { %v10929_v42 = vpop.eup %10928 }
0x3314   :  { %v6061_v27 = vmul.f32 %v10929_v42, %v10915_v13  ;;  %9938 = vmatmul.mubr.msk.bf16.vlgmr.msra.gmra.mxu0 %vm542_vm3, %v6065_v24  ;;  %v10931_v46 = vpop.eup %10930 }
0x3315   :  { %9948 = vmatpush3.bf16.msra.mxu0 %v6214_v22  ;;  %9949 = vmatprep.mubr.msk.bf16.mxu0 %vm11231_vm1, %v11229_v37  ;;  %v6062_v57 = vmul.f32 %v10931_v46, %v12749_v52  ;;  %v9079_v52 = vld [vmem:[%s13373_s6 + $0x54] sm:$0xf] }
0x3316   :  { %v6066_v44 = vpack.c.bf16 %v6061_v27, %v6060_v23  ;;  %9959 = vmatprep.subr.bf16.mxu0 %v11229_v37  ;;  %v6320_v53 = vsel %vm838_vm4, %v9079_v52, 0 }
0x3317   :  { %v10933_v55 = vpop.eup %10932 }
0x3318   :  { %v6063_v17 = vmul.f32 %v10933_v55, %v10917_v5  ;;  %9944 = vmatmul.mubr.msk.bf16.vlgmr.msra.gmra.mxu1 %vm542_vm3, %v6066_v44 }
0x3319   :  { %9955 = vmatprep.mubr.msk.bf16.mxu1 %vm11231_vm1, %v11229_v37  ;;  %9954 = vmatpush3.bf16.msra.mxu1 %v6273_v62 }
0x331a   :  { %v6067_v54 = vpack.c.bf16 %v6063_v17, %v6062_v57  ;;  %9965 = vmatprep.subr.bf16.mxu1 %v11229_v37 }
0x331c   :  { %9950 = vmatmul.mubr.msk.bf16.vlgmr.msra.gmra.mxu0 %vm542_vm3, %v6067_v54 }
0x331d   :  { %9961 = vmatprep.mubr.msk.bf16.mxu0 %vm11231_vm1, %v11229_v37  ;;  %9960 = vmatpush3.bf16.msra.mxu0 %v6320_v53 }
0x331e   :  { %9971 = vmatprep.subr.bf16.mxu0 %v11229_v37 }
0x33d0   :  { %v6109_v58 = vpop.f32.mrf.mxu1 }
0x33d2   :  { %v9933_v60 = vpop.f32.mrf.mxu1 }
0x33d4   :  { %v6112_v51 = vpop.f32.mrf.mxu1  ;;  %v6157_v3 = vpop.f32.mrf.mxu0 }
0x33d5   :  { %v6260_v63 = vpack.c.bf16 %v6112_v51, %v6109_v58 }
0x33d6   :  { %v9934_v25 = vpop.f32.mrf.mxu1  ;;  %v9939_v6 = vpop.f32.mrf.mxu0 }
0x33d7   :  { %9956 = vmatmul.mubr.msk.bf16.vlgmr.msra.gmra.mxu1 %vm344_vm2, %v6260_v63  ;;  %v10628_v63 = vld [vmem:[#allocation11 + $0x58] sm:$0xff]  }
0x33d8   :  { %v6160_v1 = vpop.f32.mrf.mxu0  ;;  %v6205_v38 = vpop.f32.mrf.mxu1  ;;  %9966 = vmatpush3.bf16.msra.mxu1 %v6367_v9  ;;  %9967 = vmatprep.mubr.msk.bf16.mxu1 %vm11231_vm1, %v11229_v37  ;;  %v10629_v9 = vld [vmem:[#allocation11 + $0x50] sm:$0xff]  }
0x33d9   :  { %v6261_v13 = vpack.c.bf16 %v6160_v1, %v6157_v3  ;;  %9977 = vmatprep.subr.bf16.mxu1 %v11229_v37 }
0x33da   :  { %v9940_v5 = vpop.f32.mrf.mxu0  ;;  %v9945_v19 = vpop.f32.mrf.mxu1 }
0x33db   :  { %9962 = vmatmul.mubr.msk.bf16.vlgmr.msra.gmra.mxu0 %vm344_vm2, %v6261_v13  ;;  %v9086_v19 = vld [vmem:[#allocation10 + $0x5] ss:$0 sm:$0xff] }
0x33dc   :  { %v6208_v12 = vpop.f32.mrf.mxu1  ;;  %v6253_v15 = vpop.f32.mrf.mxu0  ;;  %9972 = vmatpush3.bf16.msra.mxu0 %v6414_v7  ;;  %9973 = vmatprep.mubr.msk.bf16.mxu0 %vm11231_vm1, %v11229_v37 }
0x33dd   :  { %v6262_v20 = vpack.c.bf16 %v6208_v12, %v6205_v38  ;;  %9985 = vmatprep.subr.bf16.mxu0 %v11229_v37 }
0x33de   :  { %v9946_v31 = vpop.f32.mrf.mxu1  ;;  %v9951_v0 = vpop.f32.mrf.mxu0 }
0x33df   :  { %9968 = vmatmul.mubr.msk.bf16.vlgmr.msra.gmra.mxu1 %vm344_vm2, %v6262_v20  ;;  %v10630_v0 = vld [vmem:[%s13376_s9 + $0xb8] sm:$0xff]  }
0x33e0   :  { %v6256_v56 = vpop.f32.mrf.mxu0  ;;  %9981 = vmatprep.mubr.msk.bf16.mxu1 %vm11231_vm1, %v11229_v37  ;;  %9978 = vmatpush3.bf16.msra.mxu1 %v10628_v63 }
0x33e1   :  { %v6263_v16 = vpack.c.bf16 %v6256_v56, %v6253_v15  ;;  %9979 = vmatprep.subr.bf16.mxu1 %v11229_v37  ;;  %v10631_v56 = vld [vmem:[%s13376_s9 + $0xb0] sm:$0xff]  }
0x33e2   :  { %v9952_v28 = vpop.f32.mrf.mxu0 }
0x33e3   :  { %9974 = vmatmul.mubr.msk.bf16.vlgmr.msra.gmra.mxu0 %vm344_vm2, %v6263_v16  ;;  %v10632_v16 = vld [vmem:[%s13376_s9 + $0xa8] sm:$0xff]   ;;  %v10633_v28 = vld [vmem:[%s13376_s9 + $0xa0] sm:$0xff]  }
0x33e4   :  { %9993 = vmatprep.mubr.msk.bf16.mxu0 %vm11231_vm1, %v11229_v37  ;;  %9980 = vmatpush3.bf16.msra.mxu1 %v10629_v9 }
0x33e5   :  { %9986 = vmatpush3.bf16.msra.mxu0 %v10630_v0 }
0x33e6   :  { %9987 = vmatprep.subr.bf16.mxu0 %v11229_v37 }
0x33e9   :  { %9988 = vmatpush3.bf16.msra.mxu0 %v10631_v56 }
0x33ea   :  { %9989 = vmatprep.subr.bf16.mxu0 %v11229_v37 }
0x33ed   :  { %9990 = vmatpush3.bf16.msra.mxu0 %v10632_v16 }
0x33ee   :  { %9991 = vmatprep.subr.bf16.mxu0 %v11229_v37 }
0x33f1   :  { %9992 = vmatpush3.bf16.msra.mxu0 %v10633_v28 }
0x33f2   :  { %10003 = vmatprep.subr.bf16.mxu0 %v11229_v37 }
0x3497   :  { %v6309_v2 = vpop.f32.mrf.mxu1 }
0x3498   :  { %v6457_v32 = vsel %vm129_vm0, %v6309_v2, 0.0 }
0x3499   :  { %v9957_v21 = vpop.f32.mrf.mxu1 }
0x349b   :  { %v6312_v30 = vpop.f32.mrf.mxu1  ;;  %v6356_v59 = vpop.f32.mrf.mxu0 }
0x349c   :  { %v6458_v39 = vsel %vm129_vm0, %v6356_v59, 0.0  ;;  %v6464_v22 = vsel %vm129_vm0, %v6312_v30, 0.0 }
0x349d   :  { %v9958_v18 = vpop.f32.mrf.mxu1  ;;  %v9963_v33 = vpop.f32.mrf.mxu0  ;;  %v6459_v41 = vadd.f32 %v6458_v39, %v6457_v32 }
0x349f   :  { %v6359_v14 = vpop.f32.mrf.mxu0  ;;  %v6403_v50 = vpop.f32.mrf.mxu1 }
0x34a0   :  { %v6460_v26 = vsel %vm129_vm0, %v6403_v50, 0.0  ;;  %v6465_v43 = vsel %vm129_vm0, %v6359_v14, 0.0 }
0x34a1   :  { %v9964_v34 = vpop.f32.mrf.mxu0  ;;  %v9969_v47 = vpop.f32.mrf.mxu1  ;;  %v6461_v24 = vadd.f32 %v6460_v26, %v6459_v41  ;;  %v6466_v44 = vadd.f32 %v6465_v43, %v6464_v22 }
0x34a3   :  { %v6406_v42 = vpop.f32.mrf.mxu1  ;;  %v6450_v23 = vpop.f32.mrf.mxu0 }
0x34a4   :  { %v6467_v27 = vsel %vm129_vm0, %v6406_v42, 0.0  ;;  %v6462_v46 = vsel %vm129_vm0, %v6450_v23, 0.0 }
0x34a5   :  { %v6463_v55 = vadd.f32 %v6462_v46, %v6461_v24  ;;  %v9970_v57 = vpop.f32.mrf.mxu1  ;;  %v9975_v17 = vpop.f32.mrf.mxu0  ;;  %v6468_v54 = vadd.f32 %v6467_v27, %v6466_v44 }
0x34a7   :  { %v12821_v40 = vadd.f32 %v6463_v55, %v12609_v49  ;;  %v6453_v62 = vpop.f32.mrf.mxu0 }
0x34a8   :  { %v6469_v52 = vsel %vm129_vm0, %v6453_v62, 0.0 }
0x34a9   :  { %v6470_v53 = vadd.f32 %v6469_v52, %v6468_v54  ;;  %v9976_v58 = vpop.f32.mrf.mxu0  ;;  %v6473_v60 = vmul.f32 %v12821_v40, %v12821_v40 }
0x34ab   :  { %v12827_v61 = vadd.f32 %v6470_v53, %v12614_v8  ;;  %v6475_v51 = vsel %vm129_vm0, %v6473_v60, 0.0 }
0x34ac   :  { %6476 = vadd.xlane.f32.xlu1 %v6475_v51  ;;  %v10634_v51 = vld [vmem:[%s13372_s5 + $0xd0] ss:$8 sps:$4 sm:$0xff]  }
0x34ad   :  { %v6474_v3 = vmul.f32 %v12827_v61, %v12827_v61 }
0x34af   :  { %v6478_v49 = vsel %vm129_vm0, %v6474_v3, 0.0  ;;  %v10637_v3 = vld [vmem:[%s13372_s5 + $0xc0] ss:$8 sps:$4 sm:$0xff]  }
0x34b0   :  { %6479 = vadd.xlane.f32.xlu0 %v6478_v49 }
0x3535   :  { %v6477_v25 = vpop.xlane.xlu1 %6476 }
0x3536   :  { %v6481_v6 = vmul.f32 0.03125, %v6477_v25 }
0x3538   :  { %v6483_v11 = vadd.f32 1e-06, %v6481_v6 }
0x3539   :  { %v6480_v8 = vpop.xlane.xlu0 %6479 }
0x353a   :  { %10934 = vrsqrt.f32 %v6483_v11  ;;  %v6482_v1 = vmul.f32 0.03125, %v6480_v8 }
0x353c   :  { %v6484_v38 = vadd.f32 1e-06, %v6482_v1 }
0x353e   :  { %10936 = vrsqrt.f32 %v6484_v38 }
0x3547   :  { %v10935_v13 = vpop.eup %10934 }
0x3548   :  { %v6487_v7 = vmul.f32 %v10935_v13, %v12821_v40  ;;  %v9103_v13 = vld [vmem:[#allocation8 + $0x6] ss:$0 sm:$0xff] }
0x354a   :  { %v6497_v15 = vmul.f32 %v9086_v19, %v6487_v7 }
0x354b   :  { %v10937_v5 = vpop.eup %10936 }
0x354c   :  { %v6488_v12 = vmul.f32 %v10937_v5, %v12827_v61 }
0x354e   :  { %v6498_v20 = vmul.f32 %v9086_v19, %v6488_v12 }
0x3550   :  { %v6499_v31 = vpack.c.bf16 %v6498_v20, %v6497_v15 }
0x3552   :  { %9982 = vmatmul.mubr.msk.bf16.vlgmr.msra.gmra.mxu1 %vm129_vm0, %v6499_v31  ;;  %v12894_v31 = vld [vmem:[%s13369_s2] sm:$0xff] }
0x3553   :  { %6752 = vmatprep.mubr.bf16.mxu1 %v11226_v10 }
0x3612   :  { %v6554_v2 = vpop.f32.mrf.mxu1 }
0x3613   :  { %6577 = vrot.lane.b32.xlu0 %v6554_v2, %s11224_s25  ;;  %v6561_v18 = vsub.f32 0.0, %v6554_v2 }
0x3614   :  { %v9983_v21 = vpop.f32.mrf.mxu1 }
0x3615   :  { %v6563_v39 = vmul.f32 1.442695, %v6561_v18  ;;  %v12909_v21 = vld [vmem:[%s13369_s2 + $0x8] sm:$0xff] }
0x3616   :  { %v6557_v30 = vpop.f32.mrf.mxu1 }
0x3617   :  { %6579 = vrot.lane.b32.xlu1 %v6557_v30, %s11224_s25  ;;  %v6562_v33 = vsub.f32 0.0, %v6557_v30  ;;  %10938 = vpow2.f32 %v6563_v39 }
0x3618   :  { %v9984_v59 = vpop.f32.mrf.mxu1 }
0x3619   :  { %v6565_v14 = vmul.f32 1.442695, %v6562_v33 }
0x361b   :  { %10940 = vpow2.f32 %v6565_v14 }
0x3624   :  { %v10939_v50 = vpop.eup %10938 }
0x3625   :  { %v6567_v26 = vadd.f32 1.0, %v10939_v50 }
0x3627   :  { %10942 = vrcp.f32 %v6567_v26 }
0x3628   :  { %v10941_v32 = vpop.eup %10940 }
0x3629   :  { %v6568_v41 = vadd.f32 1.0, %v10941_v32 }
0x362b   :  { %10944 = vrcp.f32 %v6568_v41 }
0x3634   :  { %v10943_v34 = vpop.eup %10942 }
0x3635   :  { %v6573_v24 = vmul.f32 %v10943_v34, %v6554_v2 }
0x3638   :  { %v10945_v47 = vpop.eup %10944 }
0x3639   :  { %v6574_v42 = vmul.f32 %v10945_v47, %v6557_v30 }
0x3685   :  { %v6578_v43 = vpop.permute.xlu0 %6577 }
0x3686   :  { %v6583_v22 = vmul.f32 %v6578_v43, %v6573_v24 }
0x3689   :  { %v6580_v23 = vpop.permute.xlu1 %6579 }
0x368a   :  { %v6584_v27 = vmul.f32 %v6580_v23, %v6574_v42 }
0x368c   :  { %v6585_v46 = vpack.c.bf16 %v6584_v27, %v6583_v22 }
0x368e   :  { %9994 = vmatmul.mubr.msk.bf16.vlgmr.msra.gmra.mxu0 %vm1183_vm5, %v6585_v46 }
0x368f   :  { %10005 = vmatprep.mubr.msk.bf16.mxu0 %vm11231_vm1, %v11229_v37 }
0x374e   :  { %v6656_v44 = vpop.f32.mrf.mxu0 }
0x374f   :  { %v12860_v55 = vadd.f32 %v6656_v44, %v12821_v40  ;;  %v10636_v40 = vld [vmem:[%s13372_s5 + $0xd4] ss:$8 sps:$4 sm:$0xff]  }
0x3750   :  { %v9995_v57 = vpop.f32.mrf.mxu0  ;;  %6732 = vmatprep.subr.bf16.mxu1 %v10636_v40 }
0x3751   :  { %v6665_v17 = vmul.f32 %v12860_v55, %v12860_v55  ;;  %6733 = vmatpush1.bf16.msra.mxu1 %v10634_v51 }
0x3752   :  { %v6659_v54 = vpop.f32.mrf.mxu0 }
0x3753   :  { %v12865_v62 = vadd.f32 %v6659_v54, %v12827_v61  ;;  %v6667_v52 = vsel %vm129_vm0, %v6665_v17, 0.0  ;;  %v10639_v61 = vld [vmem:[%s13372_s5 + $0xc4] ss:$8 sps:$4 sm:$0xff]  }
0x3754   :  { %6668 = vadd.xlane.f32.xlu1 %v6667_v52  ;;  %v9996_v53 = vpop.f32.mrf.mxu0  ;;  %6734 = vmatprep.subr.bf16.mxu1 %v10639_v61 }
0x3755   :  { %v6666_v58 = vmul.f32 %v12865_v62, %v12865_v62  ;;  %6735 = vmatpush1.bf16.msra.mxu1 %v10637_v3 }
0x3756   :  { %9997 = vmatprep.subr.bf16.mxu1 %v11229_v37 }
0x3757   :  { %v6670_v60 = vsel %vm129_vm0, %v6666_v58, 0.0 }
0x3758   :  { %6671 = vadd.xlane.f32.xlu0 %v6670_v60 }
0x37dd   :  { %v6669_v49 = vpop.xlane.xlu1 %6668 }
0x37de   :  { %v6673_v63 = vmul.f32 0.03125, %v6669_v49 }
0x37e0   :  { %v6675_v9 = vadd.f32 1e-06, %v6673_v63 }
0x37e1   :  { %v6672_v25 = vpop.xlane.xlu0 %6671 }
0x37e2   :  { %10946 = vrsqrt.f32 %v6675_v9  ;;  %v6674_v6 = vmul.f32 0.03125, %v6672_v25 }
0x37e4   :  { %v6676_v11 = vadd.f32 1e-06, %v6674_v6 }
0x37e6   :  { %10948 = vrsqrt.f32 %v6676_v11 }
0x37ef   :  { %v10947_v8 = vpop.eup %10946 }
0x37f0   :  { %v6679_v1 = vmul.f32 %v10947_v8, %v12860_v55 }
0x37f2   :  { %v6689_v5 = vmul.f32 %v9103_v13, %v6679_v1 }
0x37f3   :  { %v10949_v38 = vpop.eup %10948 }
0x37f4   :  { %v6680_v7 = vmul.f32 %v10949_v38, %v12865_v62 }
0x37f6   :  { %v6690_v19 = vmul.f32 %v9103_v13, %v6680_v7 }
0x37f8   :  { %v6691_v12 = vpack.c.bf16 %v6690_v19, %v6689_v5 }
0x37fa   :  { %9112 = vmatmul.mubr.msk.bf16.vlgmr.msra.gmra.mxu1 %vm129_vm0, %v6691_v12 }
0x37fb   :  { %9999 = vmatprep.mubr.msk.bf16.mxu1 %vm11231_vm1, %v11229_v37 }
0x38ba   :  { %v12889_v15 = vpop.f32.mrf.mxu1 }
0x38bb   :  { %v6765_v59 = vmul.f32 %v12889_v15, %v11381_v45  ;;  %v6777_v33 = vmul.f32 %v12889_v15, %v11371_v35  ;;  %v6763_v46 = vmul.f32 %v12666_v4, %v12889_v15 }
0x38bc   :  { %v6756_v20 = vpop.f32.mrf.mxu1 }
0x38bd   :  { %v6779_v0 = vmul.f32 %v12894_v31, %v6756_v20 }
0x38be   :  { %v12897_v56 = vpop.f32.mrf.mxu1 }
0x38bf   :  { %6783 = vrot.lane.b32.xlu0 %v6779_v0, %s11227_s12  ;;  %v12902_v16 = vpack.i.bf16 %v12897_v56, %v12889_v15  ;;  %v6859_v2 = vpack.c.bf16 %v12897_v56, %v12889_v15  ;;  %v6778_v39 = vmul.f32 %v12897_v56, %v11373_v36  ;;  %v6766_v34 = vmul.f32 %v12897_v56, %v11392_v48 }
0x38c0   :  { %v6760_v28 = vpop.f32.mrf.mxu1  ;;  %v6764_v57 = vmul.f32 %v12670_v29, %v12897_v56 }
0x38c1   :  { %v6780_v30 = vmul.f32 %v12909_v21, %v6760_v28 }
0x38c3   :  { %6769 = vrot.lane.b32.xlu0 %v6765_v59, %s11227_s12  ;;  %6785 = vrot.lane.b32.xlu1 %v6780_v30, %s11227_s12 }
0x3931   :  { %v6784_v18 = vpop.permute.xlu0 %6783 }
0x3932   :  { %v6789_v50 = vadd.f32 %v6784_v18, %v6777_v33  ;;  %v12957_v18 = vld [vmem:[#allocation7] sm:$0xff] }
0x3935   :  { %v6786_v14 = vpop.permute.xlu1 %6785  ;;  %v6770_v47 = vpop.permute.xlu0 %6769 }
0x3936   :  { %v6790_v32 = vadd.f32 %v6786_v14, %v6778_v39  ;;  %v6775_v52 = vadd.f32 %v6770_v47, %v6763_v46 }
0x3938   :  { %v10477_v26 = vpack.i.bf16 %v6790_v32, %v6789_v50  ;;  %v6835_v41 = vpack.c.bf16 %v6790_v32, %v6789_v50  ;;  %v12961_v32 = vld [vmem:[#allocation7 + $0x8] sm:$0xff] }
0x393a   :  { %10478 = vrot.lane.b32.xlu0 %v10477_v26, %s11230_s17  ;;  %10473 = vrot.lane.b32.xlu1 %v10477_v26, %s11232_s20 }
0x393e   :  { %6771 = vrot.lane.b32.xlu1 %v6766_v34, %s11227_s12  ;;  %6864 = vrot.lane.b32.xlu0 %v6835_v41, %s11228_s16 }
0x3942   :  { %10483 = vrot.lane.b32.xlu1 %v10477_v26, %s11233_s0 }
0x39ac   :  { %v10479_v43 = vpop.permute.xlu0 %10478  ;;  %v10474_v24 = vpop.permute.xlu1 %10473 }
0x39ad   :  { %v10476_v42 = vunpack.i.h.bf16 %v10474_v24  ;;  %v10475_v23 = vunpack.i.l.bf16 %v10474_v24  ;;  %v10481_v22 = vunpack.i.h.bf16 %v10479_v43  ;;  %v10480_v27 = vunpack.i.l.bf16 %v10479_v43 }
0x39af   :  { %v6836_v44 = vpack.c.bf16 %v10476_v42, %v10475_v23  ;;  %v6837_v60 = vpack.c.bf16 %v10481_v22, %v10480_v27 }
0x39b0   :  { %v6772_v17 = vpop.permute.xlu1 %6771  ;;  %v6865_v54 = vpop.permute.xlu0 %6864 }
0x39b1   :  { %v6776_v53 = vadd.f32 %v6772_v17, %v6764_v57  ;;  %v6870_v58 = vsel %vm344_vm2, %v6865_v54, 0  ;;  %6914 = vrot.lane.b32.xlu1 %v6836_v44, %s11228_s16 }
0x39b2   :  { %9998 = vmatpush3.bf16.xpose.msra.mxu1 %v6870_v58 }
0x39b3   :  { %v6811_v40 = vpack.c.bf16 %v6776_v53, %v6775_v52  ;;  %v10487_v51 = vpack.i.bf16 %v6776_v53, %v6775_v52  ;;  %10009 = vmatprep.subr.bf16.mxu1 %v11229_v37 }
0x39b4   :  { %v10484_v61 = vpop.permute.xlu1 %10483 }
0x39b5   :  { %v10486_v4 = vunpack.i.h.bf16 %v10484_v61  ;;  %v10485_v3 = vunpack.i.l.bf16 %v10484_v61  ;;  %6964 = vrot.lane.b32.xlu1 %v6837_v60, %s11228_s16  ;;  %10488 = vrot.lane.b32.xlu0 %v10487_v51, %s11232_s20 }
0x39b7   :  { %v6838_v29 = vpack.c.bf16 %v10486_v4, %v10485_v3 }
0x39b9   :  { %10493 = vrot.lane.b32.xlu1 %v10487_v51, %s11230_s17  ;;  %7014 = vrot.lane.b32.xlu0 %v6838_v29, %s11228_s16 }
0x39ba   :  { %10000 = vmatmul.mubr.msk.bf16.vlgmr.msra.gmra.mxu1 %vm344_vm2, %v6811_v40 }
0x39bb   :  { %10011 = vmatprep.mubr.msk.bf16.mxu1 %vm11231_vm1, %v11229_v37 }
0x39bd   :  { %10498 = vrot.lane.b32.xlu0 %v10487_v51, %s11233_s0 }
0x3a23   :  { %v6915_v49 = vpop.permute.xlu1 %6914 }
0x3a24   :  { %v6920_v63 = vsel %vm344_vm2, %v6915_v49, 0 }
0x3a25   :  { %10004 = vmatpush3.bf16.xpose.msra.mxu0 %v6920_v63 }
0x3a26   :  { %10015 = vmatprep.subr.bf16.mxu0 %v11229_v37 }
0x3a27   :  { %v6965_v9 = vpop.permute.xlu1 %6964  ;;  %v10489_v25 = vpop.permute.xlu0 %10488 }
0x3a28   :  { %v6970_v6 = vsel %vm344_vm2, %v6965_v9, 0  ;;  %v10491_v11 = vunpack.i.h.bf16 %v10489_v25  ;;  %v10490_v8 = vunpack.i.l.bf16 %v10489_v25 }
0x3a29   :  { %10010 = vmatpush3.bf16.xpose.msra.mxu1 %v6970_v6 }
0x3a2a   :  { %v6812_v1 = vpack.c.bf16 %v10491_v11, %v10490_v8  ;;  %10021 = vmatprep.subr.bf16.mxu1 %v11229_v37 }
0x3a2b   :  { %v10494_v38 = vpop.permute.xlu1 %10493  ;;  %v7015_v13 = vpop.permute.xlu0 %7014 }
0x3a2c   :  { %v10496_v7 = vunpack.i.h.bf16 %v10494_v38  ;;  %v10495_v5 = vunpack.i.l.bf16 %v10494_v38  ;;  %v7020_v19 = vsel %vm344_vm2, %v7015_v13, 0  ;;  %10006 = vmatmul.mubr.msk.bf16.vlgmr.msra.gmra.mxu0 %vm344_vm2, %v6812_v1 }
0x3a2d   :  { %10016 = vmatpush3.bf16.xpose.msra.mxu0 %v7020_v19  ;;  %10017 = vmatprep.mubr.msk.bf16.mxu0 %vm11231_vm1, %v11229_v37 }
0x3a2e   :  { %v6813_v12 = vpack.c.bf16 %v10496_v7, %v10495_v5  ;;  %10027 = vmatprep.subr.bf16.mxu0 %v11229_v37 }
0x3a2f   :  { %v10499_v20 = vpop.permute.xlu0 %10498 }
0x3a30   :  { %v10501_v0 = vunpack.i.h.bf16 %v10499_v20  ;;  %v10500_v28 = vunpack.i.l.bf16 %v10499_v20  ;;  %10012 = vmatmul.mubr.msk.bf16.vlgmr.msra.gmra.mxu1 %vm344_vm2, %v6813_v12 }
0x3a31   :  { %10023 = vmatprep.mubr.msk.bf16.mxu1 %vm11231_vm1, %v11229_v37 }
0x3a32   :  { %v6814_v30 = vpack.c.bf16 %v10501_v0, %v10500_v28 }
0x3a34   :  { %10018 = vmatmul.mubr.msk.bf16.vlgmr.msra.gmra.mxu0 %vm344_vm2, %v6814_v30 }
0x3a35   :  { %10029 = vmatprep.mubr.msk.bf16.mxu0 %vm11231_vm1, %v11229_v37 }
0x3a7a   :  { %v6906_v59 = vpop.f32.mrf.mxu1 }
0x3a7b   :  { %v6907_v33 = vadd.f32 %v12957_v18, %v6906_v59 }
0x3a7c   :  { %v10001_v39 = vpop.f32.mrf.mxu1 }
0x3a7d   :  { %v7063_v14 = vsel %vm542_vm3, %v6907_v33, -inf }
0x3a7e   :  { %7064 = vmax.xlane.f32.xlu1 %v7063_v14  ;;  %v6909_v50 = vpop.f32.mrf.mxu1 }
0x3a7f   :  { %v6910_v26 = vadd.f32 %v12961_v32, %v6909_v50 }
0x3a80   :  { %v10002_v41 = vpop.f32.mrf.mxu1 }
0x3a81   :  { %v7066_v34 = vsel %vm542_vm3, %v6910_v26, -inf }
0x3a82   :  { %7067 = vmax.xlane.f32.xlu0 %v7066_v34 }
0x3aec   :  { %v6956_v47 = vpop.f32.mrf.mxu0 }
0x3aed   :  { %v6957_v43 = vadd.f32 %v12957_v18, %v6956_v47 }
0x3aee   :  { %v10007_v24 = vpop.f32.mrf.mxu0 }
0x3aef   :  { %v7069_v42 = vsel %vm542_vm3, %v6957_v43, -inf }
0x3af0   :  { %v7006_v23 = vpop.f32.mrf.mxu1  ;;  %7070 = vmax.xlane.f32.xlu0 %v7069_v42  ;;  %v6959_v22 = vpop.f32.mrf.mxu0 }
0x3af1   :  { %v7007_v27 = vadd.f32 %v12957_v18, %v7006_v23  ;;  %v6960_v46 = vadd.f32 %v12961_v32, %v6959_v22 }
0x3af2   :  { %v10008_v44 = vpop.f32.mrf.mxu0  ;;  %v10013_v57 = vpop.f32.mrf.mxu1 }
0x3af3   :  { %v7075_v17 = vsel %vm542_vm3, %v7007_v27, -inf  ;;  %v7072_v54 = vsel %vm542_vm3, %v6960_v46, -inf }
0x3af4   :  { %v7009_v52 = vpop.f32.mrf.mxu1  ;;  %7076 = vmax.xlane.f32.xlu0 %v7075_v17  ;;  %7073 = vmax.xlane.f32.xlu1 %v7072_v54  ;;  %v7056_v53 = vpop.f32.mrf.mxu0 }
0x3af5   :  { %v7010_v58 = vadd.f32 %v12961_v32, %v7009_v52  ;;  %v7057_v60 = vadd.f32 %v12957_v18, %v7056_v53 }
0x3af6   :  { %v10014_v40 = vpop.f32.mrf.mxu1  ;;  %v10019_v51 = vpop.f32.mrf.mxu0 }
0x3af7   :  { %v7078_v61 = vsel %vm542_vm3, %v7010_v58, -inf  ;;  %v7081_v4 = vsel %vm542_vm3, %v7057_v60, -inf }
0x3af8   :  { %7079 = vmax.xlane.f32.xlu1 %v7078_v61  ;;  %7082 = vmax.xlane.f32.xlu0 %v7081_v4  ;;  %v7059_v3 = vpop.f32.mrf.mxu0 }
0x3af9   :  { %v7060_v29 = vadd.f32 %v12961_v32, %v7059_v3 }
0x3afa   :  { %v10020_v49 = vpop.f32.mrf.mxu0 }
0x3afb   :  { %v7084_v63 = vsel %vm542_vm3, %v7060_v29, -inf }
0x3afc   :  { %7085 = vmax.xlane.f32.xlu1 %v7084_v63 }
0x3b07   :  { %v7065_v9 = vpop.xlane.xlu1 %7064 }
0x3b08   :  { %v7087_v25 = vsub.f32 %v6907_v33, %v7065_v9 }
0x3b0a   :  { %v7095_v6 = vmul.f32 1.442695, %v7087_v25 }
0x3b0b   :  { %v7068_v11 = vpop.xlane.xlu0 %7067 }
0x3b0c   :  { %10950 = vpow2.f32 %v7095_v6  ;;  %v7088_v8 = vsub.f32 %v6910_v26, %v7068_v11 }
0x3b0d   :  { %10508 = vrot.lane.b32.xlu1 %v12902_v16, %s11230_s17 }
0x3b0e   :  { %10503 = vrot.lane.b32.xlu0 %v12902_v16, %s11232_s20  ;;  %v7097_v1 = vmul.f32 1.442695, %v7088_v8 }
0x3b10   :  { %10952 = vpow2.f32 %v7097_v1 }
0x3b11   :  { %10513 = vrot.lane.b32.xlu1 %v12902_v16, %s11233_s0 }
0x3b15   :  { %7156 = vrot.lane.b32.xlu1 %v6859_v2, %s11224_s25 }
0x3b19   :  { %v12987_v38 = vpop.eup %10950 }
0x3b1a   :  { %v7111_v13 = vsel %vm542_vm3, %v12987_v38, 0.0 }
0x3b1d   :  { %v12991_v7 = vpop.eup %10952 }
0x3b1e   :  { %v7114_v16 = vsel %vm542_vm3, %v12991_v7, 0.0 }
0x3b2d   :  { %7112 = vadd.xlane.f32.xlu0 %v7111_v13 }
0x3b39   :  { %7115 = vadd.xlane.f32.xlu1 %v7114_v16 }
0x3b79   :  { %v7071_v15 = vpop.xlane.xlu0 %7070 }
0x3b7a   :  { %v7089_v56 = vsub.f32 %v6957_v43, %v7071_v15 }
0x3b7c   :  { %v7099_v2 = vmul.f32 1.442695, %v7089_v56 }
0x3b7d   :  { %v7077_v5 = vpop.xlane.xlu0 %7076  ;;  %v7074_v19 = vpop.xlane.xlu1 %7073 }
0x3b7e   :  { %10954 = vpow2.f32 %v7099_v2  ;;  %v7091_v12 = vsub.f32 %v7007_v27, %v7077_v5  ;;  %v7090_v20 = vsub.f32 %v6960_v46, %v7074_v19 }
0x3b80   :  { %v7103_v0 = vmul.f32 1.442695, %v7091_v12  ;;  %v7101_v28 = vmul.f32 1.442695, %v7090_v20 }
0x3b81   :  { %v7080_v30 = vpop.xlane.xlu1 %7079  ;;  %v7083_v59 = vpop.xlane.xlu0 %7082 }
0x3b82   :  { %10956 = vpow2.f32 %v7103_v0  ;;  %v7092_v33 = vsub.f32 %v7010_v58, %v7080_v30  ;;  %v7093_v39 = vsub.f32 %v7057_v60, %v7083_v59 }
0x3b83   :  { %10958 = vpow2.f32 %v7101_v28 }
0x3b84   :  { %v7105_v14 = vmul.f32 1.442695, %v7092_v33  ;;  %v7107_v50 = vmul.f32 1.442695, %v7093_v39 }
0x3b85   :  { %v7086_v26 = vpop.xlane.xlu1 %7085  ;;  %v10504_v3 = vpop.permute.xlu0 %10503 }
0x3b86   :  { %10960 = vpow2.f32 %v7105_v14  ;;  %v7094_v41 = vsub.f32 %v7060_v29, %v7086_v26  ;;  %v10506_v49 = vunpack.i.h.bf16 %v10504_v3  ;;  %v10505_v63 = vunpack.i.l.bf16 %v10504_v3  ;;  %v9121_v14 = vld [vmem:[%s13373_s6 + $0x60] sm:$0xf] }
0x3b87   :  { %10962 = vpow2.f32 %v7107_v50 }
0x3b88   :  { %v7109_v34 = vmul.f32 1.442695, %v7094_v41  ;;  %v6860_v9 = vpack.c.bf16 %v10506_v49, %v10505_v63 }
0x3b89   :  { %v10509_v47 = vpop.permute.xlu1 %10508 }
0x3b8a   :  { %10964 = vpow2.f32 %v7109_v34  ;;  %v10511_v60 = vunpack.i.h.bf16 %v10509_v47  ;;  %v10510_v40 = vunpack.i.l.bf16 %v10509_v47 }
0x3b8b   :  { %v12995_v43 = vpop.eup %10954 }
0x3b8c   :  { %v7117_v24 = vsel %vm542_vm3, %v12995_v43, 0.0  ;;  %v6861_v51 = vpack.c.bf16 %v10511_v60, %v10510_v40 }
0x3b8d   :  { %7118 = vadd.xlane.f32.xlu0 %v7117_v24  ;;  %v10514_v42 = vpop.permute.xlu1 %10513 }
0x3b8e   :  { %v10516_v61 = vunpack.i.h.bf16 %v10514_v42  ;;  %v10515_v4 = vunpack.i.l.bf16 %v10514_v42 }
0x3b8f   :  { %v12999_v23 = vpop.eup %10956 }
0x3b90   :  { %v10959_v22 = vpop.eup %10958  ;;  %v7123_v27 = vsel %vm542_vm3, %v12999_v23, 0.0  ;;  %v6862_v29 = vpack.c.bf16 %v10516_v61, %v10515_v4 }
0x3b91   :  { %v7120_v46 = vsel %vm542_vm3, %v10959_v22, 0.0  ;;  %7124 = vadd.xlane.f32.xlu1 %v7123_v27  ;;  %v7157_v44 = vpop.permute.xlu1 %7156  ;;  %v9122_v27 = vld [vmem:[%s13373_s6 + $0x64] sm:$0xf] }
0x3b92   :  { %7121 = vadd.xlane.f32.xlu0 %v7120_v46  ;;  %10022 = vmatpush3.bf16.msra.mxu1 %v7157_v44  ;;  %v7407_v46 = vsel %vm838_vm4, %v9122_v27, 0 }
0x3b93   :  { %v10961_v57 = vpop.eup %10960  ;;  %10033 = vmatprep.subr.bf16.mxu1 %v11229_v37 }
0x3b94   :  { %v13005_v17 = vpop.eup %10962  ;;  %v7126_v54 = vsel %vm542_vm3, %v10961_v57, 0.0 }
0x3b95   :  { %v7129_v52 = vsel %vm542_vm3, %v13005_v17, 0.0 }
0x3b96   :  { %7127 = vadd.xlane.f32.xlu0 %v7126_v54  ;;  %7130 = vadd.xlane.f32.xlu1 %v7129_v52 }
0x3b97   :  { %v13010_v53 = vpop.eup %10964 }
0x3b98   :  { %v7132_v58 = vsel %vm542_vm3, %v13010_v53, 0.0 }
0x3b9a   :  { %7133 = vadd.xlane.f32.xlu0 %v7132_v58 }
0x3ba7   :  { %7252 = vrot.lane.b32.xlu1 %v6861_v51, %s11224_s25  ;;  %v9124_v51 = vld [vmem:[%s13373_s6 + $0x6c] sm:$0xf] }
0x3bab   :  { %7300 = vrot.lane.b32.xlu1 %v6862_v29, %s11224_s25  ;;  %v7501_v29 = vsel %vm838_vm4, %v9124_v51, 0 }
0x3bb0   :  { %7204 = vrot.lane.b32.xlu0 %v6860_v9, %s11224_s25 }
0x3bb6   :  { %v7113_v25 = vpop.xlane.xlu0 %7112 }
0x3bb7   :  { %10966 = vrcp.f32 %v7113_v25 }
0x3bc2   :  { %v7116_v6 = vpop.xlane.xlu1 %7115 }
0x3bc3   :  { %10968 = vrcp.f32 %v7116_v6 }
0x3bc4   :  { %v10967_v11 = vpop.eup %10966 }
0x3bc5   :  { %v7143_v1 = vmul.f32 %v10967_v11, %v12987_v38 }
0x3bd0   :  { %v10969_v8 = vpop.eup %10968 }
0x3bd1   :  { %v7144_v13 = vmul.f32 %v10969_v8, %v12991_v7 }
0x3bd3   :  { %v7151_v16 = vpack.c.bf16 %v7144_v13, %v7143_v1 }
0x3bd5   :  { %10024 = vmatmul.mubr.msk.bf16.vlgmr.msra.gmra.mxu1 %vm542_vm3, %v7151_v16 }
0x3bd6   :  { %10035 = vmatprep.mubr.msk.bf16.mxu1 %vm11231_vm1, %v11229_v37 }
0x3c16   :  { %v7119_v15 = vpop.xlane.xlu0 %7118 }
0x3c17   :  { %10970 = vrcp.f32 %v7119_v15 }
0x3c1a   :  { %v7125_v56 = vpop.xlane.xlu1 %7124 }
0x3c1b   :  { %v7122_v2 = vpop.xlane.xlu0 %7121 }
0x3c1c   :  { %10972 = vrcp.f32 %v7122_v2 }
0x3c1d   :  { %10974 = vrcp.f32 %v7125_v56 }
0x3c1f   :  { %v7128_v5 = vpop.xlane.xlu0 %7127  ;;  %v7131_v19 = vpop.xlane.xlu1 %7130 }
0x3c20   :  { %10976 = vrcp.f32 %v7128_v5 }
0x3c21   :  { %10978 = vrcp.f32 %v7131_v19 }
0x3c23   :  { %v7134_v12 = vpop.xlane.xlu0 %7133  ;;  %v7253_v38 = vpop.permute.xlu1 %7252 }
0x3c24   :  { %10980 = vrcp.f32 %v7134_v12  ;;  %10034 = vmatpush3.bf16.msra.mxu1 %v7253_v38  ;;  %v10971_v7 = vpop.eup %10970 }
0x3c25   :  { %10045 = vmatprep.subr.bf16.mxu1 %v11229_v37  ;;  %v7145_v28 = vmul.f32 %v10971_v7, %v12995_v43  ;;  %v7360_v43 = vsel %vm838_vm4, %v9121_v14, 0 }
0x3c27   :  { %v7205_v20 = vpop.permute.xlu0 %7204  ;;  %v7301_v41 = vpop.permute.xlu1 %7300 }
0x3c28   :  { %10028 = vmatpush3.bf16.msra.mxu0 %v7205_v20 }
0x3c29   :  { %v10973_v0 = vpop.eup %10972  ;;  %10039 = vmatprep.subr.bf16.mxu0 %v11229_v37 }
0x3c2a   :  { %v7146_v30 = vmul.f32 %v10973_v0, %v10959_v22  ;;  %v10975_v59 = vpop.eup %10974 }
0x3c2b   :  { %v7147_v50 = vmul.f32 %v10975_v59, %v12999_v23 }
0x3c2c   :  { %v7152_v33 = vpack.c.bf16 %v7146_v30, %v7145_v28 }
0x3c2d   :  { %v10977_v39 = vpop.eup %10976 }
0x3c2e   :  { %v7148_v26 = vmul.f32 %v10977_v39, %v10961_v57  ;;  %10030 = vmatmul.mubr.msk.bf16.vlgmr.msra.gmra.mxu0 %vm542_vm3, %v7152_v33  ;;  %v10979_v34 = vpop.eup %10978 }
0x3c2f   :  { %10040 = vmatpush3.bf16.msra.mxu0 %v7301_v41  ;;  %10041 = vmatprep.mubr.msk.bf16.mxu0 %vm11231_vm1, %v11229_v37  ;;  %v7149_v42 = vmul.f32 %v10979_v34, %v13005_v17  ;;  %v9123_v17 = vld [vmem:[%s13373_s6 + $0x68] sm:$0xf] }
0x3c30   :  { %v7153_v47 = vpack.c.bf16 %v7148_v26, %v7147_v50  ;;  %10051 = vmatprep.subr.bf16.mxu0 %v11229_v37 }
0x3c31   :  { %v10981_v24 = vpop.eup %10980 }
0x3c32   :  { %v7150_v22 = vmul.f32 %v10981_v24, %v13010_v53  ;;  %10036 = vmatmul.mubr.msk.bf16.vlgmr.msra.gmra.mxu1 %vm542_vm3, %v7153_v47  ;;  %v7454_v53 = vsel %vm838_vm4, %v9123_v17, 0 }
0x3c33   :  { %10046 = vmatpush3.bf16.msra.mxu1 %v7360_v43  ;;  %10047 = vmatprep.mubr.msk.bf16.mxu1 %vm11231_vm1, %v11229_v37 }
0x3c34   :  { %v7154_v23 = vpack.c.bf16 %v7150_v22, %v7149_v42  ;;  %10057 = vmatprep.subr.bf16.mxu1 %v11229_v37 }
0x3c36   :  { %10042 = vmatmul.mubr.msk.bf16.vlgmr.msra.gmra.mxu0 %vm542_vm3, %v7154_v23 }
0x3c37   :  { %10053 = vmatprep.mubr.msk.bf16.mxu0 %vm11231_vm1, %v11229_v37  ;;  %10052 = vmatpush3.bf16.msra.mxu0 %v7407_v46 }
0x3c38   :  { %10063 = vmatprep.subr.bf16.mxu0 %v11229_v37 }
0x3c95   :  { %v7196_v44 = vpop.f32.mrf.mxu1 }
0x3c97   :  { %v10025_v57 = vpop.f32.mrf.mxu1 }
0x3c99   :  { %v7199_v54 = vpop.f32.mrf.mxu1 }
0x3c9a   :  { %v7347_v52 = vpack.c.bf16 %v7199_v54, %v7196_v44 }
0x3c9b   :  { %v10026_v58 = vpop.f32.mrf.mxu1 }
0x3c9c   :  { %10048 = vmatmul.mubr.msk.bf16.vlgmr.msra.gmra.mxu1 %vm344_vm2, %v7347_v52 }
0x3c9d   :  { %10058 = vmatpush3.bf16.msra.mxu1 %v7454_v53  ;;  %10059 = vmatprep.mubr.msk.bf16.mxu1 %vm11231_vm1, %v11229_v37 }
0x3c9e   :  { %10069 = vmatprep.subr.bf16.mxu1 %v11229_v37 }
0x3cee   :  { %v7244_v60 = vpop.f32.mrf.mxu0 }
0x3cf0   :  { %v10031_v40 = vpop.f32.mrf.mxu0 }
0x3cf1   :  { %v10641_v40 = vld [vmem:[#allocation11 + $0x60] sm:$0xff]  }
0x3cf2   :  { %v7247_v61 = vpop.f32.mrf.mxu0  ;;  %v7292_v4 = vpop.f32.mrf.mxu1 }
0x3cf3   :  { %v7348_v3 = vpack.c.bf16 %v7247_v61, %v7244_v60  ;;  %v10640_v60 = vld [vmem:[#allocation11 + $0x68] sm:$0xff]  }
0x3cf4   :  { %v10032_v49 = vpop.f32.mrf.mxu0  ;;  %v10037_v63 = vpop.f32.mrf.mxu1 }
0x3cf5   :  { %10054 = vmatmul.mubr.msk.bf16.vlgmr.msra.gmra.mxu0 %vm344_vm2, %v7348_v3 }
0x3cf6   :  { %v7295_v9 = vpop.f32.mrf.mxu1  ;;  %v7340_v25 = vpop.f32.mrf.mxu0  ;;  %10064 = vmatpush3.bf16.msra.mxu0 %v7501_v29  ;;  %10065 = vmatprep.mubr.msk.bf16.mxu0 %vm11231_vm1, %v11229_v37 }
0x3cf7   :  { %v7349_v6 = vpack.c.bf16 %v7295_v9, %v7292_v4  ;;  %10077 = vmatprep.subr.bf16.mxu0 %v11229_v37 }
0x3cf8   :  { %v10038_v11 = vpop.f32.mrf.mxu1  ;;  %v10043_v8 = vpop.f32.mrf.mxu0 }
0x3cf9   :  { %10060 = vmatmul.mubr.msk.bf16.vlgmr.msra.gmra.mxu1 %vm344_vm2, %v7349_v6 }
0x3cfa   :  { %v7343_v1 = vpop.f32.mrf.mxu0  ;;  %10073 = vmatprep.mubr.msk.bf16.mxu1 %vm11231_vm1, %v11229_v37  ;;  %10070 = vmatpush3.bf16.msra.mxu1 %v10640_v60 }
0x3cfb   :  { %v7350_v13 = vpack.c.bf16 %v7343_v1, %v7340_v25  ;;  %10071 = vmatprep.subr.bf16.mxu1 %v11229_v37  ;;  %v9129_v25 = vld [vmem:[#allocation10 + $0x6] ss:$0 sm:$0xff] }
0x3cfc   :  { %v10044_v16 = vpop.f32.mrf.mxu0 }
0x3cfd   :  { %10066 = vmatmul.mubr.msk.bf16.vlgmr.msra.gmra.mxu0 %vm344_vm2, %v7350_v13  ;;  %v10642_v13 = vld [vmem:[%s13376_s9 + $0xd8] sm:$0xff]   ;;  %v10643_v16 = vld [vmem:[%s13376_s9 + $0xd0] sm:$0xff]  }
0x3cfe   :  { %10085 = vmatprep.mubr.msk.bf16.mxu0 %vm11231_vm1, %v11229_v37  ;;  %10072 = vmatpush3.bf16.msra.mxu1 %v10641_v40 }
0x3cff   :  { %10078 = vmatpush3.bf16.msra.mxu0 %v10642_v13 }
0x3d00   :  { %10079 = vmatprep.subr.bf16.mxu0 %v11229_v37 }
0x3d03   :  { %10080 = vmatpush3.bf16.msra.mxu0 %v10643_v16 }
0x3d04   :  { %10081 = vmatprep.subr.bf16.mxu0 %v11229_v37 }
0x3d5c   :  { %v7396_v15 = vpop.f32.mrf.mxu1 }
0x3d5d   :  { %v7544_v0 = vsel %vm129_vm0, %v7396_v15, 0.0  ;;  %v10644_v15 = vld [vmem:[%s13376_s9 + $0xc8] sm:$0xff]  }
0x3d5e   :  { %v10049_v56 = vpop.f32.mrf.mxu1  ;;  %10082 = vmatpush3.bf16.msra.mxu0 %v10644_v15 }
0x3d5f   :  { %10083 = vmatprep.subr.bf16.mxu0 %v11229_v37 }
0x3d60   :  { %v7399_v2 = vpop.f32.mrf.mxu1 }
0x3d61   :  { %v7551_v41 = vsel %vm129_vm0, %v7399_v2, 0.0 }
0x3d62   :  { %v10050_v5 = vpop.f32.mrf.mxu1 }
0x3db5   :  { %v7443_v19 = vpop.f32.mrf.mxu0 }
0x3db6   :  { %v7545_v38 = vsel %vm129_vm0, %v7443_v19, 0.0 }
0x3db7   :  { %v10055_v12 = vpop.f32.mrf.mxu0  ;;  %v7546_v30 = vadd.f32 %v7545_v38, %v7544_v0 }
0x3db9   :  { %v7446_v7 = vpop.f32.mrf.mxu0  ;;  %v7490_v20 = vpop.f32.mrf.mxu1 }
0x3dba   :  { %v7547_v28 = vsel %vm129_vm0, %v7490_v20, 0.0  ;;  %v7552_v39 = vsel %vm129_vm0, %v7446_v7, 0.0 }
0x3dbb   :  { %v10056_v59 = vpop.f32.mrf.mxu0  ;;  %v10061_v33 = vpop.f32.mrf.mxu1  ;;  %v7548_v14 = vadd.f32 %v7547_v28, %v7546_v30  ;;  %v7553_v43 = vadd.f32 %v7552_v39, %v7551_v41 }
0x3dbd   :  { %v7493_v50 = vpop.f32.mrf.mxu1  ;;  %v7537_v26 = vpop.f32.mrf.mxu0 }
0x3dbe   :  { %v7554_v34 = vsel %vm129_vm0, %v7493_v50, 0.0  ;;  %v7549_v47 = vsel %vm129_vm0, %v7537_v26, 0.0 }
0x3dbf   :  { %v7550_v24 = vadd.f32 %v7549_v47, %v7548_v14  ;;  %v10062_v42 = vpop.f32.mrf.mxu1  ;;  %v10067_v22 = vpop.f32.mrf.mxu0  ;;  %v7555_v23 = vadd.f32 %v7554_v34, %v7553_v43 }
0x3dc1   :  { %v13078_v27 = vadd.f32 %v7550_v24, %v12860_v55  ;;  %v7540_v46 = vpop.f32.mrf.mxu0 }
0x3dc2   :  { %v7556_v44 = vsel %vm129_vm0, %v7540_v46, 0.0 }
0x3dc3   :  { %v7557_v57 = vadd.f32 %v7556_v44, %v7555_v23  ;;  %v10068_v17 = vpop.f32.mrf.mxu0  ;;  %v7560_v54 = vmul.f32 %v13078_v27, %v13078_v27 }
0x3dc5   :  { %v13084_v52 = vadd.f32 %v7557_v57, %v12865_v62  ;;  %v7562_v53 = vsel %vm129_vm0, %v7560_v54, 0.0 }
0x3dc6   :  { %7563 = vadd.xlane.f32.xlu0 %v7562_v53 }
0x3dc7   :  { %v7561_v58 = vmul.f32 %v13084_v52, %v13084_v52 }
0x3dc9   :  { %v7565_v55 = vsel %vm129_vm0, %v7561_v58, 0.0  ;;  %v10646_v58 = vld [vmem:[%s13372_s5 + $0xf0] ss:$8 sps:$4 sm:$0xff]  }
0x3dca   :  { %7566 = vadd.xlane.f32.xlu1 %v7565_v55  ;;  %v10649_v55 = vld [vmem:[%s13372_s5 + $0xe0] ss:$8 sps:$4 sm:$0xff]  }
0x3e4f   :  { %v7564_v51 = vpop.xlane.xlu0 %7563 }
0x3e50   :  { %v7568_v61 = vmul.f32 0.03125, %v7564_v51 }
0x3e52   :  { %v7570_v4 = vadd.f32 1e-06, %v7568_v61 }
0x3e53   :  { %v7567_v62 = vpop.xlane.xlu1 %7566 }
0x3e54   :  { %10982 = vrsqrt.f32 %v7570_v4  ;;  %v7569_v3 = vmul.f32 0.03125, %v7567_v62 }
0x3e56   :  { %v7571_v29 = vadd.f32 1e-06, %v7569_v3 }
0x3e58   :  { %10984 = vrsqrt.f32 %v7571_v29 }
0x3e61   :  { %v10983_v49 = vpop.eup %10982 }
0x3e62   :  { %v7574_v63 = vmul.f32 %v10983_v49, %v13078_v27 }
0x3e64   :  { %v7584_v11 = vmul.f32 %v9129_v25, %v7574_v63  ;;  %v9146_v63 = vld [vmem:[#allocation8 + $0x7] ss:$0 sm:$0xff] }
0x3e65   :  { %v10985_v9 = vpop.eup %10984 }
0x3e66   :  { %v7575_v6 = vmul.f32 %v10985_v9, %v13084_v52 }
0x3e68   :  { %v7585_v8 = vmul.f32 %v9129_v25, %v7575_v6 }
0x3e6a   :  { %v7586_v1 = vpack.c.bf16 %v7585_v8, %v7584_v11 }
0x3e6c   :  { %10074 = vmatmul.mubr.msk.bf16.vlgmr.msra.gmra.mxu1 %vm129_vm0, %v7586_v1 }
0x3e6d   :  { %7839 = vmatprep.mubr.bf16.mxu1 %v11226_v10  ;;  %v10645_v10 = vld [vmem:[%s13376_s9 + $0xc0] sm:$0xff]  }
0x3e6e   :  { %10084 = vmatpush3.bf16.msra.mxu0 %v10645_v10 }
0x3e6f   :  { %10095 = vmatprep.subr.bf16.mxu0 %v11229_v37 }
0x3f2c   :  { %v7641_v56 = vpop.f32.mrf.mxu1 }
0x3f2d   :  { %7664 = vrot.lane.b32.xlu0 %v7641_v56, %s11224_s25  ;;  %v7648_v12 = vsub.f32 0.0, %v7641_v56 }
0x3f2e   :  { %v10075_v2 = vpop.f32.mrf.mxu1 }
0x3f2f   :  { %v7650_v7 = vmul.f32 1.442695, %v7648_v12 }
0x3f30   :  { %v7644_v5 = vpop.f32.mrf.mxu1 }
0x3f31   :  { %7666 = vrot.lane.b32.xlu1 %v7644_v5, %s11224_s25  ;;  %v7649_v38 = vsub.f32 0.0, %v7644_v5  ;;  %10986 = vpow2.f32 %v7650_v7 }
0x3f32   :  { %v10076_v19 = vpop.f32.mrf.mxu1 }
0x3f33   :  { %v7652_v20 = vmul.f32 1.442695, %v7649_v38 }
0x3f35   :  { %10988 = vpow2.f32 %v7652_v20 }
0x3f3e   :  { %v10987_v0 = vpop.eup %10986 }
0x3f3f   :  { %v7654_v30 = vadd.f32 1.0, %v10987_v0 }
0x3f41   :  { %10990 = vrcp.f32 %v7654_v30 }
0x3f42   :  { %v10989_v28 = vpop.eup %10988 }
0x3f43   :  { %v7655_v59 = vadd.f32 1.0, %v10989_v28 }
0x3f45   :  { %10992 = vrcp.f32 %v7655_v59 }
0x3f4e   :  { %v10991_v33 = vpop.eup %10990 }
0x3f4f   :  { %v7660_v50 = vmul.f32 %v10991_v33, %v7641_v56 }
0x3f52   :  { %v10993_v39 = vpop.eup %10992 }
0x3f53   :  { %v7661_v26 = vmul.f32 %v10993_v39, %v7644_v5 }
0x3f9f   :  { %v7665_v14 = vpop.permute.xlu0 %7664 }
0x3fa0   :  { %v7670_v34 = vmul.f32 %v7665_v14, %v7660_v50  ;;  %v11062_v14 = vld [vmem:[#allocation5] sm:$0xff] }
0x3fa3   :  { %v7667_v41 = vpop.permute.xlu1 %7666 }
0x3fa4   :  { %v7671_v47 = vmul.f32 %v7667_v41, %v7661_v26  ;;  %v11063_v41 = vld [vmem:[#allocation5 + $0x8] sm:$0xff] }
0x3fa6   :  { %v7672_v43 = vpack.c.bf16 %v7671_v47, %v7670_v34 }
0x3fa8   :  { %10086 = vmatmul.mubr.msk.bf16.vlgmr.msra.gmra.mxu0 %vm1183_vm5, %v7672_v43 }
0x3fa9   :  { %10097 = vmatprep.mubr.msk.bf16.mxu0 %vm11231_vm1, %v11229_v37 }
0x4068   :  { %v7743_v24 = vpop.f32.mrf.mxu0 }
0x4069   :  { %v13117_v42 = vadd.f32 %v7743_v24, %v13078_v27  ;;  %v10648_v27 = vld [vmem:[%s13372_s5 + $0xf4] ss:$8 sps:$4 sm:$0xff]  }
0x406a   :  { %v10087_v22 = vpop.f32.mrf.mxu0  ;;  %7819 = vmatprep.subr.bf16.mxu1 %v10648_v27 }
0x406b   :  { %v7752_v23 = vmul.f32 %v13117_v42, %v13117_v42  ;;  %7820 = vmatpush1.bf16.msra.mxu1 %v10646_v58 }
0x406c   :  { %v7746_v46 = vpop.f32.mrf.mxu0 }
0x406d   :  { %v13122_v44 = vadd.f32 %v7746_v46, %v13084_v52  ;;  %v7754_v57 = vsel %vm129_vm0, %v7752_v23, 0.0  ;;  %v10651_v52 = vld [vmem:[%s13372_s5 + $0xe4] ss:$8 sps:$4 sm:$0xff]  }
0x406e   :  { %7755 = vadd.xlane.f32.xlu0 %v7754_v57  ;;  %v10088_v17 = vpop.f32.mrf.mxu0  ;;  %7821 = vmatprep.subr.bf16.mxu1 %v10651_v52 }
0x406f   :  { %v7753_v54 = vmul.f32 %v13122_v44, %v13122_v44  ;;  %7822 = vmatpush1.bf16.msra.mxu1 %v10649_v55 }
0x4070   :  { %10089 = vmatprep.subr.bf16.mxu1 %v11229_v37 }
0x4071   :  { %v7757_v53 = vsel %vm129_vm0, %v7753_v54, 0.0 }
0x4072   :  { %7758 = vadd.xlane.f32.xlu1 %v7757_v53 }
0x40f7   :  { %v7756_v60 = vpop.xlane.xlu0 %7755 }
0x40f8   :  { %v7760_v40 = vmul.f32 0.03125, %v7756_v60 }
0x40fa   :  { %v7762_v51 = vadd.f32 1e-06, %v7760_v40 }
0x40fb   :  { %v7759_v61 = vpop.xlane.xlu1 %7758 }
0x40fc   :  { %10994 = vrsqrt.f32 %v7762_v51  ;;  %v7761_v4 = vmul.f32 0.03125, %v7759_v61 }
0x40fe   :  { %v7763_v62 = vadd.f32 1e-06, %v7761_v4 }
0x4100   :  { %10996 = vrsqrt.f32 %v7763_v62 }
0x4109   :  { %v10995_v3 = vpop.eup %10994 }
0x410a   :  { %v7766_v29 = vmul.f32 %v10995_v3, %v13117_v42 }
0x410c   :  { %v7776_v25 = vmul.f32 %v9146_v63, %v7766_v29 }
0x410d   :  { %v10997_v49 = vpop.eup %10996 }
0x410e   :  { %v7767_v9 = vmul.f32 %v10997_v49, %v13122_v44 }
0x4110   :  { %v7777_v6 = vmul.f32 %v9146_v63, %v7767_v9 }
0x4112   :  { %v7778_v11 = vpack.c.bf16 %v7777_v6, %v7776_v25 }
0x4114   :  { %9155 = vmatmul.mubr.msk.bf16.vlgmr.msra.gmra.mxu1 %vm129_vm0, %v7778_v11 }
0x4115   :  { %10091 = vmatprep.mubr.msk.bf16.mxu1 %vm11231_vm1, %v11229_v37 }
0x41d4   :  { %v13146_v8 = vpop.f32.mrf.mxu1 }
0x41d5   :  { %v7852_v5 = vmul.f32 %v13146_v8, %v11381_v45  ;;  %v7864_v19 = vmul.f32 %v13146_v8, %v11371_v35  ;;  %v7850_v50 = vmul.f32 %v11062_v14, %v13146_v8 }
0x41d6   :  { %v7843_v1 = vpop.f32.mrf.mxu1 }
0x41d7   :  { %v7866_v13 = vmul.f32 %v12894_v31, %v7843_v1 }
0x41d8   :  { %v13149_v16 = vpop.f32.mrf.mxu1 }
0x41d9   :  { %7870 = vrot.lane.b32.xlu0 %v7866_v13, %s11227_s12  ;;  %v13154_v15 = vpack.i.bf16 %v13149_v16, %v13146_v8  ;;  %v7946_v56 = vpack.c.bf16 %v13149_v16, %v13146_v8  ;;  %v7865_v12 = vmul.f32 %v13149_v16, %v11373_v36  ;;  %v7853_v45 = vmul.f32 %v13149_v16, %v11392_v48 }
0x41da   :  { %v7847_v10 = vpop.f32.mrf.mxu1  ;;  %v7851_v48 = vmul.f32 %v11063_v41, %v13149_v16 }
0x41db   :  { %v7867_v2 = vmul.f32 %v12909_v21, %v7847_v10 }
0x41dd   :  { %7872 = vrot.lane.b32.xlu1 %v7867_v2, %s11227_s12 }
0x41e1   :  { %7856 = vrot.lane.b32.xlu1 %v7852_v5, %s11227_s12 }
0x424b   :  { %v7871_v31 = vpop.permute.xlu0 %7870 }
0x424c   :  { %v7876_v7 = vadd.f32 %v7871_v31, %v7864_v19 }
0x424f   :  { %v7873_v38 = vpop.permute.xlu1 %7872 }
0x4250   :  { %v7877_v20 = vadd.f32 %v7873_v38, %v7865_v12 }
0x4252   :  { %v10522_v0 = vpack.i.bf16 %v7877_v20, %v7876_v7  ;;  %v7922_v28 = vpack.c.bf16 %v7877_v20, %v7876_v7 }
0x4253   :  { %v7857_v35 = vpop.permute.xlu1 %7856 }
0x4254   :  { %10523 = vrot.lane.b32.xlu1 %v10522_v0, %s11230_s17  ;;  %10518 = vrot.lane.b32.xlu0 %v10522_v0, %s11232_s20  ;;  %v7862_v43 = vadd.f32 %v7857_v35, %v7850_v50 }
0x4258   :  { %7858 = vrot.lane.b32.xlu0 %v7853_v45, %s11227_s12  ;;  %7951 = vrot.lane.b32.xlu1 %v7922_v28, %s11228_s16 }
0x425c   :  { %10528 = vrot.lane.b32.xlu0 %v10522_v0, %s11233_s0 }
0x42c6   :  { %v10519_v36 = vpop.permute.xlu0 %10518  ;;  %v10524_v21 = vpop.permute.xlu1 %10523 }
0x42c7   :  { %v10521_v30 = vunpack.i.h.bf16 %v10519_v36  ;;  %v10520_v59 = vunpack.i.l.bf16 %v10519_v36  ;;  %v10526_v33 = vunpack.i.h.bf16 %v10524_v21  ;;  %v10525_v39 = vunpack.i.l.bf16 %v10524_v21 }
0x42c9   :  { %v7923_v26 = vpack.c.bf16 %v10521_v30, %v10520_v59  ;;  %v7924_v23 = vpack.c.bf16 %v10526_v33, %v10525_v39 }
0x42ca   :  { %v7859_v34 = vpop.permute.xlu0 %7858  ;;  %v7952_v47 = vpop.permute.xlu1 %7951 }
0x42cb   :  { %v7863_v24 = vadd.f32 %v7859_v34, %v7851_v48  ;;  %v7957_v22 = vsel %vm344_vm2, %v7952_v47, 0  ;;  %8001 = vrot.lane.b32.xlu0 %v7923_v26, %s11228_s16 }
0x42cc   :  { %10090 = vmatpush3.bf16.xpose.msra.mxu1 %v7957_v22 }
0x42cd   :  { %v7898_v46 = vpack.c.bf16 %v7863_v24, %v7862_v43  ;;  %v10532_v57 = vpack.i.bf16 %v7863_v24, %v7862_v43  ;;  %10101 = vmatprep.subr.bf16.mxu1 %v11229_v37 }
0x42ce   :  { %v10529_v17 = vpop.permute.xlu0 %10528 }
0x42cf   :  { %v10531_v54 = vunpack.i.h.bf16 %v10529_v17  ;;  %v10530_v53 = vunpack.i.l.bf16 %v10529_v17  ;;  %10533 = vrot.lane.b32.xlu1 %v10532_v57, %s11232_s20  ;;  %8051 = vrot.lane.b32.xlu0 %v7924_v23, %s11228_s16 }
0x42d1   :  { %v7925_v27 = vpack.c.bf16 %v10531_v54, %v10530_v53 }
0x42d3   :  { %8101 = vrot.lane.b32.xlu1 %v7925_v27, %s11228_s16  ;;  %10092 = vmatmul.mubr.msk.bf16.vlgmr.msra.gmra.mxu1 %vm344_vm2, %v7898_v46 }
0x42d4   :  { %10538 = vrot.lane.b32.xlu0 %v10532_v57, %s11230_s17  ;;  %10103 = vmatprep.mubr.msk.bf16.mxu1 %vm11231_vm1, %v11229_v37 }
0x42d7   :  { %10543 = vrot.lane.b32.xlu1 %v10532_v57, %s11233_s0 }
0x433d   :  { %v8002_v58 = vpop.permute.xlu0 %8001 }
0x433e   :  { %v8007_v52 = vsel %vm344_vm2, %v8002_v58, 0 }
0x433f   :  { %10096 = vmatpush3.bf16.xpose.msra.mxu0 %v8007_v52 }
0x4340   :  { %10107 = vmatprep.subr.bf16.mxu0 %v11229_v37 }
0x4341   :  { %v10534_v55 = vpop.permute.xlu1 %10533  ;;  %v8052_v60 = vpop.permute.xlu0 %8051 }
0x4342   :  { %v10536_v40 = vunpack.i.h.bf16 %v10534_v55  ;;  %v10535_v51 = vunpack.i.l.bf16 %v10534_v55  ;;  %v8057_v61 = vsel %vm344_vm2, %v8052_v60, 0 }
0x4343   :  { %10102 = vmatpush3.bf16.xpose.msra.mxu1 %v8057_v61 }
0x4344   :  { %v7899_v4 = vpack.c.bf16 %v10536_v40, %v10535_v51  ;;  %10113 = vmatprep.subr.bf16.mxu1 %v11229_v37 }
0x4345   :  { %v8102_v62 = vpop.permute.xlu1 %8101 }
0x4346   :  { %v8107_v3 = vsel %vm344_vm2, %v8102_v62, 0  ;;  %v10539_v29 = vpop.permute.xlu0 %10538  ;;  %10098 = vmatmul.mubr.msk.bf16.vlgmr.msra.gmra.mxu0 %vm344_vm2, %v7899_v4 }
0x4347   :  { %v10541_v49 = vunpack.i.h.bf16 %v10539_v29  ;;  %v10540_v63 = vunpack.i.l.bf16 %v10539_v29  ;;  %10108 = vmatpush3.bf16.xpose.msra.mxu0 %v8107_v3  ;;  %10109 = vmatprep.mubr.msk.bf16.mxu0 %vm11231_vm1, %v11229_v37 }
0x4348   :  { %10119 = vmatprep.subr.bf16.mxu0 %v11229_v37 }
0x4349   :  { %v7900_v9 = vpack.c.bf16 %v10541_v49, %v10540_v63  ;;  %v10544_v25 = vpop.permute.xlu1 %10543 }
0x434a   :  { %v10546_v6 = vunpack.i.h.bf16 %v10544_v25  ;;  %v10545_v11 = vunpack.i.l.bf16 %v10544_v25 }
0x434b   :  { %10104 = vmatmul.mubr.msk.bf16.vlgmr.msra.gmra.mxu1 %vm344_vm2, %v7900_v9 }
0x434c   :  { %v7901_v1 = vpack.c.bf16 %v10546_v6, %v10545_v11  ;;  %10115 = vmatprep.mubr.msk.bf16.mxu1 %vm11231_vm1, %v11229_v37 }
0x434e   :  { %10110 = vmatmul.mubr.msk.bf16.vlgmr.msra.gmra.mxu0 %vm344_vm2, %v7901_v1 }
0x434f   :  { %10121 = vmatprep.mubr.msk.bf16.mxu0 %vm11231_vm1, %v11229_v37 }
0x4393   :  { %v7993_v13 = vpop.f32.mrf.mxu1 }
0x4394   :  { %v13203_v10 = vadd.f32 %v12957_v18, %v7993_v13 }
0x4395   :  { %v10093_v2 = vpop.f32.mrf.mxu1 }
0x4396   :  { %v8150_v5 = vsel %vm542_vm3, %v13203_v10, -inf }
0x4397   :  { %v7996_v31 = vpop.f32.mrf.mxu1  ;;  %8151 = vmax.xlane.f32.xlu0 %v8150_v5 }
0x4398   :  { %v7997_v19 = vadd.f32 %v12961_v32, %v7996_v31 }
0x4399   :  { %v10094_v12 = vpop.f32.mrf.mxu1 }
0x439a   :  { %v8153_v38 = vsel %vm542_vm3, %v7997_v19, -inf }
0x439b   :  { %8154 = vmax.xlane.f32.xlu1 %v8153_v38 }
0x4406   :  { %v8043_v7 = vpop.f32.mrf.mxu0 }
0x4407   :  { %v8044_v20 = vadd.f32 %v12957_v18, %v8043_v7 }
0x4408   :  { %v10099_v0 = vpop.f32.mrf.mxu0 }
0x4409   :  { %v8156_v28 = vsel %vm542_vm3, %v8044_v20, -inf }
0x440a   :  { %8157 = vmax.xlane.f32.xlu0 %v8156_v28  ;;  %v8046_v45 = vpop.f32.mrf.mxu0 }
0x440b   :  { %v8093_v35 = vpop.f32.mrf.mxu1  ;;  %v13212_v36 = vadd.f32 %v12961_v32, %v8046_v45 }
0x440c   :  { %v8094_v21 = vadd.f32 %v12957_v18, %v8093_v35  ;;  %v10100_v30 = vpop.f32.mrf.mxu0 }
0x440d   :  { %v10105_v59 = vpop.f32.mrf.mxu1  ;;  %v8159_v33 = vsel %vm542_vm3, %v13212_v36, -inf }
0x440e   :  { %v8162_v39 = vsel %vm542_vm3, %v8094_v21, -inf  ;;  %8160 = vmax.xlane.f32.xlu0 %v8159_v33  ;;  %v8143_v14 = vpop.f32.mrf.mxu0 }
0x440f   :  { %8163 = vmax.xlane.f32.xlu1 %v8162_v39  ;;  %v8096_v50 = vpop.f32.mrf.mxu1  ;;  %v8144_v26 = vadd.f32 %v12957_v18, %v8143_v14 }
0x4410   :  { %v13220_v41 = vadd.f32 %v12961_v32, %v8096_v50  ;;  %v10111_v48 = vpop.f32.mrf.mxu0 }
0x4411   :  { %v10106_v34 = vpop.f32.mrf.mxu1  ;;  %v8168_v47 = vsel %vm542_vm3, %v8144_v26, -inf }
0x4412   :  { %v8165_v43 = vsel %vm542_vm3, %v13220_v41, -inf  ;;  %v8146_v24 = vpop.f32.mrf.mxu0 }
0x4413   :  { %8166 = vmax.xlane.f32.xlu0 %v8165_v43  ;;  %8169 = vmax.xlane.f32.xlu1 %v8168_v47  ;;  %v8147_v22 = vadd.f32 %v12961_v32, %v8146_v24 }
0x4414   :  { %v10112_v23 = vpop.f32.mrf.mxu0 }
0x4415   :  { %v8171_v46 = vsel %vm542_vm3, %v8147_v22, -inf }
0x4417   :  { %8172 = vmax.xlane.f32.xlu0 %v8171_v46 }
0x4420   :  { %v8152_v53 = vpop.xlane.xlu0 %8151 }
0x4421   :  { %v8174_v13 = vsub.f32 %v13203_v10, %v8152_v53 }
0x4423   :  { %v8182_v5 = vmul.f32 1.442695, %v8174_v13  ;;  %v9166_v13 = vld [vmem:[%s13373_s6 + $0x78] sm:$0xf] }
0x4424   :  { %10548 = vrot.lane.b32.xlu1 %v13154_v15, %s11232_s20  ;;  %v8155_v18 = vpop.xlane.xlu1 %8154 }
0x4425   :  { %v8175_v32 = vsub.f32 %v7997_v19, %v8155_v18 }
0x4427   :  { %v8184_v57 = vmul.f32 1.442695, %v8175_v32 }
0x4428   :  { %10558 = vrot.lane.b32.xlu1 %v13154_v15, %s11233_s0 }
0x4429   :  { %10998 = vpow2.f32 %v8184_v57 }
0x442d   :  { %10553 = vrot.lane.b32.xlu0 %v13154_v15, %s11230_s17 }
0x4431   :  { %8243 = vrot.lane.b32.xlu0 %v7946_v56, %s11224_s25 }
0x4436   :  { %v13237_v17 = vpop.eup %10998 }
0x4437   :  { %v8201_v54 = vsel %vm542_vm3, %v13237_v17, 0.0 }
0x4450   :  { %8202 = vadd.xlane.f32.xlu0 %v8201_v54 }
0x4493   :  { %v8158_v27 = vpop.xlane.xlu0 %8157 }
0x4494   :  { %v8176_v58 = vsub.f32 %v8044_v20, %v8158_v27 }
0x4496   :  { %v8186_v52 = vmul.f32 1.442695, %v8176_v58 }
0x4497   :  { %v8161_v15 = vpop.xlane.xlu0 %8160 }
0x4498   :  { %11000 = vpow2.f32 %v8186_v52  ;;  %v8164_v55 = vpop.xlane.xlu1 %8163  ;;  %v8177_v31 = vsub.f32 %v13212_v36, %v8161_v15 }
0x4499   :  { %v8178_v60 = vsub.f32 %v8094_v21, %v8164_v55 }
0x449a   :  { %v8188_v19 = vmul.f32 1.442695, %v8177_v31 }
0x449b   :  { %v8190_v8 = vmul.f32 1.442695, %v8178_v60 }
0x449c   :  { %v8167_v16 = vpop.xlane.xlu0 %8166  ;;  %v8170_v56 = vpop.xlane.xlu1 %8169 }
0x449d   :  { %11002 = vpow2.f32 %v8190_v8  ;;  %v8180_v40 = vsub.f32 %v8144_v26, %v8170_v56  ;;  %v8179_v12 = vsub.f32 %v13220_v41, %v8167_v16 }
0x449f   :  { %v8194_v51 = vmul.f32 1.442695, %v8180_v40  ;;  %v8192_v38 = vmul.f32 1.442695, %v8179_v12 }
0x44a0   :  { %v10549_v61 = vpop.permute.xlu1 %10548  ;;  %v8173_v4 = vpop.xlane.xlu0 %8172 }
0x44a1   :  { %v10551_v62 = vunpack.i.h.bf16 %v10549_v61  ;;  %v10550_v3 = vunpack.i.l.bf16 %v10549_v61  ;;  %11004 = vpow2.f32 %v8194_v51  ;;  %v8181_v7 = vsub.f32 %v8147_v22, %v8173_v4 }
0x44a2   :  { %11006 = vpow2.f32 %v8182_v5 }
0x44a3   :  { %v7947_v29 = vpack.c.bf16 %v10551_v62, %v10550_v3  ;;  %11008 = vpow2.f32 %v8188_v19  ;;  %v8196_v0 = vmul.f32 1.442695, %v8181_v7  ;;  %v8541_v19 = vsel %vm838_vm4, %v9166_v13, 0  ;;  %v9167_v7 = vld [vmem:[%s13373_s6 + $0x7c] sm:$0xf] }
0x44a4   :  { %v10554_v49 = vpop.permute.xlu0 %10553  ;;  %v10559_v20 = vpop.permute.xlu1 %10558  ;;  %11010 = vpow2.f32 %v8192_v38 }
0x44a5   :  { %v13241_v63 = vpop.eup %11000  ;;  %8291 = vrot.lane.b32.xlu1 %v7947_v29, %s11224_s25  ;;  %v10561_v28 = vunpack.i.h.bf16 %v10559_v20  ;;  %v10560_v45 = vunpack.i.l.bf16 %v10559_v20  ;;  %11012 = vpow2.f32 %v8196_v0  ;;  %v10556_v50 = vunpack.i.h.bf16 %v10554_v49 }
0x44a6   :  { %v8204_v9 = vsel %vm542_vm3, %v13241_v63, 0.0  ;;  %v10555_v26 = vunpack.i.l.bf16 %v10554_v49 }
0x44a7   :  { %8205 = vadd.xlane.f32.xlu0 %v8204_v9  ;;  %v7949_v35 = vpack.c.bf16 %v10561_v28, %v10560_v45  ;;  %v8588_v45 = vsel %vm838_vm4, %v9167_v7, 0 }
0x44a8   :  { %v8244_v25 = vpop.permute.xlu0 %8243  ;;  %v7948_v41 = vpack.c.bf16 %v10556_v50, %v10555_v26 }
0x44a9   :  { %10114 = vmatpush3.bf16.msra.mxu1 %v8244_v25  ;;  %v9165_v25 = vld [vmem:[%s13373_s6 + $0x74] sm:$0xf] }
0x44aa   :  { %v13246_v6 = vpop.eup %11002  ;;  %10125 = vmatprep.subr.bf16.mxu1 %v11229_v37 }
0x44ab   :  { %v8210_v11 = vsel %vm542_vm3, %v13246_v6, 0.0 }
0x44ac   :  { %8211 = vadd.xlane.f32.xlu0 %v8210_v11 }
0x44ae   :  { %v13251_v1 = vpop.eup %11004 }
0x44af   :  { %v8216_v2 = vsel %vm542_vm3, %v13251_v1, 0.0  ;;  %v11007_v10 = vpop.eup %11006 }
0x44b0   :  { %8217 = vadd.xlane.f32.xlu0 %v8216_v2  ;;  %v8198_v21 = vsel %vm542_vm3, %v11007_v10, 0.0  ;;  %v11009_v36 = vpop.eup %11008 }
0x44b1   :  { %v8207_v30 = vsel %vm542_vm3, %v11009_v36, 0.0  ;;  %v11011_v59 = vpop.eup %11010 }
0x44b2   :  { %v8213_v33 = vsel %vm542_vm3, %v11011_v59, 0.0  ;;  %v11013_v39 = vpop.eup %11012 }
0x44b3   :  { %v8219_v14 = vsel %vm542_vm3, %v11013_v39, 0.0 }
0x44c6   :  { %8387 = vrot.lane.b32.xlu0 %v7949_v35, %s11224_s25 }
0x44c9   :  { %8199 = vadd.xlane.f32.xlu1 %v8198_v21 }
0x44cd   :  { %8208 = vadd.xlane.f32.xlu1 %v8207_v30 }
0x44d1   :  { %8214 = vadd.xlane.f32.xlu1 %v8213_v33 }
0x44d5   :  { %8220 = vadd.xlane.f32.xlu1 %v8219_v14 }
0x44d9   :  { %v8203_v34 = vpop.xlane.xlu0 %8202 }
0x44da   :  { %11014 = vrcp.f32 %v8203_v34 }
0x44e6   :  { %8339 = vrot.lane.b32.xlu1 %v7948_v41, %s11224_s25 }
0x44e7   :  { %v11015_v18 = vpop.eup %11014 }
0x44e8   :  { %v8231_v54 = vmul.f32 %v11015_v18, %v13237_v17 }
0x4517   :  { %v8292_v48 = vpop.permute.xlu1 %8291 }
0x4518   :  { %10120 = vmatpush3.bf16.msra.mxu0 %v8292_v48 }
0x4519   :  { %10131 = vmatprep.subr.bf16.mxu0 %v11229_v37 }
0x4530   :  { %v8206_v47 = vpop.xlane.xlu0 %8205 }
0x4535   :  { %v8212_v24 = vpop.xlane.xlu0 %8211 }
0x4539   :  { %v8218_v23 = vpop.xlane.xlu0 %8217 }
0x453d   :  { %v8388_v40 = vpop.permute.xlu0 %8387 }
0x4552   :  { %v8200_v43 = vpop.xlane.xlu1 %8199 }
0x4553   :  { %11016 = vrcp.f32 %v8200_v43 }
0x4554   :  { %11018 = vrcp.f32 %v8206_v47 }
0x4556   :  { %v8209_v22 = vpop.xlane.xlu1 %8208 }
0x4557   :  { %11020 = vrcp.f32 %v8209_v22 }
0x4558   :  { %11022 = vrcp.f32 %v8212_v24 }
0x455a   :  { %v8215_v46 = vpop.xlane.xlu1 %8214 }
0x455b   :  { %11024 = vrcp.f32 %v8215_v46 }
0x455c   :  { %11026 = vrcp.f32 %v8218_v23 }
0x455e   :  { %v8221_v32 = vpop.xlane.xlu1 %8220 }
0x455f   :  { %11028 = vrcp.f32 %v8221_v32 }
0x4560   :  { %v11017_v57 = vpop.eup %11016 }
0x4561   :  { %v8230_v53 = vmul.f32 %v11017_v57, %v11007_v10  ;;  %v11019_v27 = vpop.eup %11018 }
0x4562   :  { %v8232_v15 = vmul.f32 %v11019_v27, %v13241_v63  ;;  %v8340_v60 = vpop.permute.xlu1 %8339  ;;  %v9164_v63 = vld [vmem:[%s13373_s6 + $0x70] sm:$0xf] }
0x4563   :  { %v8238_v58 = vpack.c.bf16 %v8231_v54, %v8230_v53  ;;  %v8447_v9 = vsel %vm838_vm4, %v9164_v63, 0 }
0x4564   :  { %v11021_v52 = vpop.eup %11020 }
0x4565   :  { %v8233_v55 = vmul.f32 %v11021_v52, %v11009_v36  ;;  %10116 = vmatmul.mubr.msk.bf16.vlgmr.msra.gmra.mxu1 %vm542_vm3, %v8238_v58  ;;  %v11023_v8 = vpop.eup %11022 }
0x4566   :  { %10126 = vmatpush3.bf16.msra.mxu1 %v8340_v60  ;;  %10127 = vmatprep.mubr.msk.bf16.mxu1 %vm11231_vm1, %v11229_v37  ;;  %v8234_v17 = vmul.f32 %v11023_v8, %v13246_v6  ;;  %v8494_v6 = vsel %vm838_vm4, %v9165_v25, 0  ;;  %v10652_v25 = vld [vmem:[#allocation11 + $0x78] sm:$0xff]  }
0x4567   :  { %v8239_v16 = vpack.c.bf16 %v8233_v55, %v8232_v15  ;;  %10137 = vmatprep.subr.bf16.mxu1 %v11229_v37 }
0x4568   :  { %v11025_v56 = vpop.eup %11024 }
0x4569   :  { %v8235_v51 = vmul.f32 %v11025_v56, %v11011_v59  ;;  %10122 = vmatmul.mubr.msk.bf16.vlgmr.msra.gmra.mxu0 %vm542_vm3, %v8239_v16  ;;  %v11027_v61 = vpop.eup %11026 }
0x456a   :  { %10132 = vmatpush3.bf16.msra.mxu0 %v8388_v40  ;;  %10133 = vmatprep.mubr.msk.bf16.mxu0 %vm11231_vm1, %v11229_v37  ;;  %v8236_v3 = vmul.f32 %v11027_v61, %v13251_v1 }
0x456b   :  { %v8240_v4 = vpack.c.bf16 %v8235_v51, %v8234_v17  ;;  %10143 = vmatprep.subr.bf16.mxu0 %v11229_v37 }
0x456c   :  { %v11029_v62 = vpop.eup %11028 }
0x456d   :  { %v8237_v29 = vmul.f32 %v11029_v62, %v11013_v39  ;;  %10128 = vmatmul.mubr.msk.bf16.vlgmr.msra.gmra.mxu1 %vm542_vm3, %v8240_v4 }
0x456e   :  { %10139 = vmatprep.mubr.msk.bf16.mxu1 %vm11231_vm1, %v11229_v37  ;;  %10138 = vmatpush3.bf16.msra.mxu1 %v8447_v9 }
0x456f   :  { %v8241_v49 = vpack.c.bf16 %v8237_v29, %v8236_v3  ;;  %10149 = vmatprep.subr.bf16.mxu1 %v11229_v37 }
0x4571   :  { %10134 = vmatmul.mubr.msk.bf16.vlgmr.msra.gmra.mxu0 %vm542_vm3, %v8241_v49 }
0x4572   :  { %10145 = vmatprep.mubr.msk.bf16.mxu0 %vm11231_vm1, %v11229_v37  ;;  %10144 = vmatpush3.bf16.msra.mxu0 %v8494_v6  ;;  %v10653_v6 = vld [vmem:[#allocation11 + $0x70] sm:$0xff]  }
0x4573   :  { %10155 = vmatprep.subr.bf16.mxu0 %v11229_v37 }
0x4625   :  { %v8283_v11 = vpop.f32.mrf.mxu1 }
0x4627   :  { %v10117_v1 = vpop.f32.mrf.mxu1 }
0x4629   :  { %v8286_v2 = vpop.f32.mrf.mxu1  ;;  %v8331_v5 = vpop.f32.mrf.mxu0 }
0x462a   :  { %v8434_v31 = vpack.c.bf16 %v8286_v2, %v8283_v11 }
0x462b   :  { %v10118_v12 = vpop.f32.mrf.mxu1  ;;  %v10123_v38 = vpop.f32.mrf.mxu0 }
0x462c   :  { %10140 = vmatmul.mubr.msk.bf16.vlgmr.msra.gmra.mxu1 %vm344_vm2, %v8434_v31  ;;  %v9172_v38 = vld [vmem:[#allocation10 + $0x7] ss:$0 sm:$0xff] }
0x462d   :  { %v8334_v20 = vpop.f32.mrf.mxu0  ;;  %v8379_v0 = vpop.f32.mrf.mxu1  ;;  %10150 = vmatpush3.bf16.msra.mxu1 %v8541_v19  ;;  %10151 = vmatprep.mubr.msk.bf16.mxu1 %vm11231_vm1, %v11229_v37 }
0x462e   :  { %v8435_v28 = vpack.c.bf16 %v8334_v20, %v8331_v5  ;;  %10161 = vmatprep.subr.bf16.mxu1 %v11229_v37 }
0x462f   :  { %v10124_v10 = vpop.f32.mrf.mxu0  ;;  %v10129_v35 = vpop.f32.mrf.mxu1 }
0x4630   :  { %10146 = vmatmul.mubr.msk.bf16.vlgmr.msra.gmra.mxu0 %vm344_vm2, %v8435_v28  ;;  %v10655_v10 = vld [vmem:[%s13376_s9 + $0xf0] sm:$0xff]   ;;  %v10656_v35 = vld [vmem:[%s13376_s9 + $0xe8] sm:$0xff]  }
0x4631   :  { %v8382_v21 = vpop.f32.mrf.mxu1  ;;  %v8427_v36 = vpop.f32.mrf.mxu0  ;;  %10156 = vmatpush3.bf16.msra.mxu0 %v8588_v45  ;;  %10157 = vmatprep.mubr.msk.bf16.mxu0 %vm11231_vm1, %v11229_v37  ;;  %v10654_v45 = vld [vmem:[%s13376_s9 + $0xf8] sm:$0xff]  }
0x4632   :  { %v8436_v30 = vpack.c.bf16 %v8382_v21, %v8379_v0  ;;  %10169 = vmatprep.subr.bf16.mxu0 %v11229_v37  ;;  %v10657_v21 = vld [vmem:[%s13376_s9 + $0xe0] sm:$0xff]   ;;  %s11234_s9 = smov [#allocation13]  }
0x4633   :  { %v10130_v59 = vpop.f32.mrf.mxu1  ;;  %v10135_v33 = vpop.f32.mrf.mxu0 }
0x4634   :  { %10152 = vmatmul.mubr.msk.bf16.vlgmr.msra.gmra.mxu1 %vm344_vm2, %v8436_v30 }
0x4635   :  { %v8430_v39 = vpop.f32.mrf.mxu0  ;;  %10165 = vmatprep.mubr.msk.bf16.mxu1 %vm11231_vm1, %v11229_v37  ;;  %10162 = vmatpush3.bf16.msra.mxu1 %v10652_v25 }
0x4636   :  { %v8437_v14 = vpack.c.bf16 %v8430_v39, %v8427_v36  ;;  %10163 = vmatprep.subr.bf16.mxu1 %v11229_v37 }
0x4637   :  { %v10136_v50 = vpop.f32.mrf.mxu0 }
0x4638   :  { %10158 = vmatmul.mubr.msk.bf16.vlgmr.msra.gmra.mxu0 %vm344_vm2, %v8437_v14 }
0x4639   :  { %10177 = vmatprep.mubr.msk.bf16.mxu0 %vm11231_vm1, %v11229_v37  ;;  %10164 = vmatpush3.bf16.msra.mxu1 %v10653_v6 }
0x463a   :  { %10170 = vmatpush3.bf16.msra.mxu0 %v10654_v45 }
0x463b   :  { %10171 = vmatprep.subr.bf16.mxu0 %v11229_v37 }
0x463e   :  { %10172 = vmatpush3.bf16.msra.mxu0 %v10655_v10 }
0x463f   :  { %10173 = vmatprep.subr.bf16.mxu0 %v11229_v37 }
0x4642   :  { %10174 = vmatpush3.bf16.msra.mxu0 %v10656_v35 }
0x4643   :  { %10175 = vmatprep.subr.bf16.mxu0 %v11229_v37 }
0x4646   :  { %10176 = vmatpush3.bf16.msra.mxu0 %v10657_v21 }
0x46ec   :  { %v8483_v26 = vpop.f32.mrf.mxu1 }
0x46ed   :  { %v8631_v46 = vsel %vm129_vm0, %v8483_v26, 0.0 }
0x46ee   :  { %v10141_v41 = vpop.f32.mrf.mxu1 }
0x46f0   :  { %v8486_v48 = vpop.f32.mrf.mxu1  ;;  %v8530_v34 = vpop.f32.mrf.mxu0 }
0x46f1   :  { %v8632_v24 = vsel %vm129_vm0, %v8530_v34, 0.0  ;;  %v8638_v15 = vsel %vm129_vm0, %v8486_v48, 0.0 }
0x46f2   :  { %v10142_v47 = vpop.f32.mrf.mxu1  ;;  %v10147_v43 = vpop.f32.mrf.mxu0  ;;  %v8633_v32 = vadd.f32 %v8632_v24, %v8631_v46 }
0x46f4   :  { %v8533_v22 = vpop.f32.mrf.mxu0  ;;  %v8577_v23 = vpop.f32.mrf.mxu1 }
0x46f5   :  { %v8634_v18 = vsel %vm129_vm0, %v8577_v23, 0.0  ;;  %v8639_v53 = vsel %vm129_vm0, %v8533_v22, 0.0 }
0x46f6   :  { %v10148_v57 = vpop.f32.mrf.mxu0  ;;  %v10153_v54 = vpop.f32.mrf.mxu1  ;;  %v8635_v27 = vadd.f32 %v8634_v18, %v8633_v32  ;;  %v8640_v8 = vadd.f32 %v8639_v53, %v8638_v15 }
0x46f8   :  { %v8580_v58 = vpop.f32.mrf.mxu1  ;;  %v8624_v52 = vpop.f32.mrf.mxu0 }
0x46f9   :  { %v8641_v55 = vsel %vm129_vm0, %v8580_v58, 0.0  ;;  %v8636_v60 = vsel %vm129_vm0, %v8624_v52, 0.0 }
0x46fa   :  { %v8637_v16 = vadd.f32 %v8636_v60, %v8635_v27  ;;  %v10154_v56 = vpop.f32.mrf.mxu1  ;;  %v10159_v17 = vpop.f32.mrf.mxu0  ;;  %v8642_v40 = vadd.f32 %v8641_v55, %v8640_v8 }
0x46fc   :  { %v13323_v51 = vadd.f32 %v8637_v16, %v13117_v42  ;;  %v8627_v61 = vpop.f32.mrf.mxu0 }
0x46fd   :  { %v8643_v4 = vsel %vm129_vm0, %v8627_v61, 0.0 }
0x46fe   :  { %v8644_v62 = vadd.f32 %v8643_v4, %v8642_v40  ;;  %v10160_v3 = vpop.f32.mrf.mxu0  ;;  %v8647_v29 = vmul.f32 %v13323_v51, %v13323_v51 }
0x4700   :  { %v13329_v49 = vadd.f32 %v8644_v62, %v13122_v44  ;;  %v8649_v63 = vsel %vm129_vm0, %v8647_v29, 0.0 }
0x4701   :  { %8650 = vadd.xlane.f32.xlu1 %v8649_v63 }
0x4702   :  { %v8648_v9 = vmul.f32 %v13329_v49, %v13329_v49 }
0x4704   :  { %v8652_v42 = vsel %vm129_vm0, %v8648_v9, 0.0 }
0x4705   :  { %8653 = vadd.xlane.f32.xlu0 %v8652_v42 }
0x478a   :  { %v8651_v11 = vpop.xlane.xlu1 %8650 }
0x478b   :  { %v8655_v1 = vmul.f32 0.03125, %v8651_v11 }
0x478d   :  { %v8657_v13 = vadd.f32 1e-06, %v8655_v1 }
0x478e   :  { %v8654_v44 = vpop.xlane.xlu0 %8653 }
0x478f   :  { %11030 = vrsqrt.f32 %v8657_v13  ;;  %v8656_v2 = vmul.f32 0.03125, %v8654_v44 }
0x4791   :  { %v8658_v5 = vadd.f32 1e-06, %v8656_v2 }
0x4793   :  { %11032 = vrsqrt.f32 %v8658_v5 }
0x479c   :  { %v11031_v31 = vpop.eup %11030 }
0x479d   :  { %v8661_v19 = vmul.f32 %v11031_v31, %v13323_v51 }
0x479f   :  { %v8671_v20 = vmul.f32 %v9172_v38, %v8661_v19 }
0x47a0   :  { %v11033_v12 = vpop.eup %11032 }
0x47a1   :  { %v8662_v7 = vmul.f32 %v11033_v12, %v13329_v49 }
0x47a3   :  { %v8672_v0 = vmul.f32 %v9172_v38, %v8662_v7 }
0x47a5   :  { %v8673_v28 = vpack.c.bf16 %v8672_v0, %v8671_v20 }
0x47a7   :  { %10166 = vmatmul.mubr.msk.bf16.vlgmr.msra.gmra.mxu1 %vm129_vm0, %v8673_v28 }
0x4867   :  { %v8728_v36 = vpop.f32.mrf.mxu1 }
0x4868   :  { %8751 = vrot.lane.b32.xlu0 %v8728_v36, %s11224_s25  ;;  %v8735_v39 = vsub.f32 0.0, %v8728_v36 }
0x4869   :  { %v10167_v30 = vpop.f32.mrf.mxu1 }
0x486a   :  { %v8737_v50 = vmul.f32 1.442695, %v8735_v39 }
0x486b   :  { %v8731_v59 = vpop.f32.mrf.mxu1 }
0x486c   :  { %8753 = vrot.lane.b32.xlu1 %v8731_v59, %s11224_s25  ;;  %v8736_v14 = vsub.f32 0.0, %v8731_v59  ;;  %11034 = vpow2.f32 %v8737_v50  ;;  %s8846_s25 = sshll.u32 %s11234_s9, 4  ;;  %s8847_s25 = int_to_ptr.vmem [resolvable:$true] %s8846_s25 }
0x486d   :  { %v10168_v33 = vpop.f32.mrf.mxu1  ;;  %s11184_s8 = scalar_lea.vmem %s8847_s25, 256  ;;  %p11189_p3 = scmp.lt.s32.totalorder %s8847_s25, %s8847_s25 }
0x486e   :  { %v8739_v26 = vmul.f32 1.442695, %v8736_v14  ;;  %p11185_p2 = scmp.ne.s32.totalorder %s8847_s25, %s11184_s8  ;;  %p11190_p4 = scmp.lt.s32.totalorder %s11184_s8, %s11184_s8 }
0x4870   :  { %11036 = vpow2.f32 %v8739_v26  ;;  %p11191_p5 = por %p11190_p4, %p11189_p3 }
0x4872   :  { %p11192_p6 = pnand %p11191_p5, %p11185_p2 }
0x4879   :  { %v11035_v37 = vpop.eup %11034 }
0x487a   :  { %v8741_v48 = vadd.f32 1.0, %v11035_v37 }
0x487c   :  { %11038 = vrcp.f32 %v8741_v48 }
0x487d   :  { %v11037_v41 = vpop.eup %11036 }
0x487e   :  { %v8742_v34 = vadd.f32 1.0, %v11037_v41 }
0x4880   :  { %11040 = vrcp.f32 %v8742_v34 }
0x4889   :  { %v11039_v47 = vpop.eup %11038 }
0x488a   :  { %v8747_v22 = vmul.f32 %v11039_v47, %v8728_v36 }
0x488d   :  { %v11041_v43 = vpop.eup %11040 }
0x488e   :  { %v8748_v23 = vmul.f32 %v11041_v43, %v8731_v59 }
0x48da   :  { %v8752_v24 = vpop.permute.xlu0 %8751 }
0x48db   :  { %v8757_v18 = vmul.f32 %v8752_v24, %v8747_v22 }
0x48de   :  { %v8754_v46 = vpop.permute.xlu1 %8753 }
0x48df   :  { %v8758_v32 = vmul.f32 %v8754_v46, %v8748_v23 }
0x48e1   :  { %v8759_v57 = vpack.c.bf16 %v8758_v32, %v8757_v18 }
0x48e3   :  { %10178 = vmatmul.mubr.msk.bf16.vlgmr.msra.gmra.mxu0 %vm1183_vm5, %v8759_v57 }
0x49a3   :  { %v8830_v54 = vpop.f32.mrf.mxu0 }
0x49a4   :  { %v8837_v53 = vadd.f32 %v8830_v54, %v13323_v51 }
0x49a5   :  { %v10179_v27 = vpop.f32.mrf.mxu0 }
0x49a6   :  { %8839 = vst.msk [vmem:[#allocation13] sm:$0xff] %vm129_vm0, %v8837_v53 }
0x49a7   :  { %v8833_v58 = vpop.f32.mrf.mxu0 }
0x49a8   :  { %v8838_v52 = vadd.f32 %v8833_v58, %v13329_v49 }
0x49a9   :  { %v10180_v15 = vpop.f32.mrf.mxu0 }
0x49aa   :  { %8840 = vst.msk [vmem:[#allocation13 + $0x8] sm:$0xff] %vm129_vm0, %v8838_v52 }
0x49ab   :  { %11195 = shalt.err (!%p11192_p6)
}
0x49ac   :  { %8852 = dma.vmem_to_hbm [thread:$0]  %s8847_s25, 256, %s13377_s10, [#allocation4], %s11216_s18, %s11216_s18, %s11217_s19  }
0x49ad   :  { %11212 = dma.done.wait [#allocation4], 256  }
0x49ae   :  { %11213 = vsyncadd [#allocation4], 4294967040 }
0x49af   :  { %8856 = vsyncpa [#allocation3], 1 }
0x49b0   :  { %8857 = vsyncpa [#allocation6], 1 }
0x49b1   :  { %8858 = vsyncpa [#allocation9], 1 }
0x49b2   :  { %8859 = vsyncpa [#allocation12], 1 }
0x49b3   :  { %8860 = vsyncpa [#allocation4], 1 }

</bundles_post_ra>
